<compile_context>
chip_gen: v5e
topology: v5e:2x2
jax: 0.10.0
libtpu: 0.0.40
codegen_flags: <defaults>
</compile_context>

<pallas_src>
import functools

import numpy as np

import jax
import jax.numpy as jnp
from jax.experimental import pallas as pl
from jax.experimental.pallas import tpu as pltpu

EPS = 1e-5  # PyTorch BatchNorm2d default eps

_COMPILER_PARAMS = pltpu.CompilerParams(vmem_limit_bytes=32 * 1024 * 1024)


def _round_up(x, m):
    return ((x + m - 1) // m) * m


# ---------------------------------------------------------------------------
# Kernel 1: fused Linear -> bias -> ReLU  (lane-dense (B, out_dim) output)
# ---------------------------------------------------------------------------
def _fc_relu_kernel(z_ref, w_ref, b_ref, o_ref):
    acc = jnp.dot(z_ref[...], w_ref[...], preferred_element_type=jnp.float32)
    o_ref[...] = jnp.maximum(acc + b_ref[...], 0.0)


def fc_relu(z, w_t, b_row):
    m, k = z.shape
    k2, n = w_t.shape
    assert k == k2
    return pl.pallas_call(
        _fc_relu_kernel,
        out_shape=jax.ShapeDtypeStruct((m, n), jnp.float32),
        grid=(1,),
        in_specs=[
            pl.BlockSpec((m, k), lambda i: (0, 0)),
            pl.BlockSpec((k, n), lambda i: (0, 0)),
            pl.BlockSpec((1, n), lambda i: (0, 0)),
        ],
        out_specs=pl.BlockSpec((m, n), lambda i: (0, 0)),
        compiler_params=_COMPILER_PARAMS,
    )(z, w_t, b_row)


# ---------------------------------------------------------------------------
# Kernel 2: fused sub-pixel ConvTranspose2d(k=4,s=2,p=1) -> BatchNorm -> ReLU
#
# Input layout : x_ref (Cin, S + mp_pad + S), channels-first, flattened over
#                the zero-padded (H+2, W+2) spatial grid per image (batch
#                major), zero-padded on the lane axis up to mp_pad (a multiple
#                of 128) and with S = W+3 lanes of zero slack on both ends so
#                every tap offset is a plain in-bounds static lane slice.
# Weight layout: w_ref (4*Cout, 9*Cin), block row p = ry*2+rx (output parity),
#                block col q = (oy+1)*3 + (ox+1) (tap offset); zero blocks for
#                taps a parity does not touch.
# Output layout: o_ref (4*Cout, mp_pad): the 4 parity planes stacked along
#                sublanes, computed on the padded grid, with border / lane-pad
#                positions forced to exactly zero so the next layer can reuse
#                them as its zero padding.
# ---------------------------------------------------------------------------
def _deconv_bn_relu_kernel(x_ref, w_ref, g_ref, b_ref, m_ref, o_ref, *,
                           n_img, h_in, w_in, slack, mp_pad, use_bn, use_relu):
    wp2 = w_in + 2
    mask = m_ref[...]                                   # (1, mp_pad)
    cout4 = o_ref.shape[0]
    cout = cout4 // 4

    # 9 unique tap slices (hoisted), K-stacked into one (9*Cin, mp_pad) operand.
    taps = []
    for oy in (-1, 0, 1):
        for ox in (-1, 0, 1):
            off = oy * wp2 + ox
            taps.append(x_ref[:, pl.ds(slack + off, mp_pad)])
    x_stack = jnp.concatenate(taps, axis=0)

    # One MXU matmul per layer: all 4 output parities stacked along M.
    acc = jnp.dot(w_ref[...], x_stack,
                  preferred_element_type=jnp.float32)   # (4*Cout, mp_pad)

    if use_bn:
        # Training-mode BatchNorm2d batch statistics over all N*(2H)*(2W)
        # valid output positions (the 4 parity planes together), biased var.
        # One pass: var = E[x^2] - mean^2, reusing the masked activations.
        cnt = 4.0 * n_img * h_in * w_in
        am = acc * mask
        s1 = jnp.sum(am, axis=1, keepdims=True)         # (4*Cout, 1)
        s2 = jnp.sum(am * am, axis=1, keepdims=True)    # (4*Cout, 1)
        s1c = s1[0:cout] + s1[cout:2 * cout] + s1[2 * cout:3 * cout] + s1[3 * cout:4 * cout]
        s2c = s2[0:cout] + s2[cout:2 * cout] + s2[2 * cout:3 * cout] + s2[3 * cout:4 * cout]
        mean = s1c * (1.0 / cnt)
        var = s2c * (1.0 / cnt) - mean * mean
        inv = jax.lax.rsqrt(var + EPS)
        mean4 = jnp.concatenate([mean, mean, mean, mean], axis=0)
        inv4 = jnp.concatenate([inv, inv, inv, inv], axis=0)
        acc = (acc - mean4) * inv4

    out = acc * g_ref[...] + b_ref[...]
    if use_relu:
        out = jnp.maximum(out, 0.0)
    o_ref[...] = (out * mask).astype(o_ref.dtype)


def deconv_bn_relu(x_flat, w_stacked, gamma4, beta4, mask_row, *,
                   n_img, h_in, w_in, use_bn, use_relu):
    cin, total = x_flat.shape
    cout4, kdim = w_stacked.shape
    assert kdim == 9 * cin
    slack = w_in + 3
    mp_pad = total - 2 * slack
    assert mp_pad % 128 == 0
    assert mask_row.shape == (1, mp_pad)
    kern = functools.partial(_deconv_bn_relu_kernel, n_img=n_img, h_in=h_in,
                             w_in=w_in, slack=slack, mp_pad=mp_pad,
                             use_bn=use_bn, use_relu=use_relu)
    return pl.pallas_call(
        kern,
        out_shape=jax.ShapeDtypeStruct((cout4, mp_pad), jnp.float32),
        grid=(1,),
        in_specs=[
            pl.BlockSpec((cin, total), lambda i: (0, 0)),
            pl.BlockSpec((cout4, kdim), lambda i: (0, 0)),
            pl.BlockSpec((cout4, 1), lambda i: (0, 0)),
            pl.BlockSpec((cout4, 1), lambda i: (0, 0)),
            pl.BlockSpec((1, mp_pad), lambda i: (0, 0)),
        ],
        out_specs=pl.BlockSpec((cout4, mp_pad), lambda i: (0, 0)),
        compiler_params=_COMPILER_PARAMS,
    )(x_flat, w_stacked, gamma4, beta4, mask_row)


# ---------------------------------------------------------------------------
# Glue helpers (pure layout plumbing; masks are compile-time constants)
# ---------------------------------------------------------------------------
def _interior_mask(n_img, h, w):
    """(1, mp_pad) f32 mask: 1 at interior (valid) grid positions, 0 at the
    padded-grid border and at the 128-lane alignment padding."""
    hp, wp = h + 2, w + 2
    rows = np.arange(hp * wp) // wp
    cols = np.arange(hp * wp) % wp
    m = ((rows >= 1) & (rows <= h) & (cols >= 1) & (cols <= w)).astype(np.float32)
    m = np.tile(m, n_img)
    mp_pad = _round_up(m.size, 128)
    m = np.pad(m, (0, mp_pad - m.size))
    return jnp.asarray(m[None, :])


def _interleave_and_pad(y, n_img, h, w):
    """Pixel-shuffle the 4 parity planes (stacked along sublanes) into the
    next layer's padded, flat, channels-first input.  One XLA transpose +
    slices + pad; reshapes are free."""
    cout = y.shape[0] // 4
    hp, wp = h + 2, w + 2
    mp = n_img * hp * wp
    y6 = y[:, :mp].reshape(2, 2, cout, n_img, hp, wp)
    t = jnp.transpose(y6, (2, 3, 4, 0, 5, 1))           # (C, N, hp, 2, wp, 2)
    full = t.reshape(cout, n_img, 2 * hp, 2 * wp)
    core = full[:, :, 1:2 * h + 3, 1:2 * w + 3]         # next input, padded by 1
    hn, wn = 2 * h, 2 * w
    mp_next = n_img * (hn + 2) * (wn + 2)
    mp_next_pad = _round_up(mp_next, 128)
    slack = wn + 3
    flat = core.reshape(cout, mp_next)
    flat = jnp.pad(flat, ((0, 0), (slack, slack + mp_next_pad - mp_next)))
    return flat, hn, wn


# ---------------------------------------------------------------------------
# Decoder forward (input_width = input_height = 48 -> paddings [1,1,1,1])
# ---------------------------------------------------------------------------
def decoder_forward(z, params, *, input_width=48, input_height=48,
                    input_channels=3, num_filters=16):
    # TODO(synk): only the 48x48 geometry (paddings [1,1,1,1]) is lowered; the
    # 84x84 variant (padding 0 on conv2) needs a different sub-pixel geometry.
    assert input_width == 48 and input_height == 48
    b = z.shape[0]
    nf = num_filters
    h0, w0 = input_height // 16, input_width // 16               # 3, 3

    # Linear(repr, conv_output_dim) + ReLU
    h = fc_relu(z, params["fc_wT"], params["fc_b"])              # (B, 1152)

    # Unflatten -> channels-first, pad spatially by 1, flatten (batch-major),
    # pad the lane axis to a 128 multiple and add slack lanes for tap slicing.
    x = h.reshape(b, nf * 8, h0, w0)
    x = jnp.transpose(x, (1, 0, 2, 3))                           # (C, B, 3, 3)
    x = jnp.pad(x, ((0, 0), (0, 0), (1, 1), (1, 1)))
    mp = b * (h0 + 2) * (w0 + 2)
    mp_pad = _round_up(mp, 128)
    slack = w0 + 3
    x = x.reshape(nf * 8, mp)
    x = jnp.pad(x, ((0, 0), (slack, slack + mp_pad - mp)))

    hh, ww = h0, w0
    for name in ("4", "3", "2"):
        y = deconv_bn_relu(x, params["conv" + name + "_w4"],
                           params["bn" + name + "_g4"],
                           params["bn" + name + "_b4"],
                           _interior_mask(b, hh, ww),
                           n_img=b, h_in=hh, w_in=ww,
                           use_bn=True, use_relu=True)
        x, hh, ww = _interleave_and_pad(y, b, hh, ww)

    # Final ConvTranspose2d: no BN, no ReLU, no bias (use_bias_for_conv=False).
    cout = 2 * input_channels
    y = deconv_bn_relu(x, params["conv1_w4"],
                       jnp.ones((4 * cout, 1), jnp.float32),
                       jnp.zeros((4 * cout, 1), jnp.float32),
                       _interior_mask(b, hh, ww),
                       n_img=b, h_in=hh, w_in=ww,
                       use_bn=False, use_relu=False)

    # Final pixel-shuffle straight to NCHW.
    hp, wp = hh + 2, ww + 2
    mp = b * hp * wp
    y6 = y[:, :mp].reshape(2, 2, cout, b, hp, wp)
    t = jnp.transpose(y6, (3, 2, 4, 0, 5, 1))                    # (B,C,hp,2,wp,2)
    full = t.reshape(b, cout, 2 * hp, 2 * wp)
    out = full[:, :, 2:2 + 2 * hh, 2:2 + 2 * ww]                 # (B, 2*Cimg, 48, 48)
    return out[:, :input_channels], out[:, input_channels:]


# ---------------------------------------------------------------------------
# Parameter creation (PyTorch layouts) and one-time re-layout (outside jit)
# ---------------------------------------------------------------------------
def init_params(key, *, repr_size=64, input_channels=3, num_filters=16,
                input_width=48, input_height=48):
    nf = num_filters
    conv_output_dim = nf * 8 * (input_width // 16) * (input_height // 16)
    ks = jax.random.split(key, 12)

    def w(k, shape, scale=0.05):
        return (scale * jax.random.normal(k, shape)).astype(jnp.float32)

    return {
        # nn.Linear weight layout: (out_features, in_features)
        "fc_w": w(ks[0], (conv_output_dim, repr_size)),
        "fc_b": w(ks[1], (conv_output_dim,)),
        # nn.ConvTranspose2d weight layout: (Cin, Cout, K, K), bias=False
        "conv4_w": w(ks[2], (nf * 8, nf * 4, 4, 4)),
        "conv3_w": w(ks[3], (nf * 4, nf * 2, 4, 4)),
        "conv2_w": w(ks[4], (nf * 2, nf, 4, 4)),
        "conv1_w": w(ks[5], (nf, input_channels * 2, 4, 4)),
        # BatchNorm2d affine params
        "bn4_g": (1.0 + 0.1 * jax.random.normal(ks[6], (nf * 4,))).astype(jnp.float32),
        "bn4_b": w(ks[7], (nf * 4,), 0.1),
        "bn3_g": (1.0 + 0.1 * jax.random.normal(ks[8], (nf * 2,))).astype(jnp.float32),
        "bn3_b": w(ks[9], (nf * 2,), 0.1),
        "bn2_g": (1.0 + 0.1 * jax.random.normal(ks[10], (nf,))).astype(jnp.float32),
        "bn2_b": w(ks[11], (nf,), 0.1),
    }


def _prep_deconv_stacked(w_pt):
    """(Cin, Cout, 4, 4) PyTorch ConvTranspose2d weight -> (4*Cout, 9*Cin)
    block-structured sub-pixel weight: block row p = ry*2+rx (output parity),
    block col q = (oy+1)*3 + (ox+1) (tap offset), zero blocks where a parity
    does not use a tap."""
    cin, cout = w_pt.shape[0], w_pt.shape[1]
    rows = []
    for ry in range(2):
        for rx in range(2):
            cols = []
            for oy in (-1, 0, 1):
                for ox in (-1, 0, 1):
                    dy, dx = oy - ry + 1, ox - rx + 1
                    if dy in (0, 1) and dx in (0, 1):
                        blk = jnp.transpose(
                            w_pt[:, :, 3 - ry - 2 * dy, 3 - rx - 2 * dx])
                    else:
                        blk = jnp.zeros((cout, cin), w_pt.dtype)
                    cols.append(blk)
            rows.append(jnp.concatenate(cols, axis=1))              # (Cout, 9*Cin)
    return jnp.concatenate(rows, axis=0)                            # (4*Cout, 9*Cin)


def prepare_params(raw):
    """One-time weight re-layout, done outside the jitted forward."""
    p = {
        "fc_wT": jnp.transpose(raw["fc_w"]),
        "fc_b": raw["fc_b"].reshape(1, -1),
    }
    for name in ("conv4", "conv3", "conv2", "conv1"):
        p[name + "_w4"] = _prep_deconv_stacked(raw[name + "_w"])
    for name in ("bn4", "bn3", "bn2"):
        p[name + "_g4"] = jnp.tile(raw[name + "_g"].reshape(-1, 1), (4, 1))
        p[name + "_b4"] = jnp.tile(raw[name + "_b"].reshape(-1, 1), (4, 1))
    return p


# ---------------------------------------------------------------------------
# Pure-JAX reference (direct dilate+pad+correlate lowering) for self-checking
# ---------------------------------------------------------------------------
def _ref_conv_transpose(x, w, stride=2, padding=1):
    n, cin, hh, ww = x.shape
    _, cout, k, _ = w.shape
    hd, wd = (hh - 1) * stride + 1, (ww - 1) * stride + 1
    xd = jnp.zeros((n, cin, hd, wd), x.dtype).at[:, :, ::stride, ::stride].set(x)
    pe = k - 1 - padding
    xp = jnp.pad(xd, ((0, 0), (0, 0), (pe, pe), (pe, pe)))
    wf = w[:, :, ::-1, ::-1]
    ho, wo = hd + 2 * pe - k + 1, wd + 2 * pe - k + 1
    out = jnp.zeros((n, cout, ho, wo), jnp.float32)
    for ky in range(k):
        for kx in range(k):
            out = out + jnp.einsum("nchw,cd->ndhw",
                                   xp[:, :, ky:ky + ho, kx:kx + wo],
                                   wf[:, :, ky, kx],
                                   precision=jax.lax.Precision.HIGHEST)
    return out


def _ref_bn_relu(x, g, b):
    mean = jnp.mean(x, axis=(0, 2, 3), keepdims=True)
    var = jnp.mean(jnp.square(x - mean), axis=(0, 2, 3), keepdims=True)
    y = (x - mean) * jax.lax.rsqrt(var + EPS)
    return jnp.maximum(y * g.reshape(1, -1, 1, 1) + b.reshape(1, -1, 1, 1), 0.0)


def reference_forward(z, raw, *, input_channels=3, num_filters=16,
                      input_width=48, input_height=48):
    nf = num_filters
    h = jnp.maximum(jnp.dot(z, raw["fc_w"].T,
                            precision=jax.lax.Precision.HIGHEST) + raw["fc_b"], 0.0)
    h = h.reshape(-1, nf * 8, input_width // 16, input_height // 16)
    h = _ref_bn_relu(_ref_conv_transpose(h, raw["conv4_w"]), raw["bn4_g"], raw["bn4_b"])
    h = _ref_bn_relu(_ref_conv_transpose(h, raw["conv3_w"]), raw["bn3_g"], raw["bn3_b"])
    h = _ref_bn_relu(_ref_conv_transpose(h, raw["conv2_w"]), raw["bn2_g"], raw["bn2_b"])
    out = _ref_conv_transpose(h, raw["conv1_w"])
    return out[:, :input_channels], out[:, input_channels:]


if __name__ == "__main__":
    key = jax.random.PRNGKey(0)
    kz, kp = jax.random.split(key)

    B, REPR = 2, 64
    z = jax.random.normal(kz, (B, REPR), dtype=jnp.float32)
    raw = init_params(kp)
    params = prepare_params(raw)

    fwd = jax.jit(functools.partial(decoder_forward,
                                    input_width=48, input_height=48,
                                    input_channels=3, num_filters=16))
    mu, logvar = fwd(z, params)
    jax.block_until_ready((mu, logvar))

    assert mu.shape == (B, 3, 48, 48), mu.shape
    assert logvar.shape == (B, 3, 48, 48), logvar.shape
    assert mu.dtype == jnp.float32 and logvar.dtype == jnp.float32
    assert bool(jnp.all(jnp.isfinite(mu))) and bool(jnp.all(jnp.isfinite(logvar)))

    # Numerical self-check against the direct (dilate + pad + correlate) lowering.
    mu_r, lv_r = jax.jit(reference_forward)(z, raw)
    jax.block_until_ready((mu_r, lv_r))
    err = max(float(jnp.max(jnp.abs(mu - mu_r))),
              float(jnp.max(jnp.abs(logvar - lv_r))))
    assert err < 2e-2, f"mismatch vs reference: max abs err = {err}"

    print("KERNEL_OK")
</pallas_src>

<mosaic_0001>
module attributes {stable_mosaic.version = 11 : i64} {
  func.func @_fc_relu_kernel(%arg0: i32, %arg1: memref<2x64xf32, #tpu.memory_space<vmem>>, %arg2: memref<64x1152xf32, #tpu.memory_space<vmem>>, %arg3: memref<1x1152xf32, #tpu.memory_space<vmem>>, %arg4: memref<2x1152xf32, #tpu.memory_space<vmem>>) attributes {dimension_semantics = [#tpu.dimension_semantics<arbitrary>], iteration_bounds = array<i64: 1>, scalar_prefetch = 0 : i64, scratch_operands = 0 : i64, tpu.core_type = #tpu.core_type<tc>, window_params = [{pipeline_mode = #tpu.pipeline_mode<synchronous>, transform_indices = @transform_0, window_bounds = array<i64: 2, 64>}, {pipeline_mode = #tpu.pipeline_mode<synchronous>, transform_indices = @transform_1, window_bounds = array<i64: 64, 1152>}, {pipeline_mode = #tpu.pipeline_mode<synchronous>, transform_indices = @transform_2, window_bounds = array<i64: 1, 1152>}, {pipeline_mode = #tpu.pipeline_mode<synchronous>, transform_indices = @transform_3, window_bounds = array<i64: 2, 1152>}]} {
    %c0 = arith.constant 0 : index
    %c0_0 = arith.constant 0 : index
    %0 = vector.load %arg1[%c0, %c0_0] : memref<2x64xf32, #tpu.memory_space<vmem>>, vector<2x64xf32>
    %c0_1 = arith.constant 0 : index
    %c0_2 = arith.constant 0 : index
    %1 = vector.load %arg2[%c0_1, %c0_2] : memref<64x1152xf32, #tpu.memory_space<vmem>>, vector<64x1152xf32>
    %cst = arith.constant dense<0.000000e+00> : vector<2x1152xf32>
    %2 = tpu.matmul %0, %1, %cst {dimension_numbers = #tpu.dot_dimension_numbers<[1], [0], [0], [1], [0, 0, 1, 1], [], []>} : vector<2x64xf32>, vector<64x1152xf32>, vector<2x1152xf32> -> vector<2x1152xf32>
    %c0_3 = arith.constant 0 : index
    %c0_4 = arith.constant 0 : index
    %3 = vector.load %arg3[%c0_3, %c0_4] : memref<1x1152xf32, #tpu.memory_space<vmem>>, vector<1x1152xf32>
    %4 = vector.broadcast %3 : vector<1x1152xf32> to vector<2x1152xf32>
    %5 = arith.addf %2, %4 : vector<2x1152xf32>
    %cst_5 = arith.constant 0.000000e+00 : f32
    %6 = vector.broadcast %cst_5 : f32 to vector<2x1152xf32>
    %7 = arith.maximumf %5, %6 : vector<2x1152xf32>
    %c0_6 = arith.constant 0 : index
    %c0_7 = arith.constant 0 : index
    %8 = vector.load %arg4[%c0_6, %c0_7] : memref<2x1152xf32, #tpu.memory_space<vmem>>, vector<2x1152xf32>
    tpu.vector_store %arg4[%c0_6, %c0_7], %7 {strides = array<i32>} : memref<2x1152xf32, #tpu.memory_space<vmem>>, vector<2x1152xf32>,
    return
  }
  func.func @transform_0(%arg0: i32) -> (i32, i32) {
    %c0_i32 = arith.constant 0 : i32
    %c0_i32_0 = arith.constant 0 : i32
    %c0_i32_1 = arith.constant 0 : i32
    return %c0_i32, %c0_i32_0 : i32, i32
  }
  func.func @transform_1(%arg0: i32) -> (i32, i32) {
    %c0_i32 = arith.constant 0 : i32
    %c0_i32_0 = arith.constant 0 : i32
    %c0_i32_1 = arith.constant 0 : i32
    return %c0_i32, %c0_i32_0 : i32, i32
  }
  func.func @transform_2(%arg0: i32) -> (i32, i32) {
    %c0_i32 = arith.constant 0 : i32
    %c0_i32_0 = arith.constant 0 : i32
    %c0_i32_1 = arith.constant 0 : i32
    return %c0_i32, %c0_i32_0 : i32, i32
  }
  func.func @transform_3(%arg0: i32) -> (i32, i32) {
    %c0_i32 = arith.constant 0 : i32
    %c0_i32_0 = arith.constant 0 : i32
    %c0_i32_1 = arith.constant 0 : i32
    return %c0_i32, %c0_i32_0 : i32, i32
  }
}

module attributes {stable_mosaic.version = 11 : i64} {
  func.func @_deconv_bn_relu_kernel(%arg0: i32, %arg1: memref<128x140xf32, #tpu.memory_space<vmem>>, %arg2: memref<256x1152xf32, #tpu.memory_space<vmem>>, %arg3: memref<256x1xf32, #tpu.memory_space<vmem>>, %arg4: memref<256x1xf32, #tpu.memory_space<vmem>>, %arg5: memref<1x128xf32, #tpu.memory_space<vmem>>, %arg6: memref<256x128xf32, #tpu.memory_space<vmem>>) attributes {dimension_semantics = [#tpu.dimension_semantics<arbitrary>], iteration_bounds = array<i64: 1>, scalar_prefetch = 0 : i64, scratch_operands = 0 : i64, tpu.core_type = #tpu.core_type<tc>, window_params = [{pipeline_mode = #tpu.pipeline_mode<synchronous>, transform_indices = @transform_0, window_bounds = array<i64: 128, 140>}, {pipeline_mode = #tpu.pipeline_mode<synchronous>, transform_indices = @transform_1, window_bounds = array<i64: 256, 1152>}, {pipeline_mode = #tpu.pipeline_mode<synchronous>, transform_indices = @transform_2, window_bounds = array<i64: 256, 1>}, {pipeline_mode = #tpu.pipeline_mode<synchronous>, transform_indices = @transform_3, window_bounds = array<i64: 256, 1>}, {pipeline_mode = #tpu.pipeline_mode<synchronous>, transform_indices = @transform_4, window_bounds = array<i64: 1, 128>}, {pipeline_mode = #tpu.pipeline_mode<synchronous>, transform_indices = @transform_5, window_bounds = array<i64: 256, 128>}]} {
    %c0 = arith.constant 0 : index
    %c0_0 = arith.constant 0 : index
    %0 = vector.load %arg5[%c0, %c0_0] : memref<1x128xf32, #tpu.memory_space<vmem>>, vector<1x128xf32>
    %c0_1 = arith.constant 0 : index
    %c0_2 = arith.constant 0 : index
    %1 = vector.load %arg1[%c0_1, %c0_2] : memref<128x140xf32, #tpu.memory_space<vmem>>, vector<128x128xf32>
    %c0_3 = arith.constant 0 : index
    %c1 = arith.constant 1 : index
    %2 = vector.load %arg1[%c0_3, %c1] : memref<128x140xf32, #tpu.memory_space<vmem>>, vector<128x128xf32>
    %c0_4 = arith.constant 0 : index
    %c2 = arith.constant 2 : index
    %3 = vector.load %arg1[%c0_4, %c2] : memref<128x140xf32, #tpu.memory_space<vmem>>, vector<128x128xf32>
    %c0_5 = arith.constant 0 : index
    %c5 = arith.constant 5 : index
    %4 = vector.load %arg1[%c0_5, %c5] : memref<128x140xf32, #tpu.memory_space<vmem>>, vector<128x128xf32>
    %c0_6 = arith.constant 0 : index
    %c6 = arith.constant 6 : index
    %5 = vector.load %arg1[%c0_6, %c6] : memref<128x140xf32, #tpu.memory_space<vmem>>, vector<128x128xf32>
    %c0_7 = arith.constant 0 : index
    %c7 = arith.constant 7 : index
    %6 = vector.load %arg1[%c0_7, %c7] : memref<128x140xf32, #tpu.memory_space<vmem>>, vector<128x128xf32>
    %c0_8 = arith.constant 0 : index
    %c10 = arith.constant 10 : index
    %7 = vector.load %arg1[%c0_8, %c10] : memref<128x140xf32, #tpu.memory_space<vmem>>, vector<128x128xf32>
    %c0_9 = arith.constant 0 : index
    %c11 = arith.constant 11 : index
    %8 = vector.load %arg1[%c0_9, %c11] : memref<128x140xf32, #tpu.memory_space<vmem>>, vector<128x128xf32>
    %c0_10 = arith.constant 0 : index
    %c12 = arith.constant 12 : index
    %9 = vector.load %arg1[%c0_10, %c12] : memref<128x140xf32, #tpu.memory_space<vmem>>, vector<128x128xf32>
    %10 = tpu.concatenate %1, %2, %3, %4, %5, %6, %7, %8, %9 in 0 : vector<128x128xf32>, vector<128x128xf32>, vector<128x128xf32>, vector<128x128xf32>, vector<128x128xf32>, vector<128x128xf32>, vector<128x128xf32>, vector<128x128xf32>, vector<128x128xf32> -> vector<1152x128xf32>
    %c0_11 = arith.constant 0 : index
    %c0_12 = arith.constant 0 : index
    %11 = vector.load %arg2[%c0_11, %c0_12] : memref<256x1152xf32, #tpu.memory_space<vmem>>, vector<256x1152xf32>
    %cst = arith.constant dense<0.000000e+00> : vector<256x128xf32>
    %12 = tpu.matmul %11, %10, %cst {dimension_numbers = #tpu.dot_dimension_numbers<[1], [0], [0], [1], [0, 0, 1, 1], [], []>} : vector<256x1152xf32>, vector<1152x128xf32>, vector<256x128xf32> -> vector<256x128xf32>
    %13 = vector.broadcast %0 : vector<1x128xf32> to vector<256x128xf32>
    %14 = arith.mulf %12, %13 : vector<256x128xf32>
    %cst_13 = arith.constant dense<0.000000e+00> : vector<256xf32>
    %15 = vector.multi_reduction <add>, %14, %cst_13 [1] : vector<256x128xf32> to vector<256xf32>
    %16 = vector.shape_cast %15 : vector<256xf32> to vector<256x1xf32>
    %17 = arith.mulf %14, %14 : vector<256x128xf32>
    %cst_14 = arith.constant dense<0.000000e+00> : vector<256xf32>
    %18 = vector.multi_reduction <add>, %17, %cst_14 [1] : vector<256x128xf32> to vector<256xf32>
    %19 = vector.shape_cast %18 : vector<256xf32> to vector<256x1xf32>
    %20 = vector.extract_strided_slice %16 {offsets = [0, 0], sizes = [64, 1], strides = [1, 1]} : vector<256x1xf32> to vector<64x1xf32>
    %21 = vector.extract_strided_slice %16 {offsets = [64, 0], sizes = [64, 1], strides = [1, 1]} : vector<256x1xf32> to vector<64x1xf32>
    %22 = arith.addf %20, %21 : vector<64x1xf32>
    %23 = vector.extract_strided_slice %16 {offsets = [128, 0], sizes = [64, 1], strides = [1, 1]} : vector<256x1xf32> to vector<64x1xf32>
    %24 = arith.addf %22, %23 : vector<64x1xf32>
    %25 = vector.extract_strided_slice %16 {offsets = [192, 0], sizes = [64, 1], strides = [1, 1]} : vector<256x1xf32> to vector<64x1xf32>
    %26 = arith.addf %24, %25 : vector<64x1xf32>
    %27 = vector.extract_strided_slice %19 {offsets = [0, 0], sizes = [64, 1], strides = [1, 1]} : vector<256x1xf32> to vector<64x1xf32>
    %28 = vector.extract_strided_slice %19 {offsets = [64, 0], sizes = [64, 1], strides = [1, 1]} : vector<256x1xf32> to vector<64x1xf32>
    %29 = arith.addf %27, %28 : vector<64x1xf32>
    %30 = vector.extract_strided_slice %19 {offsets = [128, 0], sizes = [64, 1], strides = [1, 1]} : vector<256x1xf32> to vector<64x1xf32>
    %31 = arith.addf %29, %30 : vector<64x1xf32>
    %32 = vector.extract_strided_slice %19 {offsets = [192, 0], sizes = [64, 1], strides = [1, 1]} : vector<256x1xf32> to vector<64x1xf32>
    %33 = arith.addf %31, %32 : vector<64x1xf32>
    %cst_15 = arith.constant 0.013888889 : f32
    %34 = vector.broadcast %cst_15 : f32 to vector<64x1xf32>
    %35 = arith.mulf %26, %34 : vector<64x1xf32>
    %cst_16 = arith.constant 0.013888889 : f32
    %36 = vector.broadcast %cst_16 : f32 to vector<64x1xf32>
    %37 = arith.mulf %33, %36 : vector<64x1xf32>
    %38 = arith.mulf %35, %35 : vector<64x1xf32>
    %39 = arith.subf %37, %38 : vector<64x1xf32>
    %cst_17 = arith.constant 9.99999974E-6 : f32
    %40 = vector.broadcast %cst_17 : f32 to vector<64x1xf32>
    %41 = arith.addf %39, %40 : vector<64x1xf32>
    %42 = math.rsqrt %41 : vector<64x1xf32>
    %43 = tpu.concatenate %35, %35, %35, %35 in 0 : vector<64x1xf32>, vector<64x1xf32>, vector<64x1xf32>, vector<64x1xf32> -> vector<256x1xf32>
    %44 = tpu.concatenate %42, %42, %42, %42 in 0 : vector<64x1xf32>, vector<64x1xf32>, vector<64x1xf32>, vector<64x1xf32> -> vector<256x1xf32>
    %45 = vector.broadcast %43 : vector<256x1xf32> to vector<256x128xf32>
    %46 = arith.subf %12, %45 : vector<256x128xf32>
    %47 = vector.broadcast %44 : vector<256x1xf32> to vector<256x128xf32>
    %48 = arith.mulf %46, %47 : vector<256x128xf32>
    %c0_18 = arith.constant 0 : index
    %c0_19 = arith.constant 0 : index
    %49 = vector.load %arg3[%c0_18, %c0_19] : memref<256x1xf32, #tpu.memory_space<vmem>>, vector<256x1xf32>
    %50 = vector.broadcast %49 : vector<256x1xf32> to vector<256x128xf32>
    %51 = arith.mulf %48, %50 : vector<256x128xf32>
    %c0_20 = arith.constant 0 : index
    %c0_21 = arith.constant 0 : index
    %52 = vector.load %arg4[%c0_20, %c0_21] : memref<256x1xf32, #tpu.memory_space<vmem>>, vector<256x1xf32>
    %53 = vector.broadcast %52 : vector<256x1xf32> to vector<256x128xf32>
    %54 = arith.addf %51, %53 : vector<256x128xf32>
    %cst_22 = arith.constant 0.000000e+00 : f32
    %55 = vector.broadcast %cst_22 : f32 to vector<256x128xf32>
    %56 = arith.maximumf %54, %55 : vector<256x128xf32>
    %57 = vector.broadcast %0 : vector<1x128xf32> to vector<256x128xf32>
    %58 = arith.mulf %56, %57 : vector<256x128xf32>
    %c0_23 = arith.constant 0 : index
    %c0_24 = arith.constant 0 : index
    %59 = vector.load %arg6[%c0_23, %c0_24] : memref<256x128xf32, #tpu.memory_space<vmem>>, vector<256x128xf32>
    tpu.vector_store %arg6[%c0_23, %c0_24], %58 {strides = array<i32>} : memref<256x128xf32, #tpu.memory_space<vmem>>, vector<256x128xf32>,
    return
  }
  func.func @transform_0(%arg0: i32) -> (i32, i32) {
    %c0_i32 = arith.constant 0 : i32
    %c0_i32_0 = arith.constant 0 : i32
    %c0_i32_1 = arith.constant 0 : i32
    return %c0_i32, %c0_i32_0 : i32, i32
  }
  func.func @transform_1(%arg0: i32) -> (i32, i32) {
    %c0_i32 = arith.constant 0 : i32
    %c0_i32_0 = arith.constant 0 : i32
    %c0_i32_1 = arith.constant 0 : i32
    return %c0_i32, %c0_i32_0 : i32, i32
  }
  func.func @transform_2(%arg0: i32) -> (i32, i32) {
    %c0_i32 = arith.constant 0 : i32
    %c0_i32_0 = arith.constant 0 : i32
    %c0_i32_1 = arith.constant 0 : i32
    return %c0_i32, %c0_i32_0 : i32, i32
  }
  func.func @transform_3(%arg0: i32) -> (i32, i32) {
    %c0_i32 = arith.constant 0 : i32
    %c0_i32_0 = arith.constant 0 : i32
    %c0_i32_1 = arith.constant 0 : i32
    return %c0_i32, %c0_i32_0 : i32, i32
  }
  func.func @transform_4(%arg0: i32) -> (i32, i32) {
    %c0_i32 = arith.constant 0 : i32
    %c0_i32_0 = arith.constant 0 : i32
    %c0_i32_1 = arith.constant 0 : i32
    return %c0_i32, %c0_i32_0 : i32, i32
  }
  func.func @transform_5(%arg0: i32) -> (i32, i32) {
    %c0_i32 = arith.constant 0 : i32
    %c0_i32_0 = arith.constant 0 : i32
    %c0_i32_1 = arith.constant 0 : i32
    return %c0_i32, %c0_i32_0 : i32, i32
  }
}

module attributes {stable_mosaic.version = 11 : i64} {
  func.func @_deconv_bn_relu_kernel(%arg0: i32, %arg1: memref<64x146xf32, #tpu.memory_space<vmem>>, %arg2: memref<128x576xf32, #tpu.memory_space<vmem>>, %arg3: memref<128x1xf32, #tpu.memory_space<vmem>>, %arg4: memref<128x1xf32, #tpu.memory_space<vmem>>, %arg5: memref<1x128xf32, #tpu.memory_space<vmem>>, %arg6: memref<128x128xf32, #tpu.memory_space<vmem>>) attributes {dimension_semantics = [#tpu.dimension_semantics<arbitrary>], iteration_bounds = array<i64: 1>, scalar_prefetch = 0 : i64, scratch_operands = 0 : i64, tpu.core_type = #tpu.core_type<tc>, window_params = [{pipeline_mode = #tpu.pipeline_mode<synchronous>, transform_indices = @transform_0, window_bounds = array<i64: 64, 146>}, {pipeline_mode = #tpu.pipeline_mode<synchronous>, transform_indices = @transform_1, window_bounds = array<i64: 128, 576>}, {pipeline_mode = #tpu.pipeline_mode<synchronous>, transform_indices = @transform_2, window_bounds = array<i64: 128, 1>}, {pipeline_mode = #tpu.pipeline_mode<synchronous>, transform_indices = @transform_3, window_bounds = array<i64: 128, 1>}, {pipeline_mode = #tpu.pipeline_mode<synchronous>, transform_indices = @transform_4, window_bounds = array<i64: 1, 128>}, {pipeline_mode = #tpu.pipeline_mode<synchronous>, transform_indices = @transform_5, window_bounds = array<i64: 128, 128>}]} {
    %c0 = arith.constant 0 : index
    %c0_0 = arith.constant 0 : index
    %0 = vector.load %arg5[%c0, %c0_0] : memref<1x128xf32, #tpu.memory_space<vmem>>, vector<1x128xf32>
    %c0_1 = arith.constant 0 : index
    %c0_2 = arith.constant 0 : index
    %1 = vector.load %arg1[%c0_1, %c0_2] : memref<64x146xf32, #tpu.memory_space<vmem>>, vector<64x128xf32>
    %c0_3 = arith.constant 0 : index
    %c1 = arith.constant 1 : index
    %2 = vector.load %arg1[%c0_3, %c1] : memref<64x146xf32, #tpu.memory_space<vmem>>, vector<64x128xf32>
    %c0_4 = arith.constant 0 : index
    %c2 = arith.constant 2 : index
    %3 = vector.load %arg1[%c0_4, %c2] : memref<64x146xf32, #tpu.memory_space<vmem>>, vector<64x128xf32>
    %c0_5 = arith.constant 0 : index
    %c8 = arith.constant 8 : index
    %4 = vector.load %arg1[%c0_5, %c8] : memref<64x146xf32, #tpu.memory_space<vmem>>, vector<64x128xf32>
    %c0_6 = arith.constant 0 : index
    %c9 = arith.constant 9 : index
    %5 = vector.load %arg1[%c0_6, %c9] : memref<64x146xf32, #tpu.memory_space<vmem>>, vector<64x128xf32>
    %c0_7 = arith.constant 0 : index
    %c10 = arith.constant 10 : index
    %6 = vector.load %arg1[%c0_7, %c10] : memref<64x146xf32, #tpu.memory_space<vmem>>, vector<64x128xf32>
    %c0_8 = arith.constant 0 : index
    %c16 = arith.constant 16 : index
    %7 = vector.load %arg1[%c0_8, %c16] : memref<64x146xf32, #tpu.memory_space<vmem>>, vector<64x128xf32>
    %c0_9 = arith.constant 0 : index
    %c17 = arith.constant 17 : index
    %8 = vector.load %arg1[%c0_9, %c17] : memref<64x146xf32, #tpu.memory_space<vmem>>, vector<64x128xf32>
    %c0_10 = arith.constant 0 : index
    %c18 = arith.constant 18 : index
    %9 = vector.load %arg1[%c0_10, %c18] : memref<64x146xf32, #tpu.memory_space<vmem>>, vector<64x128xf32>
    %10 = tpu.concatenate %1, %2, %3, %4, %5, %6, %7, %8, %9 in 0 : vector<64x128xf32>, vector<64x128xf32>, vector<64x128xf32>, vector<64x128xf32>, vector<64x128xf32>, vector<64x128xf32>, vector<64x128xf32>, vector<64x128xf32>, vector<64x128xf32> -> vector<576x128xf32>
    %c0_11 = arith.constant 0 : index
    %c0_12 = arith.constant 0 : index
    %11 = vector.load %arg2[%c0_11, %c0_12] : memref<128x576xf32, #tpu.memory_space<vmem>>, vector<128x576xf32>
    %cst = arith.constant dense<0.000000e+00> : vector<128x128xf32>
    %12 = tpu.matmul %11, %10, %cst {dimension_numbers = #tpu.dot_dimension_numbers<[1], [0], [0], [1], [0, 0, 1, 1], [], []>} : vector<128x576xf32>, vector<576x128xf32>, vector<128x128xf32> -> vector<128x128xf32>
    %13 = vector.broadcast %0 : vector<1x128xf32> to vector<128x128xf32>
    %14 = arith.mulf %12, %13 : vector<128x128xf32>
    %cst_13 = arith.constant dense<0.000000e+00> : vector<128xf32>
    %15 = vector.multi_reduction <add>, %14, %cst_13 [1] : vector<128x128xf32> to vector<128xf32>
    %16 = vector.shape_cast %15 : vector<128xf32> to vector<128x1xf32>
    %17 = arith.mulf %14, %14 : vector<128x128xf32>
    %cst_14 = arith.constant dense<0.000000e+00> : vector<128xf32>
    %18 = vector.multi_reduction <add>, %17, %cst_14 [1] : vector<128x128xf32> to vector<128xf32>
    %19 = vector.shape_cast %18 : vector<128xf32> to vector<128x1xf32>
    %20 = vector.extract_strided_slice %16 {offsets = [0, 0], sizes = [32, 1], strides = [1, 1]} : vector<128x1xf32> to vector<32x1xf32>
    %21 = vector.extract_strided_slice %16 {offsets = [32, 0], sizes = [32, 1], strides = [1, 1]} : vector<128x1xf32> to vector<32x1xf32>
    %22 = arith.addf %20, %21 : vector<32x1xf32>
    %23 = vector.extract_strided_slice %16 {offsets = [64, 0], sizes = [32, 1], strides = [1, 1]} : vector<128x1xf32> to vector<32x1xf32>
    %24 = arith.addf %22, %23 : vector<32x1xf32>
    %25 = vector.extract_strided_slice %16 {offsets = [96, 0], sizes = [32, 1], strides = [1, 1]} : vector<128x1xf32> to vector<32x1xf32>
    %26 = arith.addf %24, %25 : vector<32x1xf32>
    %27 = vector.extract_strided_slice %19 {offsets = [0, 0], sizes = [32, 1], strides = [1, 1]} : vector<128x1xf32> to vector<32x1xf32>
    %28 = vector.extract_strided_slice %19 {offsets = [32, 0], sizes = [32, 1], strides = [1, 1]} : vector<128x1xf32> to vector<32x1xf32>
    %29 = arith.addf %27, %28 : vector<32x1xf32>
    %30 = vector.extract_strided_slice %19 {offsets = [64, 0], sizes = [32, 1], strides = [1, 1]} : vector<128x1xf32> to vector<32x1xf32>
    %31 = arith.addf %29, %30 : vector<32x1xf32>
    %32 = vector.extract_strided_slice %19 {offsets = [96, 0], sizes = [32, 1], strides = [1, 1]} : vector<128x1xf32> to vector<32x1xf32>
    %33 = arith.addf %31, %32 : vector<32x1xf32>
    %cst_15 = arith.constant 0.00347222225 : f32
    %34 = vector.broadcast %cst_15 : f32 to vector<32x1xf32>
    %35 = arith.mulf %26, %34 : vector<32x1xf32>
    %cst_16 = arith.constant 0.00347222225 : f32
    %36 = vector.broadcast %cst_16 : f32 to vector<32x1xf32>
    %37 = arith.mulf %33, %36 : vector<32x1xf32>
    %38 = arith.mulf %35, %35 : vector<32x1xf32>
    %39 = arith.subf %37, %38 : vector<32x1xf32>
    %cst_17 = arith.constant 9.99999974E-6 : f32
    %40 = vector.broadcast %cst_17 : f32 to vector<32x1xf32>
    %41 = arith.addf %39, %40 : vector<32x1xf32>
    %42 = math.rsqrt %41 : vector<32x1xf32>
    %43 = tpu.concatenate %35, %35, %35, %35 in 0 : vector<32x1xf32>, vector<32x1xf32>, vector<32x1xf32>, vector<32x1xf32> -> vector<128x1xf32>
    %44 = tpu.concatenate %42, %42, %42, %42 in 0 : vector<32x1xf32>, vector<32x1xf32>, vector<32x1xf32>, vector<32x1xf32> -> vector<128x1xf32>
    %45 = vector.broadcast %43 : vector<128x1xf32> to vector<128x128xf32>
    %46 = arith.subf %12, %45 : vector<128x128xf32>
    %47 = vector.broadcast %44 : vector<128x1xf32> to vector<128x128xf32>
    %48 = arith.mulf %46, %47 : vector<128x128xf32>
    %c0_18 = arith.constant 0 : index
    %c0_19 = arith.constant 0 : index
    %49 = vector.load %arg3[%c0_18, %c0_19] : memref<128x1xf32, #tpu.memory_space<vmem>>, vector<128x1xf32>
    %50 = vector.broadcast %49 : vector<128x1xf32> to vector<128x128xf32>
    %51 = arith.mulf %48, %50 : vector<128x128xf32>
    %c0_20 = arith.constant 0 : index
    %c0_21 = arith.constant 0 : index
    %52 = vector.load %arg4[%c0_20, %c0_21] : memref<128x1xf32, #tpu.memory_space<vmem>>, vector<128x1xf32>
    %53 = vector.broadcast %52 : vector<128x1xf32> to vector<128x128xf32>
    %54 = arith.addf %51, %53 : vector<128x128xf32>
    %cst_22 = arith.constant 0.000000e+00 : f32
    %55 = vector.broadcast %cst_22 : f32 to vector<128x128xf32>
    %56 = arith.maximumf %54, %55 : vector<128x128xf32>
    %57 = vector.broadcast %0 : vector<1x128xf32> to vector<128x128xf32>
    %58 = arith.mulf %56, %57 : vector<128x128xf32>
    %c0_23 = arith.constant 0 : index
    %c0_24 = arith.constant 0 : index
    %59 = vector.load %arg6[%c0_23, %c0_24] : memref<128x128xf32, #tpu.memory_space<vmem>>, vector<128x128xf32>
    tpu.vector_store %arg6[%c0_23, %c0_24], %58 {strides = array<i32>} : memref<128x128xf32, #tpu.memory_space<vmem>>, vector<128x128xf32>,
    return
  }
  func.func @transform_0(%arg0: i32) -> (i32, i32) {
    %c0_i32 = arith.constant 0 : i32
    %c0_i32_0 = arith.constant 0 : i32
    %c0_i32_1 = arith.constant 0 : i32
    return %c0_i32, %c0_i32_0 : i32, i32
  }
  func.func @transform_1(%arg0: i32) -> (i32, i32) {
    %c0_i32 = arith.constant 0 : i32
    %c0_i32_0 = arith.constant 0 : i32
    %c0_i32_1 = arith.constant 0 : i32
    return %c0_i32, %c0_i32_0 : i32, i32
  }
  func.func @transform_2(%arg0: i32) -> (i32, i32) {
    %c0_i32 = arith.constant 0 : i32
    %c0_i32_0 = arith.constant 0 : i32
    %c0_i32_1 = arith.constant 0 : i32
    return %c0_i32, %c0_i32_0 : i32, i32
  }
  func.func @transform_3(%arg0: i32) -> (i32, i32) {
    %c0_i32 = arith.constant 0 : i32
    %c0_i32_0 = arith.constant 0 : i32
    %c0_i32_1 = arith.constant 0 : i32
    return %c0_i32, %c0_i32_0 : i32, i32
  }
  func.func @transform_4(%arg0: i32) -> (i32, i32) {
    %c0_i32 = arith.constant 0 : i32
    %c0_i32_0 = arith.constant 0 : i32
    %c0_i32_1 = arith.constant 0 : i32
    return %c0_i32, %c0_i32_0 : i32, i32
  }
  func.func @transform_5(%arg0: i32) -> (i32, i32) {
    %c0_i32 = arith.constant 0 : i32
    %c0_i32_0 = arith.constant 0 : i32
    %c0_i32_1 = arith.constant 0 : i32
    return %c0_i32, %c0_i32_0 : i32, i32
  }
}

module attributes {stable_mosaic.version = 11 : i64} {
  func.func @_deconv_bn_relu_kernel(%arg0: i32, %arg1: memref<32x542xf32, #tpu.memory_space<vmem>>, %arg2: memref<64x288xf32, #tpu.memory_space<vmem>>, %arg3: memref<64x1xf32, #tpu.memory_space<vmem>>, %arg4: memref<64x1xf32, #tpu.memory_space<vmem>>, %arg5: memref<1x512xf32, #tpu.memory_space<vmem>>, %arg6: memref<64x512xf32, #tpu.memory_space<vmem>>) attributes {dimension_semantics = [#tpu.dimension_semantics<arbitrary>], iteration_bounds = array<i64: 1>, scalar_prefetch = 0 : i64, scratch_operands = 0 : i64, tpu.core_type = #tpu.core_type<tc>, window_params = [{pipeline_mode = #tpu.pipeline_mode<synchronous>, transform_indices = @transform_0, window_bounds = array<i64: 32, 542>}, {pipeline_mode = #tpu.pipeline_mode<synchronous>, transform_indices = @transform_1, window_bounds = array<i64: 64, 288>}, {pipeline_mode = #tpu.pipeline_mode<synchronous>, transform_indices = @transform_2, window_bounds = array<i64: 64, 1>}, {pipeline_mode = #tpu.pipeline_mode<synchronous>, transform_indices = @transform_3, window_bounds = array<i64: 64, 1>}, {pipeline_mode = #tpu.pipeline_mode<synchronous>, transform_indices = @transform_4, window_bounds = array<i64: 1, 512>}, {pipeline_mode = #tpu.pipeline_mode<synchronous>, transform_indices = @transform_5, window_bounds = array<i64: 64, 512>}]} {
    %c0 = arith.constant 0 : index
    %c0_0 = arith.constant 0 : index
    %0 = vector.load %arg5[%c0, %c0_0] : memref<1x512xf32, #tpu.memory_space<vmem>>, vector<1x512xf32>
    %c0_1 = arith.constant 0 : index
    %c0_2 = arith.constant 0 : index
    %1 = vector.load %arg1[%c0_1, %c0_2] : memref<32x542xf32, #tpu.memory_space<vmem>>, vector<32x512xf32>
    %c0_3 = arith.constant 0 : index
    %c1 = arith.constant 1 : index
    %2 = vector.load %arg1[%c0_3, %c1] : memref<32x542xf32, #tpu.memory_space<vmem>>, vector<32x512xf32>
    %c0_4 = arith.constant 0 : index
    %c2 = arith.constant 2 : index
    %3 = vector.load %arg1[%c0_4, %c2] : memref<32x542xf32, #tpu.memory_space<vmem>>, vector<32x512xf32>
    %c0_5 = arith.constant 0 : index
    %c14 = arith.constant 14 : index
    %4 = vector.load %arg1[%c0_5, %c14] : memref<32x542xf32, #tpu.memory_space<vmem>>, vector<32x512xf32>
    %c0_6 = arith.constant 0 : index
    %c15 = arith.constant 15 : index
    %5 = vector.load %arg1[%c0_6, %c15] : memref<32x542xf32, #tpu.memory_space<vmem>>, vector<32x512xf32>
    %c0_7 = arith.constant 0 : index
    %c16 = arith.constant 16 : index
    %6 = vector.load %arg1[%c0_7, %c16] : memref<32x542xf32, #tpu.memory_space<vmem>>, vector<32x512xf32>
    %c0_8 = arith.constant 0 : index
    %c28 = arith.constant 28 : index
    %7 = vector.load %arg1[%c0_8, %c28] : memref<32x542xf32, #tpu.memory_space<vmem>>, vector<32x512xf32>
    %c0_9 = arith.constant 0 : index
    %c29 = arith.constant 29 : index
    %8 = vector.load %arg1[%c0_9, %c29] : memref<32x542xf32, #tpu.memory_space<vmem>>, vector<32x512xf32>
    %c0_10 = arith.constant 0 : index
    %c30 = arith.constant 30 : index
    %9 = vector.load %arg1[%c0_10, %c30] : memref<32x542xf32, #tpu.memory_space<vmem>>, vector<32x512xf32>
    %10 = tpu.concatenate %1, %2, %3, %4, %5, %6, %7, %8, %9 in 0 : vector<32x512xf32>, vector<32x512xf32>, vector<32x512xf32>, vector<32x512xf32>, vector<32x512xf32>, vector<32x512xf32>, vector<32x512xf32>, vector<32x512xf32>, vector<32x512xf32> -> vector<288x512xf32>
    %c0_11 = arith.constant 0 : index
    %c0_12 = arith.constant 0 : index
    %11 = vector.load %arg2[%c0_11, %c0_12] : memref<64x288xf32, #tpu.memory_space<vmem>>, vector<64x288xf32>
    %cst = arith.constant dense<0.000000e+00> : vector<64x512xf32>
    %12 = tpu.matmul %11, %10, %cst {dimension_numbers = #tpu.dot_dimension_numbers<[1], [0], [0], [1], [0, 0, 1, 1], [], []>} : vector<64x288xf32>, vector<288x512xf32>, vector<64x512xf32> -> vector<64x512xf32>
    %13 = vector.broadcast %0 : vector<1x512xf32> to vector<64x512xf32>
    %14 = arith.mulf %12, %13 : vector<64x512xf32>
    %cst_13 = arith.constant dense<0.000000e+00> : vector<64xf32>
    %15 = vector.multi_reduction <add>, %14, %cst_13 [1] : vector<64x512xf32> to vector<64xf32>
    %16 = vector.shape_cast %15 : vector<64xf32> to vector<64x1xf32>
    %17 = arith.mulf %14, %14 : vector<64x512xf32>
    %cst_14 = arith.constant dense<0.000000e+00> : vector<64xf32>
    %18 = vector.multi_reduction <add>, %17, %cst_14 [1] : vector<64x512xf32> to vector<64xf32>
    %19 = vector.shape_cast %18 : vector<64xf32> to vector<64x1xf32>
    %20 = vector.extract_strided_slice %16 {offsets = [0, 0], sizes = [16, 1], strides = [1, 1]} : vector<64x1xf32> to vector<16x1xf32>
    %21 = vector.extract_strided_slice %16 {offsets = [16, 0], sizes = [16, 1], strides = [1, 1]} : vector<64x1xf32> to vector<16x1xf32>
    %22 = arith.addf %20, %21 : vector<16x1xf32>
    %23 = vector.extract_strided_slice %16 {offsets = [32, 0], sizes = [16, 1], strides = [1, 1]} : vector<64x1xf32> to vector<16x1xf32>
    %24 = arith.addf %22, %23 : vector<16x1xf32>
    %25 = vector.extract_strided_slice %16 {offsets = [48, 0], sizes = [16, 1], strides = [1, 1]} : vector<64x1xf32> to vector<16x1xf32>
    %26 = arith.addf %24, %25 : vector<16x1xf32>
    %27 = vector.extract_strided_slice %19 {offsets = [0, 0], sizes = [16, 1], strides = [1, 1]} : vector<64x1xf32> to vector<16x1xf32>
    %28 = vector.extract_strided_slice %19 {offsets = [16, 0], sizes = [16, 1], strides = [1, 1]} : vector<64x1xf32> to vector<16x1xf32>
    %29 = arith.addf %27, %28 : vector<16x1xf32>
    %30 = vector.extract_strided_slice %19 {offsets = [32, 0], sizes = [16, 1], strides = [1, 1]} : vector<64x1xf32> to vector<16x1xf32>
    %31 = arith.addf %29, %30 : vector<16x1xf32>
    %32 = vector.extract_strided_slice %19 {offsets = [48, 0], sizes = [16, 1], strides = [1, 1]} : vector<64x1xf32> to vector<16x1xf32>
    %33 = arith.addf %31, %32 : vector<16x1xf32>
    %cst_15 = arith.constant 8.68055562E-4 : f32
    %34 = vector.broadcast %cst_15 : f32 to vector<16x1xf32>
    %35 = arith.mulf %26, %34 : vector<16x1xf32>
    %cst_16 = arith.constant 8.68055562E-4 : f32
    %36 = vector.broadcast %cst_16 : f32 to vector<16x1xf32>
    %37 = arith.mulf %33, %36 : vector<16x1xf32>
    %38 = arith.mulf %35, %35 : vector<16x1xf32>
    %39 = arith.subf %37, %38 : vector<16x1xf32>
    %cst_17 = arith.constant 9.99999974E-6 : f32
    %40 = vector.broadcast %cst_17 : f32 to vector<16x1xf32>
    %41 = arith.addf %39, %40 : vector<16x1xf32>
    %42 = math.rsqrt %41 : vector<16x1xf32>
    %43 = tpu.concatenate %35, %35, %35, %35 in 0 : vector<16x1xf32>, vector<16x1xf32>, vector<16x1xf32>, vector<16x1xf32> -> vector<64x1xf32>
    %44 = tpu.concatenate %42, %42, %42, %42 in 0 : vector<16x1xf32>, vector<16x1xf32>, vector<16x1xf32>, vector<16x1xf32> -> vector<64x1xf32>
    %45 = vector.broadcast %43 : vector<64x1xf32> to vector<64x512xf32>
    %46 = arith.subf %12, %45 : vector<64x512xf32>
    %47 = vector.broadcast %44 : vector<64x1xf32> to vector<64x512xf32>
    %48 = arith.mulf %46, %47 : vector<64x512xf32>
    %c0_18 = arith.constant 0 : index
    %c0_19 = arith.constant 0 : index
    %49 = vector.load %arg3[%c0_18, %c0_19] : memref<64x1xf32, #tpu.memory_space<vmem>>, vector<64x1xf32>
    %50 = vector.broadcast %49 : vector<64x1xf32> to vector<64x512xf32>
    %51 = arith.mulf %48, %50 : vector<64x512xf32>
    %c0_20 = arith.constant 0 : index
    %c0_21 = arith.constant 0 : index
    %52 = vector.load %arg4[%c0_20, %c0_21] : memref<64x1xf32, #tpu.memory_space<vmem>>, vector<64x1xf32>
    %53 = vector.broadcast %52 : vector<64x1xf32> to vector<64x512xf32>
    %54 = arith.addf %51, %53 : vector<64x512xf32>
    %cst_22 = arith.constant 0.000000e+00 : f32
    %55 = vector.broadcast %cst_22 : f32 to vector<64x512xf32>
    %56 = arith.maximumf %54, %55 : vector<64x512xf32>
    %57 = vector.broadcast %0 : vector<1x512xf32> to vector<64x512xf32>
    %58 = arith.mulf %56, %57 : vector<64x512xf32>
    %c0_23 = arith.constant 0 : index
    %c0_24 = arith.constant 0 : index
    %59 = vector.load %arg6[%c0_23, %c0_24] : memref<64x512xf32, #tpu.memory_space<vmem>>, vector<64x512xf32>
    tpu.vector_store %arg6[%c0_23, %c0_24], %58 {strides = array<i32>} : memref<64x512xf32, #tpu.memory_space<vmem>>, vector<64x512xf32>,
    return
  }
  func.func @transform_0(%arg0: i32) -> (i32, i32) {
    %c0_i32 = arith.constant 0 : i32
    %c0_i32_0 = arith.constant 0 : i32
    %c0_i32_1 = arith.constant 0 : i32
    return %c0_i32, %c0_i32_0 : i32, i32
  }
  func.func @transform_1(%arg0: i32) -> (i32, i32) {
    %c0_i32 = arith.constant 0 : i32
    %c0_i32_0 = arith.constant 0 : i32
    %c0_i32_1 = arith.constant 0 : i32
    return %c0_i32, %c0_i32_0 : i32, i32
  }
  func.func @transform_2(%arg0: i32) -> (i32, i32) {
    %c0_i32 = arith.constant 0 : i32
    %c0_i32_0 = arith.constant 0 : i32
    %c0_i32_1 = arith.constant 0 : i32
    return %c0_i32, %c0_i32_0 : i32, i32
  }
  func.func @transform_3(%arg0: i32) -> (i32, i32) {
    %c0_i32 = arith.constant 0 : i32
    %c0_i32_0 = arith.constant 0 : i32
    %c0_i32_1 = arith.constant 0 : i32
    return %c0_i32, %c0_i32_0 : i32, i32
  }
  func.func @transform_4(%arg0: i32) -> (i32, i32) {
    %c0_i32 = arith.constant 0 : i32
    %c0_i32_0 = arith.constant 0 : i32
    %c0_i32_1 = arith.constant 0 : i32
    return %c0_i32, %c0_i32_0 : i32, i32
  }
  func.func @transform_5(%arg0: i32) -> (i32, i32) {
    %c0_i32 = arith.constant 0 : i32
    %c0_i32_0 = arith.constant 0 : i32
    %c0_i32_1 = arith.constant 0 : i32
    return %c0_i32, %c0_i32_0 : i32, i32
  }
}

module attributes {stable_mosaic.version = 11 : i64} {
  func.func @_deconv_bn_relu_kernel(%arg0: i32, %arg1: memref<16x1462xf32, #tpu.memory_space<vmem>>, %arg2: memref<24x144xf32, #tpu.memory_space<vmem>>, %arg3: memref<24x1xf32, #tpu.memory_space<vmem>>, %arg4: memref<24x1xf32, #tpu.memory_space<vmem>>, %arg5: memref<1x1408xf32, #tpu.memory_space<vmem>>, %arg6: memref<24x1408xf32, #tpu.memory_space<vmem>>) attributes {dimension_semantics = [#tpu.dimension_semantics<arbitrary>], iteration_bounds = array<i64: 1>, scalar_prefetch = 0 : i64, scratch_operands = 0 : i64, tpu.core_type = #tpu.core_type<tc>, window_params = [{pipeline_mode = #tpu.pipeline_mode<synchronous>, transform_indices = @transform_0, window_bounds = array<i64: 16, 1462>}, {pipeline_mode = #tpu.pipeline_mode<synchronous>, transform_indices = @transform_1, window_bounds = array<i64: 24, 144>}, {pipeline_mode = #tpu.pipeline_mode<synchronous>, transform_indices = @transform_2, window_bounds = array<i64: 24, 1>}, {pipeline_mode = #tpu.pipeline_mode<synchronous>, transform_indices = @transform_3, window_bounds = array<i64: 24, 1>}, {pipeline_mode = #tpu.pipeline_mode<synchronous>, transform_indices = @transform_4, window_bounds = array<i64: 1, 1408>}, {pipeline_mode = #tpu.pipeline_mode<synchronous>, transform_indices = @transform_5, window_bounds = array<i64: 24, 1408>}]} {
    %c0 = arith.constant 0 : index
    %c0_0 = arith.constant 0 : index
    %0 = vector.load %arg5[%c0, %c0_0] : memref<1x1408xf32, #tpu.memory_space<vmem>>, vector<1x1408xf32>
    %c0_1 = arith.constant 0 : index
    %c0_2 = arith.constant 0 : index
    %1 = vector.load %arg1[%c0_1, %c0_2] : memref<16x1462xf32, #tpu.memory_space<vmem>>, vector<16x1408xf32>
    %c0_3 = arith.constant 0 : index
    %c1 = arith.constant 1 : index
    %2 = vector.load %arg1[%c0_3, %c1] : memref<16x1462xf32, #tpu.memory_space<vmem>>, vector<16x1408xf32>
    %c0_4 = arith.constant 0 : index
    %c2 = arith.constant 2 : index
    %3 = vector.load %arg1[%c0_4, %c2] : memref<16x1462xf32, #tpu.memory_space<vmem>>, vector<16x1408xf32>
    %c0_5 = arith.constant 0 : index
    %c26 = arith.constant 26 : index
    %4 = vector.load %arg1[%c0_5, %c26] : memref<16x1462xf32, #tpu.memory_space<vmem>>, vector<16x1408xf32>
    %c0_6 = arith.constant 0 : index
    %c27 = arith.constant 27 : index
    %5 = vector.load %arg1[%c0_6, %c27] : memref<16x1462xf32, #tpu.memory_space<vmem>>, vector<16x1408xf32>
    %c0_7 = arith.constant 0 : index
    %c28 = arith.constant 28 : index
    %6 = vector.load %arg1[%c0_7, %c28] : memref<16x1462xf32, #tpu.memory_space<vmem>>, vector<16x1408xf32>
    %c0_8 = arith.constant 0 : index
    %c52 = arith.constant 52 : index
    %7 = vector.load %arg1[%c0_8, %c52] : memref<16x1462xf32, #tpu.memory_space<vmem>>, vector<16x1408xf32>
    %c0_9 = arith.constant 0 : index
    %c53 = arith.constant 53 : index
    %8 = vector.load %arg1[%c0_9, %c53] : memref<16x1462xf32, #tpu.memory_space<vmem>>, vector<16x1408xf32>
    %c0_10 = arith.constant 0 : index
    %c54 = arith.constant 54 : index
    %9 = vector.load %arg1[%c0_10, %c54] : memref<16x1462xf32, #tpu.memory_space<vmem>>, vector<16x1408xf32>
    %10 = tpu.concatenate %1, %2, %3, %4, %5, %6, %7, %8, %9 in 0 : vector<16x1408xf32>, vector<16x1408xf32>, vector<16x1408xf32>, vector<16x1408xf32>, vector<16x1408xf32>, vector<16x1408xf32>, vector<16x1408xf32>, vector<16x1408xf32>, vector<16x1408xf32> -> vector<144x1408xf32>
    %c0_11 = arith.constant 0 : index
    %c0_12 = arith.constant 0 : index
    %11 = vector.load %arg2[%c0_11, %c0_12] : memref<24x144xf32, #tpu.memory_space<vmem>>, vector<24x144xf32>
    %cst = arith.constant dense<0.000000e+00> : vector<24x1408xf32>
    %12 = tpu.matmul %11, %10, %cst {dimension_numbers = #tpu.dot_dimension_numbers<[1], [0], [0], [1], [0, 0, 1, 1], [], []>} : vector<24x144xf32>, vector<144x1408xf32>, vector<24x1408xf32> -> vector<24x1408xf32>
    %c0_13 = arith.constant 0 : index
    %c0_14 = arith.constant 0 : index
    %13 = vector.load %arg3[%c0_13, %c0_14] : memref<24x1xf32, #tpu.memory_space<vmem>>, vector<24x1xf32>
    %14 = vector.broadcast %13 : vector<24x1xf32> to vector<24x1408xf32>
    %15 = arith.mulf %12, %14 : vector<24x1408xf32>
    %c0_15 = arith.constant 0 : index
    %c0_16 = arith.constant 0 : index
    %16 = vector.load %arg4[%c0_15, %c0_16] : memref<24x1xf32, #tpu.memory_space<vmem>>, vector<24x1xf32>
    %17 = vector.broadcast %16 : vector<24x1xf32> to vector<24x1408xf32>
    %18 = arith.addf %15, %17 : vector<24x1408xf32>
    %19 = vector.broadcast %0 : vector<1x1408xf32> to vector<24x1408xf32>
    %20 = arith.mulf %18, %19 : vector<24x1408xf32>
    %c0_17 = arith.constant 0 : index
    %c0_18 = arith.constant 0 : index
    %21 = vector.load %arg6[%c0_17, %c0_18] : memref<24x1408xf32, #tpu.memory_space<vmem>>, vector<24x1408xf32>
    tpu.vector_store %arg6[%c0_17, %c0_18], %20 {strides = array<i32>} : memref<24x1408xf32, #tpu.memory_space<vmem>>, vector<24x1408xf32>,
    return
  }
  func.func @transform_0(%arg0: i32) -> (i32, i32) {
    %c0_i32 = arith.constant 0 : i32
    %c0_i32_0 = arith.constant 0 : i32
    %c0_i32_1 = arith.constant 0 : i32
    return %c0_i32, %c0_i32_0 : i32, i32
  }
  func.func @transform_1(%arg0: i32) -> (i32, i32) {
    %c0_i32 = arith.constant 0 : i32
    %c0_i32_0 = arith.constant 0 : i32
    %c0_i32_1 = arith.constant 0 : i32
    return %c0_i32, %c0_i32_0 : i32, i32
  }
  func.func @transform_2(%arg0: i32) -> (i32, i32) {
    %c0_i32 = arith.constant 0 : i32
    %c0_i32_0 = arith.constant 0 : i32
    %c0_i32_1 = arith.constant 0 : i32
    return %c0_i32, %c0_i32_0 : i32, i32
  }
  func.func @transform_3(%arg0: i32) -> (i32, i32) {
    %c0_i32 = arith.constant 0 : i32
    %c0_i32_0 = arith.constant 0 : i32
    %c0_i32_1 = arith.constant 0 : i32
    return %c0_i32, %c0_i32_0 : i32, i32
  }
  func.func @transform_4(%arg0: i32) -> (i32, i32) {
    %c0_i32 = arith.constant 0 : i32
    %c0_i32_0 = arith.constant 0 : i32
    %c0_i32_1 = arith.constant 0 : i32
    return %c0_i32, %c0_i32_0 : i32, i32
  }
  func.func @transform_5(%arg0: i32) -> (i32, i32) {
    %c0_i32 = arith.constant 0 : i32
    %c0_i32_0 = arith.constant 0 : i32
    %c0_i32_1 = arith.constant 0 : i32
    return %c0_i32, %c0_i32_0 : i32, i32
  }
}

</mosaic_0001>

<bundles_post_ra>
// kernel: decoder_forward.5
= control target key start
LH: loop header
LB: loop body
LE: loop exit
PB: predicated region body
PF: predicated region fallthrough
CT: control target
= control target key end

     0   :  { %8 = vsyncpa [#allocation3], 0  ;;  %s539_s0 = inlined_call_operand.hbm [shape: f32[2,64], index: 0, kind: input, shape index: {}]   ;;  %s540_s1 = inlined_call_operand.hbm [shape: f32[64,1152], index: 1, kind: input, shape index: {}]   ;;  %s541_s2 = inlined_call_operand.hbm [shape: f32[1,1152], index: 2, kind: input, shape index: {}]   ;;  %s542_s3 = inlined_call_operand.vmem [shape: f32[2,1152], index: 3, kind: output, shape index: {}]  }
   0x1   :  { %9 = vsyncpa [#allocation5], 0  ;;  %s25_s14 = sshll.u32 %s540_s1, 4  ;;  %s470_s15 = smov [#allocation4]   ;;  %s26_s14 = int_to_ptr.hbm [resolvable:$true] %s25_s14 }
   0x2   :  { %s27_s16 = sshll.u32 %s470_s15, 4  ;;  %s15_s19 = sshll.u32 %s539_s0, 4  ;;  %s28_s16 = int_to_ptr.vmem [resolvable:$true] %s27_s16  ;;  %s16_s19 = int_to_ptr.hbm [resolvable:$true] %s15_s19 }
   0x3   :  { %s471_s20 = smov 1152   ;;  %s472_s21 = smov 72  }
   0x4   :  { %33 = dma.hbm_to_vmem [thread:$0]  %s26_s14, 9216, %s28_s16, [#allocation5], %s471_s20, %s471_s20, %s472_s21  }
   0x5   :  { %s473_s22 = smov [#allocation2]   ;;  %s39_s26 = sshll.u32 %s541_s2, 4  ;;  %s40_s26 = int_to_ptr.hbm [resolvable:$true] %s39_s26 }
   0x6   :  { %s17_s23 = sshll.u32 %s473_s22, 4  ;;  %s474_s1 = smov [#allocation6]   ;;  %s18_s23 = int_to_ptr.vmem [resolvable:$true] %s17_s23 }
   0x7   :  { %20 = dma.hbm_to_vmem [thread:$0]  %s16_s19, 32, %s18_s23, [#allocation3]  }
   0x8   :  { %s41_s27 = sshll.u32 %s474_s1, 4  ;;  %s42_s27 = int_to_ptr.vmem [resolvable:$true] %s41_s27 }
   0x9   :  { %44 = dma.hbm_to_vmem [thread:$0]  %s40_s26, 144, %s42_s27, [#allocation5]  }
   0xa   :  { %466 = dma.done.wait [#allocation3], 32  }
   0xb   :  { %467 = vsyncadd [#allocation3], 4294967264 }
   0xc   :  { %468 = dma.done.wait [#allocation5], 9360  }
   0xd   :  { %469 = vsyncadd [#allocation5], 4294957936  ;;  %v121_v0 = vld [vmem:[#allocation4 + $0x1f8] sm:$0xff]  ;;  %v123_v1 = vld [vmem:[#allocation4 + $0x208] sm:$0xff]  ;;  %vm152_vm0 = vcmask 523264   ;;  %vm361_vm1 = vcmask 1045508  }
   0xe   :  { %v124_v2 = vld [vmem:[#allocation4 + $0x210] sm:$0xff]  ;;  %164 = vmatpush.msra.mxu0 %v121_v0  ;;  %204 = vmatpush.msra.mxu2 %v123_v1  ;;  %v114_v4 = vld [vmem:[#allocation4 + $0x1c0] sm:$0xff]  ;;  %v115_v5 = vld [vmem:[#allocation4 + $0x1c8] sm:$0xff]  ;;  %vm359_vm2 = vcmask 1041408   ;;  %vm363_vm3 = vcmask 1043456  }
   0xf   :  { %v112_v3 = vld [vmem:[#allocation4 + $0x1b0] sm:$0xff]  ;;  %224 = vmatpush.msra.mxu3 %v124_v2  ;;  %v103_v6 = vld [vmem:[#allocation4 + $0x168] sm:$0xff]  ;;  %v105_v7 = vld [vmem:[#allocation4 + $0x178] sm:$0xff] }
  0x10   :  { %165 = vmatpush.msra.mxu0 %v112_v3  ;;  %205 = vmatpush.msra.mxu2 %v114_v4  ;;  %v106_v8 = vld [vmem:[#allocation4 + $0x180] sm:$0xff]  ;;  %v96_v11 = vld [vmem:[#allocation4 + $0x130] sm:$0xff]  ;;  %v113_v12 = vld [vmem:[#allocation4 + $0x1b8] sm:$0xff] }
  0x11   :  { %v122_v9 = vld [vmem:[#allocation4 + $0x200] sm:$0xff]  ;;  %225 = vmatpush.msra.mxu3 %v115_v5  ;;  %v97_v13 = vld [vmem:[#allocation4 + $0x138] sm:$0xff]  ;;  %v104_v14 = vld [vmem:[#allocation4 + $0x170] sm:$0xff] }
  0x12   :  { %184 = vmatpush.msra.mxu1 %v122_v9  ;;  %v94_v10 = vld [vmem:[#allocation4 + $0x120] sm:$0xff]  ;;  %166 = vmatpush.msra.mxu0 %v103_v6  ;;  %v85_v15 = vld [vmem:[#allocation4 + $0xd8] sm:$0xff]  ;;  %v87_v16 = vld [vmem:[#allocation4 + $0xe8] sm:$0xff] }
  0x13   :  { %206 = vmatpush.msra.mxu2 %v105_v7  ;;  %226 = vmatpush.msra.mxu3 %v106_v8  ;;  %v88_v17 = vld [vmem:[#allocation4 + $0xf0] sm:$0xff]  ;;  %v95_v18 = vld [vmem:[#allocation4 + $0x128] sm:$0xff]  ;;  %v78_v20 = vld [vmem:[#allocation4 + $0xa0] sm:$0xff] }
  0x14   :  { %185 = vmatpush.msra.mxu1 %v113_v12  ;;  %167 = vmatpush.msra.mxu0 %v94_v10  ;;  %v76_v19 = vld [vmem:[#allocation4 + $0x90] sm:$0xff]  ;;  %v79_v21 = vld [vmem:[#allocation4 + $0xa8] sm:$0xff]  ;;  %v86_v22 = vld [vmem:[#allocation4 + $0xe0] sm:$0xff] }
  0x15   :  { %207 = vmatpush.msra.mxu2 %v96_v11  ;;  %227 = vmatpush.msra.mxu3 %v97_v13  ;;  %v67_v23 = vld [vmem:[#allocation4 + $0x48] sm:$0xff]  ;;  %v69_v24 = vld [vmem:[#allocation4 + $0x58] sm:$0xff]  ;;  %v70_v25 = vld [vmem:[#allocation4 + $0x60] sm:$0xff] }
  0x16   :  { %186 = vmatpush.msra.mxu1 %v104_v14  ;;  %168 = vmatpush.msra.mxu0 %v85_v15  ;;  %v77_v26 = vld [vmem:[#allocation4 + $0x98] sm:$0xff]  ;;  %v58_v27 = vld [vmem:[#allocation4] sm:$0xff]  ;;  %v60_v28 = vld [vmem:[#allocation4 + $0x10] sm:$0xff] }
  0x17   :  { %208 = vmatpush.msra.mxu2 %v87_v16  ;;  %228 = vmatpush.msra.mxu3 %v88_v17  ;;  %v61_v29 = vld [vmem:[#allocation4 + $0x18] sm:$0xff]  ;;  %v127_v31 = vld [vmem:[#allocation4 + $0x228] sm:$0xff]  ;;  %v128_v32 = vld [vmem:[#allocation4 + $0x230] sm:$0xff] }
  0x18   :  { %187 = vmatpush.msra.mxu1 %v95_v18  ;;  %169 = vmatpush.msra.mxu0 %v76_v19  ;;  %v125_v30 = vld [vmem:[#allocation4 + $0x218] sm:$0xff]  ;;  %v68_v33 = vld [vmem:[#allocation4 + $0x50] sm:$0xff]  ;;  %v118_v35 = vld [vmem:[#allocation4 + $0x1e0] sm:$0xff] }
  0x19   :  { %209 = vmatpush.msra.mxu2 %v78_v20  ;;  %229 = vmatpush.msra.mxu3 %v79_v21  ;;  %v116_v34 = vld [vmem:[#allocation4 + $0x1d0] sm:$0xff]  ;;  %v119_v36 = vld [vmem:[#allocation4 + $0x1e8] sm:$0xff]  ;;  %v109_v39 = vld [vmem:[#allocation4 + $0x198] sm:$0xff] }
  0x1a   :  { %188 = vmatpush.msra.mxu1 %v86_v22  ;;  %170 = vmatpush.msra.mxu0 %v67_v23  ;;  %v59_v37 = vld [vmem:[#allocation4 + $0x8] sm:$0xff]  ;;  %v110_v40 = vld [vmem:[#allocation4 + $0x1a0] sm:$0xff]  ;;  %v504_v42 = vld [vmem:[#allocation2] sm:$0x3] }
  0x1b   :  { %210 = vmatpush.msra.mxu2 %v69_v24  ;;  %230 = vmatpush.msra.mxu3 %v70_v25  ;;  %v107_v38 = vld [vmem:[#allocation4 + $0x188] sm:$0xff]  ;;  %v126_v41 = vld [vmem:[#allocation4 + $0x220] sm:$0xff]  ;;  %v100_v44 = vld [vmem:[#allocation4 + $0x150] sm:$0xff] }
  0x1c   :  { %189 = vmatpush.msra.mxu1 %v77_v26  ;;  %171 = vmatpush.msra.mxu0 %v58_v27  ;;  %v98_v43 = vld [vmem:[#allocation4 + $0x140] sm:$0xff]  ;;  %v101_v45 = vld [vmem:[#allocation4 + $0x158] sm:$0xff]  ;;  %v91_v48 = vld [vmem:[#allocation4 + $0x108] sm:$0xff] }
  0x1d   :  { %211 = vmatpush.msra.mxu2 %v60_v28  ;;  %231 = vmatpush.msra.mxu3 %v61_v29  ;;  %v117_v46 = vld [vmem:[#allocation4 + $0x1d8] sm:$0xff]  ;;  %v92_v49 = vld [vmem:[#allocation4 + $0x110] sm:$0xff]  ;;  %v82_v52 = vld [vmem:[#allocation4 + $0xc0] sm:$0xff] }
  0x1e   :  { %244 = vmatpush.msrb.mxu0 %v125_v30  ;;  %190 = vmatpush.msra.mxu1 %v68_v33  ;;  %v89_v47 = vld [vmem:[#allocation4 + $0xf8] sm:$0xff]  ;;  %v108_v50 = vld [vmem:[#allocation4 + $0x190] sm:$0xff]  ;;  %v83_v53 = vld [vmem:[#allocation4 + $0xc8] sm:$0xff] }
  0x1f   :  { %284 = vmatpush.msrb.mxu2 %v127_v31  ;;  %304 = vmatpush.msrb.mxu3 %v128_v32  ;;  %v80_v51 = vld [vmem:[#allocation4 + $0xb0] sm:$0xff]  ;;  %v99_v54 = vld [vmem:[#allocation4 + $0x148] sm:$0xff]  ;;  %v73_v56 = vld [vmem:[#allocation4 + $0x78] sm:$0xff] }
  0x20   :  { %245 = vmatpush.msrb.mxu0 %v116_v34  ;;  %191 = vmatpush.msra.mxu1 %v59_v37  ;;  %v71_v55 = vld [vmem:[#allocation4 + $0x68] sm:$0xff]  ;;  %v74_v57 = vld [vmem:[#allocation4 + $0x80] sm:$0xff]  ;;  %v64_v59 = vld [vmem:[#allocation4 + $0x30] sm:$0xff] }
  0x21   :  { %285 = vmatpush.msrb.mxu2 %v118_v35  ;;  %305 = vmatpush.msrb.mxu3 %v119_v36  ;;  %v90_v58 = vld [vmem:[#allocation4 + $0x100] sm:$0xff]  ;;  %v65_v61 = vld [vmem:[#allocation4 + $0x38] sm:$0xff]  ;;  %v72_v0 = vld [vmem:[#allocation4 + $0x70] sm:$0xff] }
  0x22   :  { %246 = vmatpush.msrb.mxu0 %v107_v38  ;;  %264 = vmatpush.msrb.mxu1 %v126_v41  ;;  %v62_v60 = vld [vmem:[#allocation4 + $0x20] sm:$0xff]  ;;  %v81_v62 = vld [vmem:[#allocation4 + $0xb8] sm:$0xff]  ;;  %v120_v1 = vld [vmem:[#allocation4 + $0x1f0] sm:$0xff] }
  0x23   :  { %286 = vmatpush.msrb.mxu2 %v109_v39  ;;  %306 = vmatpush.msrb.mxu3 %v110_v40  ;;  %v129_v63 = vld [vmem:[#allocation4 + $0x238] sm:$0xff]  ;;  %v63_v2 = vld [vmem:[#allocation4 + $0x28] sm:$0xff]  ;;  %v102_v4 = vld [vmem:[#allocation4 + $0x160] sm:$0xff] }
  0x24   :  { %381 = vmatmul.msk.f32.vlgmr.msra.gmra.mxu2 %vm152_vm0, %v504_v42  ;;  %382 = vmatmul.msk.f32.vlgmr.msra.gmra.mxu3 %vm152_vm0, %v504_v42  ;;  %v111_v3 = vld [vmem:[#allocation4 + $0x1a8] sm:$0xff]  ;;  %v93_v5 = vld [vmem:[#allocation4 + $0x118] sm:$0xff]  ;;  %v84_v6 = vld [vmem:[#allocation4 + $0xd0] sm:$0xff] }
  0x25   :  { %247 = vmatpush.msrb.mxu0 %v98_v43  ;;  %287 = vmatpush.msrb.mxu2 %v100_v44  ;;  %v75_v7 = vld [vmem:[#allocation4 + $0x88] sm:$0xff]  ;;  %v66_v8 = vld [vmem:[#allocation4 + $0x40] sm:$0xff] }
  0x26   :  { %307 = vmatpush.msrb.mxu3 %v101_v45  ;;  %265 = vmatpush.msrb.mxu1 %v117_v46  ;;  %v130_v9 = vld [vmem:[#allocation6] sm:$0xff] }
  0x27   :  { %248 = vmatpush.msrb.mxu0 %v89_v47  ;;  %288 = vmatpush.msrb.mxu2 %v91_v48  ;;  %v136_v10 = vperm.slane %v130_v9, 2  ;;  %v137_v11 = vperm.slane %v130_v9, 3  ;;  %v135_v12 = vperm.slane %v130_v9, 1  ;;  %v134_v16 = vperm.slane %v130_v9, 0 }
  0x28   :  { %308 = vmatpush.msrb.mxu3 %v92_v49  ;;  %266 = vmatpush.msrb.mxu1 %v108_v50  ;;  %v139_v30 = vperm.slane %v130_v9, 5  ;;  %v140_v32 = vperm.slane %v130_v9, 6  ;;  %v138_v33 = vperm.slane %v130_v9, 4  ;;  %v141_v35 = vperm.slane %v130_v9, 7 }
  0x29   :  { %249 = vmatpush.msrb.mxu0 %v80_v51  ;;  %289 = vmatpush.msrb.mxu2 %v82_v52  ;;  %v393_v52 = vld [vmem:[#allocation6 + $0x8] ss:$0 sm:$0xff] }
  0x2a   :  { %309 = vmatpush.msrb.mxu3 %v83_v53  ;;  %267 = vmatpush.msrb.mxu1 %v99_v54 }
  0x2b   :  { %250 = vmatpush.msrb.mxu0 %v71_v55  ;;  %380 = vmatmul.msk.f32.vlgmr.msra.gmra.mxu1 %vm152_vm0, %v504_v42 }
  0x2c   :  { %290 = vmatpush.msrb.mxu2 %v73_v56  ;;  %310 = vmatpush.msrb.mxu3 %v74_v57 }
  0x2d   :  { %268 = vmatpush.msrb.mxu1 %v90_v58  ;;  %379 = vmatmul.msk.f32.vlgmr.msra.gmra.mxu0 %vm152_vm0, %v504_v42 }
  0x2e   :  { %291 = vmatpush.msrb.mxu2 %v64_v59  ;;  %251 = vmatpush.msrb.mxu0 %v62_v60 }
  0x2f   :  { %311 = vmatpush.msrb.mxu3 %v65_v61  ;;  %269 = vmatpush.msrb.mxu1 %v81_v62 }
  0x30   :  { %385 = vmatmul.msk.f32.vlgmr.msrb.gmra.mxu2 %vm152_vm0, %v504_v42  ;;  %386 = vmatmul.msk.f32.vlgmr.msrb.gmra.mxu3 %vm152_vm0, %v504_v42 }
  0x31   :  { %324 = vmatpush.msra.mxu0 %v129_v63  ;;  %270 = vmatpush.msrb.mxu1 %v72_v0 }
  0x33   :  { %325 = vmatpush.msra.mxu0 %v120_v1  ;;  %271 = vmatpush.msrb.mxu1 %v63_v2 }
  0x34   :  { %384 = vmatmul.msk.f32.vlgmr.msrb.gmra.mxu1 %vm152_vm0, %v504_v42 }
  0x35   :  { %326 = vmatpush.msra.mxu0 %v111_v3 }
  0x36   :  { %383 = vmatmul.msk.f32.vlgmr.msrb.gmra.mxu0 %vm152_vm0, %v504_v42 }
  0x37   :  { %327 = vmatpush.msra.mxu0 %v102_v4 }
  0x39   :  { %328 = vmatpush.msra.mxu0 %v93_v5 }
  0x3b   :  { %329 = vmatpush.msra.mxu0 %v84_v6 }
  0x3d   :  { %330 = vmatpush.msra.mxu0 %v75_v7 }
  0x3f   :  { %331 = vmatpush.msra.mxu0 %v66_v8 }
  0x40   :  { %387 = vmatmul.msk.f32.vlgmr.msra.gmra.mxu0 %vm152_vm0, %v504_v42 }
  0xa7   :  { %v213_v13 = vpop.f32.mrf.mxu2  ;;  %v233_v15 = vpop.f32.mrf.mxu3 }
  0xa8   :  { %v214_v14 = vadd.f32 %v213_v13, %v136_v10  ;;  %v193_v17 = vpop.f32.mrf.mxu1  ;;  %v234_v18 = vadd.f32 %v233_v15, %v137_v11 }
  0xa9   :  { %v194_v19 = vadd.f32 %v193_v17, %v135_v12 }
  0xaa   :  { %v338_v20 = vmax.f32 %v214_v14, 0.0  ;;  %v339_v21 = vmax.f32 %v234_v18, 0.0  ;;  %v173_v22 = vpop.f32.mrf.mxu0 }
  0xab   :  { %v337_v23 = vmax.f32 %v194_v19, 0.0  ;;  %v174_v25 = vadd.f32 %v173_v22, %v134_v16 }
  0xac   :  { %v354_v24 = vrot.slane %v338_v20, 4  ;;  %v355_v26 = vrot.slane %v339_v21, 2 }
  0xad   :  { %v353_v27 = vrot.slane %v337_v23, 6  ;;  %v336_v28 = vmax.f32 %v174_v25, 0.0 }
  0xae   :  { %v362_v29 = vsel %vm361_vm1, %v354_v24, %v355_v26 }
  0xaf   :  { %v360_v31 = vsel %vm359_vm2, %v336_v28, %v353_v27 }
  0xb0   :  { %v364_v34 = vsel %vm363_vm3, %v360_v31, %v362_v29 }
  0xb1   :  { %370 = vst [vmem:[%s542_s3] sm:$0xff] %v364_v34  ;;  %v273_v36 = vpop.f32.mrf.mxu1 }
  0xb2   :  { %v274_v37 = vadd.f32 %v273_v36, %v139_v30 }
  0xb3   :  { %v293_v38 = vpop.f32.mrf.mxu2  ;;  %v253_v39 = vpop.f32.mrf.mxu0 }
  0xb4   :  { %v294_v40 = vadd.f32 %v293_v38, %v140_v32  ;;  %v313_v41 = vpop.f32.mrf.mxu3  ;;  %v254_v42 = vadd.f32 %v253_v39, %v138_v33  ;;  %v341_v43 = vmax.f32 %v274_v37, 0.0 }
  0xb5   :  { %v314_v44 = vadd.f32 %v313_v41, %v141_v35 }
  0xb6   :  { %v342_v45 = vmax.f32 %v294_v40, 0.0  ;;  %v340_v46 = vmax.f32 %v254_v42, 0.0  ;;  %v356_v47 = vrot.slane %v341_v43, 6 }
  0xb7   :  { %v343_v48 = vmax.f32 %v314_v44, 0.0 }
  0xb8   :  { %v357_v49 = vrot.slane %v342_v45, 4  ;;  %v365_v51 = vsel %vm359_vm2, %v340_v46, %v356_v47 }
  0xb9   :  { %v358_v50 = vrot.slane %v343_v48, 2 }
  0xbb   :  { %v366_v53 = vsel %vm361_vm1, %v357_v49, %v358_v50 }
  0xbc   :  { %v367_v54 = vsel %vm363_vm3, %v365_v51, %v366_v53 }
  0xbd   :  { %371 = vst [vmem:[%s542_s3 + $0x8] sm:$0xff] %v367_v54  ;;  %v333_v55 = vpop.f32.mrf.mxu0 }
  0xbe   :  { %v334_v56 = vadd.f32 %v393_v52, %v333_v55 }
  0xc0   :  { %v344_v57 = vmax.f32 %v334_v56, 0.0 }
  0xc2   :  { %372 = vst [vmem:[%s542_s3 + $0x10] sm:$0x3] %v344_v57 }
  0xc3   :  { %377 = vsyncpa [#allocation3], 1 }
  0xc4   :  { %378 = vsyncpa [#allocation5], 1 }

// kernel: decoder_forward.7
= control target key start
LH: loop header
LB: loop body
LE: loop exit
PB: predicated region body
PF: predicated region fallthrough
CT: control target
= control target key end

     0   :  { %s1835_s26 = smov 127   ;;  %s1836_s27 = smov 126   ;;  %vm85_vm0 = vcmask 1039360   ;;  %vm183_vm1 = vcmask 982016   ;;  %vm134_vm2 = vcmask 1031168   ;;  %vm281_vm3 = vcmask 965632   ;;  %s2910_s0 = inlined_call_operand.vmem [shape: f32[64,146], index: 0, kind: input, shape index: {}]   ;;  %s2911_s1 = inlined_call_operand.vmem [shape: f32[128,576], index: 1, kind: input, shape index: {}]   ;;  %s2912_s2 = inlined_call_operand.vmem [shape: f32[128,1], index: 2, kind: input, shape index: {}]   ;;  %s2913_s4 = inlined_call_operand.vmem [shape: f32[1,128], index: 4, kind: input, shape index: {}]   ;;  %s2914_s3 = inlined_call_operand.vmem [shape: f32[128,1], index: 3, kind: input, shape index: {}]   ;;  %s2915_s5 = inlined_call_operand.vmem [shape: f32[128,128], index: 5, kind: output, shape index: {}]  }
   0x1   :  { %v1877_v0 = vld [vmem:[%s2910_s0 + $0x20] sm:$0xff]  ;;  %v31_v1 = vld [vmem:[%s2910_s0 + $0x28] sm:$0xff]  ;;  %v1900_v6 = vld [vmem:[%s2910_s0 + $0x30] sm:$0xff]  ;;  %s1839_s28 = smov 118   ;;  %s1840_s29 = smov 112   ;;  %vm232_vm4 = vcmask 973824  }
   0x2   :  { %v1885_v2 = vld [vmem:[%s2910_s0] sm:$0xff]  ;;  %v1888_v3 = vpack.i.bf16 %v31_v1, %v1877_v0  ;;  %v29_v4 = vld [vmem:[%s2910_s0 + $0x8] sm:$0xff]  ;;  %v32_v7 = vld [vmem:[%s2910_s0 + $0x38] sm:$0xff]  ;;  %s1841_s30 = smov 111   ;;  %s1842_s6 = smov 110   ;;  %vm379_vm5 = vcmask 908288  }
   0x3   :  { %v1894_v5 = vpack.i.bf16 %v29_v4, %v1885_v2  ;;  %v1909_v8 = vld [vmem:[%s2910_s0 + $0x40] sm:$0xff]  ;;  %v33_v9 = vld [vmem:[%s2910_s0 + $0x48] sm:$0xff]  ;;  %v1917_v10 = vld [vmem:[%s2910_s0 + $0x10] sm:$0xff]  ;;  %v1926_v13 = vpack.i.bf16 %v32_v7, %v1900_v6  ;;  %vm428_vm6 = vcmask 900096   ;;  %vm330_vm7 = vcmask 916480  }
   0x4   :  { %1514 = vrot.lane.b32.xlu1 %v1888_v3, %s1835_s26  ;;  %v30_v11 = vld [vmem:[%s2910_s0 + $0x18] sm:$0xff]  ;;  %v1923_v12 = vpack.i.bf16 %v33_v9, %v1909_v8  ;;  %v1935_v15 = vld [vmem:[%s2910_s0 + $0x50] sm:$0xff]  ;;  %v1956_v20 = vld [vmem:[%s2910_s0 + $0x60] sm:$0xff]  ;;  %vm525_vm8 = vcmask 523264  }
   0x5   :  { %1504 = vrot.lane.b32.xlu0 %v1894_v5, %s1835_s26  ;;  %v1930_v14 = vpack.i.bf16 %v30_v11, %v1917_v10  ;;  %v34_v16 = vld [vmem:[%s2910_s0 + $0x58] sm:$0xff]  ;;  %v1948_v18 = vld [vmem:[%s2910_s0 + $0x70] sm:$0xff]  ;;  %v35_v21 = vld [vmem:[%s2910_s0 + $0x68] sm:$0xff] }
   0x6   :  { %1524 = vrot.lane.b32.xlu2 %v1923_v12, %s1835_s26  ;;  %v1942_v17 = vpack.i.bf16 %v34_v16, %v1935_v15  ;;  %v36_v19 = vld [vmem:[%s2910_s0 + $0x78] sm:$0xff]  ;;  %v1966_v23 = vpack.i.bf16 %v35_v21, %v1956_v20  ;;  %s1837_s0 = smov 120  }
   0x7   :  { %v1962_v22 = vpack.i.bf16 %v36_v19, %v1948_v18 }
   0xc   :  { %1519 = vrot.lane.b32.xlu1 %v1926_v13, %s1835_s26 }
   0xd   :  { %1509 = vrot.lane.b32.xlu0 %v1930_v14, %s1835_s26 }
   0xe   :  { %1529 = vrot.lane.b32.xlu2 %v1942_v17, %s1835_s26 }
  0x14   :  { %1539 = vrot.lane.b32.xlu1 %v1962_v22, %s1835_s26 }
  0x15   :  { %1534 = vrot.lane.b32.xlu0 %v1966_v23, %s1835_s26  ;;  %s1838_s26 = smov 119  }
  0x16   :  { %1544 = vrot.lane.b32.xlu2 %v1894_v5, %s1836_s27 }
  0x1c   :  { %1554 = vrot.lane.b32.xlu1 %v1888_v3, %s1836_s27 }
  0x1d   :  { %1549 = vrot.lane.b32.xlu0 %v1930_v14, %s1836_s27 }
  0x1e   :  { %1559 = vrot.lane.b32.xlu2 %v1926_v13, %s1836_s27 }
  0x24   :  { %1569 = vrot.lane.b32.xlu1 %v1942_v17, %s1836_s27 }
  0x25   :  { %1564 = vrot.lane.b32.xlu0 %v1923_v12, %s1836_s27 }
  0x26   :  { %1574 = vrot.lane.b32.xlu2 %v1966_v23, %s1836_s27 }
  0x2c   :  { %1584 = vrot.lane.b32.xlu1 %v1894_v5, %s1837_s0 }
  0x2d   :  { %1579 = vrot.lane.b32.xlu0 %v1962_v22, %s1836_s27 }
  0x2e   :  { %1589 = vrot.lane.b32.xlu2 %v1930_v14, %s1837_s0 }
  0x34   :  { %1599 = vrot.lane.b32.xlu1 %v1926_v13, %s1837_s0 }
  0x35   :  { %1594 = vrot.lane.b32.xlu0 %v1888_v3, %s1837_s0 }
  0x36   :  { %1604 = vrot.lane.b32.xlu2 %v1923_v12, %s1837_s0 }
  0x3c   :  { %1614 = vrot.lane.b32.xlu1 %v1966_v23, %s1837_s0 }
  0x3d   :  { %1609 = vrot.lane.b32.xlu0 %v1942_v17, %s1837_s0 }
  0x3e   :  { %1619 = vrot.lane.b32.xlu2 %v1962_v22, %s1837_s0 }
  0x44   :  { %1629 = vrot.lane.b32.xlu1 %v1930_v14, %s1838_s26 }
  0x45   :  { %1624 = vrot.lane.b32.xlu0 %v1894_v5, %s1838_s26 }
  0x46   :  { %1634 = vrot.lane.b32.xlu2 %v1888_v3, %s1838_s26 }
  0x4c   :  { %1644 = vrot.lane.b32.xlu1 %v1923_v12, %s1838_s26 }
  0x4d   :  { %1639 = vrot.lane.b32.xlu0 %v1926_v13, %s1838_s26 }
  0x4e   :  { %1649 = vrot.lane.b32.xlu2 %v1942_v17, %s1838_s26 }
  0x54   :  { %1659 = vrot.lane.b32.xlu1 %v1962_v22, %s1838_s26 }
  0x55   :  { %1654 = vrot.lane.b32.xlu0 %v1966_v23, %s1838_s26 }
  0x56   :  { %1664 = vrot.lane.b32.xlu2 %v1894_v5, %s1839_s28 }
  0x5c   :  { %1674 = vrot.lane.b32.xlu1 %v1888_v3, %s1839_s28 }
  0x5d   :  { %1669 = vrot.lane.b32.xlu0 %v1930_v14, %s1839_s28 }
  0x5e   :  { %1679 = vrot.lane.b32.xlu2 %v1926_v13, %s1839_s28 }
  0x60   :  { %v1998_v24 = vpop.permute.xlu2 %1524 }
  0x61   :  { %v1527_v44 = vunpack.i.h.bf16 %v1998_v24  ;;  %v1526_v45 = vunpack.i.l.bf16 %v1998_v24 }
  0x63   :  { %v90_v53 = vsel %vm85_vm0, %v1526_v45, %v1527_v44 }
  0x64   :  { %1689 = vrot.lane.b32.xlu1 %v1942_v17, %s1839_s28 }
  0x65   :  { %1684 = vrot.lane.b32.xlu0 %v1923_v12, %s1839_s28 }
  0x66   :  { %1694 = vrot.lane.b32.xlu2 %v1966_v23, %s1839_s28 }
  0x68   :  { %v1530_v25 = vpop.permute.xlu2 %1529 }
  0x69   :  { %v1532_v40 = vunpack.i.h.bf16 %v1530_v25  ;;  %v1531_v41 = vunpack.i.l.bf16 %v1530_v25 }
  0x6b   :  { %v91_v49 = vsel %vm85_vm0, %v1531_v41, %v1532_v40 }
  0x6c   :  { %1704 = vrot.lane.b32.xlu1 %v1894_v5, %s1840_s29 }
  0x6d   :  { %1699 = vrot.lane.b32.xlu0 %v1962_v22, %s1839_s28 }
  0x6e   :  { %1709 = vrot.lane.b32.xlu2 %v1930_v14, %s1840_s29 }
  0x70   :  { %v2006_v26 = vpop.permute.xlu2 %1544 }
  0x74   :  { %1719 = vrot.lane.b32.xlu1 %v1926_v13, %s1840_s29 }
  0x75   :  { %1714 = vrot.lane.b32.xlu0 %v1888_v3, %s1840_s29 }
  0x76   :  { %v2010_v27 = vpop.permute.xlu1 %1514  ;;  %1724 = vrot.lane.b32.xlu2 %v1923_v12, %s1840_s29 }
  0x77   :  { %v2012_v28 = vpop.permute.xlu0 %1504  ;;  %v1517_v51 = vunpack.i.h.bf16 %v2010_v27  ;;  %v1516_v52 = vunpack.i.l.bf16 %v2010_v27  ;;  %v470_v27 = vld [vmem:[%s2911_s1 + $0xc8] sm:$0xff] }
  0x78   :  { %v2015_v29 = vpop.permute.xlu2 %1559  ;;  %v1507_v59 = vunpack.i.h.bf16 %v2012_v28  ;;  %v1506_v60 = vunpack.i.l.bf16 %v2012_v28 }
  0x79   :  { %v88_v58 = vsel %vm85_vm0, %v1516_v52, %v1517_v51 }
  0x7a   :  { %v86_v1 = vsel %vm85_vm0, %v1506_v60, %v1507_v59  ;;  %v1562_v59 = vunpack.i.h.bf16 %v2015_v29  ;;  %v1561_v60 = vunpack.i.l.bf16 %v2015_v29 }
  0x7c   :  { %1734 = vrot.lane.b32.xlu1 %v1966_v23, %s1840_s29  ;;  %v138_v29 = vsel %vm134_vm2, %v1561_v60, %v1562_v59 }
  0x7d   :  { %1729 = vrot.lane.b32.xlu0 %v1942_v17, %s1840_s29 }
  0x7e   :  { %v1520_v30 = vpop.permute.xlu1 %1519  ;;  %1739 = vrot.lane.b32.xlu2 %v1962_v22, %s1840_s29 }
  0x7f   :  { %v2019_v31 = vpop.permute.xlu0 %1509  ;;  %v1522_v46 = vunpack.i.h.bf16 %v1520_v30  ;;  %v1521_v47 = vunpack.i.l.bf16 %v1520_v30 }
  0x80   :  { %v2022_v32 = vpop.permute.xlu2 %1574  ;;  %v1512_v56 = vunpack.i.h.bf16 %v2019_v31  ;;  %v1511_v57 = vunpack.i.l.bf16 %v2019_v31 }
  0x81   :  { %v89_v54 = vsel %vm85_vm0, %v1521_v47, %v1522_v46  ;;  %v1577_v45 = vunpack.i.h.bf16 %v2022_v32  ;;  %v1576_v46 = vunpack.i.l.bf16 %v2022_v32  ;;  %v485_v32 = vld [vmem:[%s2911_s1 + $0x140] sm:$0xff] }
  0x82   :  { %v87_v63 = vsel %vm85_vm0, %v1511_v57, %v1512_v56 }
  0x84   :  { %1749 = vrot.lane.b32.xlu1 %v1962_v22, %s1841_s30 }
  0x85   :  { %1744 = vrot.lane.b32.xlu0 %v1894_v5, %s1841_s30 }
  0x86   :  { %v1540_v33 = vpop.permute.xlu1 %1539  ;;  %1754 = vrot.lane.b32.xlu2 %v1966_v23, %s1841_s30 }
  0x87   :  { %v1542_v34 = vunpack.i.h.bf16 %v1540_v33  ;;  %v1541_v35 = vunpack.i.l.bf16 %v1540_v33  ;;  %v1535_v36 = vpop.permute.xlu0 %1534 }
  0x88   :  { %v1537_v37 = vunpack.i.h.bf16 %v1535_v36  ;;  %v1536_v38 = vunpack.i.l.bf16 %v1535_v36  ;;  %v2031_v42 = vpop.permute.xlu2 %1589 }
  0x89   :  { %v93_v39 = vsel %vm85_vm0, %v1541_v35, %v1542_v34 }
  0x8a   :  { %574 = vmatpush.msra.mxu0 %v93_v39  ;;  %1446 = vmatpush.msra.mxu1 %v93_v39  ;;  %v92_v43 = vsel %vm85_vm0, %v1536_v38, %v1537_v37  ;;  %v1591_v37 = vunpack.i.l.bf16 %v2031_v42 }
  0x8b   :  { %1447 = vmatpush.msra.mxu2 %v93_v39  ;;  %1448 = vmatpush.msra.mxu3 %v93_v39 }
  0x8c   :  { %575 = vmatpush.msra.mxu0 %v92_v43  ;;  %1449 = vmatpush.msra.mxu1 %v92_v43 }
  0x8d   :  { %1759 = vrot.lane.b32.xlu0 %v1942_v17, %s1841_s30  ;;  %1450 = vmatpush.msra.mxu2 %v92_v43 }
  0x8e   :  { %1451 = vmatpush.msra.mxu3 %v92_v43  ;;  %v2038_v48 = vpop.permute.xlu1 %1554  ;;  %1764 = vrot.lane.b32.xlu1 %v1923_v12, %s1841_s30 }
  0x8f   :  { %v2043_v50 = vpop.permute.xlu0 %1549  ;;  %576 = vmatpush.msra.mxu0 %v91_v49  ;;  %1452 = vmatpush.msra.mxu1 %v91_v49 }
  0x90   :  { %1453 = vmatpush.msra.mxu2 %v91_v49  ;;  %1454 = vmatpush.msra.mxu3 %v91_v49  ;;  %v2049_v55 = vpop.permute.xlu2 %1604 }
  0x91   :  { %577 = vmatpush.msra.mxu0 %v90_v53  ;;  %1455 = vmatpush.msra.mxu1 %v90_v53 }
  0x92   :  { %1456 = vmatpush.msra.mxu2 %v90_v53  ;;  %1457 = vmatpush.msra.mxu3 %v90_v53 }
  0x93   :  { %578 = vmatpush.msra.mxu0 %v89_v54  ;;  %1458 = vmatpush.msra.mxu1 %v89_v54 }
  0x94   :  { %1459 = vmatpush.msra.mxu2 %v89_v54  ;;  %1460 = vmatpush.msra.mxu3 %v89_v54 }
  0x95   :  { %1774 = vrot.lane.b32.xlu0 %v1888_v3, %s1841_s30  ;;  %579 = vmatpush.msra.mxu0 %v88_v58 }
  0x96   :  { %1461 = vmatpush.msra.mxu1 %v88_v58  ;;  %1462 = vmatpush.msra.mxu2 %v88_v58  ;;  %v2058_v61 = vpop.permute.xlu1 %1569 }
  0x97   :  { %1463 = vmatpush.msra.mxu3 %v88_v58  ;;  %1779 = vrot.lane.b32.xlu1 %v1930_v14, %s1841_s30  ;;  %v2062_v62 = vpop.permute.xlu0 %1564  ;;  %v1572_v51 = vunpack.i.h.bf16 %v2058_v61  ;;  %v1571_v52 = vunpack.i.l.bf16 %v2058_v61  ;;  %v141_v58 = vsel %vm134_vm2, %v1576_v46, %v1577_v45 }
  0x98   :  { %580 = vmatpush.msra.mxu0 %v87_v63  ;;  %1464 = vmatpush.msra.mxu1 %v87_v63  ;;  %v1620_v4 = vpop.permute.xlu2 %1619  ;;  %v1567_v56 = vunpack.i.h.bf16 %v2062_v62  ;;  %v1566_v57 = vunpack.i.l.bf16 %v2062_v62 }
  0x99   :  { %1465 = vmatpush.msra.mxu2 %v87_v63  ;;  %1466 = vmatpush.msra.mxu3 %v87_v63  ;;  %v1622_v16 = vunpack.i.h.bf16 %v1620_v4  ;;  %v140_v61 = vsel %vm134_vm2, %v1571_v52, %v1572_v51 }
  0x9a   :  { %581 = vmatpush.msra.mxu0 %v86_v1  ;;  %1467 = vmatpush.msra.mxu1 %v86_v1 }
  0x9b   :  { %1468 = vmatpush.msra.mxu2 %v86_v1  ;;  %1469 = vmatpush.msra.mxu3 %v86_v1  ;;  %v1557_v1 = vunpack.i.h.bf16 %v2038_v48 }
  0x9c   :  { %1470 = vmatpush.msra.mxu1 %v1948_v18  ;;  %1769 = vrot.lane.b32.xlu2 %v1926_v13, %s1841_s30 }
  0x9d   :  { %1789 = vrot.lane.b32.xlu0 %v1966_v23, %s1842_s6  ;;  %1471 = vmatpush.msra.mxu2 %v1948_v18 }
  0x9e   :  { %v2072_v7 = vpop.permute.xlu1 %1584  ;;  %1473 = vmatpush.msra.mxu1 %v1956_v20  ;;  %1472 = vmatpush.msra.mxu3 %v1948_v18 }
  0x9f   :  { %v2076_v9 = vpop.permute.xlu0 %1579  ;;  %1794 = vrot.lane.b32.xlu1 %v1942_v17, %s1842_s6  ;;  %1474 = vmatpush.msra.mxu2 %v1956_v20  ;;  %v1621_v17 = vunpack.i.l.bf16 %v1620_v4  ;;  %v1586_v40 = vunpack.i.l.bf16 %v2072_v7  ;;  %v1556_v4 = vunpack.i.l.bf16 %v2038_v48 }
  0xa0   :  { %1476 = vmatpush.msra.mxu1 %v1935_v15  ;;  %1475 = vmatpush.msra.mxu3 %v1956_v20  ;;  %v2086_v11 = vpop.permute.xlu2 %1634  ;;  %v1581_v44 = vunpack.i.l.bf16 %v2076_v9 }
  0xa1   :  { %1477 = vmatpush.msra.mxu2 %v1935_v15  ;;  %582 = vmatpush.msra.mxu0 %v1948_v18  ;;  %v137_v48 = vsel %vm134_vm2, %v1556_v4, %v1557_v1 }
  0xa2   :  { %1479 = vmatpush.msra.mxu1 %v1909_v8  ;;  %1478 = vmatpush.msra.mxu3 %v1935_v15 }
  0xa3   :  { %1480 = vmatpush.msra.mxu2 %v1909_v8  ;;  %583 = vmatpush.msra.mxu0 %v1956_v20  ;;  %v191_v20 = vsel %vm183_vm1, %v1621_v17, %v1622_v16  ;;  %v1551_v16 = vunpack.i.l.bf16 %v2043_v50 }
  0xa4   :  { %1482 = vmatpush.msra.mxu1 %v1900_v6  ;;  %1784 = vrot.lane.b32.xlu2 %v1962_v22, %s1842_s6 }
  0xa5   :  { %1804 = vrot.lane.b32.xlu0 %v1926_v13, %s1842_s6  ;;  %1483 = vmatpush.msra.mxu2 %v1900_v6  ;;  %v465_v13 = vld [vmem:[%s2911_s1 + $0xa0] sm:$0xff] }
  0xa6   :  { %v1600_v18 = vpop.permute.xlu1 %1599  ;;  %1485 = vmatpush.msra.mxu1 %v1877_v0  ;;  %1481 = vmatpush.msra.mxu3 %v1909_v8 }
  0xa7   :  { %v1595_v19 = vpop.permute.xlu0 %1594  ;;  %1809 = vrot.lane.b32.xlu1 %v1888_v3, %s1842_s6  ;;  %1486 = vmatpush.msra.mxu2 %v1877_v0  ;;  %v1602_v30 = vunpack.i.h.bf16 %v1600_v18  ;;  %v1601_v31 = vunpack.i.l.bf16 %v1600_v18  ;;  %v1547_v18 = vunpack.i.h.bf16 %v2006_v26 }
  0xa8   :  { %1488 = vmatpush.msra.mxu1 %v1917_v10  ;;  %1484 = vmatpush.msra.mxu3 %v1900_v6  ;;  %v2111_v3 = vpop.permute.xlu2 %1649  ;;  %v1596_v34 = vunpack.i.l.bf16 %v1595_v19 }
  0xa9   :  { %1489 = vmatpush.msra.mxu2 %v1917_v10  ;;  %584 = vmatpush.msra.mxu0 %v1935_v15  ;;  %v187_v39 = vsel %vm183_vm1, %v1601_v31, %v1602_v30 }
  0xaa   :  { %1491 = vmatpush.msra.mxu1 %v1885_v2  ;;  %1487 = vmatpush.msra.mxu3 %v1877_v0 }
  0xab   :  { %602 = vmatmul.f32.vlgmr.msra.gmra.mxu1 %v465_v13  ;;  %1492 = vmatpush.msra.mxu2 %v1885_v2  ;;  %v490_v13 = vld [vmem:[%s2911_s1 + $0x168] sm:$0xff] }
  0xac   :  { %639 = vmatpush.msrb.mxu1 %v191_v20  ;;  %1799 = vrot.lane.b32.xlu2 %v1923_v12, %s1842_s6  ;;  %v1606_v12 = vunpack.i.l.bf16 %v2049_v55 }
  0xad   :  { %1819 = vrot.lane.b32.xlu0 %v1894_v5, %s1842_s6  ;;  %1490 = vmatpush.msra.mxu3 %v1917_v10  ;;  %v1607_v5 = vunpack.i.h.bf16 %v2049_v55  ;;  %v480_v55 = vld [vmem:[%s2911_s1 + $0x118] sm:$0xff] }
  0xae   :  { %v1615_v21 = vpop.permute.xlu1 %1614  ;;  %585 = vmatpush.msra.mxu0 %v1909_v8  ;;  %614 = vmatmul.f32.vlgmr.msra.gmra.mxu2 %v485_v32  ;;  %v445_v32 = vld [vmem:[%s2911_s1] sm:$0xff] }
  0xaf   :  { %v1617_v15 = vunpack.i.h.bf16 %v1615_v21  ;;  %v1616_v22 = vunpack.i.l.bf16 %v1615_v21  ;;  %v1610_v23 = vpop.permute.xlu0 %1609  ;;  %1493 = vmatpush.msra.mxu3 %v1885_v2  ;;  %v188_v35 = vsel %vm183_vm1, %v1606_v12, %v1607_v5  ;;  %v500_v12 = vld [vmem:[%s2911_s1 + $0x1b8] sm:$0xff] }
  0xb0   :  { %v1612_v24 = vunpack.i.h.bf16 %v1610_v23  ;;  %v1611_v25 = vunpack.i.l.bf16 %v1610_v23  ;;  %586 = vmatpush.msra.mxu0 %v1900_v6  ;;  %v2129_v8 = vpop.permute.xlu2 %1664  ;;  %v1597_v6 = vunpack.i.h.bf16 %v1595_v19  ;;  %v1546_v19 = vunpack.i.l.bf16 %v2006_v26  ;;  %v495_v23 = vld [vmem:[%s2911_s1 + $0x190] sm:$0xff] }
  0xb1   :  { %v190_v28 = vsel %vm183_vm1, %v1616_v22, %v1617_v15  ;;  %v1667_v59 = vunpack.i.h.bf16 %v2129_v8  ;;  %v1666_v60 = vunpack.i.l.bf16 %v2129_v8 }
  0xb2   :  { %640 = vmatpush.msrb.mxu1 %v190_v28  ;;  %587 = vmatpush.msra.mxu0 %v1877_v0  ;;  %v189_v33 = vsel %vm183_vm1, %v1611_v25, %v1612_v24  ;;  %v1592_v0 = vunpack.i.h.bf16 %v2031_v42  ;;  %v186_v41 = vsel %vm183_vm1, %v1596_v34, %v1597_v6  ;;  %v1582_v42 = vunpack.i.h.bf16 %v2076_v9  ;;  %v451_v24 = vld [vmem:[%s2911_s1 + $0x30] sm:$0xff]  ;;  %v456_v28 = vld [vmem:[%s2911_s1 + $0x58] sm:$0xff] }
  0xb3   :  { %605 = vmatmul.f32.gmra.mxu1 %v470_v27  ;;  %v1552_v9 = vunpack.i.h.bf16 %v2043_v50  ;;  %v446_v50 = vld [vmem:[%s2911_s1 + $0x8] sm:$0xff]  ;;  %v135_v21 = vsel %vm134_vm2, %v1546_v19, %v1547_v18  ;;  %v282_v19 = vsel %vm281_vm3, %v1666_v60, %v1667_v59 }
  0xb4   :  { %641 = vmatpush.msrb.mxu1 %v189_v33  ;;  %1814 = vrot.lane.b32.xlu2 %v1930_v14, %s1842_s6  ;;  %v475_v14 = vld [vmem:[%s2911_s1 + $0xf0] sm:$0xff]  ;;  %v142_v54 = vsel %vm134_vm2, %v1581_v44, %v1582_v42  ;;  %v461_v44 = vld [vmem:[%s2911_s1 + $0x80] sm:$0xff] }
  0xb5   :  { %588 = vmatpush.msra.mxu0 %v1917_v10  ;;  %v1587_v10 = vunpack.i.h.bf16 %v2072_v7  ;;  %v139_v7 = vsel %vm134_vm2, %v1566_v57, %v1567_v56  ;;  %v136_v20 = vsel %vm134_vm2, %v1551_v16, %v1552_v9 }
  0xb6   :  { %642 = vmatpush.msrb.mxu1 %v188_v35  ;;  %v2137_v36 = vpop.permute.xlu1 %1629  ;;  %617 = vmatmul.f32.gmra.mxu2 %v490_v13  ;;  %v1652_v13 = vunpack.i.h.bf16 %v2111_v3 }
  0xb7   :  { %v2141_v38 = vpop.permute.xlu0 %1624  ;;  %589 = vmatpush.msra.mxu0 %v1885_v2  ;;  %v185_v2 = vsel %vm183_vm1, %v1591_v37, %v1592_v0  ;;  %v184_v47 = vsel %vm183_vm1, %v1586_v40, %v1587_v10  ;;  %v505_v0 = vld [vmem:[%s2911_s1 + $0x1e0] sm:$0xff] }
  0xb8   :  { %643 = vmatpush.msrb.mxu1 %v187_v39  ;;  %v2151_v43 = vpop.permute.xlu2 %1679  ;;  %626 = vmatmul.f32.vlgmr.msra.gmra.mxu3 %v505_v0  ;;  %v520_v0 = vld [vmem:[%s2911_s1 + $0x258] sm:$0xff] }
  0xb9   :  { %v1681_v45 = vunpack.i.l.bf16 %v2151_v43  ;;  %590 = vmatmul.f32.vlgmr.msra.gmra.mxu0 %v445_v32  ;;  %v460_v32 = vld [vmem:[%s2911_s1 + $0x78] sm:$0xff] }
  0xba   :  { %644 = vmatpush.msrb.mxu1 %v186_v41 }
  0xbb   :  { %608 = vmatmul.f32.gmra.mxu1 %v475_v14 }
  0xbc   :  { %645 = vmatpush.msrb.mxu1 %v185_v2  ;;  %v1682_v2 = vunpack.i.h.bf16 %v2151_v43  ;;  %v510_v43 = vld [vmem:[%s2911_s1 + $0x208] sm:$0xff] }
  0xbe   :  { %646 = vmatpush.msrb.mxu1 %v184_v47  ;;  %v2159_v49 = vpop.permute.xlu1 %1644  ;;  %620 = vmatmul.f32.gmra.mxu2 %v495_v23 }
  0xbf   :  { %v2163_v53 = vpop.permute.xlu0 %1639 }
  0xc0   :  { %647 = vmatpush.msrb.mxu1 %v142_v54  ;;  %v1695_v63 = vpop.permute.xlu2 %1694  ;;  %629 = vmatmul.f32.gmra.mxu3 %v510_v43 }
  0xc1   :  { %v1697_v33 = vunpack.i.h.bf16 %v1695_v63  ;;  %v1696_v6 = vunpack.i.l.bf16 %v1695_v63  ;;  %v466_v63 = vld [vmem:[%s2911_s1 + $0xa8] sm:$0xff] }
  0xc2   :  { %648 = vmatpush.msrb.mxu1 %v141_v58  ;;  %v285_v58 = vsel %vm281_vm3, %v1681_v45, %v1682_v2  ;;  %v476_v2 = vld [vmem:[%s2911_s1 + $0xf8] sm:$0xff] }
  0xc3   :  { %611 = vmatmul.f32.gmra.mxu1 %v480_v55  ;;  %v288_v42 = vsel %vm281_vm3, %v1696_v6, %v1697_v33  ;;  %v455_v6 = vld [vmem:[%s2911_s1 + $0x50] sm:$0xff] }
  0xc4   :  { %649 = vmatpush.msrb.mxu1 %v140_v61 }
  0xc6   :  { %650 = vmatpush.msrb.mxu1 %v139_v7  ;;  %v2181_v62 = vpop.permute.xlu1 %1659  ;;  %623 = vmatmul.f32.gmra.mxu2 %v500_v12 }
  0xc7   :  { %v2185_v17 = vpop.permute.xlu0 %1654  ;;  %v1662_v4 = vunpack.i.h.bf16 %v2181_v62  ;;  %v1661_v7 = vunpack.i.l.bf16 %v2181_v62  ;;  %v515_v62 = vld [vmem:[%s2911_s1 + $0x230] sm:$0xff] }
  0xc8   :  { %651 = vmatpush.msrb.mxu1 %v138_v29  ;;  %v2199_v26 = vpop.permute.xlu2 %1709  ;;  %v1657_v8 = vunpack.i.h.bf16 %v2185_v17  ;;  %v1656_v18 = vunpack.i.l.bf16 %v2185_v17  ;;  %632 = vmatmul.f32.gmra.mxu3 %v515_v62  ;;  %v1647_v17 = vunpack.i.h.bf16 %v2159_v49 }
  0xca   :  { %652 = vmatpush.msrb.mxu1 %v137_v48  ;;  %v450_v48 = vld [vmem:[%s2911_s1 + $0x28] sm:$0xff] }
  0xcb   :  { %593 = vmatmul.f32.gmra.mxu0 %v450_v48 }
  0xcc   :  { %653 = vmatpush.msrb.mxu1 %v136_v20  ;;  %v1651_v20 = vunpack.i.l.bf16 %v2111_v3  ;;  %v1641_v3 = vunpack.i.l.bf16 %v2163_v53 }
  0xce   :  { %654 = vmatpush.msrb.mxu1 %v135_v21  ;;  %v1675_v15 = vpop.permute.xlu1 %1674  ;;  %v1646_v21 = vunpack.i.l.bf16 %v2159_v49 }
  0xcf   :  { %v1670_v22 = vpop.permute.xlu0 %1669  ;;  %655 = vmatmul.f32.vlgmr.msrb.gmra.mxu1 %v446_v50  ;;  %v1677_v52 = vunpack.i.h.bf16 %v1675_v15  ;;  %v1676_v54 = vunpack.i.l.bf16 %v1675_v15  ;;  %v240_v50 = vsel %vm232_vm4, %v1661_v7, %v1662_v4  ;;  %v239_v15 = vsel %vm232_vm4, %v1656_v18, %v1657_v8  ;;  %v452_v18 = vld [vmem:[%s2911_s1 + $0x38] sm:$0xff] }
  0xd0   :  { %v2207_v5 = vpop.permute.xlu2 %1724  ;;  %v1672_v56 = vunpack.i.h.bf16 %v1670_v22  ;;  %v1671_v57 = vunpack.i.l.bf16 %v1670_v22  ;;  %v471_v22 = vld [vmem:[%s2911_s1 + $0xd0] sm:$0xff]  ;;  %635 = vmatmul.f32.gmra.mxu3 %v520_v0 }
  0xd1   :  { %v284_v61 = vsel %vm281_vm3, %v1676_v54, %v1677_v52 }
  0xd2   :  { %v283_v9 = vsel %vm281_vm3, %v1671_v57, %v1672_v56 }
  0xd3   :  { %596 = vmatmul.f32.gmra.mxu0 %v455_v6 }
  0xd6   :  { %v1690_v25 = vpop.permute.xlu1 %1689 }
  0xd7   :  { %v1685_v27 = vpop.permute.xlu0 %1684  ;;  %658 = vmatmul.f32.gmra.mxu1 %v451_v24  ;;  %v1692_v37 = vunpack.i.h.bf16 %v1690_v25  ;;  %v1691_v39 = vunpack.i.l.bf16 %v1690_v25  ;;  %v1642_v25 = vunpack.i.h.bf16 %v2163_v53  ;;  %v237_v53 = vsel %vm232_vm4, %v1646_v21, %v1647_v17 }
  0xd8   :  { %v2221_v10 = vpop.permute.xlu2 %1739  ;;  %v1687_v40 = vunpack.i.h.bf16 %v1685_v27  ;;  %v1686_v41 = vunpack.i.l.bf16 %v1685_v27  ;;  %v238_v27 = vsel %vm232_vm4, %v1651_v20, %v1652_v13 }
  0xd9   :  { %v287_v46 = vsel %vm281_vm3, %v1691_v39, %v1692_v37 }
  0xda   :  { %v286_v55 = vsel %vm281_vm3, %v1686_v41, %v1687_v40  ;;  %v1631_v40 = vunpack.i.l.bf16 %v2137_v36  ;;  %v236_v41 = vsel %vm232_vm4, %v1641_v3, %v1642_v25 }
  0xdb   :  { %599 = vmatmul.f32.gmra.mxu0 %v460_v32 }
  0xde   :  { %v2215_v30 = vpop.permute.xlu1 %1704 }
  0xdf   :  { %v1700_v31 = vpop.permute.xlu0 %1699  ;;  %661 = vmatmul.f32.gmra.mxu1 %v456_v28 }
  0xe0   :  { %v1702_v34 = vunpack.i.h.bf16 %v1700_v31  ;;  %v1701_v35 = vunpack.i.l.bf16 %v1700_v31  ;;  %v1755_v1 = vpop.permute.xlu2 %1754 }
  0xe1   :  { %v1757_v23 = vunpack.i.h.bf16 %v1755_v1  ;;  %v1756_v24 = vunpack.i.l.bf16 %v1755_v1 }
  0xe2   :  { %v289_v14 = vsel %vm281_vm3, %v1701_v35, %v1702_v34  ;;  %v1637_v34 = vunpack.i.h.bf16 %v2086_v11  ;;  %v1636_v35 = vunpack.i.l.bf16 %v2086_v11  ;;  %v1627_v11 = vunpack.i.h.bf16 %v2141_v38 }
  0xe3   :  { %704 = vmatpush.msrb.mxu2 %v289_v14  ;;  %v386_v39 = vsel %vm379_vm5, %v1756_v24, %v1757_v23  ;;  %v1632_v14 = vunpack.i.h.bf16 %v2137_v36  ;;  %v486_v24 = vld [vmem:[%s2911_s1 + $0x148] sm:$0xff] }
  0xe5   :  { %705 = vmatpush.msrb.mxu2 %v288_v42  ;;  %v1626_v42 = vunpack.i.l.bf16 %v2141_v38  ;;  %v234_v45 = vsel %vm232_vm4, %v1631_v40, %v1632_v14  ;;  %v447_v38 = vld [vmem:[%s2911_s1 + $0x10] sm:$0xff] }
  0xe6   :  { %v2230_v47 = vpop.permute.xlu1 %1719 }
  0xe7   :  { %v2232_v51 = vpop.permute.xlu0 %1714  ;;  %706 = vmatpush.msrb.mxu2 %v287_v46  ;;  %664 = vmatmul.f32.gmra.mxu1 %v461_v44  ;;  %v235_v44 = vsel %vm232_vm4, %v1636_v35, %v1637_v34  ;;  %v233_v52 = vsel %vm232_vm4, %v1626_v42, %v1627_v11  ;;  %v1726_v35 = vunpack.i.l.bf16 %v2207_v5  ;;  %v1721_v11 = vunpack.i.l.bf16 %v2230_v47 }
  0xe9   :  { %707 = vmatpush.msrb.mxu2 %v286_v55 }
  0xeb   :  { %708 = vmatpush.msrb.mxu2 %v285_v58 }
  0xed   :  { %709 = vmatpush.msrb.mxu2 %v284_v61 }
  0xee   :  { %v2251_v16 = vpop.permute.xlu1 %1734 }
  0xef   :  { %v2253_v29 = vpop.permute.xlu0 %1729  ;;  %710 = vmatpush.msrb.mxu2 %v283_v9  ;;  %667 = vmatmul.f32.gmra.mxu1 %v466_v63  ;;  %v481_v9 = vld [vmem:[%s2911_s1 + $0x120] sm:$0xff]  ;;  %v1737_v3 = vunpack.i.h.bf16 %v2251_v16 }
  0xf1   :  { %711 = vmatpush.msrb.mxu2 %v282_v19 }
  0xf3   :  { %712 = vmatpush.msrb.mxu2 %v240_v50 }
  0xf5   :  { %713 = vmatpush.msrb.mxu2 %v239_v15  ;;  %v1742_v15 = vunpack.i.h.bf16 %v2221_v10 }
  0xf6   :  { %v1750_v12 = vpop.permute.xlu1 %1749  ;;  %v1770_v28 = vpop.permute.xlu2 %1769 }
  0xf7   :  { %v2276_v31 = vpop.permute.xlu0 %1744  ;;  %714 = vmatpush.msrb.mxu2 %v238_v27  ;;  %670 = vmatmul.f32.gmra.mxu1 %v471_v22  ;;  %v1752_v49 = vunpack.i.h.bf16 %v1750_v12  ;;  %v1751_v33 = vunpack.i.l.bf16 %v1750_v12  ;;  %v1772_v58 = vunpack.i.h.bf16 %v1770_v28  ;;  %v1771_v59 = vunpack.i.l.bf16 %v1770_v28 }
  0xf8   :  { %v1747_v62 = vunpack.i.h.bf16 %v2276_v31  ;;  %v1746_v20 = vunpack.i.l.bf16 %v2276_v31  ;;  %v1741_v22 = vunpack.i.l.bf16 %v2221_v10  ;;  %v1736_v27 = vunpack.i.l.bf16 %v2251_v16  ;;  %v457_v31 = vld [vmem:[%s2911_s1 + $0x60] sm:$0xff] }
  0xf9   :  { %715 = vmatpush.msrb.mxu2 %v237_v53  ;;  %v387_v37 = vsel %vm379_vm5, %v1751_v33, %v1752_v49  ;;  %v383_v7 = vsel %vm379_vm5, %v1771_v59, %v1772_v58  ;;  %v1732_v49 = vunpack.i.h.bf16 %v2253_v29  ;;  %v1731_v33 = vunpack.i.l.bf16 %v2253_v29 }
  0xfa   :  { %769 = vmatpush.msrb.mxu3 %v387_v37  ;;  %v380_v12 = vsel %vm379_vm5, %v1746_v20, %v1747_v62  ;;  %v338_v10 = vsel %vm330_vm7, %v1741_v22, %v1742_v15  ;;  %v1727_v16 = vunpack.i.h.bf16 %v2207_v5  ;;  %v337_v40 = vsel %vm330_vm7, %v1736_v27, %v1737_v3  ;;  %v449_v20 = vld [vmem:[%s2911_s1 + $0x20] sm:$0xff]  ;;  %v506_v3 = vld [vmem:[%s2911_s1 + $0x1e8] sm:$0xff] }
  0xfb   :  { %716 = vmatpush.msrb.mxu2 %v236_v41  ;;  %v1722_v29 = vunpack.i.h.bf16 %v2230_v47  ;;  %v336_v42 = vsel %vm330_vm7, %v1731_v33, %v1732_v49  ;;  %v1712_v47 = vunpack.i.h.bf16 %v2199_v26  ;;  %v501_v15 = vld [vmem:[%s2911_s1 + $0x1c0] sm:$0xff]  ;;  %v458_v27 = vld [vmem:[%s2911_s1 + $0x68] sm:$0xff]  ;;  %v463_v49 = vld [vmem:[%s2911_s1 + $0x90] sm:$0xff] }
  0xfc   :  { %770 = vmatpush.msrb.mxu3 %v386_v39  ;;  %v453_v22 = vld [vmem:[%s2911_s1 + $0x40] sm:$0xff]  ;;  %v482_v33 = vld [vmem:[%s2911_s1 + $0x128] sm:$0xff] }
  0xfd   :  { %717 = vmatpush.msrb.mxu2 %v235_v44  ;;  %v491_v44 = vld [vmem:[%s2911_s1 + $0x170] sm:$0xff]  ;;  %v334_v32 = vsel %vm330_vm7, %v1721_v11, %v1722_v29  ;;  %v1157_v29 = vld [vmem:[%s2912_s2 + $0x18] sm:$0xff]  ;;  %v473_v11 = vld [vmem:[%s2911_s1 + $0xe0] sm:$0xff] }
  0xfe   :  { %v1785_v36 = vpop.permute.xlu2 %1784 }
  0xff   :  { %v1760_v46 = vpop.permute.xlu0 %1759  ;;  %718 = vmatpush.msrb.mxu2 %v234_v45  ;;  %673 = vmatmul.f32.gmra.mxu1 %v476_v2  ;;  %v1787_v54 = vunpack.i.h.bf16 %v1785_v36  ;;  %v1786_v55 = vunpack.i.l.bf16 %v1785_v36  ;;  %v1717_v45 = vunpack.i.h.bf16 %v2232_v51  ;;  %v1716_v36 = vunpack.i.l.bf16 %v2232_v51 }
 0x100   :  { %v1762_v43 = vunpack.i.h.bf16 %v1760_v46  ;;  %v1761_v56 = vunpack.i.l.bf16 %v1760_v46  ;;  %v1765_v57 = vpop.permute.xlu1 %1764  ;;  %v335_v46 = vsel %vm330_vm7, %v1726_v35, %v1727_v16  ;;  %v1707_v51 = vunpack.i.h.bf16 %v2215_v30  ;;  %v1164_v16 = vld [vmem:[%s2912_s2 + $0x50] sm:$0xff]  ;;  %v516_v35 = vld [vmem:[%s2911_s1 + $0x238] sm:$0xff] }
 0x101   :  { %v1767_v60 = vunpack.i.h.bf16 %v1765_v57  ;;  %v1766_v61 = vunpack.i.l.bf16 %v1765_v57  ;;  %719 = vmatpush.msrb.mxu2 %v233_v52  ;;  %v436_v63 = vsel %vm428_vm6, %v1786_v55, %v1787_v54  ;;  %v1711_v55 = vunpack.i.l.bf16 %v2199_v26 }
 0x102   :  { %720 = vmatmul.f32.vlgmr.msrb.gmra.mxu2 %v447_v38  ;;  %v385_v1 = vsel %vm379_vm5, %v1761_v56, %v1762_v43  ;;  %842 = vmatpush.msrb.mxu0 %v436_v63  ;;  %v462_v38 = vld [vmem:[%s2911_s1 + $0x88] sm:$0xff]  ;;  %v1706_v57 = vunpack.i.l.bf16 %v2215_v30 }
 0x103   :  { %771 = vmatpush.msrb.mxu3 %v385_v1  ;;  %v384_v4 = vsel %vm379_vm5, %v1766_v61, %v1767_v60  ;;  %v333_v61 = vsel %vm330_vm7, %v1716_v36, %v1717_v45  ;;  %v478_v45 = vld [vmem:[%s2911_s1 + $0x108] sm:$0xff]  ;;  %v1160_v36 = vld [vmem:[%s2912_s2 + $0x30] sm:$0xff] }
 0x105   :  { %772 = vmatpush.msrb.mxu3 %v384_v4  ;;  %v332_v4 = vsel %vm330_vm7, %v1711_v55, %v1712_v47  ;;  %v479_v47 = vld [vmem:[%s2911_s1 + $0x110] sm:$0xff]  ;;  %v1163_v55 = vld [vmem:[%s2912_s2 + $0x48] sm:$0xff] }
 0x106   :  { %v1800_v25 = vpop.permute.xlu2 %1799 }
 0x107   :  { %v1775_v8 = vpop.permute.xlu0 %1774  ;;  %773 = vmatpush.msrb.mxu3 %v383_v7  ;;  %676 = vmatmul.f32.gmra.mxu1 %v481_v9  ;;  %v1802_v0 = vunpack.i.h.bf16 %v1800_v25  ;;  %v1801_v37 = vunpack.i.l.bf16 %v1800_v25  ;;  %v496_v7 = vld [vmem:[%s2911_s1 + $0x198] sm:$0xff]  ;;  %v1158_v25 = vld [vmem:[%s2912_s2 + $0x20] sm:$0xff] }
 0x108   :  { %v1777_v19 = vunpack.i.h.bf16 %v1775_v8  ;;  %v1776_v48 = vunpack.i.l.bf16 %v1775_v8  ;;  %v448_v9 = vld [vmem:[%s2911_s1 + $0x18] sm:$0xff] }
 0x109   :  { %v1780_v13 = vpop.permute.xlu1 %1779  ;;  %v433_v2 = vsel %vm428_vm6, %v1801_v37, %v1802_v0  ;;  %v468_v0 = vld [vmem:[%s2911_s1 + $0xb8] sm:$0xff]  ;;  %v487_v37 = vld [vmem:[%s2911_s1 + $0x150] sm:$0xff] }
 0x10a   :  { %v1782_v50 = vunpack.i.h.bf16 %v1780_v13  ;;  %v1781_v17 = vunpack.i.l.bf16 %v1780_v13  ;;  %723 = vmatmul.f32.gmra.mxu2 %v452_v18  ;;  %v382_v21 = vsel %vm379_vm5, %v1776_v48, %v1777_v19  ;;  %v331_v18 = vsel %vm330_vm7, %v1706_v57, %v1707_v51  ;;  %v467_v19 = vld [vmem:[%s2911_s1 + $0xb0] sm:$0xff]  ;;  %v484_v51 = vld [vmem:[%s2911_s1 + $0x138] sm:$0xff] }
 0x10b   :  { %774 = vmatpush.msrb.mxu3 %v382_v21  ;;  %v1155_v21 = vld [vmem:[%s2912_s2 + $0x8] sm:$0xff]  ;;  %v488_v57 = vld [vmem:[%s2911_s1 + $0x158] sm:$0xff] }
 0x10c   :  { %v381_v23 = vsel %vm379_vm5, %v1781_v17, %v1782_v50  ;;  %v1843_v17 = vmov 0  }
 0x10d   :  { %775 = vmatpush.msrb.mxu3 %v381_v23  ;;  %1824 = vset.pattern.permute.xlu1 %v1843_v17  ;;  %v472_v23 = vld [vmem:[%s2911_s1 + $0xd8] sm:$0xff] }
 0x10e   :  { %v1815_v52 = vpop.permute.xlu2 %1814  ;;  %1177 = vperm.xlu1 %1824, %v1155_v21   ;;  %1825 = vset.pattern.permute.xlu2 %v1843_v17  ;;  %v522_v21 = vld [vmem:[%s2911_s1 + $0x268] sm:$0xff] }
 0x10f   :  { %v1790_v28 = vpop.permute.xlu0 %1789  ;;  %776 = vmatpush.msrb.mxu3 %v380_v12  ;;  %679 = vmatmul.f32.gmra.mxu1 %v486_v24  ;;  %v1817_v59 = vunpack.i.h.bf16 %v1815_v52  ;;  %v1816_v60 = vunpack.i.l.bf16 %v1815_v52  ;;  %v454_v24 = vld [vmem:[%s2911_s1 + $0x48] sm:$0xff]  ;;  %v477_v12 = vld [vmem:[%s2911_s1 + $0x100] sm:$0xff]  ;;  %v1165_v52 = vld [vmem:[%s2912_s2 + $0x58] sm:$0xff] }
 0x110   :  { %v1792_v6 = vunpack.i.h.bf16 %v1790_v28  ;;  %v1791_v34 = vunpack.i.l.bf16 %v1790_v28  ;;  %1823 = vset.pattern.permute.xlu0 %v1843_v17  ;;  %v459_v28 = vld [vmem:[%s2911_s1 + $0x70] sm:$0xff] }
 0x111   :  { %777 = vmatpush.msrb.mxu3 %v338_v10  ;;  %v1795_v53 = vpop.permute.xlu1 %1794  ;;  %v430_v8 = vsel %vm428_vm6, %v1816_v60, %v1817_v59  ;;  %v1161_v10 = vld [vmem:[%s2912_s2 + $0x38] sm:$0xff]  ;;  %v1166_v59 = vld [vmem:[%s2912_s2 + $0x60] sm:$0xff]  ;;  %v507_v60 = vld [vmem:[%s2911_s1 + $0x1f0] sm:$0xff] }
 0x112   :  { %726 = vmatmul.f32.gmra.mxu2 %v457_v31  ;;  %v1797_v39 = vunpack.i.h.bf16 %v1795_v53  ;;  %v1796_v14 = vunpack.i.l.bf16 %v1795_v53  ;;  %v435_v41 = vsel %vm428_vm6, %v1791_v34, %v1792_v6  ;;  %v511_v31 = vld [vmem:[%s2911_s1 + $0x210] sm:$0xff]  ;;  %v464_v34 = vld [vmem:[%s2911_s1 + $0x98] sm:$0xff]  ;;  %v1154_v53 = vld [vmem:[%s2912_s2] sm:$0xff] }
 0x113   :  { %778 = vmatpush.msrb.mxu3 %v337_v40  ;;  %843 = vmatpush.msrb.mxu0 %v435_v41  ;;  %v1156_v6 = vld [vmem:[%s2912_s2 + $0x10] sm:$0xff]  ;;  %v1167_v40 = vld [vmem:[%s2912_s2 + $0x68] sm:$0xff]  ;;  %v521_v41 = vld [vmem:[%s2911_s1 + $0x260] sm:$0xff] }
 0x114   :  { %v434_v5 = vsel %vm428_vm6, %v1796_v14, %v1797_v39  ;;  %1182 = vperm.xlu2 %1825, %v1156_v6   ;;  %1172 = vperm.xlu0 %1823, %v1154_v53   ;;  %v1159_v39 = vld [vmem:[%s2912_s2 + $0x28] sm:$0xff]  ;;  %v469_v14 = vld [vmem:[%s2911_s1 + $0xc0] sm:$0xff]  ;;  %v503_v17 = vld [vmem:[%s2911_s1 + $0x1d0] sm:$0xff] }
 0x115   :  { %779 = vmatpush.msrb.mxu3 %v336_v42  ;;  %844 = vmatpush.msrb.mxu0 %v434_v5  ;;  %v492_v42 = vld [vmem:[%s2911_s1 + $0x178] sm:$0xff]  ;;  %v1162_v5 = vld [vmem:[%s2912_s2 + $0x40] sm:$0xff]  ;;  %v519_v53 = vld [vmem:[%s2911_s1 + $0x250] sm:$0xff] }
 0x116   :  { %1192 = vperm.xlu1 %1824, %v1158_v25   ;;  %v508_v25 = vld [vmem:[%s2911_s1 + $0x1f8] sm:$0xff] }
 0x117   :  { %780 = vmatpush.msrb.mxu3 %v335_v46  ;;  %682 = vmatmul.f32.gmra.mxu1 %v491_v44  ;;  %v1805_v54 = vpop.permute.xlu0 %1804  ;;  %v474_v44 = vld [vmem:[%s2911_s1 + $0xe8] sm:$0xff]  ;;  %v497_v46 = vld [vmem:[%s2911_s1 + $0x1a0] sm:$0xff] }
 0x118   :  { %v1807_v43 = vunpack.i.h.bf16 %v1805_v54  ;;  %v1806_v56 = vunpack.i.l.bf16 %v1805_v54  ;;  %845 = vmatpush.msrb.mxu0 %v433_v2  ;;  %v1266_v2 = vld [vmem:[%s2914_s3] sm:$0xff]  ;;  %v483_v54 = vld [vmem:[%s2911_s1 + $0x130] sm:$0xff] }
 0x119   :  { %781 = vmatpush.msrb.mxu3 %v334_v32  ;;  %v1810_v58 = vpop.permute.xlu1 %1809 }
 0x11a   :  { %729 = vmatmul.f32.gmra.mxu2 %v462_v38  ;;  %v1812_v63 = vunpack.i.h.bf16 %v1810_v58  ;;  %v1811_v1 = vunpack.i.l.bf16 %v1810_v58  ;;  %v432_v26 = vsel %vm428_vm6, %v1806_v56, %v1807_v43  ;;  %v1269_v38 = vld [vmem:[%s2914_s3 + $0x18] sm:$0xff]  ;;  %v502_v43 = vld [vmem:[%s2911_s1 + $0x1c8] sm:$0xff]  ;;  %v1168_v56 = vld [vmem:[%s2912_s2 + $0x70] sm:$0xff] }
 0x11b   :  { %782 = vmatpush.msrb.mxu3 %v333_v61  ;;  %846 = vmatpush.msrb.mxu0 %v432_v26  ;;  %v1267_v61 = vld [vmem:[%s2914_s3 + $0x8] sm:$0xff]  ;;  %v493_v26 = vld [vmem:[%s2911_s1 + $0x180] sm:$0xff] }
 0x11c   :  { %v431_v30 = vsel %vm428_vm6, %v1811_v1, %v1812_v63  ;;  %1197 = vperm.xlu2 %1825, %v1159_v39   ;;  %1187 = vperm.xlu0 %1823, %v1157_v29   ;;  %v489_v1 = vld [vmem:[%s2911_s1 + $0x160] sm:$0xff]  ;;  %v523_v39 = vld [vmem:[%s2911_s1 + $0x270] sm:$0xff] }
 0x11d   :  { %783 = vmatpush.msrb.mxu3 %v332_v4  ;;  %847 = vmatpush.msrb.mxu0 %v431_v30  ;;  %v1169_v4 = vld [vmem:[%s2912_s2 + $0x78] sm:$0xff] }
 0x11e   :  { %1207 = vperm.xlu1 %1824, %v1161_v10   ;;  %v513_v10 = vld [vmem:[%s2911_s1 + $0x220] sm:$0xff] }
 0x11f   :  { %784 = vmatpush.msrb.mxu3 %v331_v18  ;;  %685 = vmatmul.f32.gmra.mxu1 %v496_v7  ;;  %v1820_v48 = vpop.permute.xlu0 %1819  ;;  %v512_v7 = vld [vmem:[%s2911_s1 + $0x218] sm:$0xff] }
 0x120   :  { %785 = vmatmul.f32.vlgmr.msrb.gmra.mxu3 %v448_v9  ;;  %v1822_v62 = vunpack.i.h.bf16 %v1820_v48  ;;  %v1821_v13 = vunpack.i.l.bf16 %v1820_v48  ;;  %848 = vmatpush.msrb.mxu0 %v430_v8  ;;  %v1270_v9 = vld [vmem:[%s2914_s3 + $0x20] sm:$0xff]  ;;  %v494_v8 = vld [vmem:[%s2911_s1 + $0x188] sm:$0xff]  ;;  %v1268_v48 = vld [vmem:[%s2914_s3 + $0x10] sm:$0xff] }
 0x122   :  { %732 = vmatmul.f32.gmra.mxu2 %v467_v19  ;;  %v429_v50 = vsel %vm428_vm6, %v1821_v13, %v1822_v62  ;;  %v498_v19 = vld [vmem:[%s2911_s1 + $0x1a8] sm:$0xff]  ;;  %v517_v62 = vld [vmem:[%s2911_s1 + $0x240] sm:$0xff] }
 0x123   :  { %849 = vmatpush.msrb.mxu0 %v429_v50 }
 0x124   :  { %1430 = vmatmul.msk.f32.vlgmr.msrb.gmra.mxu0 %vm525_vm8, %v449_v20  ;;  %1212 = vperm.xlu2 %1825, %v1162_v5   ;;  %v499_v20 = vld [vmem:[%s2911_s1 + $0x1b0] sm:$0xff] }
 0x125   :  { %1202 = vperm.xlu0 %1823, %v1160_v36   ;;  %v2620_v36 = vld [vmem:[%s2913_s4] ss:$0 sm:$0xff] }
 0x126   :  { %1222 = vperm.xlu1 %1824, %v1164_v16  }
 0x127   :  { %688 = vmatmul.f32.gmra.mxu1 %v501_v15  ;;  %v504_v15 = vld [vmem:[%s2911_s1 + $0x1d8] sm:$0xff] }
 0x128   :  { %788 = vmatmul.f32.gmra.mxu3 %v453_v22  ;;  %v2500_v32 = vpop.f32.mrf.mxu1 }
 0x12a   :  { %735 = vmatmul.f32.gmra.mxu2 %v472_v23 }
 0x12c   :  { %1431 = vmatmul.msk.f32.gmra.mxu0 %vm525_vm8, %v454_v24  ;;  %1227 = vperm.xlu2 %1825, %v1165_v52  }
 0x12d   :  { %1217 = vperm.xlu0 %1823, %v1163_v55  }
 0x12e   :  { %1237 = vperm.xlu1 %1824, %v1167_v40  }
 0x12f   :  { %691 = vmatmul.f32.gmra.mxu1 %v506_v3 }
 0x130   :  { %791 = vmatmul.f32.gmra.mxu3 %v458_v27  ;;  %v2526_v63 = vpop.f32.mrf.mxu1  ;;  %v509_v27 = vld [vmem:[%s2911_s1 + $0x200] sm:$0xff] }
 0x131   :  { %v2515_v58 = vpop.f32.mrf.mxu2 }
 0x132   :  { %738 = vmatmul.f32.gmra.mxu2 %v477_v12 }
 0x134   :  { %1432 = vmatmul.msk.f32.gmra.mxu0 %vm525_vm8, %v459_v28  ;;  %1242 = vperm.xlu2 %1825, %v1168_v56  }
 0x135   :  { %1232 = vperm.xlu0 %1823, %v1166_v59  }
 0x136   :  { %1284 = vperm.xlu1 %1824, %v1266_v2   ;;  %v591_v22 = vpop.f32.mrf.mxu0 }
 0x137   :  { %694 = vmatmul.f32.gmra.mxu1 %v511_v31 }
 0x138   :  { %794 = vmatmul.f32.gmra.mxu3 %v463_v49  ;;  %v2549_v18 = vpop.f32.mrf.mxu1 }
 0x139   :  { %v2541_v30 = vpop.f32.mrf.mxu2 }
 0x13a   :  { %741 = vmatmul.f32.gmra.mxu2 %v482_v33  ;;  %v514_v33 = vld [vmem:[%s2911_s1 + $0x228] sm:$0xff] }
 0x13b   :  { %v2580_v24 = vpop.f32.mrf.mxu3 }
 0x13c   :  { %1433 = vmatmul.msk.f32.gmra.mxu0 %vm525_vm8, %v464_v34  ;;  %1289 = vperm.xlu2 %1825, %v1267_v61   ;;  %v518_v34 = vld [vmem:[%s2911_s1 + $0x248] sm:$0xff] }
 0x13d   :  { %1247 = vperm.xlu0 %1823, %v1169_v4  }
 0x13e   :  { %1299 = vperm.xlu1 %1824, %v1269_v38  }
 0x13f   :  { %697 = vmatmul.f32.gmra.mxu1 %v516_v35 }
 0x140   :  { %797 = vmatmul.f32.gmra.mxu3 %v468_v0  ;;  %v2567_v50 = vpop.f32.mrf.mxu1 }
 0x141   :  { %v2561_v13 = vpop.f32.mrf.mxu2 }
 0x142   :  { %744 = vmatmul.f32.gmra.mxu2 %v487_v37 }
 0x143   :  { %v2593_v31 = vpop.f32.mrf.mxu3 }
 0x144   :  { %1434 = vmatmul.msk.f32.gmra.mxu0 %vm525_vm8, %v469_v14  ;;  %1304 = vperm.xlu2 %1825, %v1270_v9  }
 0x145   :  { %1294 = vperm.xlu0 %1823, %v1268_v48  }
 0x147   :  { %700 = vmatmul.f32.gmra.mxu1 %v521_v41  ;;  %v524_v41 = vld [vmem:[%s2911_s1 + $0x278] sm:$0xff] }
 0x148   :  { %800 = vmatmul.f32.gmra.mxu3 %v473_v11  ;;  %v594_v12 = vpop.f32.mrf.mxu0 }
 0x149   :  { %v2578_v23 = vpop.f32.mrf.mxu2 }
 0x14a   :  { %747 = vmatmul.f32.gmra.mxu2 %v492_v42 }
 0x14b   :  { %v2602_v35 = vpop.f32.mrf.mxu3 }
 0x14c   :  { %1435 = vmatmul.msk.f32.gmra.mxu0 %vm525_vm8, %v474_v44  ;;  %v656_v3 = vpop.f32.mrf.mxu1 }
 0x14d   :  { %v657_v11 = vadd.f32 %v656_v3, %v591_v22 }
 0x150   :  { %803 = vmatmul.f32.gmra.mxu3 %v478_v45  ;;  %v597_v16 = vpop.f32.mrf.mxu0 }
 0x152   :  { %750 = vmatmul.f32.gmra.mxu2 %v497_v46 }
 0x153   :  { %v2611_v40 = vpop.f32.mrf.mxu3 }
 0x154   :  { %1436 = vmatmul.msk.f32.gmra.mxu0 %vm525_vm8, %v479_v47  ;;  %v659_v49 = vpop.f32.mrf.mxu1 }
 0x155   :  { %v660_v46 = vadd.f32 %v659_v49, %v594_v12 }
 0x158   :  { %806 = vmatmul.f32.gmra.mxu3 %v483_v54  ;;  %v600_v14 = vpop.f32.mrf.mxu0 }
 0x15a   :  { %753 = vmatmul.f32.gmra.mxu2 %v502_v43 }
 0x15c   :  { %1437 = vmatmul.msk.f32.gmra.mxu0 %vm525_vm8, %v484_v51  ;;  %v662_v0 = vpop.f32.mrf.mxu1 }
 0x160   :  { %809 = vmatmul.f32.gmra.mxu3 %v488_v57  ;;  %v663_v57 = vadd.f32 %v662_v0, %v597_v16 }
 0x162   :  { %756 = vmatmul.f32.gmra.mxu2 %v507_v60 }
 0x164   :  { %1438 = vmatmul.msk.f32.gmra.mxu0 %vm525_vm8, %v489_v1  ;;  %v665_v29 = vpop.f32.mrf.mxu1 }
 0x168   :  { %812 = vmatmul.f32.gmra.mxu3 %v493_v26 }
 0x16a   :  { %759 = vmatmul.f32.gmra.mxu2 %v512_v7 }
 0x16c   :  { %1439 = vmatmul.msk.f32.gmra.mxu0 %vm525_vm8, %v494_v8  ;;  %v668_v47 = vpop.f32.mrf.mxu1 }
 0x16d   :  { %v669_v12 = vadd.f32 %v668_v47, %v2500_v32 }
 0x170   :  { %815 = vmatmul.f32.gmra.mxu3 %v498_v19  ;;  %v666_v19 = vadd.f32 %v665_v29, %v600_v14 }
 0x172   :  { %762 = vmatmul.f32.gmra.mxu2 %v517_v62 }
 0x174   :  { %1440 = vmatmul.msk.f32.gmra.mxu0 %vm525_vm8, %v499_v20  ;;  %v671_v1 = vpop.f32.mrf.mxu1 }
 0x178   :  { %818 = vmatmul.f32.gmra.mxu3 %v503_v17 }
 0x17a   :  { %765 = vmatmul.f32.gmra.mxu2 %v522_v21 }
 0x17c   :  { %1441 = vmatmul.msk.f32.gmra.mxu0 %vm525_vm8, %v504_v15  ;;  %v674_v15 = vpop.f32.mrf.mxu1 }
 0x180   :  { %821 = vmatmul.f32.gmra.mxu3 %v508_v25 }
 0x184   :  { %1442 = vmatmul.msk.f32.gmra.mxu0 %vm525_vm8, %v509_v27 }
 0x185   :  { %v721_v28 = vpop.f32.mrf.mxu2 }
 0x186   :  { %v722_v44 = vadd.f32 %v721_v28, %v657_v11 }
 0x188   :  { %824 = vmatmul.f32.gmra.mxu3 %v513_v10 }
 0x18c   :  { %1443 = vmatmul.msk.f32.gmra.mxu0 %vm525_vm8, %v514_v33 }
 0x18d   :  { %v724_v6 = vpop.f32.mrf.mxu2 }
 0x18e   :  { %v725_v43 = vadd.f32 %v724_v6, %v660_v46 }
 0x190   :  { %827 = vmatmul.f32.gmra.mxu3 %v518_v34 }
 0x194   :  { %1444 = vmatmul.msk.f32.gmra.mxu0 %vm525_vm8, %v519_v53  ;;  %v677_v53 = vpop.f32.mrf.mxu1 }
 0x195   :  { %v727_v37 = vpop.f32.mrf.mxu2 }
 0x196   :  { %v728_v4 = vadd.f32 %v727_v37, %v663_v57 }
 0x198   :  { %830 = vmatmul.f32.gmra.mxu3 %v523_v39  ;;  %v672_v39 = vadd.f32 %v671_v1, %v2526_v63 }
 0x19c   :  { %1445 = vmatmul.msk.f32.gmra.mxu0 %vm525_vm8, %v524_v41 }
 0x19d   :  { %v730_v42 = vpop.f32.mrf.mxu2 }
 0x19e   :  { %v731_v21 = vadd.f32 %v730_v42, %v666_v19 }
 0x1a1   :  { %v851_v5 = vpop.f32.mrf.mxu0 }
 0x1a3   :  { %v786_v2 = vpop.f32.mrf.mxu3 }
 0x1a4   :  { %v787_v45 = vadd.f32 %v786_v2, %v722_v44  ;;  %v680_v44 = vpop.f32.mrf.mxu1  ;;  %v675_v2 = vadd.f32 %v674_v15, %v2549_v18 }
 0x1a5   :  { %v733_v54 = vpop.f32.mrf.mxu2 }
 0x1a6   :  { %v2622_v52 = vadd.f32 %v851_v5, %v787_v45  ;;  %v734_v33 = vadd.f32 %v733_v54, %v669_v12 }
 0x1a8   :  { %v902_v38 = vmul.f32 %v2620_v36, %v2622_v52 }
 0x1a9   :  { %v854_v55 = vpop.f32.mrf.mxu0 }
 0x1aa   :  { %918 = vadd.xlane.f32.xlu1 %v902_v38  ;;  %v950_v61 = vmul.f32 %v902_v38, %v902_v38 }
 0x1ab   :  { %v789_v56 = vpop.f32.mrf.mxu3 }
 0x1ac   :  { %v790_v51 = vadd.f32 %v789_v56, %v725_v43  ;;  %v678_v56 = vadd.f32 %v677_v53, %v2567_v50  ;;  %v683_v57 = vpop.f32.mrf.mxu1 }
 0x1ad   :  { %v736_v7 = vpop.f32.mrf.mxu2 }
 0x1ae   :  { %v2626_v59 = vadd.f32 %v854_v55, %v790_v51  ;;  %v737_v41 = vadd.f32 %v736_v7, %v672_v39 }
 0x1b0   :  { %v903_v60 = vmul.f32 %v2620_v36, %v2626_v59 }
 0x1b1   :  { %v857_v26 = vpop.f32.mrf.mxu0 }
 0x1b2   :  { %920 = vadd.xlane.f32.xlu2 %v903_v60  ;;  %966 = vadd.xlane.f32.xlu1 %v950_v61  ;;  %v951_v20 = vmul.f32 %v903_v60, %v903_v60 }
 0x1b3   :  { %v792_v9 = vpop.f32.mrf.mxu3 }
 0x1b4   :  { %v793_v8 = vadd.f32 %v792_v9, %v728_v4  ;;  %v681_v9 = vadd.f32 %v680_v44, %v2515_v58 }
 0x1b5   :  { %v739_v3 = vpop.f32.mrf.mxu2 }
 0x1b6   :  { %v2630_v48 = vadd.f32 %v857_v26, %v793_v8  ;;  %v740_v47 = vadd.f32 %v739_v3, %v675_v2  ;;  %v684_v3 = vadd.f32 %v683_v57, %v2541_v30 }
 0x1b8   :  { %v904_v62 = vmul.f32 %v2620_v36, %v2630_v48 }
 0x1b9   :  { %v860_v17 = vpop.f32.mrf.mxu0 }
 0x1ba   :  { %922 = vadd.xlane.f32.xlu0 %v904_v62  ;;  %968 = vadd.xlane.f32.xlu2 %v951_v20  ;;  %v952_v28 = vmul.f32 %v904_v62, %v904_v62  ;;  %v686_v20 = vpop.f32.mrf.mxu1 }
 0x1bb   :  { %v795_v22 = vpop.f32.mrf.mxu3 }
 0x1bc   :  { %v796_v25 = vadd.f32 %v795_v22, %v731_v21  ;;  %v2659_v21 = vpop.permute.xlu2 %1182 }
 0x1bd   :  { %v742_v37 = vpop.f32.mrf.mxu2 }
 0x1be   :  { %v2634_v27 = vadd.f32 %v860_v17, %v796_v25  ;;  %v743_v60 = vadd.f32 %v742_v37, %v678_v56  ;;  %v687_v37 = vadd.f32 %v686_v20, %v2561_v13  ;;  %v2684_v56 = vpop.permute.xlu0 %1172 }
 0x1c0   :  { %2921 = vst [vmem:[#allocation2_spill] sm:$0xff] %v2634_v27  ;;  %v905_v10 = vmul.f32 %v2620_v36, %v2634_v27 }
 0x1c1   :  { %v863_v49 = vpop.f32.mrf.mxu0 }
 0x1c2   :  { %970 = vadd.xlane.f32.xlu0 %v952_v28  ;;  %924 = vadd.xlane.f32.xlu2 %v905_v10  ;;  %v953_v6 = vmul.f32 %v905_v10, %v905_v10 }
 0x1c3   :  { %v798_v34 = vpop.f32.mrf.mxu3 }
 0x1c4   :  { %v799_v16 = vadd.f32 %v798_v34, %v734_v33  ;;  %972 = vadd.xlane.f32.xlu1 %v953_v6  ;;  %v689_v6 = vpop.f32.mrf.mxu1  ;;  %v2666_v34 = vpop.permute.xlu2 %1197 }
 0x1c5   :  { %v745_v46 = vpop.f32.mrf.mxu2  ;;  %v690_v2 = vadd.f32 %v689_v6, %v2578_v23 }
 0x1c6   :  { %v2639_v0 = vadd.f32 %v863_v49, %v799_v16  ;;  %v746_v19 = vadd.f32 %v745_v46, %v681_v9 }
 0x1c8   :  { %v906_v32 = vmul.f32 %v2620_v36, %v2639_v0 }
 0x1c9   :  { %v866_v14 = vpop.f32.mrf.mxu0 }
 0x1ca   :  { %v954_v29 = vmul.f32 %v906_v32, %v906_v32 }
 0x1cb   :  { %v801_v11 = vpop.f32.mrf.mxu3 }
 0x1cc   :  { %v802_v42 = vadd.f32 %v801_v11, %v737_v41  ;;  %974 = vadd.xlane.f32.xlu2 %v954_v29  ;;  %926 = vadd.xlane.f32.xlu1 %v906_v32  ;;  %v2673_v32 = vpop.permute.xlu1 %1177  ;;  %v692_v44 = vpop.f32.mrf.mxu1 }
 0x1cd   :  { %v748_v1 = vpop.f32.mrf.mxu2  ;;  %v693_v23 = vadd.f32 %v692_v44, %v2580_v24 }
 0x1ce   :  { %v2644_v5 = vadd.f32 %v866_v14, %v802_v42  ;;  %v749_v28 = vadd.f32 %v748_v1, %v684_v3 }
 0x1d0   :  { %v907_v45 = vmul.f32 %v2620_v36, %v2644_v5 }
 0x1d1   :  { %v869_v63 = vpop.f32.mrf.mxu0 }
 0x1d2   :  { %v955_v38 = vmul.f32 %v907_v45, %v907_v45 }
 0x1d3   :  { %v804_v54 = vpop.f32.mrf.mxu3 }
 0x1d4   :  { %v805_v55 = vadd.f32 %v804_v54, %v740_v47  ;;  %976 = vadd.xlane.f32.xlu0 %v955_v38  ;;  %928 = vadd.xlane.f32.xlu2 %v907_v45  ;;  %v2678_v45 = vpop.permute.xlu2 %1212 }
 0x1d5   :  { %v751_v22 = vpop.f32.mrf.mxu2 }
 0x1d6   :  { %v2649_v43 = vadd.f32 %v869_v63, %v805_v55  ;;  %v752_v14 = vadd.f32 %v751_v22, %v687_v37  ;;  %v2682_v55 = vpop.permute.xlu1 %1192 }
 0x1d8   :  { %v908_v51 = vmul.f32 %v2620_v36, %v2649_v43 }
 0x1d9   :  { %v872_v18 = vpop.f32.mrf.mxu0 }
 0x1da   :  { %v956_v61 = vmul.f32 %v908_v51, %v908_v51 }
 0x1db   :  { %v807_v26 = vpop.f32.mrf.mxu3 }
 0x1dc   :  { %v808_v4 = vadd.f32 %v807_v26, %v743_v60  ;;  %930 = vadd.xlane.f32.xlu0 %v908_v51  ;;  %978 = vadd.xlane.f32.xlu1 %v956_v61  ;;  %v695_v60 = vpop.f32.mrf.mxu1  ;;  %v2691_v1 = vpop.permute.xlu2 %1227 }
 0x1dd   :  { %v754_v53 = vpop.f32.mrf.mxu2  ;;  %2924 = vst [vmem:[#allocation5_spill] sm:$0xff] %v2691_v1  ;;  %v696_v24 = vadd.f32 %v695_v60, %v2593_v31 }
 0x1de   :  { %v2654_v7 = vadd.f32 %v872_v18, %v808_v4  ;;  %v755_v47 = vadd.f32 %v754_v53, %v690_v2 }
 0x1e0   :  { %2922 = vst [vmem:[#allocation3_spill] sm:$0xff] %v2654_v7  ;;  %v909_v8 = vmul.f32 %v2620_v36, %v2654_v7 }
 0x1e1   :  { %v875_v50 = vpop.f32.mrf.mxu0 }
 0x1e2   :  { %v957_v62 = vmul.f32 %v909_v8, %v909_v8 }
 0x1e3   :  { %v810_v17 = vpop.f32.mrf.mxu3 }
 0x1e4   :  { %v811_v15 = vadd.f32 %v810_v17, %v746_v19  ;;  %980 = vadd.xlane.f32.xlu2 %v957_v62  ;;  %932 = vadd.xlane.f32.xlu1 %v909_v8  ;;  %v2693_v19 = vpop.permute.xlu1 %1207  ;;  %v2695_v62 = vpop.permute.xlu0 %1187 }
 0x1e5   :  { %v757_v46 = vpop.f32.mrf.mxu2  ;;  %2925 = vst [vmem:[#allocation6_spill] sm:$0xff] %v2693_v19 }
 0x1e6   :  { %v2661_v25 = vadd.f32 %v875_v50, %v811_v15  ;;  %v758_v26 = vadd.f32 %v757_v46, %v693_v23  ;;  %2926 = vst [vmem:[#allocation7_spill] sm:$0xff] %v2695_v62 }
 0x1e8   :  { %v910_v58 = vmul.f32 %v2620_v36, %v2661_v25 }
 0x1e9   :  { %v878_v12 = vpop.f32.mrf.mxu0 }
 0x1ea   :  { %v958_v10 = vmul.f32 %v910_v58, %v910_v58 }
 0x1eb   :  { %v813_v49 = vpop.f32.mrf.mxu3 }
 0x1ec   :  { %v814_v33 = vadd.f32 %v813_v49, %v749_v28  ;;  %982 = vadd.xlane.f32.xlu0 %v958_v10  ;;  %934 = vadd.xlane.f32.xlu2 %v910_v58  ;;  %v698_v58 = vpop.f32.mrf.mxu1  ;;  %v2702_v10 = vpop.permute.xlu2 %1242 }
 0x1ed   :  { %v760_v9 = vpop.f32.mrf.mxu2  ;;  %2927 = vst [vmem:[#allocation8_spill] sm:$0xff] %v2702_v10  ;;  %v699_v6 = vadd.f32 %v698_v58, %v2602_v35  ;;  %v2707_v53 = vpop.permute.xlu1 %1222 }
 0x1ee   :  { %v2668_v16 = vadd.f32 %v878_v12, %v814_v33  ;;  %v761_v22 = vadd.f32 %v760_v9, %v696_v24  ;;  %2929 = vst [vmem:[#allocation10_spill] sm:$0xff] %v2707_v53  ;;  %v2709_v31 = vpop.permute.xlu0 %1202 }
 0x1f0   :  { %v911_v30 = vmul.f32 %v2620_v36, %v2668_v16 }
 0x1f1   :  { %v881_v39 = vpop.f32.mrf.mxu0 }
 0x1f2   :  { %v959_v41 = vmul.f32 %v911_v30, %v911_v30 }
 0x1f3   :  { %v816_v29 = vpop.f32.mrf.mxu3 }
 0x1f4   :  { %v817_v11 = vadd.f32 %v816_v29, %v752_v14  ;;  %936 = vadd.xlane.f32.xlu0 %v911_v30  ;;  %984 = vadd.xlane.f32.xlu1 %v959_v41  ;;  %v2715_v2 = vpop.permute.xlu2 %1289 }
 0x1f5   :  { %v763_v49 = vpop.f32.mrf.mxu2 }
 0x1f6   :  { %v2675_v42 = vadd.f32 %v881_v39, %v817_v11  ;;  %v764_v39 = vadd.f32 %v763_v49, %v699_v6  ;;  %v701_v11 = vpop.f32.mrf.mxu1  ;;  %v1274_v6 = vld [vmem:[%s2914_s3 + $0x40] sm:$0xff] }
 0x1f8   :  { %v912_v13 = vmul.f32 %v2620_v36, %v2675_v42 }
 0x1f9   :  { %v884_v63 = vpop.f32.mrf.mxu0 }
 0x1fa   :  { %v960_v38 = vmul.f32 %v912_v13, %v912_v13 }
 0x1fb   :  { %v819_v54 = vpop.f32.mrf.mxu3 }
 0x1fc   :  { %v820_v51 = vadd.f32 %v819_v54, %v755_v47  ;;  %986 = vadd.xlane.f32.xlu2 %v960_v38  ;;  %938 = vadd.xlane.f32.xlu1 %v912_v13  ;;  %v702_v13 = vadd.f32 %v701_v11, %v2611_v40  ;;  %v2722_v38 = vpop.permute.xlu0 %1217 }
 0x1fd   :  { %v766_v35 = vpop.f32.mrf.mxu2 }
 0x1fe   :  { %v2686_v57 = vadd.f32 %v884_v63, %v820_v51  ;;  %v2720_v63 = vpop.permute.xlu1 %1237  ;;  %v767_v47 = vadd.f32 %v766_v35, %v702_v13 }
 0x1ff   :  { %2930 = vst [vmem:[#allocation11_spill] sm:$0xff] %v2720_v63 }
 0x200   :  { %2923 = vst [vmem:[#allocation4_spill] sm:$0xff] %v2686_v57  ;;  %v913_v18 = vmul.f32 %v2620_v36, %v2686_v57 }
 0x201   :  { %v887_v61 = vpop.f32.mrf.mxu0 }
 0x202   :  { %v961_v4 = vmul.f32 %v913_v18, %v913_v18 }
 0x203   :  { %v822_v8 = vpop.f32.mrf.mxu3 }
 0x204   :  { %v823_v50 = vadd.f32 %v822_v8, %v758_v26  ;;  %988 = vadd.xlane.f32.xlu0 %v961_v4  ;;  %940 = vadd.xlane.f32.xlu2 %v913_v18  ;;  %v2732_v4 = vpop.permute.xlu0 %1232  ;;  %v1272_v8 = vld [vmem:[%s2914_s3 + $0x30] sm:$0xff] }
 0x206   :  { %v2697_v20 = vadd.f32 %v887_v61, %v823_v50  ;;  %v2726_v61 = vpop.permute.xlu2 %1304  ;;  %v2730_v26 = vpop.permute.xlu1 %1284 }
 0x208   :  { %v914_v17 = vmul.f32 %v2620_v36, %v2697_v20 }
 0x209   :  { %v890_v15 = vpop.f32.mrf.mxu0 }
 0x20a   :  { %v962_v3 = vmul.f32 %v914_v17, %v914_v17 }
 0x20b   :  { %v825_v12 = vpop.f32.mrf.mxu3 }
 0x20c   :  { %v826_v28 = vadd.f32 %v825_v12, %v761_v22  ;;  %942 = vadd.xlane.f32.xlu0 %v914_v17  ;;  %990 = vadd.xlane.f32.xlu1 %v962_v3  ;;  %v2739_v24 = vpop.permute.xlu0 %1247  ;;  %v1273_v17 = vld [vmem:[%s2914_s3 + $0x38] sm:$0xff]  ;;  %v1271_v3 = vld [vmem:[%s2914_s3 + $0x28] sm:$0xff] }
 0x20d   :  { %2933 = vst [vmem:[#allocation14_spill] sm:$0xff] %v2739_v24 }
 0x20e   :  { %v2704_v33 = vadd.f32 %v890_v15, %v826_v28  ;;  %v2737_v50 = vpop.permute.xlu1 %1299  ;;  %v1275_v15 = vld [vmem:[%s2914_s3 + $0x48] sm:$0xff]  ;;  %v1276_v28 = vld [vmem:[%s2914_s3 + $0x50] sm:$0xff] }
 0x20f   :  { %2932 = vst [vmem:[#allocation13_spill] sm:$0xff] %v2737_v50 }
 0x210   :  { %2928 = vst [vmem:[#allocation9_spill] sm:$0xff] %v2704_v33  ;;  %v915_v37 = vmul.f32 %v2620_v36, %v2704_v33 }
 0x211   :  { %v893_v30 = vpop.f32.mrf.mxu0 }
 0x212   :  { %v963_v14 = vmul.f32 %v915_v37, %v915_v37 }
 0x213   :  { %v828_v41 = vpop.f32.mrf.mxu3 }
 0x214   :  { %v829_v29 = vadd.f32 %v828_v41, %v764_v39  ;;  %992 = vadd.xlane.f32.xlu2 %v963_v14  ;;  %944 = vadd.xlane.f32.xlu1 %v915_v37  ;;  %v2750_v12 = vpop.permute.xlu0 %1294  ;;  %v1277_v14 = vld [vmem:[%s2914_s3 + $0x58] sm:$0xff] }
 0x215   :  { %2934 = vst [vmem:[#allocation15_spill] sm:$0xff] %v2750_v12 }
 0x216   :  { %v2713_v44 = vadd.f32 %v893_v30, %v829_v29 }
 0x218   :  { %v916_v46 = vmul.f32 %v2620_v36, %v2713_v44 }
 0x219   :  { %v896_v23 = vpop.f32.mrf.mxu0 }
 0x21a   :  { %v964_v54 = vmul.f32 %v916_v46, %v916_v46 }
 0x21b   :  { %v831_v51 = vpop.f32.mrf.mxu3 }
 0x21c   :  { %v832_v18 = vadd.f32 %v831_v51, %v767_v47  ;;  %994 = vadd.xlane.f32.xlu0 %v964_v54  ;;  %946 = vadd.xlane.f32.xlu2 %v916_v46 }
 0x21d   :  { %v919_v58 = vpop.xlane.xlu1 %918 }
 0x21e   :  { %v2724_v60 = vadd.f32 %v896_v23, %v832_v18 }
 0x220   :  { %2931 = vst [vmem:[#allocation12_spill] sm:$0xff] %v2724_v60  ;;  %v917_v40 = vmul.f32 %v2620_v36, %v2724_v60 }
 0x222   :  { %v965_v23 = vmul.f32 %v917_v40, %v917_v40 }
 0x224   :  { %948 = vadd.xlane.f32.xlu0 %v917_v40 }
 0x225   :  { %v921_v9 = vpop.xlane.xlu2 %920  ;;  %v967_v37 = vpop.xlane.xlu1 %966 }
 0x22d   :  { %1314 = vperm.xlu1 %1824, %v1272_v8   ;;  %v969_v22 = vpop.xlane.xlu2 %968  ;;  %v923_v30 = vpop.xlane.xlu0 %922 }
 0x234   :  { %1319 = vperm.xlu2 %1825, %v1273_v17  }
 0x235   :  { %1329 = vperm.xlu1 %1824, %v1275_v15   ;;  %v2755_v49 = vpop.xlane.xlu2 %924  ;;  %v971_v29 = vpop.xlane.xlu0 %970 }
 0x237   :  { %v973_v41 = vpop.xlane.xlu1 %972 }
 0x238   :  { %1309 = vperm.xlu0 %1823, %v1271_v3  }
 0x23c   :  { %1334 = vperm.xlu2 %1825, %v1276_v28  }
 0x23f   :  { %v975_v39 = vpop.xlane.xlu2 %974  ;;  %v927_v35 = vpop.xlane.xlu1 %926 }
 0x240   :  { %1324 = vperm.xlu0 %1823, %v1274_v6   ;;  %v1278_v6 = vld [vmem:[%s2914_s3 + $0x60] sm:$0xff] }
 0x247   :  { %v929_v11 = vpop.xlane.xlu2 %928  ;;  %v977_v13 = vpop.xlane.xlu0 %976 }
 0x248   :  { %1339 = vperm.xlu0 %1823, %v1277_v14   ;;  %v1011_v57 = vadd.f32 %v977_v13, %v969_v22  ;;  %v999_v7 = vadd.f32 %v929_v11, %v921_v9 }
 0x24f   :  { %v979_v54 = vpop.xlane.xlu1 %978  ;;  %v931_v51 = vpop.xlane.xlu0 %930 }
 0x257   :  { %v981_v46 = vpop.xlane.xlu2 %980  ;;  %v933_v18 = vpop.xlane.xlu1 %932 }
 0x258   :  { %v1013_v47 = vadd.f32 %v981_v46, %v973_v41  ;;  %v1010_v41 = vadd.f32 %v975_v39, %v967_v37  ;;  %v998_v46 = vadd.f32 %v927_v35, %v919_v58 }
 0x25f   :  { %996 = vadd.xlane.f32.xlu1 %v965_v23  ;;  %v983_v8 = vpop.xlane.xlu0 %982  ;;  %v935_v17 = vpop.xlane.xlu2 %934 }
 0x260   :  { %v1014_v24 = vadd.f32 %v1010_v41, %v983_v8  ;;  %v1002_v40 = vadd.f32 %v998_v46, %v935_v17  ;;  %v1000_v8 = vadd.f32 %v931_v51, %v923_v30  ;;  %v1012_v17 = vadd.f32 %v979_v54, %v971_v29 }
 0x261   :  { %v1001_v29 = vadd.f32 %v933_v18, %v2755_v49 }
 0x267   :  { %v985_v15 = vpop.xlane.xlu1 %984  ;;  %v937_v3 = vpop.xlane.xlu0 %936 }
 0x268   :  { %v1003_v10 = vadd.f32 %v999_v7, %v937_v3  ;;  %v1015_v53 = vadd.f32 %v1011_v57, %v985_v15 }
 0x26f   :  { %v987_v28 = vpop.xlane.xlu2 %986  ;;  %v939_v14 = vpop.xlane.xlu1 %938 }
 0x270   :  { %v1004_v9 = vadd.f32 %v1000_v8, %v939_v14 }
 0x277   :  { %v989_v63 = vpop.xlane.xlu0 %988  ;;  %v941_v23 = vpop.xlane.xlu2 %940 }
 0x278   :  { %v2766_v50 = vadd.f32 %v1013_v47, %v989_v63  ;;  %1344 = vperm.xlu1 %1824, %v1278_v6   ;;  %v1005_v51 = vadd.f32 %v1001_v29, %v941_v23 }
 0x27f   :  { %v943_v1 = vpop.xlane.xlu0 %942  ;;  %v991_v19 = vpop.xlane.xlu1 %990 }
 0x280   :  { %v1006_v62 = vadd.f32 %v1002_v40, %v943_v1  ;;  %v1018_v33 = vadd.f32 %v1014_v24, %v991_v19 }
 0x282   :  { %v1022_v60 = vmul.f32 0.0034722222, %v1006_v62  ;;  %v1026_v12 = vmul.f32 0.0034722222, %v1018_v33  ;;  %v1016_v62 = vadd.f32 %v1012_v17, %v987_v28 }
 0x284   :  { %v1030_v27 = vmul.f32 %v1022_v60, %v1022_v60  ;;  %1084 = vperm.xlu2 %1825, %v1022_v60  }
 0x286   :  { %v1034_v63 = vsub.f32 %v1026_v12, %v1030_v27 }
 0x287   :  { %v993_v47 = vpop.xlane.xlu2 %992  ;;  %v945_v6 = vpop.xlane.xlu1 %944 }
 0x288   :  { %v1038_v37 = vadd.f32 1e-05, %v1034_v63  ;;  %v1019_v58 = vadd.f32 %v1015_v53, %v993_v47  ;;  %v1007_v39 = vadd.f32 %v1003_v10, %v945_v6  ;;  %v1280_v10 = vld [vmem:[%s2914_s3 + $0x70] sm:$0xff] }
 0x28a   :  { %1827 = vrsqrt.f32 %v1038_v37  ;;  %v1023_v35 = vmul.f32 0.0034722222, %v1007_v39  ;;  %v1027_v1 = vmul.f32 0.0034722222, %v1019_v58  ;;  %vm1048_vm10 = vweird.f32 %v1038_v37 }
 0x28c   :  { %v1031_v19 = vmul.f32 %v1023_v35, %v1023_v35  ;;  %1089 = vperm.xlu0 %1823, %v1023_v35  }
 0x28e   :  { %v1035_v24 = vsub.f32 %v1027_v1, %v1031_v19 }
 0x28f   :  { %v995_v33 = vpop.xlane.xlu0 %994  ;;  %v947_v60 = vpop.xlane.xlu2 %946 }
 0x290   :  { %v1828_v7 = vpop.eup %1827  ;;  %v1039_v57 = vadd.f32 1e-05, %v1035_v24  ;;  %v1020_v27 = vadd.f32 %v1016_v62, %v995_v33  ;;  %v1008_v22 = vadd.f32 %v1004_v9, %v947_v60  ;;  %v1281_v9 = vld [vmem:[%s2914_s3 + $0x78] sm:$0xff] }
 0x291   :  { %v1043_v12 = vmul.f32 %v1828_v7, %v1038_v37  ;;  %vm1049_vm9 = vweird.f32 %v1828_v7 }
 0x292   :  { %1829 = vrsqrt.f32 %v1039_v57  ;;  %v1024_v53 = vmul.f32 0.0034722222, %v1008_v22  ;;  %v1028_v11 = vmul.f32 0.0034722222, %v1020_v27  ;;  %vm1050_vm11 = vmor %vm1048_vm10, %vm1049_vm9  ;;  %vm1058_vm13 = vweird.f32 %v1039_v57 }
 0x293   :  { %v1044_v30 = vmul.f32 %v1828_v7, %v1043_v12 }
 0x294   :  { %v1032_v13 = vmul.f32 %v1024_v53, %v1024_v53  ;;  %1094 = vperm.xlu1 %1824, %v1024_v53   ;;  %1354 = vperm.xlu0 %1823, %v1280_v10  }
 0x295   :  { %v1045_v54 = vmul.f32 0.5, %v1044_v30 }
 0x296   :  { %v1036_v15 = vsub.f32 %v1028_v11, %v1032_v13 }
 0x297   :  { %v949_v3 = vpop.xlane.xlu0 %948  ;;  %v1046_v28 = vsub.f32 1.5, %v1045_v54  ;;  %v2778_v10 = vpop.permute.xlu2 %1319 }
 0x298   :  { %v1830_v14 = vpop.eup %1829  ;;  %v1040_v41 = vadd.f32 1e-05, %v1036_v15  ;;  %v1009_v46 = vadd.f32 %v1005_v51, %v949_v3 }
 0x299   :  { %v1053_v40 = vmul.f32 %v1830_v14, %v1039_v57  ;;  %v1047_v63 = vmul.f32 %v1828_v7, %v1046_v28  ;;  %vm1059_vm12 = vweird.f32 %v1830_v14 }
 0x29a   :  { %1831 = vrsqrt.f32 %v1040_v41  ;;  %v1025_v47 = vmul.f32 0.0034722222, %v1009_v46  ;;  %vm1060_vm14 = vmor %vm1058_vm13, %vm1059_vm12  ;;  %vm1068_vm0 = vweird.f32 %v1040_v41 }
 0x29b   :  { %v1051_v49 = vsel %vm1050_vm11, %v1828_v7, %v1047_v63  ;;  %v1054_v18 = vmul.f32 %v1830_v14, %v1053_v40 }
 0x29c   :  { %1099 = vperm.xlu2 %1825, %v1025_v47   ;;  %1120 = vperm.xlu1 %1824, %v1051_v49   ;;  %v1033_v57 = vmul.f32 %v1025_v47, %v1025_v47 }
 0x29d   :  { %v1055_v6 = vmul.f32 0.5, %v1054_v18 }
 0x29f   :  { %v1056_v58 = vsub.f32 1.5, %v1055_v6  ;;  %v2775_v24 = vpop.permute.xlu1 %1314  ;;  %v2780_v13 = vpop.permute.xlu2 %1334 }
 0x2a0   :  { %v1832_v23 = vpop.eup %1831 }
 0x2a1   :  { %v1063_v39 = vmul.f32 %v1832_v23, %v1040_v41  ;;  %v1057_v35 = vmul.f32 %v1830_v14, %v1056_v58  ;;  %vm1069_vm15 = vweird.f32 %v1832_v23 }
 0x2a2   :  { %vm1070_vm1 = vmor %vm1068_vm0, %vm1069_vm15 }
 0x2a3   :  { %v1061_v8 = vsel %vm1060_vm14, %v1830_v14, %v1057_v35  ;;  %v1064_v17 = vmul.f32 %v1832_v23, %v1063_v39  ;;  %v1279_v14 = vld [vmem:[%s2914_s3 + $0x68] sm:$0xff] }
 0x2a4   :  { %1125 = vperm.xlu2 %1825, %v1061_v8  }
 0x2a5   :  { %v1065_v1 = vmul.f32 0.5, %v1064_v17 }
 0x2a7   :  { %v1066_v37 = vsub.f32 1.5, %v1065_v1  ;;  %v1330_v33 = vpop.permute.xlu1 %1329 }
 0x2a9   :  { %v1067_v19 = vmul.f32 %v1832_v23, %v1066_v37 }
 0x2aa   :  { %v1310_v30 = vpop.permute.xlu0 %1309 }
 0x2ab   :  { %v1071_v62 = vsel %vm1070_vm1, %v1832_v23, %v1067_v19 }
 0x2ac   :  { %1130 = vperm.xlu1 %1824, %v1071_v62  }
 0x2b4   :  { %1359 = vperm.xlu1 %1824, %v1281_v9  }
 0x2d2   :  { %v997_v60 = vpop.xlane.xlu1 %996 }
 0x2d3   :  { %v1021_v7 = vadd.f32 %v2766_v50, %v997_v60  ;;  %v1325_v50 = vpop.permute.xlu0 %1324 }
 0x2d5   :  { %v1029_v27 = vmul.f32 0.0034722222, %v1021_v7 }
 0x2d7   :  { %v1037_v22 = vsub.f32 %v1029_v27, %v1033_v57 }
 0x2d9   :  { %v1041_v12 = vadd.f32 1e-05, %v1037_v22 }
 0x2db   :  { %1833 = vrsqrt.f32 %v1041_v12  ;;  %vm1078_vm3 = vweird.f32 %v1041_v12  ;;  %v2785_v41 = vpop.permute.xlu0 %1339 }
 0x2de   :  { %v1085_v28 = vpop.permute.xlu2 %1084 }
 0x2e1   :  { %v1834_v53 = vpop.eup %1833 }
 0x2e2   :  { %v1073_v29 = vmul.f32 %v1834_v53, %v1041_v12  ;;  %vm1079_vm2 = vweird.f32 %v1834_v53 }
 0x2e3   :  { %vm1080_vm4 = vmor %vm1078_vm3, %vm1079_vm2 }
 0x2e4   :  { %v1074_v11 = vmul.f32 %v1834_v53, %v1073_v29 }
 0x2e6   :  { %v1075_v54 = vmul.f32 0.5, %v1074_v11 }
 0x2e8   :  { %v1076_v51 = vsub.f32 1.5, %v1075_v54 }
 0x2ea   :  { %v1077_v15 = vmul.f32 %v1834_v53, %v1076_v51  ;;  %v1345_v40 = vpop.permute.xlu1 %1344 }
 0x2ec   :  { %v1081_v3 = vsel %vm1080_vm4, %v1834_v53, %v1077_v15 }
 0x2ed   :  { %1135 = vperm.xlu2 %1825, %v1081_v3  }
 0x2f5   :  { %1349 = vperm.xlu2 %1825, %v1279_v14  }
 0x2f6   :  { %v2787_v46 = vpop.permute.xlu2 %1099 }
 0x2fe   :  { %v2789_v63 = vpop.permute.xlu0 %1089  ;;  %v2797_v6 = vpop.permute.xlu2 %1125 }
 0x2ff   :  { %v1103_v47 = vsub.f32 %v2626_v59, %v2789_v63  ;;  %v1107_v49 = vsub.f32 %v2644_v5, %v2789_v63  ;;  %v1111_v18 = vsub.f32 %v2668_v16, %v2789_v63 }
 0x301   :  { %v1139_v58 = vmul.f32 %v2797_v6, %v1103_v47  ;;  %v1143_v23 = vmul.f32 %v2797_v6, %v1107_v49  ;;  %v1147_v39 = vmul.f32 %v2797_v6, %v1111_v18 }
 0x303   :  { %v1251_v35 = vmul.f32 %v2673_v32, %v1139_v58  ;;  %v1255_v8 = vmul.f32 %v2666_v34, %v1143_v23  ;;  %v1259_v59 = vmul.f32 %v2722_v38, %v1147_v39  ;;  %v1102_v34 = vsub.f32 %v2622_v52, %v1085_v28  ;;  %v2935_v39 = vld [vmem:[#allocation10_spill] sm:$0xff] }
 0x304   :  { %v1106_v32 = vsub.f32 %v2639_v0, %v1085_v28  ;;  %v1114_v38 = vsub.f32 %v2697_v20, %v1085_v28 }
 0x305   :  { %v1363_v17 = vadd.f32 %v2715_v2, %v1251_v35  ;;  %v1367_v5 = vadd.f32 %v1310_v30, %v1255_v8  ;;  %v1371_v1 = vadd.f32 %v1330_v33, %v1259_v59  ;;  %v1110_v2 = vsub.f32 %v2661_v25, %v1085_v28  ;;  %v2936_v8 = vld [vmem:[#allocation8_spill] sm:$0xff] }
 0x306   :  { %v1095_v37 = vpop.permute.xlu1 %1094 }
 0x307   :  { %v1379_v16 = vmax.f32 %v1363_v17, 0.0  ;;  %v1383_v19 = vmax.f32 %v1367_v5, 0.0  ;;  %v1387_v62 = vmax.f32 %v1371_v1, 0.0  ;;  %v2937_v17 = vld [vmem:[#allocation15_spill] sm:$0xff] }
 0x309   :  { %v1395_v9 = vmul.f32 %v2620_v36, %v1379_v16  ;;  %v1399_v60 = vmul.f32 %v2620_v36, %v1383_v19  ;;  %v1403_v7 = vmul.f32 %v2620_v36, %v1387_v62 }
 0x30b   :  { %1411 = vst [vmem:[%s2915_s5 + $0x8] sm:$0xff] %v1395_v9 }
 0x30c   :  { %1415 = vst [vmem:[%s2915_s5 + $0x28] sm:$0xff] %v1399_v60  ;;  %v2939_v60 = vld [vmem:[#allocation3_spill] sm:$0xff] }
 0x30d   :  { %1419 = vst [vmem:[%s2915_s5 + $0x48] sm:$0xff] %v1403_v7  ;;  %v1109_v7 = vsub.f32 %v2939_v60, %v2787_v46 }
 0x30e   :  { %v1121_v33 = vpop.permute.xlu1 %1120 }
 0x30f   :  { %v1138_v57 = vmul.f32 %v1121_v33, %v1102_v34  ;;  %v1142_v27 = vmul.f32 %v1121_v33, %v1106_v32  ;;  %v1146_v22 = vmul.f32 %v1121_v33, %v1110_v2  ;;  %v1150_v12 = vmul.f32 %v1121_v33, %v1114_v38  ;;  %v2940_v34 = vld [vmem:[#allocation4_spill] sm:$0xff]  ;;  %v2942_v33 = vld [vmem:[#allocation9_spill] sm:$0xff] }
 0x310   :  { %v1113_v32 = vsub.f32 %v2940_v34, %v2787_v46  ;;  %v2941_v2 = vld [vmem:[#allocation12_spill] sm:$0xff] }
 0x311   :  { %v1250_v53 = vmul.f32 %v2684_v56, %v1138_v57  ;;  %v1254_v30 = vmul.f32 %v2682_v55, %v1142_v27  ;;  %v1258_v52 = vmul.f32 %v2678_v45, %v1146_v22  ;;  %v1262_v0 = vmul.f32 %v2732_v4, %v1150_v12 }
 0x312   :  { %v1112_v4 = vsub.f32 %v2675_v42, %v1095_v37  ;;  %v1117_v38 = vsub.f32 %v2941_v2, %v2787_v46  ;;  %v1115_v57 = vsub.f32 %v2942_v33, %v2789_v63 }
 0x313   :  { %v1362_v25 = vadd.f32 %v2730_v26, %v1250_v53  ;;  %v1366_v20 = vadd.f32 %v2726_v61, %v1254_v30  ;;  %v1370_v29 = vadd.f32 %v1325_v50, %v1258_v52  ;;  %v1374_v11 = vadd.f32 %v1345_v40, %v1262_v0  ;;  %v2943_v52 = vld [vmem:[#allocation7_spill] sm:$0xff] }
 0x314   :  { %v1104_v61 = vsub.f32 %v2630_v48, %v1095_v37  ;;  %v1108_v26 = vsub.f32 %v2649_v43, %v1095_v37  ;;  %v1116_v50 = vsub.f32 %v2713_v44, %v1095_v37  ;;  %v1355_v48 = vpop.permute.xlu0 %1354 }
 0x315   :  { %v1378_v54 = vmax.f32 %v1362_v25, 0.0  ;;  %v1382_v51 = vmax.f32 %v1366_v20, 0.0  ;;  %v1386_v15 = vmax.f32 %v1370_v29, 0.0  ;;  %v1390_v3 = vmax.f32 %v1374_v11, 0.0  ;;  %v2944_v25 = vld [vmem:[#allocation6_spill] sm:$0xff]  ;;  %v2945_v29 = vld [vmem:[#allocation5_spill] sm:$0xff] }
 0x317   :  { %v1394_v28 = vmul.f32 %v2620_v36, %v1378_v54  ;;  %v1398_v56 = vmul.f32 %v2620_v36, %v1382_v51  ;;  %v1402_v55 = vmul.f32 %v2620_v36, %v1386_v15  ;;  %v1406_v45 = vmul.f32 %v2620_v36, %v1390_v3  ;;  %v2946_v54 = vld [vmem:[#allocation14_spill] sm:$0xff] }
 0x318   :  { %v1151_v3 = vmul.f32 %v2797_v6, %v1115_v57 }
 0x319   :  { %1410 = vst [vmem:[%s2915_s5] sm:$0xff] %v1394_v28 }
 0x31a   :  { %1414 = vst [vmem:[%s2915_s5 + $0x20] sm:$0xff] %v1398_v56 }
 0x31b   :  { %1418 = vst [vmem:[%s2915_s5 + $0x40] sm:$0xff] %v1402_v55 }
 0x31c   :  { %1422 = vst [vmem:[%s2915_s5 + $0x60] sm:$0xff] %v1406_v45 }
 0x31e   :  { %v1131_v14 = vpop.permute.xlu1 %1130 }
 0x31f   :  { %v1140_v40 = vmul.f32 %v1131_v14, %v1104_v61  ;;  %v1144_v47 = vmul.f32 %v1131_v14, %v1108_v26  ;;  %v1148_v49 = vmul.f32 %v1131_v14, %v1112_v4  ;;  %v1152_v18 = vmul.f32 %v1131_v14, %v1116_v50  ;;  %v2948_v50 = vld [vmem:[#allocation11_spill] sm:$0xff] }
 0x320   :  { %v1263_v14 = vmul.f32 %v2948_v50, %v1151_v3 }
 0x321   :  { %v1252_v58 = vmul.f32 %v2659_v21, %v1140_v40  ;;  %v1256_v23 = vmul.f32 %v2709_v31, %v1144_v47  ;;  %v1260_v35 = vmul.f32 %v2935_v39, %v1148_v49  ;;  %v1264_v59 = vmul.f32 %v2936_v8, %v1152_v18 }
 0x323   :  { %v1364_v43 = vadd.f32 %v2937_v17, %v1252_v58  ;;  %v1368_v42 = vadd.f32 %v2775_v24, %v1256_v23  ;;  %v1372_v44 = vadd.f32 %v2780_v13, %v1260_v35  ;;  %v1376_v5 = vadd.f32 %v1355_v48, %v1264_v59  ;;  %v2938_v24 = vld [vmem:[#allocation2_spill] sm:$0xff] }
 0x324   :  { %v1105_v13 = vsub.f32 %v2938_v24, %v2787_v46  ;;  %v2947_v46 = vld [vmem:[#allocation13_spill] sm:$0xff] }
 0x325   :  { %v1380_v1 = vmax.f32 %v1364_v43, 0.0  ;;  %v1384_v37 = vmax.f32 %v1368_v42, 0.0  ;;  %v1388_v16 = vmax.f32 %v1372_v44, 0.0  ;;  %v1392_v19 = vmax.f32 %v1376_v5, 0.0 }
 0x326   :  { %v1360_v15 = vpop.permute.xlu1 %1359 }
 0x327   :  { %v1396_v21 = vmul.f32 %v2620_v36, %v1380_v1  ;;  %v1400_v31 = vmul.f32 %v2620_v36, %v1384_v37  ;;  %v1404_v62 = vmul.f32 %v2620_v36, %v1388_v16  ;;  %v1408_v9 = vmul.f32 %v2620_v36, %v1392_v19 }
 0x329   :  { %1412 = vst [vmem:[%s2915_s5 + $0x10] sm:$0xff] %v1396_v21 }
 0x32a   :  { %1416 = vst [vmem:[%s2915_s5 + $0x30] sm:$0xff] %v1400_v31 }
 0x32b   :  { %1420 = vst [vmem:[%s2915_s5 + $0x50] sm:$0xff] %v1404_v62 }
 0x32c   :  { %1424 = vst [vmem:[%s2915_s5 + $0x70] sm:$0xff] %v1408_v9 }
 0x347   :  { %v1136_v27 = vpop.permute.xlu2 %1135 }
 0x348   :  { %v1141_v22 = vmul.f32 %v1136_v27, %v1105_v13  ;;  %v1145_v12 = vmul.f32 %v1136_v27, %v1109_v7  ;;  %v1149_v53 = vmul.f32 %v1136_v27, %v1113_v32  ;;  %v1153_v30 = vmul.f32 %v1136_v27, %v1117_v38 }
 0x34a   :  { %v1253_v0 = vmul.f32 %v2943_v52, %v1141_v22  ;;  %v1257_v20 = vmul.f32 %v2944_v25, %v1145_v12  ;;  %v1261_v11 = vmul.f32 %v2945_v29, %v1149_v53  ;;  %v1265_v51 = vmul.f32 %v2946_v54, %v1153_v30 }
 0x34c   :  { %v1365_v28 = vadd.f32 %v2947_v46, %v1253_v0  ;;  %v1369_v63 = vadd.f32 %v2778_v10, %v1257_v20  ;;  %v1373_v56 = vadd.f32 %v2785_v41, %v1261_v11  ;;  %v1377_v55 = vadd.f32 %v1360_v15, %v1265_v51 }
 0x34e   :  { %v1381_v45 = vmax.f32 %v1365_v28, 0.0  ;;  %v1385_v61 = vmax.f32 %v1369_v63, 0.0  ;;  %v1389_v26 = vmax.f32 %v1373_v56, 0.0  ;;  %v1393_v4 = vmax.f32 %v1377_v55, 0.0 }
 0x34f   :  { %v1350_v40 = vpop.permute.xlu2 %1349 }
 0x350   :  { %v1397_v47 = vmul.f32 %v2620_v36, %v1381_v45  ;;  %v1401_v49 = vmul.f32 %v2620_v36, %v1385_v61  ;;  %v1405_v6 = vmul.f32 %v2620_v36, %v1389_v26  ;;  %v1409_v18 = vmul.f32 %v2620_v36, %v1393_v4 }
 0x351   :  { %v1375_v58 = vadd.f32 %v1350_v40, %v1263_v14 }
 0x352   :  { %1413 = vst [vmem:[%s2915_s5 + $0x18] sm:$0xff] %v1397_v47 }
 0x353   :  { %1417 = vst [vmem:[%s2915_s5 + $0x38] sm:$0xff] %v1401_v49  ;;  %v1391_v10 = vmax.f32 %v1375_v58, 0.0 }
 0x354   :  { %1421 = vst [vmem:[%s2915_s5 + $0x58] sm:$0xff] %v1405_v6 }
 0x355   :  { %1425 = vst [vmem:[%s2915_s5 + $0x78] sm:$0xff] %v1409_v18  ;;  %v1407_v41 = vmul.f32 %v2620_v36, %v1391_v10 }
 0x357   :  { %1423 = vst [vmem:[%s2915_s5 + $0x68] sm:$0xff] %v1407_v41 }

// kernel: decoder_forward.6
= control target key start
LH: loop header
LB: loop body
LE: loop exit
PB: predicated region body
PF: predicated region fallthrough
CT: control target
= control target key end

     0   :  { %s3971_s26 = smov 127   ;;  %s3972_s10 = smov 126   ;;  %vm149_vm0 = vcmask 1039360   ;;  %vm246_vm1 = vcmask 1031168   ;;  %vm343_vm2 = vcmask 1006592   ;;  %vm440_vm3 = vcmask 998400   ;;  %s7449_s0 = inlined_call_operand.vmem [shape: f32[128,140], index: 0, kind: input, shape index: {}]   ;;  %s7450_s1 = inlined_call_operand.vmem [shape: f32[256,1152], index: 1, kind: input, shape index: {}]   ;;  %s7451_s2 = inlined_call_operand.vmem [shape: f32[256,1], index: 2, kind: input, shape index: {}]   ;;  %s7452_s3 = inlined_call_operand.vmem [shape: f32[256,1], index: 3, kind: input, shape index: {}]   ;;  %s7453_s4 = inlined_call_operand.vmem [shape: f32[1,128], index: 4, kind: input, shape index: {}]   ;;  %s7454_s5 = inlined_call_operand.vmem [shape: f32[256,128], index: 5, kind: output, shape index: {}]  }
   0x1   :  { %v4013_v0 = vld [vmem:[%s7449_s0 + $0x20] sm:$0xff]  ;;  %v39_v1 = vld [vmem:[%s7449_s0 + $0x28] sm:$0xff]  ;;  %v4037_v6 = vld [vmem:[%s7449_s0 + $0x30] sm:$0xff]  ;;  %s3974_s21 = smov 122   ;;  %s3975_s13 = smov 121   ;;  %vm537_vm4 = vcmask 990208  }
   0x2   :  { %v4021_v2 = vld [vmem:[%s7449_s0] sm:$0xff]  ;;  %v4024_v3 = vpack.i.bf16 %v39_v1, %v4013_v0  ;;  %v37_v4 = vld [vmem:[%s7449_s0 + $0x8] sm:$0xff]  ;;  %v40_v7 = vld [vmem:[%s7449_s0 + $0x38] sm:$0xff]  ;;  %vm634_vm5 = vcmask 965632   ;;  %vm731_vm6 = vcmask 957440   ;;  %vm828_vm7 = vcmask 949248  }
   0x3   :  { %v4030_v5 = vpack.i.bf16 %v37_v4, %v4021_v2  ;;  %v4047_v8 = vld [vmem:[%s7449_s0 + $0x40] sm:$0xff]  ;;  %v41_v9 = vld [vmem:[%s7449_s0 + $0x48] sm:$0xff]  ;;  %v4055_v10 = vld [vmem:[%s7449_s0 + $0x10] sm:$0xff]  ;;  %v4064_v13 = vpack.i.bf16 %v40_v7, %v4037_v6 }
   0x4   :  { %3289 = vrot.lane.b32.xlu1 %v4024_v3, %s3971_s26  ;;  %v38_v11 = vld [vmem:[%s7449_s0 + $0x18] sm:$0xff]  ;;  %v4061_v12 = vpack.i.bf16 %v41_v9, %v4047_v8  ;;  %v4074_v15 = vld [vmem:[%s7449_s0 + $0x50] sm:$0xff]  ;;  %v4106_v21 = vld [vmem:[%s7449_s0 + $0x60] sm:$0xff] }
   0x5   :  { %3279 = vrot.lane.b32.xlu0 %v4030_v5, %s3971_s26  ;;  %v4069_v14 = vpack.i.bf16 %v38_v11, %v4055_v10  ;;  %v42_v16 = vld [vmem:[%s7449_s0 + $0x58] sm:$0xff]  ;;  %v4082_v17 = vld [vmem:[%s7449_s0 + $0xf0] sm:$0xff]  ;;  %v43_v22 = vld [vmem:[%s7449_s0 + $0x68] sm:$0xff] }
   0x6   :  { %3299 = vrot.lane.b32.xlu2 %v4061_v12, %s3971_s26  ;;  %3221 = vmatpush.msra.mxu1 %v4082_v17  ;;  %v4089_v18 = vpack.i.bf16 %v42_v16, %v4074_v15  ;;  %v4097_v19 = vld [vmem:[%s7449_s0 + $0x70] sm:$0xff]  ;;  %v44_v20 = vld [vmem:[%s7449_s0 + $0x78] sm:$0xff]  ;;  %v4117_v24 = vpack.i.bf16 %v43_v22, %v4106_v21  ;;  %v4122_v25 = vld [vmem:[%s7449_s0 + $0x80] sm:$0xff] }
   0x7   :  { %3222 = vmatpush.msra.mxu2 %v4082_v17  ;;  %3223 = vmatpush.msra.mxu3 %v4082_v17  ;;  %v4112_v23 = vpack.i.bf16 %v44_v20, %v4097_v19  ;;  %v45_v26 = vld [vmem:[%s7449_s0 + $0x88] sm:$0xff]  ;;  %v31_v28 = vld [vmem:[%s7449_s0 + $0xa0] sm:$0xff]  ;;  %v30_v31 = vld [vmem:[%s7449_s0 + $0x90] sm:$0xff] }
   0x8   :  { %1149 = vmatpush.msra.mxu0 %v4082_v17  ;;  %v4130_v27 = vpack.i.bf16 %v45_v26, %v4122_v25  ;;  %v47_v29 = vld [vmem:[%s7449_s0 + $0xa8] sm:$0xff]  ;;  %v35_v30 = vld [vmem:[%s7449_s0 + $0xe0] sm:$0xff]  ;;  %v46_v32 = vld [vmem:[%s7449_s0 + $0x98] sm:$0xff] }
   0x9   :  { %3224 = vmatpush.msra.mxu1 %v35_v30  ;;  %3225 = vmatpush.msra.mxu2 %v35_v30  ;;  %v34_v33 = vld [vmem:[%s7449_s0 + $0xd0] sm:$0xff]  ;;  %v4152_v34 = vpack.i.bf16 %v47_v29, %v31_v28  ;;  %v4156_v35 = vpack.i.bf16 %v46_v32, %v30_v31  ;;  %v33_v36 = vld [vmem:[%s7449_s0 + $0xc0] sm:$0xff]  ;;  %v48_v38 = vld [vmem:[%s7449_s0 + $0xb8] sm:$0xff] }
   0xa   :  { %3226 = vmatpush.msra.mxu3 %v35_v30  ;;  %1150 = vmatpush.msra.mxu0 %v35_v30  ;;  %v32_v37 = vld [vmem:[%s7449_s0 + $0xb0] sm:$0xff]  ;;  %v4176_v40 = vld [vmem:[%s7449_s0 + $0xd8] sm:$0xff]  ;;  %v49_v41 = vld [vmem:[%s7449_s0 + $0xc8] sm:$0xff] }
   0xb   :  { %3227 = vmatpush.msra.mxu1 %v34_v33  ;;  %3228 = vmatpush.msra.mxu2 %v34_v33  ;;  %v4169_v39 = vpack.i.bf16 %v48_v38, %v32_v37  ;;  %v4182_v42 = vpack.i.bf16 %v4176_v40, %v34_v33  ;;  %v4186_v43 = vpack.i.bf16 %v49_v41, %v33_v36  ;;  %v4191_v44 = vld [vmem:[%s7449_s0 + $0xe8] sm:$0xff]  ;;  %v4207_v46 = vld [vmem:[%s7449_s0 + $0xf8] sm:$0xff]  ;;  %v933_v48 = vld [vmem:[%s7450_s1 + $0x240] sm:$0xff] }
   0xc   :  { %3294 = vrot.lane.b32.xlu1 %v4064_v13, %s3971_s26  ;;  %3229 = vmatpush.msra.mxu3 %v34_v33  ;;  %v4198_v45 = vpack.i.bf16 %v4191_v44, %v35_v30  ;;  %v4217_v47 = vpack.i.bf16 %v4207_v46, %v4082_v17  ;;  %v942_v50 = vld [vmem:[%s7450_s1 + $0x288] sm:$0xff]  ;;  %v951_v52 = vld [vmem:[%s7450_s1 + $0x2d0] sm:$0xff]  ;;  %v960_v56 = vld [vmem:[%s7450_s1 + $0x318] sm:$0xff] }
   0xd   :  { %3284 = vrot.lane.b32.xlu0 %v4069_v14, %s3971_s26  ;;  %3230 = vmatpush.msra.mxu1 %v33_v36  ;;  %v969_v60 = vld [vmem:[%s7450_s1 + $0x360] sm:$0xff]  ;;  %v987_v7 = vld [vmem:[%s7450_s1 + $0x3f0] sm:$0xff]  ;;  %v1032_v30 = vld [vmem:[%s7450_s1 + $0x558] sm:$0xff] }
   0xe   :  { %3304 = vrot.lane.b32.xlu2 %v4089_v18, %s3971_s26  ;;  %1151 = vmatpush.msra.mxu0 %v34_v33  ;;  %v1005_v1 = vld [vmem:[%s7450_s1 + $0x480] sm:$0xff]  ;;  %v1023_v16 = vld [vmem:[%s7450_s1 + $0x510] sm:$0xff] }
   0xf   :  { %3231 = vmatpush.msra.mxu2 %v33_v36  ;;  %3232 = vmatpush.msra.mxu3 %v33_v36 }
  0x10   :  { %3233 = vmatpush.msra.mxu1 %v32_v37  ;;  %1152 = vmatpush.msra.mxu0 %v33_v36 }
  0x11   :  { %3234 = vmatpush.msra.mxu2 %v32_v37  ;;  %3235 = vmatpush.msra.mxu3 %v32_v37 }
  0x12   :  { %3236 = vmatpush.msra.mxu1 %v31_v28  ;;  %1153 = vmatpush.msra.mxu0 %v32_v37 }
  0x13   :  { %3237 = vmatpush.msra.mxu2 %v31_v28  ;;  %3238 = vmatpush.msra.mxu3 %v31_v28 }
  0x14   :  { %3314 = vrot.lane.b32.xlu1 %v4112_v23, %s3971_s26  ;;  %3239 = vmatpush.msra.mxu1 %v30_v31 }
  0x15   :  { %3309 = vrot.lane.b32.xlu0 %v4117_v24, %s3971_s26  ;;  %3240 = vmatpush.msra.mxu2 %v30_v31 }
  0x16   :  { %3319 = vrot.lane.b32.xlu2 %v4130_v27, %s3971_s26  ;;  %3242 = vmatpush.msra.mxu1 %v4122_v25 }
  0x17   :  { %3243 = vmatpush.msra.mxu2 %v4122_v25  ;;  %3241 = vmatpush.msra.mxu3 %v30_v31 }
  0x18   :  { %3245 = vmatpush.msra.mxu1 %v4097_v19  ;;  %1154 = vmatpush.msra.mxu0 %v31_v28 }
  0x19   :  { %3246 = vmatpush.msra.mxu2 %v4097_v19  ;;  %3244 = vmatpush.msra.mxu3 %v4122_v25 }
  0x1a   :  { %3248 = vmatpush.msra.mxu1 %v4106_v21  ;;  %1155 = vmatpush.msra.mxu0 %v30_v31 }
  0x1b   :  { %3249 = vmatpush.msra.mxu2 %v4106_v21  ;;  %3247 = vmatpush.msra.mxu3 %v4097_v19 }
  0x1c   :  { %3329 = vrot.lane.b32.xlu1 %v4152_v34, %s3971_s26  ;;  %3251 = vmatpush.msra.mxu1 %v4074_v15 }
  0x1d   :  { %3324 = vrot.lane.b32.xlu0 %v4156_v35, %s3971_s26  ;;  %3252 = vmatpush.msra.mxu2 %v4074_v15 }
  0x1e   :  { %3334 = vrot.lane.b32.xlu2 %v4169_v39, %s3971_s26  ;;  %3254 = vmatpush.msra.mxu1 %v4047_v8 }
  0x1f   :  { %3255 = vmatpush.msra.mxu2 %v4047_v8  ;;  %3250 = vmatpush.msra.mxu3 %v4106_v21 }
  0x20   :  { %3257 = vmatpush.msra.mxu1 %v4037_v6  ;;  %1156 = vmatpush.msra.mxu0 %v4122_v25 }
  0x21   :  { %3258 = vmatpush.msra.mxu2 %v4037_v6  ;;  %3253 = vmatpush.msra.mxu3 %v4074_v15 }
  0x22   :  { %3260 = vmatpush.msra.mxu1 %v4013_v0  ;;  %1157 = vmatpush.msra.mxu0 %v4097_v19 }
  0x23   :  { %3261 = vmatpush.msra.mxu2 %v4013_v0  ;;  %3256 = vmatpush.msra.mxu3 %v4047_v8 }
  0x24   :  { %3344 = vrot.lane.b32.xlu1 %v4182_v42, %s3971_s26  ;;  %3263 = vmatpush.msra.mxu1 %v4055_v10 }
  0x25   :  { %3339 = vrot.lane.b32.xlu0 %v4186_v43, %s3971_s26  ;;  %3264 = vmatpush.msra.mxu2 %v4055_v10 }
  0x26   :  { %3349 = vrot.lane.b32.xlu2 %v4198_v45, %s3971_s26  ;;  %3266 = vmatpush.msra.mxu1 %v4021_v2 }
  0x27   :  { %3267 = vmatpush.msra.mxu2 %v4021_v2  ;;  %3259 = vmatpush.msra.mxu3 %v4037_v6 }
  0x28   :  { %1158 = vmatpush.msra.mxu0 %v4106_v21  ;;  %1189 = vmatmul.f32.vlgmr.msra.gmra.mxu1 %v933_v48 }
  0x29   :  { %3262 = vmatpush.msra.mxu3 %v4013_v0  ;;  %1213 = vmatmul.f32.vlgmr.msra.gmra.mxu2 %v1005_v1 }
  0x2a   :  { %1159 = vmatpush.msra.mxu0 %v4074_v15  ;;  %v996_v15 = vld [vmem:[%s7450_s1 + $0x438] sm:$0xff] }
  0x2b   :  { %3265 = vmatpush.msra.mxu3 %v4055_v10 }
  0x2c   :  { %3359 = vrot.lane.b32.xlu1 %v4030_v5, %s3972_s10  ;;  %1160 = vmatpush.msra.mxu0 %v4047_v8  ;;  %v1014_v8 = vld [vmem:[%s7450_s1 + $0x4c8] sm:$0xff] }
  0x2d   :  { %3354 = vrot.lane.b32.xlu0 %v4217_v47, %s3971_s26  ;;  %3268 = vmatpush.msra.mxu3 %v4021_v2  ;;  %s3973_s26 = smov 123  }
  0x2e   :  { %3364 = vrot.lane.b32.xlu2 %v4069_v14, %s3972_s10  ;;  %1161 = vmatpush.msra.mxu0 %v4037_v6 }
  0x30   :  { %1162 = vmatpush.msra.mxu0 %v4013_v0  ;;  %1192 = vmatmul.f32.gmra.mxu1 %v942_v50  ;;  %v978_v0 = vld [vmem:[%s7450_s1 + $0x3a8] sm:$0xff] }
  0x31   :  { %1216 = vmatmul.f32.gmra.mxu2 %v1014_v8 }
  0x32   :  { %1163 = vmatpush.msra.mxu0 %v4055_v10 }
  0x34   :  { %3374 = vrot.lane.b32.xlu1 %v4064_v13, %s3972_s10  ;;  %1164 = vmatpush.msra.mxu0 %v4021_v2 }
  0x35   :  { %3369 = vrot.lane.b32.xlu0 %v4024_v3, %s3972_s10 }
  0x36   :  { %3379 = vrot.lane.b32.xlu2 %v4061_v12, %s3972_s10 }
  0x38   :  { %1195 = vmatmul.f32.gmra.mxu1 %v951_v52 }
  0x39   :  { %1219 = vmatmul.f32.gmra.mxu2 %v1023_v16 }
  0x3c   :  { %3389 = vrot.lane.b32.xlu1 %v4117_v24, %s3972_s10 }
  0x3d   :  { %3384 = vrot.lane.b32.xlu0 %v4089_v18, %s3972_s10 }
  0x3e   :  { %3394 = vrot.lane.b32.xlu2 %v4112_v23, %s3972_s10 }
  0x40   :  { %1198 = vmatmul.f32.gmra.mxu1 %v960_v56 }
  0x41   :  { %1222 = vmatmul.f32.gmra.mxu2 %v1032_v30 }
  0x44   :  { %3404 = vrot.lane.b32.xlu1 %v4156_v35, %s3972_s10 }
  0x45   :  { %3399 = vrot.lane.b32.xlu0 %v4130_v27, %s3972_s10 }
  0x46   :  { %3409 = vrot.lane.b32.xlu2 %v4152_v34, %s3972_s10 }
  0x48   :  { %1201 = vmatmul.f32.gmra.mxu1 %v969_v60 }
  0x4c   :  { %3419 = vrot.lane.b32.xlu1 %v4186_v43, %s3972_s10 }
  0x4d   :  { %3414 = vrot.lane.b32.xlu0 %v4169_v39, %s3972_s10 }
  0x4e   :  { %3424 = vrot.lane.b32.xlu2 %v4182_v42, %s3972_s10 }
  0x50   :  { %1204 = vmatmul.f32.gmra.mxu1 %v978_v0  ;;  %v1041_v0 = vld [vmem:[%s7450_s1 + $0x5a0] sm:$0xff] }
  0x51   :  { %1225 = vmatmul.f32.gmra.mxu2 %v1041_v0 }
  0x54   :  { %3434 = vrot.lane.b32.xlu1 %v4217_v47, %s3972_s10 }
  0x55   :  { %3429 = vrot.lane.b32.xlu0 %v4198_v45, %s3972_s10 }
  0x56   :  { %3439 = vrot.lane.b32.xlu2 %v4030_v5, %s3973_s26 }
  0x58   :  { %1207 = vmatmul.f32.gmra.mxu1 %v987_v7 }
  0x5c   :  { %3449 = vrot.lane.b32.xlu1 %v4024_v3, %s3973_s26 }
  0x5d   :  { %3444 = vrot.lane.b32.xlu0 %v4069_v14, %s3973_s26 }
  0x5e   :  { %3454 = vrot.lane.b32.xlu2 %v4064_v13, %s3973_s26 }
  0x60   :  { %v4292_v49 = vpop.permute.xlu2 %3299  ;;  %1210 = vmatmul.f32.gmra.mxu1 %v996_v15 }
  0x64   :  { %3464 = vrot.lane.b32.xlu1 %v4089_v18, %s3973_s26 }
  0x65   :  { %3459 = vrot.lane.b32.xlu0 %v4061_v12, %s3973_s26 }
  0x66   :  { %3469 = vrot.lane.b32.xlu2 %v4117_v24, %s3973_s26 }
  0x68   :  { %v4303_v51 = vpop.permute.xlu2 %3304 }
  0x6c   :  { %3479 = vrot.lane.b32.xlu1 %v4130_v27, %s3973_s26 }
  0x6d   :  { %3474 = vrot.lane.b32.xlu0 %v4112_v23, %s3973_s26 }
  0x6e   :  { %3484 = vrot.lane.b32.xlu2 %v4156_v35, %s3973_s26 }
  0x70   :  { %v4314_v53 = vpop.permute.xlu2 %3319 }
  0x74   :  { %3494 = vrot.lane.b32.xlu1 %v4169_v39, %s3973_s26 }
  0x75   :  { %3489 = vrot.lane.b32.xlu0 %v4152_v34, %s3973_s26 }
  0x76   :  { %v4320_v54 = vpop.permute.xlu1 %3289  ;;  %3499 = vrot.lane.b32.xlu2 %v4186_v43, %s3973_s26 }
  0x77   :  { %v4322_v55 = vpop.permute.xlu0 %3279 }
  0x78   :  { %v4329_v57 = vpop.permute.xlu2 %3334 }
  0x79   :  { %v3337_v41 = vunpack.i.h.bf16 %v4329_v57  ;;  %v3336_v48 = vunpack.i.l.bf16 %v4329_v57 }
  0x7b   :  { %v161_v7 = vsel %vm149_vm0, %v3336_v48, %v3337_v41 }
  0x7c   :  { %3509 = vrot.lane.b32.xlu1 %v4198_v45, %s3973_s26 }
  0x7d   :  { %3504 = vrot.lane.b32.xlu0 %v4182_v42, %s3973_s26 }
  0x7e   :  { %v4335_v58 = vpop.permute.xlu1 %3294  ;;  %3514 = vrot.lane.b32.xlu2 %v4217_v47, %s3973_s26 }
  0x7f   :  { %v4337_v59 = vpop.permute.xlu0 %3284 }
  0x80   :  { %v3350_v61 = vpop.permute.xlu2 %3349  ;;  %v3287_v0 = vunpack.i.h.bf16 %v4337_v59 }
  0x81   :  { %v3352_v19 = vunpack.i.h.bf16 %v3350_v61  ;;  %v3351_v20 = vunpack.i.l.bf16 %v3350_v61 }
  0x83   :  { %v164_v32 = vsel %vm149_vm0, %v3351_v20, %v3352_v19 }
  0x84   :  { %3524 = vrot.lane.b32.xlu1 %v4069_v14, %s3974_s21 }
  0x85   :  { %3519 = vrot.lane.b32.xlu0 %v4030_v5, %s3974_s21 }
  0x86   :  { %v4348_v62 = vpop.permute.xlu1 %3314  ;;  %3529 = vrot.lane.b32.xlu2 %v4024_v3, %s3974_s21 }
  0x87   :  { %v4350_v63 = vpop.permute.xlu0 %3309  ;;  %v3316_v15 = vunpack.i.l.bf16 %v4348_v62 }
  0x88   :  { %v4360_v2 = vpop.permute.xlu2 %3364 }
  0x8c   :  { %3539 = vrot.lane.b32.xlu1 %v4061_v12, %s3974_s21 }
  0x8d   :  { %3534 = vrot.lane.b32.xlu0 %v4064_v13, %s3974_s21 }
  0x8e   :  { %v4366_v4 = vpop.permute.xlu1 %3329  ;;  %3544 = vrot.lane.b32.xlu2 %v4089_v18, %s3974_s21 }
  0x8f   :  { %v4368_v6 = vpop.permute.xlu0 %3324  ;;  %v3332_v56 = vunpack.i.h.bf16 %v4366_v4  ;;  %v3331_v60 = vunpack.i.l.bf16 %v4366_v4  ;;  %v3322_v4 = vunpack.i.h.bf16 %v4314_v53 }
  0x90   :  { %v4378_v9 = vpop.permute.xlu2 %3379  ;;  %v3327_v57 = vunpack.i.h.bf16 %v4368_v6  ;;  %v3326_v1 = vunpack.i.l.bf16 %v4368_v6  ;;  %v3317_v6 = vunpack.i.h.bf16 %v4348_v62  ;;  %v1050_v62 = vld [vmem:[%s7450_s1 + $0x5e8] sm:$0xff] }
  0x91   :  { %1228 = vmatmul.f32.gmra.mxu2 %v1050_v62 }
  0x92   :  { %v159_v19 = vsel %vm149_vm0, %v3326_v1, %v3327_v57  ;;  %v157_v30 = vsel %vm149_vm0, %v3316_v15, %v3317_v6  ;;  %v3286_v57 = vunpack.i.l.bf16 %v4337_v59  ;;  %v862_v15 = vld [vmem:[%s7450_s1 + $0x8] sm:$0xff] }
  0x94   :  { %3554 = vrot.lane.b32.xlu1 %v4112_v23, %s3974_s21 }
  0x95   :  { %3549 = vrot.lane.b32.xlu0 %v4117_v24, %s3974_s21 }
  0x96   :  { %v3345_v10 = vpop.permute.xlu1 %3344  ;;  %3559 = vrot.lane.b32.xlu2 %v4130_v27, %s3974_s21 }
  0x97   :  { %v3340_v11 = vpop.permute.xlu0 %3339  ;;  %v3347_v25 = vunpack.i.h.bf16 %v3345_v10  ;;  %v3346_v26 = vunpack.i.l.bf16 %v3345_v10  ;;  %v3321_v10 = vunpack.i.l.bf16 %v4314_v53  ;;  %v1077_v53 = vld [vmem:[%s7450_s1 + $0x6c0] sm:$0xff] }
  0x98   :  { %v4392_v17 = vpop.permute.xlu2 %3394  ;;  %v3342_v36 = vunpack.i.h.bf16 %v3340_v11  ;;  %v3341_v37 = vunpack.i.l.bf16 %v3340_v11  ;;  %v160_v11 = vsel %vm149_vm0, %v3331_v60, %v3332_v56  ;;  %1237 = vmatmul.f32.vlgmr.msra.gmra.mxu3 %v1077_v53  ;;  %v3292_v56 = vunpack.i.h.bf16 %v4320_v54  ;;  %v1068_v53 = vld [vmem:[%s7450_s1 + $0x678] sm:$0xff] }
  0x99   :  { %v163_v38 = vsel %vm149_vm0, %v3346_v26, %v3347_v25  ;;  %v3311_v25 = vunpack.i.l.bf16 %v4350_v63  ;;  %v158_v26 = vsel %vm149_vm0, %v3321_v10, %v3322_v4  ;;  %v3291_v60 = vunpack.i.l.bf16 %v4320_v54 }
  0x9a   :  { %v162_v61 = vsel %vm149_vm0, %v3341_v37, %v3342_v36  ;;  %v3296_v37 = vunpack.i.l.bf16 %v4335_v58  ;;  %v3282_v54 = vunpack.i.h.bf16 %v4322_v55  ;;  %v3281_v4 = vunpack.i.l.bf16 %v4322_v55  ;;  %v1095_v55 = vld [vmem:[%s7450_s1 + $0x750] sm:$0xff] }
  0x9b   :  { %v152_v10 = vsel %vm149_vm0, %v3291_v60, %v3292_v56 }
  0x9c   :  { %3569 = vrot.lane.b32.xlu1 %v4152_v34, %s3974_s21 }
  0x9d   :  { %3564 = vrot.lane.b32.xlu0 %v4156_v35, %s3974_s21 }
  0x9e   :  { %v4398_v21 = vpop.permute.xlu1 %3359  ;;  %3574 = vrot.lane.b32.xlu2 %v4169_v39, %s3974_s21 }
  0x9f   :  { %v3355_v22 = vpop.permute.xlu0 %3354 }
  0xa0   :  { %v3357_v28 = vunpack.i.h.bf16 %v3355_v22  ;;  %v3356_v29 = vunpack.i.l.bf16 %v3355_v22  ;;  %v4407_v33 = vpop.permute.xlu2 %3409  ;;  %v3312_v22 = vunpack.i.h.bf16 %v4350_v63  ;;  %v3302_v63 = vunpack.i.h.bf16 %v4292_v49 }
  0xa2   :  { %v165_v31 = vsel %vm149_vm0, %v3356_v29, %v3357_v28  ;;  %v3307_v28 = vunpack.i.h.bf16 %v4303_v51  ;;  %v3306_v29 = vunpack.i.l.bf16 %v4303_v51  ;;  %v156_v36 = vsel %vm149_vm0, %v3311_v25, %v3312_v22 }
  0xa3   :  { %1262 = vmatpush.msrb.mxu1 %v165_v31  ;;  %v3297_v51 = vunpack.i.h.bf16 %v4335_v58  ;;  %v1059_v58 = vld [vmem:[%s7450_s1 + $0x630] sm:$0xff] }
  0xa4   :  { %3584 = vrot.lane.b32.xlu1 %v4182_v42, %s3974_s21  ;;  %v155_v41 = vsel %vm149_vm0, %v3306_v29, %v3307_v28  ;;  %1231 = vmatmul.f32.gmra.mxu2 %v1059_v58  ;;  %v871_v29 = vld [vmem:[%s7450_s1 + $0x50] sm:$0xff] }
  0xa5   :  { %3579 = vrot.lane.b32.xlu0 %v4186_v43, %s3974_s21  ;;  %1263 = vmatpush.msrb.mxu1 %v164_v32  ;;  %v3301_v32 = vunpack.i.l.bf16 %v4292_v49  ;;  %v1086_v49 = vld [vmem:[%s7450_s1 + $0x708] sm:$0xff]  ;;  %v153_v1 = vsel %vm149_vm0, %v3296_v37, %v3297_v51 }
  0xa6   :  { %v4416_v50 = vpop.permute.xlu1 %3374  ;;  %3589 = vrot.lane.b32.xlu2 %v4198_v45, %s3974_s21  ;;  %1240 = vmatmul.f32.gmra.mxu3 %v1086_v49 }
  0xa7   :  { %v4418_v52 = vpop.permute.xlu0 %3369  ;;  %1264 = vmatpush.msrb.mxu1 %v163_v38 }
  0xa8   :  { %v4431_v8 = vpop.permute.xlu2 %3424 }
  0xa9   :  { %1265 = vmatpush.msrb.mxu1 %v162_v61  ;;  %v154_v61 = vsel %vm149_vm0, %v3301_v32, %v3302_v63  ;;  %v3426_v51 = vunpack.i.l.bf16 %v4431_v8 }
  0xab   :  { %1266 = vmatpush.msrb.mxu1 %v161_v7 }
  0xac   :  { %3599 = vrot.lane.b32.xlu1 %v4030_v5, %s3975_s13  ;;  %1234 = vmatmul.f32.gmra.mxu2 %v1068_v53 }
  0xad   :  { %3594 = vrot.lane.b32.xlu0 %v4217_v47, %s3974_s21  ;;  %1267 = vmatpush.msrb.mxu1 %v160_v11  ;;  %v151_v11 = vsel %vm149_vm0, %v3286_v57, %v3287_v0  ;;  %v3412_v57 = vunpack.i.h.bf16 %v4407_v33 }
  0xae   :  { %v4442_v16 = vpop.permute.xlu1 %3389  ;;  %3604 = vrot.lane.b32.xlu2 %v4069_v14, %s3975_s13  ;;  %1243 = vmatmul.f32.gmra.mxu3 %v1095_v55 }
  0xaf   :  { %v4445_v20 = vpop.permute.xlu0 %3384  ;;  %1268 = vmatpush.msrb.mxu1 %v159_v19  ;;  %v150_v19 = vsel %vm149_vm0, %v3281_v4, %v3282_v54 }
  0xb0   :  { %v4461_v31 = vpop.permute.xlu2 %3439 }
  0xb1   :  { %1269 = vmatpush.msrb.mxu1 %v158_v26 }
  0xb3   :  { %1270 = vmatpush.msrb.mxu1 %v157_v30  ;;  %v1104_v30 = vld [vmem:[%s7450_s1 + $0x798] sm:$0xff] }
  0xb4   :  { %3614 = vrot.lane.b32.xlu1 %v4064_v13, %s3975_s13 }
  0xb5   :  { %3609 = vrot.lane.b32.xlu0 %v4024_v3, %s3975_s13  ;;  %1271 = vmatpush.msrb.mxu1 %v156_v36  ;;  %v3427_v36 = vunpack.i.h.bf16 %v4431_v8 }
  0xb6   :  { %v4472_v38 = vpop.permute.xlu1 %3404  ;;  %3619 = vrot.lane.b32.xlu2 %v4061_v12, %s3975_s13  ;;  %1246 = vmatmul.f32.gmra.mxu3 %v1104_v30 }
  0xb7   :  { %v4475_v48 = vpop.permute.xlu0 %3399  ;;  %1272 = vmatpush.msrb.mxu1 %v155_v41  ;;  %v260_v8 = vsel %vm246_vm1, %v3426_v51, %v3427_v36  ;;  %v3381_v36 = vunpack.i.l.bf16 %v4378_v9 }
  0xb8   :  { %v4491_v7 = vpop.permute.xlu2 %3454  ;;  %v3402_v55 = vunpack.i.h.bf16 %v4475_v48 }
  0xb9   :  { %1273 = vmatpush.msrb.mxu1 %v154_v61 }
  0xbb   :  { %1274 = vmatpush.msrb.mxu1 %v153_v1  ;;  %v3411_v1 = vunpack.i.l.bf16 %v4407_v33  ;;  %v3406_v33 = vunpack.i.l.bf16 %v4472_v38 }
  0xbc   :  { %3629 = vrot.lane.b32.xlu1 %v4117_v24, %s3975_s13 }
  0xbd   :  { %3624 = vrot.lane.b32.xlu0 %v4089_v18, %s3975_s13  ;;  %1275 = vmatpush.msrb.mxu1 %v152_v10  ;;  %v880_v10 = vld [vmem:[%s7450_s1 + $0x98] sm:$0xff]  ;;  %v257_v53 = vsel %vm246_vm1, %v3411_v1, %v3412_v57  ;;  %v3367_v57 = vunpack.i.h.bf16 %v4360_v2  ;;  %v3366_v1 = vunpack.i.l.bf16 %v4360_v2 }
  0xbe   :  { %v3420_v59 = vpop.permute.xlu1 %3419  ;;  %3634 = vrot.lane.b32.xlu2 %v4112_v23, %s3975_s13 }
  0xbf   :  { %v3415_v6 = vpop.permute.xlu0 %3414  ;;  %1276 = vmatpush.msrb.mxu1 %v151_v11  ;;  %v3422_v49 = vunpack.i.h.bf16 %v3420_v59  ;;  %v3421_v56 = vunpack.i.l.bf16 %v3420_v59  ;;  %v1113_v59 = vld [vmem:[%s7450_s1 + $0x7e0] sm:$0xff]  ;;  %v3407_v11 = vunpack.i.h.bf16 %v4472_v38  ;;  %v3396_v38 = vunpack.i.l.bf16 %v4392_v17 }
  0xc0   :  { %v4513_v22 = vpop.permute.xlu2 %3469  ;;  %v3417_v61 = vunpack.i.h.bf16 %v3415_v6  ;;  %v3416_v58 = vunpack.i.l.bf16 %v3415_v6  ;;  %1249 = vmatmul.f32.gmra.mxu3 %v1113_v59  ;;  %v3362_v59 = vunpack.i.h.bf16 %v4398_v21  ;;  %v248_v2 = vsel %vm246_vm1, %v3366_v1, %v3367_v57 }
  0xc1   :  { %1277 = vmatpush.msrb.mxu1 %v150_v19  ;;  %v259_v4 = vsel %vm246_vm1, %v3421_v56, %v3422_v49  ;;  %v3401_v19 = vunpack.i.l.bf16 %v4475_v48  ;;  %v3392_v48 = vunpack.i.h.bf16 %v4442_v16 }
  0xc2   :  { %1278 = vmatmul.f32.vlgmr.msrb.gmra.mxu1 %v862_v15  ;;  %v258_v6 = vsel %vm246_vm1, %v3416_v58, %v3417_v61  ;;  %v3372_v61 = vunpack.i.h.bf16 %v4418_v52 }
  0xc4   :  { %3644 = vrot.lane.b32.xlu1 %v4156_v35, %s3975_s13 }
  0xc5   :  { %3639 = vrot.lane.b32.xlu0 %v4130_v27, %s3975_s13 }
  0xc6   :  { %v3435_v25 = vpop.permute.xlu1 %3434  ;;  %3649 = vrot.lane.b32.xlu2 %v4152_v34, %s3975_s13 }
  0xc7   :  { %v3437_v26 = vunpack.i.h.bf16 %v3435_v25  ;;  %v3436_v62 = vunpack.i.l.bf16 %v3435_v25  ;;  %v3430_v28 = vpop.permute.xlu0 %3429  ;;  %v256_v25 = vsel %vm246_vm1, %v3406_v33, %v3407_v11 }
  0xc8   :  { %v3432_v63 = vunpack.i.h.bf16 %v3430_v28  ;;  %v3431_v32 = vunpack.i.l.bf16 %v3430_v28  ;;  %v4530_v41 = vpop.permute.xlu2 %3484 }
  0xc9   :  { %v262_v37 = vsel %vm246_vm1, %v3436_v62, %v3437_v26  ;;  %v3391_v62 = vunpack.i.l.bf16 %v4442_v16  ;;  %v3386_v16 = vunpack.i.l.bf16 %v4445_v20 }
  0xca   :  { %1281 = vmatmul.f32.gmra.mxu1 %v871_v29  ;;  %1375 = vmatpush.msrb.mxu2 %v262_v37  ;;  %v261_v60 = vsel %vm246_vm1, %v3431_v32, %v3432_v63  ;;  %v3387_v29 = vunpack.i.h.bf16 %v4445_v20  ;;  %v3382_v63 = vunpack.i.h.bf16 %v4378_v9  ;;  %v3376_v20 = vunpack.i.l.bf16 %v4416_v50 }
  0xcb   :  { %v253_v51 = vsel %vm246_vm1, %v3391_v62, %v3392_v48  ;;  %v916_v62 = vld [vmem:[%s7450_s1 + $0x1b8] sm:$0xff] }
  0xcc   :  { %3659 = vrot.lane.b32.xlu1 %v4186_v43, %s3975_s13  ;;  %1376 = vmatpush.msrb.mxu2 %v261_v60  ;;  %v252_v56 = vsel %vm246_vm1, %v3386_v16, %v3387_v29 }
  0xcd   :  { %3654 = vrot.lane.b32.xlu0 %v4169_v39, %s3975_s13 }
  0xce   :  { %v4538_v0 = vpop.permute.xlu1 %3449  ;;  %1377 = vmatpush.msrb.mxu2 %v260_v8  ;;  %3664 = vrot.lane.b32.xlu2 %v4182_v42, %s3975_s13  ;;  %v3397_v42 = vunpack.i.h.bf16 %v4392_v17  ;;  %v889_v17 = vld [vmem:[%s7450_s1 + $0xe0] sm:$0xff]  ;;  %v251_v8 = vsel %vm246_vm1, %v3381_v36, %v3382_v63 }
  0xcf   :  { %v4542_v54 = vpop.permute.xlu0 %3444 }
  0xd0   :  { %1378 = vmatpush.msrb.mxu2 %v259_v4  ;;  %v4556_v15 = vpop.permute.xlu2 %3499  ;;  %v254_v30 = vsel %vm246_vm1, %v3396_v38, %v3397_v42 }
  0xd1   :  { %v3501_v29 = vunpack.i.l.bf16 %v4556_v15 }
  0xd2   :  { %1284 = vmatmul.f32.gmra.mxu1 %v880_v10  ;;  %1379 = vmatpush.msrb.mxu2 %v258_v6  ;;  %v863_v6 = vld [vmem:[%s7450_s1 + $0x10] sm:$0xff] }
  0xd4   :  { %3674 = vrot.lane.b32.xlu1 %v4217_v47, %s3975_s13  ;;  %1380 = vmatpush.msrb.mxu2 %v257_v53  ;;  %v255_v47 = vsel %vm246_vm1, %v3401_v19, %v3402_v55  ;;  %v907_v19 = vld [vmem:[%s7450_s1 + $0x170] sm:$0xff] }
  0xd5   :  { %3669 = vrot.lane.b32.xlu0 %v4198_v45, %s3975_s13  ;;  %v1122_v45 = vld [vmem:[%s7450_s1 + $0x828] sm:$0xff]  ;;  %s3976_s13 = smov 118  }
  0xd6   :  { %v4568_v26 = vpop.permute.xlu1 %3464  ;;  %1381 = vmatpush.msrb.mxu2 %v256_v25  ;;  %3679 = vrot.lane.b32.xlu2 %v4030_v5, %s3976_s13  ;;  %v3377_v5 = vunpack.i.h.bf16 %v4416_v50  ;;  %v1131_v50 = vld [vmem:[%s7450_s1 + $0x870] sm:$0xff] }
  0xd7   :  { %v4572_v28 = vpop.permute.xlu0 %3459  ;;  %1252 = vmatmul.f32.gmra.mxu3 %v1122_v45 }
  0xd8   :  { %1382 = vmatpush.msrb.mxu2 %v255_v47  ;;  %v3515_v32 = vpop.permute.xlu2 %3514  ;;  %v250_v4 = vsel %vm246_vm1, %v3376_v20, %v3377_v5  ;;  %v4655_v47 = vpop.f32.mrf.mxu1  ;;  %v3487_v5 = vunpack.i.h.bf16 %v4530_v41  ;;  %v3486_v20 = vunpack.i.l.bf16 %v4530_v41  ;;  %v888_v41 = vld [vmem:[%s7450_s1 + $0xd8] sm:$0xff] }
  0xd9   :  { %v3517_v37 = vunpack.i.h.bf16 %v3515_v32  ;;  %v3516_v49 = vunpack.i.l.bf16 %v3515_v32 }
  0xda   :  { %1287 = vmatmul.f32.gmra.mxu1 %v889_v17  ;;  %1383 = vmatpush.msrb.mxu2 %v254_v30  ;;  %v353_v1 = vsel %vm343_vm2, %v3486_v20, %v3487_v5  ;;  %v943_v5 = vld [vmem:[%s7450_s1 + $0x290] sm:$0xff]  ;;  %v3947_v20 = vld [vmem:[%s7449_s0 + $0x40] sm:$0xff] }
  0xdb   :  { %v359_v9 = vsel %vm343_vm2, %v3516_v49, %v3517_v37  ;;  %v881_v49 = vld [vmem:[%s7450_s1 + $0xa0] sm:$0xff] }
  0xdc   :  { %3689 = vrot.lane.b32.xlu1 %v4024_v3, %s3976_s13  ;;  %1384 = vmatpush.msrb.mxu2 %v253_v51  ;;  %v3371_v3 = vunpack.i.l.bf16 %v4418_v52  ;;  %v861_v52 = vld [vmem:[%s7450_s1] sm:$0xff] }
  0xdd   :  { %3684 = vrot.lane.b32.xlu0 %v4069_v14, %s3976_s13  ;;  %1488 = vmatpush.msrb.mxu3 %v359_v9  ;;  %v898_v14 = vld [vmem:[%s7450_s1 + $0x128] sm:$0xff]  ;;  %v4689_v9 = vld [vmem:[%s7449_s0 + $0xe0] sm:$0xff] }
  0xde   :  { %v4597_v60 = vpop.permute.xlu1 %3479  ;;  %1385 = vmatpush.msrb.mxu2 %v252_v56  ;;  %3694 = vrot.lane.b32.xlu2 %v4064_v13, %s3976_s13  ;;  %v3361_v13 = vunpack.i.l.bf16 %v4398_v21  ;;  %v249_v11 = vsel %vm246_vm1, %v3371_v3, %v3372_v61  ;;  %v3748_v61 = vpack.i.bf16 %v4191_v44, %v4689_v9 }
  0xdf   :  { %v4601_v58 = vpop.permute.xlu0 %3474  ;;  %1255 = vmatmul.f32.gmra.mxu3 %v1131_v50  ;;  %1165 = vmatmul.f32.vlgmr.msra.gmra.mxu0 %v861_v52  ;;  %v3482_v3 = vunpack.i.h.bf16 %v4597_v60  ;;  %v4704_v50 = vld [vmem:[%s7449_s0 + $0xd0] sm:$0xff] }
  0xe0   :  { %1386 = vmatpush.msrb.mxu2 %v251_v8  ;;  %v4618_v10 = vpop.permute.xlu2 %3529  ;;  %v247_v21 = vsel %vm246_vm1, %v3361_v13, %v3362_v59  ;;  %v3481_v8 = vunpack.i.l.bf16 %v4597_v60  ;;  %v3743_v44 = vpack.i.bf16 %v4176_v40, %v4704_v50  ;;  %v3477_v57 = vunpack.i.h.bf16 %v4601_v58  ;;  %v4719_v40 = vld [vmem:[%s7449_s0 + $0xf0] sm:$0xff] }
  0xe1   :  { %v3476_v60 = vunpack.i.l.bf16 %v4601_v58  ;;  %v3472_v59 = vunpack.i.h.bf16 %v4513_v22  ;;  %v3471_v13 = vunpack.i.l.bf16 %v4513_v22  ;;  %v934_v22 = vld [vmem:[%s7450_s1 + $0x248] sm:$0xff] }
  0xe2   :  { %1290 = vmatmul.f32.gmra.mxu1 %v898_v14  ;;  %1387 = vmatpush.msrb.mxu2 %v250_v4  ;;  %v3753_v4 = vpack.i.bf16 %v4207_v46, %v4719_v40  ;;  %v352_v58 = vsel %vm343_vm2, %v3481_v8, %v3482_v3  ;;  %v3949_v3 = vld [vmem:[%s7449_s0 + $0x30] sm:$0xff]  ;;  %v3950_v8 = vld [vmem:[%s7449_s0 + $0x38] sm:$0xff] }
  0xe4   :  { %3704 = vrot.lane.b32.xlu1 %v4089_v18, %s3976_s13  ;;  %1388 = vmatpush.msrb.mxu2 %v249_v11  ;;  %v1140_v18 = vld [vmem:[%s7450_s1 + $0x8b8] sm:$0xff] }
  0xe5   :  { %3699 = vrot.lane.b32.xlu0 %v4061_v12, %s3976_s13  ;;  %v870_v12 = vld [vmem:[%s7450_s1 + $0x48] sm:$0xff] }
  0xe6   :  { %v3495_v33 = vpop.permute.xlu1 %3494  ;;  %1389 = vmatpush.msrb.mxu2 %v248_v2  ;;  %3709 = vrot.lane.b32.xlu2 %v4117_v24, %s3976_s13  ;;  %v872_v24 = vld [vmem:[%s7450_s1 + $0x58] sm:$0xff]  ;;  %v890_v2 = vld [vmem:[%s7450_s1 + $0xe8] sm:$0xff] }
  0xe7   :  { %v3490_v55 = vpop.permute.xlu0 %3489  ;;  %1258 = vmatmul.f32.gmra.mxu3 %v1140_v18  ;;  %1168 = vmatmul.f32.gmra.mxu0 %v870_v12  ;;  %v3497_v63 = vunpack.i.h.bf16 %v3495_v33  ;;  %v3496_v32 = vunpack.i.l.bf16 %v3495_v33  ;;  %v3467_v33 = vunpack.i.h.bf16 %v4568_v26  ;;  %v3462_v12 = vunpack.i.h.bf16 %v4572_v28 }
  0xe8   :  { %1390 = vmatpush.msrb.mxu2 %v247_v21  ;;  %v4643_v53 = vpop.permute.xlu2 %3544  ;;  %v3491_v51 = vunpack.i.l.bf16 %v3490_v55  ;;  %v3941_v21 = vld [vmem:[%s7449_s0 + $0x10] sm:$0xff] }
  0xe9   :  { %1391 = vmatmul.f32.vlgmr.msrb.gmra.mxu2 %v863_v6  ;;  %v355_v56 = vsel %vm343_vm2, %v3496_v32, %v3497_v63  ;;  %v3466_v6 = vunpack.i.l.bf16 %v4568_v26  ;;  %v897_v26 = vld [vmem:[%s7450_s1 + $0x120] sm:$0xff]  ;;  %v3946_v63 = vld [vmem:[%s7449_s0 + $0x28] sm:$0xff] }
  0xea   :  { %1293 = vmatmul.f32.gmra.mxu1 %v907_v19  ;;  %v3942_v19 = vld [vmem:[%s7449_s0 + $0x18] sm:$0xff] }
  0xeb   :  { %v4746_v18 = vpack.i.bf16 %v3942_v19, %v3941_v21  ;;  %v3954_v21 = vld [vmem:[%s7449_s0 + $0x78] sm:$0xff] }
  0xec   :  { %3719 = vrot.lane.b32.xlu1 %v4130_v27, %s3976_s13  ;;  %v3502_v27 = vunpack.i.h.bf16 %v4556_v15 }
  0xed   :  { %3714 = vrot.lane.b32.xlu0 %v4112_v23, %s3976_s13  ;;  %v879_v23 = vld [vmem:[%s7450_s1 + $0x90] sm:$0xff] }
  0xee   :  { %v3510_v42 = vpop.permute.xlu1 %3509  ;;  %3724 = vrot.lane.b32.xlu2 %v4156_v35, %s3976_s13  ;;  %v3492_v35 = vunpack.i.h.bf16 %v3490_v55  ;;  %v356_v15 = vsel %vm343_vm2, %v3501_v29, %v3502_v27  ;;  %v351_v55 = vsel %vm343_vm2, %v3476_v60, %v3477_v57  ;;  %v3452_v27 = vunpack.i.h.bf16 %v4538_v0  ;;  %v864_v60 = vld [vmem:[%s7450_s1 + $0x18] sm:$0xff] }
  0xef   :  { %v3512_v38 = vunpack.i.h.bf16 %v3510_v42  ;;  %v3511_v25 = vunpack.i.l.bf16 %v3510_v42  ;;  %v3505_v48 = vpop.permute.xlu0 %3504  ;;  %1171 = vmatmul.f32.gmra.mxu0 %v879_v23  ;;  %v3461_v42 = vunpack.i.l.bf16 %v4572_v28  ;;  %v3456_v28 = vunpack.i.l.bf16 %v4491_v7 }
  0xf0   :  { %v3507_v17 = vunpack.i.h.bf16 %v3505_v48  ;;  %v3506_v45 = vunpack.i.l.bf16 %v3505_v48  ;;  %v4665_v30 = vpop.permute.xlu2 %3559  ;;  %v354_v14 = vsel %vm343_vm2, %v3491_v51, %v3492_v35  ;;  %v3451_v29 = vunpack.i.l.bf16 %v4538_v0  ;;  %v899_v0 = vld [vmem:[%s7450_s1 + $0x130] sm:$0xff] }
  0xf1   :  { %1394 = vmatmul.f32.gmra.mxu2 %v872_v24  ;;  %v358_v16 = vsel %vm343_vm2, %v3511_v25, %v3512_v38  ;;  %v350_v24 = vsel %vm343_vm2, %v3471_v13, %v3472_v59  ;;  %v3943_v38 = vld [vmem:[%s7449_s0] sm:$0xff]  ;;  %v3944_v25 = vld [vmem:[%s7449_s0 + $0x8] sm:$0xff]  ;;  %v3447_v35 = vunpack.i.h.bf16 %v4542_v54  ;;  %v3446_v51 = vunpack.i.l.bf16 %v4542_v54  ;;  %v3951_v59 = vld [vmem:[%s7449_s0 + $0x50] sm:$0xff] }
  0xf2   :  { %1296 = vmatmul.f32.gmra.mxu1 %v916_v62  ;;  %1489 = vmatpush.msrb.mxu3 %v358_v16  ;;  %v357_v36 = vsel %vm343_vm2, %v3506_v45, %v3507_v17  ;;  %v4761_v48 = vpack.i.bf16 %v3944_v25, %v3943_v38  ;;  %v3457_v17 = vunpack.i.h.bf16 %v4491_v7  ;;  %v349_v45 = vsel %vm343_vm2, %v3466_v6, %v3467_v33  ;;  %v3945_v7 = vld [vmem:[%s7449_s0 + $0x20] sm:$0xff]  ;;  %v3952_v13 = vld [vmem:[%s7449_s0 + $0x58] sm:$0xff] }
  0xf3   :  { %v348_v16 = vsel %vm343_vm2, %v3461_v42, %v3462_v12  ;;  %v4783_v32 = vpack.i.bf16 %v3946_v63, %v3945_v7  ;;  %v3442_v54 = vunpack.i.h.bf16 %v4461_v31  ;;  %v345_v57 = vsel %vm343_vm2, %v3446_v51, %v3447_v35  ;;  %v908_v33 = vld [vmem:[%s7450_s1 + $0x178] sm:$0xff]  ;;  %v3956_v12 = vld [vmem:[%s7449_s0 + $0x68] sm:$0xff]  ;;  %v873_v25 = vld [vmem:[%s7450_s1 + $0x60] sm:$0xff] }
  0xf4   :  { %3734 = vrot.lane.b32.xlu1 %v4169_v39, %s3976_s13  ;;  %1490 = vmatpush.msrb.mxu3 %v357_v36  ;;  %v961_v7 = vld [vmem:[%s7450_s1 + $0x320] sm:$0xff]  ;;  %v3960_v35 = vld [vmem:[%s7449_s0 + $0xa8] sm:$0xff] }
  0xf5   :  { %3729 = vrot.lane.b32.xlu0 %v4152_v34, %s3976_s13  ;;  %v925_v34 = vld [vmem:[%s7450_s1 + $0x200] sm:$0xff] }
  0xf6   :  { %v4673_v37 = vpop.permute.xlu1 %3524  ;;  %1491 = vmatpush.msrb.mxu3 %v356_v15  ;;  %3739 = vrot.lane.b32.xlu2 %v4186_v43, %s3976_s13  ;;  %v4708_v43 = vpop.f32.mrf.mxu1 }
  0xf7   :  { %v4680_v39 = vpop.permute.xlu0 %3519  ;;  %1174 = vmatmul.f32.gmra.mxu0 %v888_v41  ;;  %v346_v41 = vsel %vm343_vm2, %v3451_v29, %v3452_v27  ;;  %v917_v29 = vld [vmem:[%s7450_s1 + $0x1c0] sm:$0xff] }
  0xf8   :  { %1492 = vmatpush.msrb.mxu3 %v355_v56  ;;  %v4710_v52 = vpop.permute.xlu2 %3574  ;;  %v3948_v56 = vld [vmem:[%s7449_s0 + $0x48] sm:$0xff] }
  0xf9   :  { %1397 = vmatmul.f32.gmra.mxu2 %v881_v49  ;;  %v347_v49 = vsel %vm343_vm2, %v3456_v28, %v3457_v17  ;;  %v3957_v17 = vld [vmem:[%s7449_s0 + $0x80] sm:$0xff]  ;;  %v3958_v28 = vld [vmem:[%s7449_s0 + $0x88] sm:$0xff] }
  0xfa   :  { %1299 = vmatmul.f32.gmra.mxu1 %v925_v34  ;;  %1493 = vmatpush.msrb.mxu3 %v354_v14  ;;  %v4804_v34 = vpack.i.bf16 %v3948_v56, %v3947_v20  ;;  %v4817_v14 = vpack.i.bf16 %v3950_v8, %v3949_v3  ;;  %v924_v56 = vld [vmem:[%s7450_s1 + $0x1f8] sm:$0xff]  ;;  %v3963_v3 = vld [vmem:[%s7449_s0 + $0xb0] sm:$0xff] }
  0xfb   :  { %v3964_v8 = vld [vmem:[%s7449_s0 + $0xb8] sm:$0xff] }
  0xfc   :  { %3749 = vrot.lane.b32.xlu1 %v3748_v61, %s3976_s13  ;;  %1494 = vmatpush.msrb.mxu3 %v353_v1  ;;  %v3441_v61 = vunpack.i.l.bf16 %v4461_v31 }
  0xfd   :  { %3744 = vrot.lane.b32.xlu0 %v3743_v44, %s3976_s13  ;;  %v906_v44 = vld [vmem:[%s7450_s1 + $0x168] sm:$0xff] }
  0xfe   :  { %v4727_v11 = vpop.permute.xlu1 %3539  ;;  %1495 = vmatpush.msrb.mxu3 %v352_v58  ;;  %3754 = vrot.lane.b32.xlu2 %v3753_v4, %s3976_s13  ;;  %v4768_v23 = vpop.f32.mrf.mxu1  ;;  %s3977_s13 = smov 117   ;;  %v344_v1 = vsel %vm343_vm2, %v3441_v61, %v3442_v54  ;;  %v4841_v58 = vpack.i.bf16 %v3952_v13, %v3951_v59  ;;  %v882_v61 = vld [vmem:[%s7450_s1 + $0xa8] sm:$0xff] }
  0xff   :  { %v4734_v46 = vpop.permute.xlu0 %3534  ;;  %1177 = vmatmul.f32.gmra.mxu0 %v897_v26  ;;  %v3955_v26 = vld [vmem:[%s7449_s0 + $0x60] sm:$0xff]  ;;  %v926_v59 = vld [vmem:[%s7450_s1 + $0x208] sm:$0xff] }
 0x100   :  { %1496 = vmatpush.msrb.mxu3 %v351_v55  ;;  %v4763_v62 = vpop.permute.xlu2 %3589  ;;  %v952_v55 = vld [vmem:[%s7450_s1 + $0x2d8] sm:$0xff]  ;;  %v4869_v42 = vpack.i.bf16 %v3956_v12, %v3955_v26 }
 0x101   :  { %1400 = vmatmul.f32.gmra.mxu2 %v890_v2 }
 0x102   :  { %1302 = vmatmul.f32.gmra.mxu1 %v934_v22  ;;  %1497 = vmatpush.msrb.mxu3 %v350_v24  ;;  %v3953_v22 = vld [vmem:[%s7449_s0 + $0x70] sm:$0xff] }
 0x103   :  { %v4859_v19 = vpack.i.bf16 %v3954_v21, %v3953_v22  ;;  %v915_v24 = vld [vmem:[%s7450_s1 + $0x1b0] sm:$0xff] }
 0x104   :  { %3764 = vrot.lane.b32.xlu1 %v4746_v18, %s3977_s13  ;;  %1498 = vmatpush.msrb.mxu3 %v349_v45  ;;  %v4889_v45 = vpack.i.bf16 %v3958_v28, %v3957_v17 }
 0x105   :  { %3759 = vrot.lane.b32.xlu0 %v4761_v48, %s3977_s13 }
 0x106   :  { %v4785_v36 = vpop.permute.xlu1 %3554  ;;  %1499 = vmatpush.msrb.mxu3 %v348_v16  ;;  %3769 = vrot.lane.b32.xlu2 %v4783_v32, %s3977_s13  ;;  %v4833_v4 = vpop.f32.mrf.mxu1 }
 0x107   :  { %v4792_v15 = vpop.permute.xlu0 %3549  ;;  %1180 = vmatmul.f32.gmra.mxu0 %v906_v44  ;;  %v4939_v44 = vpack.i.bf16 %v3964_v8, %v3963_v3  ;;  %v935_v8 = vld [vmem:[%s7450_s1 + $0x250] sm:$0xff] }
 0x108   :  { %1500 = vmatpush.msrb.mxu3 %v347_v49  ;;  %v4822_v31 = vpop.permute.xlu2 %3604  ;;  %v3961_v49 = vld [vmem:[%s7449_s0 + $0x90] sm:$0xff] }
 0x109   :  { %1403 = vmatmul.f32.gmra.mxu2 %v899_v0  ;;  %v3959_v0 = vld [vmem:[%s7449_s0 + $0xa0] sm:$0xff] }
 0x10a   :  { %1305 = vmatmul.f32.gmra.mxu1 %v943_v5  ;;  %1501 = vmatpush.msrb.mxu3 %v346_v41  ;;  %v4907_v51 = vpack.i.bf16 %v3960_v35, %v3959_v0  ;;  %v3962_v5 = vld [vmem:[%s7449_s0 + $0x98] sm:$0xff]  ;;  %v4929_v41 = vpop.f32.mrf.mxu2 }
 0x10b   :  { %v4917_v20 = vpack.i.bf16 %v3962_v5, %v3961_v49  ;;  %v891_v49 = vld [vmem:[%s7450_s1 + $0xf0] sm:$0xff]  ;;  %v3968_v5 = vld [vmem:[%s7449_s0 + $0xe8] sm:$0xff] }
 0x10c   :  { %3779 = vrot.lane.b32.xlu1 %v4804_v34, %s3977_s13  ;;  %1502 = vmatpush.msrb.mxu3 %v345_v57  ;;  %v3592_v57 = vunpack.i.h.bf16 %v4763_v62 }
 0x10d   :  { %3774 = vrot.lane.b32.xlu0 %v4817_v14, %s3977_s13 }
 0x10e   :  { %v4843_v2 = vpop.permute.xlu1 %3569  ;;  %1503 = vmatpush.msrb.mxu3 %v344_v1  ;;  %3784 = vrot.lane.b32.xlu2 %v4841_v58, %s3977_s13  ;;  %v4899_v63 = vpop.f32.mrf.mxu1 }
 0x10f   :  { %v4848_v6 = vpop.permute.xlu0 %3564  ;;  %1504 = vmatmul.f32.vlgmr.msrb.gmra.mxu3 %v864_v60  ;;  %1183 = vmatmul.f32.gmra.mxu0 %v915_v24  ;;  %v3591_v60 = vunpack.i.l.bf16 %v4763_v62  ;;  %v3966_v24 = vld [vmem:[%s7449_s0 + $0xc0] sm:$0xff] }
 0x110   :  { %v4874_v38 = vpop.permute.xlu2 %3619 }
 0x111   :  { %1406 = vmatmul.f32.gmra.mxu2 %v908_v33  ;;  %v970_v33 = vld [vmem:[%s7450_s1 + $0x368] sm:$0xff] }
 0x112   :  { %1308 = vmatmul.f32.gmra.mxu1 %v952_v55  ;;  %v3965_v55 = vld [vmem:[%s7449_s0 + $0xd8] sm:$0xff] }
 0x113   :  { %v4955_v22 = vpack.i.bf16 %v3965_v55, %v4704_v50 }
 0x114   :  { %3794 = vrot.lane.b32.xlu1 %v4859_v19, %s3977_s13 }
 0x115   :  { %3789 = vrot.lane.b32.xlu0 %v4869_v42, %s3977_s13 }
 0x116   :  { %v3585_v27 = vpop.permute.xlu1 %3584  ;;  %3799 = vrot.lane.b32.xlu2 %v4889_v45, %s3977_s13  ;;  %v4967_v50 = vpop.f32.mrf.mxu1 }
 0x117   :  { %v4894_v16 = vpop.permute.xlu0 %3579  ;;  %1507 = vmatmul.f32.gmra.mxu3 %v873_v25  ;;  %1186 = vmatmul.f32.gmra.mxu0 %v924_v56  ;;  %v3587_v62 = vunpack.i.h.bf16 %v3585_v27  ;;  %v3586_v21 = vunpack.i.l.bf16 %v3585_v27  ;;  %v3967_v25 = vld [vmem:[%s7449_s0 + $0xc8] sm:$0xff]  ;;  %v455_v27 = vsel %vm440_vm3, %v3591_v60, %v3592_v57  ;;  %v4985_v56 = vpack.i.bf16 %v3968_v5, %v4689_v9  ;;  %v4996_v57 = vpop.f32.mrf.mxu2  ;;  %v979_v9 = vld [vmem:[%s7450_s1 + $0x3b0] sm:$0xff] }
 0x118   :  { %v4922_v54 = vpop.permute.xlu2 %3634  ;;  %v4965_v17 = vpack.i.bf16 %v3967_v25, %v3966_v24  ;;  %v3581_v0 = vunpack.i.l.bf16 %v4894_v16  ;;  %v3561_v24 = vunpack.i.l.bf16 %v4665_v30  ;;  %v3551_v5 = vunpack.i.l.bf16 %v4792_v15 }
 0x119   :  { %1409 = vmatmul.f32.gmra.mxu2 %v917_v29  ;;  %v454_v35 = vsel %vm440_vm3, %v3586_v21, %v3587_v62  ;;  %v3567_v62 = vunpack.i.h.bf16 %v4848_v6  ;;  %v3566_v21 = vunpack.i.l.bf16 %v4848_v6  ;;  %v900_v6 = vld [vmem:[%s7450_s1 + $0x138] sm:$0xff] }
 0x11a   :  { %1311 = vmatmul.f32.gmra.mxu1 %v961_v7  ;;  %v3582_v7 = vunpack.i.h.bf16 %v4894_v16  ;;  %v3577_v16 = vunpack.i.h.bf16 %v4710_v52 }
 0x11c   :  { %3809 = vrot.lane.b32.xlu1 %v4907_v51, %s3977_s13 }
 0x11d   :  { %3804 = vrot.lane.b32.xlu0 %v4917_v20, %s3977_s13 }
 0x11e   :  { %v4943_v1 = vpop.permute.xlu1 %3599  ;;  %3814 = vrot.lane.b32.xlu2 %v4939_v44, %s3977_s13  ;;  %v5021_v25 = vpop.f32.mrf.mxu1 }
 0x11f   :  { %v3595_v13 = vpop.permute.xlu0 %3594  ;;  %1510 = vmatmul.f32.gmra.mxu3 %v882_v61  ;;  %v3576_v61 = vunpack.i.l.bf16 %v4710_v52  ;;  %v3571_v52 = vunpack.i.l.bf16 %v4843_v2 }
 0x120   :  { %v3597_v26 = vunpack.i.h.bf16 %v3595_v13  ;;  %v3596_v12 = vunpack.i.l.bf16 %v3595_v13  ;;  %v4971_v29 = vpop.permute.xlu2 %3649  ;;  %v453_v13 = vsel %vm440_vm3, %v3581_v0, %v3582_v7  ;;  %v450_v7 = vsel %vm440_vm3, %v3566_v21, %v3567_v62  ;;  %v953_v21 = vld [vmem:[%s7450_s1 + $0x2e0] sm:$0xff] }
 0x121   :  { %1412 = vmatmul.f32.gmra.mxu2 %v926_v59  ;;  %v3572_v59 = vunpack.i.h.bf16 %v4843_v2  ;;  %v452_v2 = vsel %vm440_vm3, %v3576_v61, %v3577_v16  ;;  %v5047_v16 = vpop.f32.mrf.mxu2  ;;  %v3547_v61 = vunpack.i.h.bf16 %v4643_v53  ;;  %v3536_v62 = vunpack.i.l.bf16 %v4734_v46 }
 0x122   :  { %1314 = vmatmul.f32.gmra.mxu1 %v970_v33  ;;  %v456_v28 = vsel %vm440_vm3, %v3596_v12, %v3597_v26  ;;  %v3969_v33 = vld [vmem:[%s7449_s0 + $0xf8] sm:$0xff]  ;;  %v3562_v12 = vunpack.i.h.bf16 %v4665_v30  ;;  %s3978_s0 = smov 116   ;;  %v3556_v30 = vunpack.i.l.bf16 %v4785_v36 }
 0x123   :  { %1601 = vmatpush.msrb.mxu0 %v456_v28  ;;  %v5012_v55 = vpack.i.bf16 %v3969_v33, %v4719_v40  ;;  %v451_v40 = vsel %vm440_vm3, %v3571_v52, %v3572_v59  ;;  %v3557_v28 = vunpack.i.h.bf16 %v4785_v36  ;;  %v3552_v36 = vunpack.i.h.bf16 %v4792_v15 }
 0x124   :  { %3824 = vrot.lane.b32.xlu1 %v4955_v22, %s3977_s13  ;;  %v3542_v52 = vunpack.i.h.bf16 %v4727_v11  ;;  %v3541_v15 = vunpack.i.l.bf16 %v4727_v11 }
 0x125   :  { %3819 = vrot.lane.b32.xlu0 %v4965_v17, %s3977_s13  ;;  %1602 = vmatpush.msrb.mxu0 %v455_v27 }
 0x126   :  { %v4991_v3 = vpop.permute.xlu1 %3614  ;;  %3829 = vrot.lane.b32.xlu2 %v4985_v56, %s3977_s13  ;;  %v5066_v33 = vpop.f32.mrf.mxu1 }
 0x127   :  { %v4998_v60 = vpop.permute.xlu0 %3609  ;;  %1603 = vmatpush.msrb.mxu0 %v454_v35  ;;  %1513 = vmatmul.f32.gmra.mxu3 %v891_v49  ;;  %v449_v35 = vsel %vm440_vm3, %v3561_v24, %v3562_v12  ;;  %v988_v49 = vld [vmem:[%s7450_s1 + $0x3f8] sm:$0xff]  ;;  %v445_v24 = vsel %vm440_vm3, %v3541_v15, %v3542_v52  ;;  %v927_v52 = vld [vmem:[%s7450_s1 + $0x210] sm:$0xff] }
 0x128   :  { %v5017_v26 = vpop.permute.xlu2 %3664 }
 0x129   :  { %1604 = vmatpush.msrb.mxu0 %v453_v13  ;;  %1415 = vmatmul.f32.gmra.mxu2 %v935_v8  ;;  %v3546_v8 = vunpack.i.l.bf16 %v4643_v53  ;;  %v447_v13 = vsel %vm440_vm3, %v3551_v5, %v3552_v36  ;;  %v909_v53 = vld [vmem:[%s7450_s1 + $0x180] sm:$0xff]  ;;  %v1006_v5 = vld [vmem:[%s7450_s1 + $0x488] sm:$0xff] }
 0x12a   :  { %1317 = vmatmul.f32.gmra.mxu1 %v979_v9  ;;  %v448_v9 = vsel %vm440_vm3, %v3556_v30, %v3557_v28  ;;  %v5087_v30 = vpop.f32.mrf.mxu2 }
 0x12b   :  { %1605 = vmatpush.msrb.mxu0 %v452_v2  ;;  %v3532_v2 = vunpack.i.h.bf16 %v4618_v10 }
 0x12c   :  { %3839 = vrot.lane.b32.xlu1 %v4761_v48, %s3978_s0  ;;  %v944_v48 = vld [vmem:[%s7450_s1 + $0x298] sm:$0xff] }
 0x12d   :  { %3834 = vrot.lane.b32.xlu0 %v5012_v55, %s3977_s13  ;;  %1606 = vmatpush.msrb.mxu0 %v451_v40  ;;  %v3527_v40 = vunpack.i.h.bf16 %v4673_v37 }
 0x12e   :  { %v5033_v27 = vpop.permute.xlu1 %3629  ;;  %3844 = vrot.lane.b32.xlu2 %v4746_v18, %s3978_s0  ;;  %v3537_v18 = vunpack.i.h.bf16 %v4734_v46  ;;  %v3531_v46 = vunpack.i.l.bf16 %v4618_v10  ;;  %v3522_v10 = vunpack.i.h.bf16 %v4680_v39 }
 0x12f   :  { %v5039_v0 = vpop.permute.xlu0 %3624  ;;  %1607 = vmatpush.msrb.mxu0 %v450_v7  ;;  %1516 = vmatmul.f32.gmra.mxu3 %v900_v6  ;;  %v3526_v6 = vunpack.i.l.bf16 %v4673_v37 }
 0x130   :  { %v5052_v59 = vpop.permute.xlu2 %3679  ;;  %v444_v28 = vsel %vm440_vm3, %v3536_v62, %v3537_v18  ;;  %v443_v37 = vsel %vm440_vm3, %v3531_v46, %v3532_v2  ;;  %v3666_v18 = vunpack.i.l.bf16 %v5017_v26  ;;  %v874_v2 = vld [vmem:[%s7450_s1 + $0x68] sm:$0xff] }
 0x131   :  { %1608 = vmatpush.msrb.mxu0 %v449_v35  ;;  %1418 = vmatmul.f32.gmra.mxu2 %v944_v48  ;;  %v3521_v48 = vunpack.i.l.bf16 %v4680_v39  ;;  %v918_v35 = vld [vmem:[%s7450_s1 + $0x1c8] sm:$0xff] }
 0x132   :  { %1320 = vmatmul.f32.gmra.mxu1 %v988_v49  ;;  %v962_v39 = vld [vmem:[%s7450_s1 + $0x328] sm:$0xff]  ;;  %v5129_v15 = vpop.f32.mrf.mxu2 }
 0x133   :  { %1609 = vmatpush.msrb.mxu0 %v448_v9 }
 0x134   :  { %3854 = vrot.lane.b32.xlu1 %v4817_v14, %s3978_s0  ;;  %v446_v14 = vsel %vm440_vm3, %v3546_v8, %v3547_v61  ;;  %v441_v61 = vsel %vm440_vm3, %v3521_v48, %v3522_v10  ;;  %v5118_v8 = vpop.f32.mrf.mxu3 }
 0x135   :  { %1610 = vmatpush.msrb.mxu0 %v447_v13  ;;  %3849 = vrot.lane.b32.xlu0 %v4783_v32, %s3978_s0  ;;  %v997_v32 = vld [vmem:[%s7450_s1 + $0x440] sm:$0xff] }
 0x136   :  { %v5070_v11 = vpop.permute.xlu1 %3644  ;;  %3859 = vrot.lane.b32.xlu2 %v4804_v34, %s3978_s0  ;;  %v442_v34 = vsel %vm440_vm3, %v3526_v6, %v3527_v40 }
 0x137   :  { %v5077_v12 = vpop.permute.xlu0 %3639  ;;  %1611 = vmatpush.msrb.mxu0 %v446_v14  ;;  %1519 = vmatmul.f32.gmra.mxu3 %v909_v53  ;;  %v971_v53 = vld [vmem:[%s7450_s1 + $0x370] sm:$0xff] }
 0x138   :  { %v5089_v7 = vpop.permute.xlu2 %3694 }
 0x139   :  { %1612 = vmatpush.msrb.mxu0 %v445_v24  ;;  %1421 = vmatmul.f32.gmra.mxu2 %v953_v21 }
 0x13a   :  { %1323 = vmatmul.f32.gmra.mxu1 %v997_v32 }
 0x13b   :  { %1613 = vmatpush.msrb.mxu0 %v444_v28 }
 0x13c   :  { %3869 = vrot.lane.b32.xlu1 %v4869_v42, %s3978_s0 }
 0x13d   :  { %1614 = vmatpush.msrb.mxu0 %v443_v37  ;;  %3864 = vrot.lane.b32.xlu0 %v4841_v58, %s3978_s0  ;;  %v865_v58 = vld [vmem:[%s7450_s1 + $0x20] sm:$0xff] }
 0x13e   :  { %v3660_v49 = vpop.permute.xlu1 %3659  ;;  %3874 = vrot.lane.b32.xlu2 %v4859_v19, %s3978_s0  ;;  %v3667_v19 = vunpack.i.h.bf16 %v5017_v26 }
 0x13f   :  { %v5107_v36 = vpop.permute.xlu0 %3654  ;;  %v5109_v42 = vpop.f32.mrf.mxu1  ;;  %1615 = vmatpush.msrb.mxu0 %v442_v34  ;;  %1522 = vmatmul.f32.gmra.mxu3 %v918_v35  ;;  %v3662_v26 = vunpack.i.h.bf16 %v3660_v49  ;;  %v3661_v40 = vunpack.i.l.bf16 %v3660_v49  ;;  %v936_v35 = vld [vmem:[%s7450_s1 + $0x258] sm:$0xff]  ;;  %v3651_v34 = vunpack.i.l.bf16 %v4971_v29 }
 0x140   :  { %v5120_v9 = vpop.permute.xlu2 %3709  ;;  %v3657_v10 = vunpack.i.h.bf16 %v5107_v36  ;;  %v3656_v48 = vunpack.i.l.bf16 %v5107_v36  ;;  %v551_v37 = vsel %vm537_vm4, %v3666_v18, %v3667_v19  ;;  %v5160_v49 = vpop.f32.mrf.mxu3  ;;  %v980_v36 = vld [vmem:[%s7450_s1 + $0x3b8] sm:$0xff]  ;;  %v3642_v19 = vunpack.i.h.bf16 %v5077_v12 }
 0x141   :  { %1616 = vmatpush.msrb.mxu0 %v441_v61  ;;  %1424 = vmatmul.f32.gmra.mxu2 %v962_v39  ;;  %v3641_v18 = vunpack.i.l.bf16 %v5077_v12  ;;  %v945_v12 = vld [vmem:[%s7450_s1 + $0x2a0] sm:$0xff] }
 0x142   :  { %1326 = vmatmul.f32.gmra.mxu1 %v1006_v5  ;;  %1617 = vmatmul.f32.vlgmr.msrb.gmra.mxu0 %v865_v58  ;;  %v5172_v5 = vpop.f32.mrf.mxu2 }
 0x144   :  { %3884 = vrot.lane.b32.xlu1 %v4917_v20, %s3978_s0 }
 0x145   :  { %3879 = vrot.lane.b32.xlu0 %v4889_v45, %s3978_s0  ;;  %v1015_v45 = vld [vmem:[%s7450_s1 + $0x4d0] sm:$0xff] }
 0x146   :  { %v3675_v13 = vpop.permute.xlu1 %3674  ;;  %3889 = vrot.lane.b32.xlu2 %v4907_v51, %s3978_s0  ;;  %v3652_v51 = vunpack.i.h.bf16 %v4971_v29  ;;  %v883_v29 = vld [vmem:[%s7450_s1 + $0xb0] sm:$0xff] }
 0x147   :  { %v3677_v20 = vunpack.i.h.bf16 %v3675_v13  ;;  %v3676_v62 = vunpack.i.l.bf16 %v3675_v13  ;;  %v3670_v14 = vpop.permute.xlu0 %3669  ;;  %v5138_v21 = vpop.f32.mrf.mxu1  ;;  %1525 = vmatmul.f32.gmra.mxu3 %v927_v52  ;;  %v3647_v52 = vunpack.i.h.bf16 %v5070_v11  ;;  %v3646_v13 = vunpack.i.l.bf16 %v5070_v11 }
 0x148   :  { %v3672_v32 = vunpack.i.h.bf16 %v3670_v14  ;;  %v3671_v46 = vunpack.i.l.bf16 %v3670_v14  ;;  %v5148_v28 = vpop.permute.xlu2 %3724  ;;  %v3637_v11 = vunpack.i.h.bf16 %v4922_v54  ;;  %v3636_v14 = vunpack.i.l.bf16 %v4922_v54 }
 0x149   :  { %1427 = vmatmul.f32.gmra.mxu2 %v971_v53  ;;  %v553_v24 = vsel %vm537_vm4, %v3676_v62, %v3677_v20  ;;  %v549_v53 = vsel %vm537_vm4, %v3656_v48, %v3657_v10  ;;  %v548_v20 = vsel %vm537_vm4, %v3651_v34, %v3652_v51  ;;  %v546_v54 = vsel %vm537_vm4, %v3641_v18, %v3642_v19 }
 0x14a   :  { %1329 = vmatmul.f32.gmra.mxu1 %v1015_v45  ;;  %1620 = vmatmul.f32.gmra.mxu0 %v874_v2  ;;  %v552_v6 = vsel %vm537_vm4, %v3671_v46, %v3672_v32  ;;  %v547_v45 = vsel %vm537_vm4, %v3646_v13, %v3647_v52  ;;  %v3632_v2 = vunpack.i.h.bf16 %v5033_v27  ;;  %v5212_v46 = vpop.f32.mrf.mxu3  ;;  %v545_v10 = vsel %vm537_vm4, %v3636_v14, %v3637_v11  ;;  %v5227_v48 = vpop.f32.mrf.mxu2  ;;  %v954_v52 = vld [vmem:[%s7450_s1 + $0x2e8] sm:$0xff] }
 0x14b   :  { %1714 = vmatpush.msra.mxu1 %v553_v24  ;;  %v3612_v13 = vunpack.i.h.bf16 %v4998_v60  ;;  %v1042_v14 = vld [vmem:[%s7450_s1 + $0x5a8] sm:$0xff] }
 0x14c   :  { %3899 = vrot.lane.b32.xlu1 %v4965_v17, %s3978_s0  ;;  %v550_v17 = vsel %vm537_vm4, %v3661_v40, %v3662_v26  ;;  %v3627_v40 = vunpack.i.h.bf16 %v5039_v0 }
 0x14d   :  { %1715 = vmatpush.msra.mxu1 %v552_v6  ;;  %3894 = vrot.lane.b32.xlu0 %v4939_v44, %s3978_s0  ;;  %v1024_v44 = vld [vmem:[%s7450_s1 + $0x518] sm:$0xff]  ;;  %v3626_v6 = vunpack.i.l.bf16 %v5039_v0  ;;  %v3617_v0 = vunpack.i.h.bf16 %v4991_v3 }
 0x14e   :  { %v5166_v39 = vpop.permute.xlu1 %3689  ;;  %3904 = vrot.lane.b32.xlu2 %v4955_v22, %s3978_s0  ;;  %v3631_v22 = vunpack.i.l.bf16 %v5033_v27  ;;  %v892_v27 = vld [vmem:[%s7450_s1 + $0xf8] sm:$0xff] }
 0x14f   :  { %v5174_v58 = vpop.permute.xlu0 %3684  ;;  %v5176_v61 = vpop.f32.mrf.mxu1  ;;  %1716 = vmatpush.msra.mxu1 %v551_v37  ;;  %1528 = vmatmul.f32.gmra.mxu3 %v936_v35  ;;  %v3622_v37 = vunpack.i.h.bf16 %v4874_v38  ;;  %v3621_v35 = vunpack.i.l.bf16 %v4874_v38 }
 0x150   :  { %v5190_v62 = vpop.permute.xlu2 %3739  ;;  %v544_v51 = vsel %vm537_vm4, %v3631_v22, %v3632_v2 }
 0x151   :  { %1717 = vmatpush.msra.mxu1 %v550_v17  ;;  %1430 = vmatmul.f32.gmra.mxu2 %v980_v36  ;;  %v542_v18 = vsel %vm537_vm4, %v3621_v35, %v3622_v37 }
 0x152   :  { %1332 = vmatmul.f32.gmra.mxu1 %v1024_v44  ;;  %1623 = vmatmul.f32.gmra.mxu0 %v883_v29  ;;  %v3616_v44 = vunpack.i.l.bf16 %v4991_v3  ;;  %v543_v29 = vsel %vm537_vm4, %v3626_v6, %v3627_v40  ;;  %v998_v3 = vld [vmem:[%s7450_s1 + $0x448] sm:$0xff]  ;;  %v5260_v22 = vpop.f32.mrf.mxu3  ;;  %v963_v6 = vld [vmem:[%s7450_s1 + $0x330] sm:$0xff] }
 0x153   :  { %1718 = vmatpush.msra.mxu1 %v549_v53  ;;  %v3611_v53 = vunpack.i.l.bf16 %v4998_v60  ;;  %v901_v60 = vld [vmem:[%s7450_s1 + $0x140] sm:$0xff] }
 0x154   :  { %3914 = vrot.lane.b32.xlu1 %v5012_v55, %s3978_s0  ;;  %v989_v55 = vld [vmem:[%s7450_s1 + $0x400] sm:$0xff]  ;;  %v541_v2 = vsel %vm537_vm4, %v3616_v44, %v3617_v0 }
 0x155   :  { %1719 = vmatpush.msra.mxu1 %v548_v20  ;;  %3909 = vrot.lane.b32.xlu0 %v4985_v56, %s3978_s0  ;;  %v1033_v56 = vld [vmem:[%s7450_s1 + $0x560] sm:$0xff]  ;;  %v540_v40 = vsel %vm537_vm4, %v3611_v53, %v3612_v13 }
 0x156   :  { %v5206_v32 = vpop.permute.xlu1 %3704 }
 0x157   :  { %v5214_v24 = vpop.permute.xlu0 %3699  ;;  %v5216_v26 = vpop.f32.mrf.mxu1  ;;  %1720 = vmatpush.msra.mxu1 %v547_v45  ;;  %1531 = vmatmul.f32.gmra.mxu3 %v945_v12  ;;  %v3607_v45 = vunpack.i.h.bf16 %v4822_v31  ;;  %v3606_v12 = vunpack.i.l.bf16 %v4822_v31 }
 0x158   :  { %v3755_v34 = vpop.permute.xlu2 %3754 }
 0x159   :  { %1721 = vmatpush.msra.mxu1 %v546_v54  ;;  %1433 = vmatmul.f32.gmra.mxu2 %v989_v55  ;;  %v3757_v17 = vunpack.i.h.bf16 %v3755_v34  ;;  %v3756_v36 = vunpack.i.l.bf16 %v3755_v34  ;;  %v3602_v55 = vunpack.i.h.bf16 %v4943_v1  ;;  %v539_v31 = vsel %vm537_vm4, %v3606_v12, %v3607_v45  ;;  %v1051_v34 = vld [vmem:[%s7450_s1 + $0x5f0] sm:$0xff] }
 0x15a   :  { %1335 = vmatmul.f32.gmra.mxu1 %v1033_v56  ;;  %1626 = vmatmul.f32.gmra.mxu0 %v892_v27  ;;  %v3601_v56 = vunpack.i.l.bf16 %v4943_v1  ;;  %v5264_v27 = vpop.f32.mrf.mxu2  ;;  %v1007_v1 = vld [vmem:[%s7450_s1 + $0x490] sm:$0xff]  ;;  %v5286_v44 = vpop.f32.mrf.mxu3  ;;  %v3742_v12 = vunpack.i.h.bf16 %v5190_v62 }
 0x15b   :  { %1722 = vmatpush.msra.mxu1 %v545_v10  ;;  %v650_v38 = vsel %vm634_vm5, %v3756_v36, %v3757_v17  ;;  %v910_v17 = vld [vmem:[%s7450_s1 + $0x188] sm:$0xff]  ;;  %v919_v45 = vld [vmem:[%s7450_s1 + $0x1d0] sm:$0xff] }
 0x15c   :  { %1827 = vmatpush.msra.mxu2 %v650_v38  ;;  %v1166_v54 = vpop.f32.mrf.mxu0  ;;  %v538_v37 = vsel %vm537_vm4, %v3601_v56, %v3602_v55  ;;  %v972_v38 = vld [vmem:[%s7450_s1 + $0x378] sm:$0xff] }
 0x15d   :  { %1723 = vmatpush.msra.mxu1 %v544_v51  ;;  %v1280_v0 = vadd.f32 %v5109_v42, %v1166_v54 }
 0x15e   :  { %v5241_v19 = vpop.permute.xlu1 %3719 }
 0x15f   :  { %v5247_v20 = vpop.permute.xlu0 %3714  ;;  %v5249_v11 = vpop.f32.mrf.mxu1  ;;  %1724 = vmatpush.msra.mxu1 %v543_v29  ;;  %1534 = vmatmul.f32.gmra.mxu3 %v954_v52 }
 0x160   :  { %v5288_v29 = vpop.permute.xlu2 %3769 }
 0x161   :  { %1725 = vmatpush.msra.mxu1 %v542_v18  ;;  %1436 = vmatmul.f32.gmra.mxu2 %v998_v3  ;;  %v1016_v18 = vld [vmem:[%s7450_s1 + $0x4d8] sm:$0xff] }
 0x162   :  { %1338 = vmatmul.f32.gmra.mxu1 %v1042_v14  ;;  %1629 = vmatmul.f32.gmra.mxu0 %v901_v60  ;;  %v1060_v60 = vld [vmem:[%s7450_s1 + $0x638] sm:$0xff] }
 0x163   :  { %1726 = vmatpush.msra.mxu1 %v541_v2  ;;  %v3741_v2 = vunpack.i.l.bf16 %v5190_v62 }
 0x164   :  { %v1169_v36 = vpop.f32.mrf.mxu0 }
 0x165   :  { %1727 = vmatpush.msra.mxu1 %v540_v40 }
 0x166   :  { %v3735_v10 = vpop.permute.xlu1 %3734 }
 0x167   :  { %v5275_v35 = vpop.permute.xlu0 %3729  ;;  %v5277_v51 = vpop.f32.mrf.mxu1  ;;  %1728 = vmatpush.msra.mxu1 %v539_v31  ;;  %1537 = vmatmul.f32.gmra.mxu3 %v963_v6  ;;  %v1283_v6 = vadd.f32 %v5138_v21, %v1169_v36  ;;  %v3727_v36 = vunpack.i.h.bf16 %v5148_v28 }
 0x168   :  { %v3731_v62 = vunpack.i.l.bf16 %v5275_v35  ;;  %v5319_v21 = vpop.permute.xlu2 %3784 }
 0x169   :  { %1729 = vmatpush.msra.mxu1 %v538_v37  ;;  %1439 = vmatmul.f32.gmra.mxu2 %v1007_v1  ;;  %v3737_v37 = vunpack.i.h.bf16 %v3735_v10  ;;  %v3736_v1 = vunpack.i.l.bf16 %v3735_v10 }
 0x16a   :  { %1341 = vmatmul.f32.gmra.mxu1 %v1051_v34  ;;  %1632 = vmatmul.f32.gmra.mxu0 %v910_v17  ;;  %v3732_v17 = vunpack.i.h.bf16 %v5275_v35 }
 0x16b   :  { %v646_v35 = vsel %vm634_vm5, %v3736_v1, %v3737_v37 }
 0x16c   :  { %v1392_v52 = vpop.f32.mrf.mxu2  ;;  %v1172_v56 = vpop.f32.mrf.mxu0 }
 0x16d   :  { %v5293_v13 = vadd.f32 %v1392_v52, %v1280_v0  ;;  %v647_v52 = vsel %vm634_vm5, %v3741_v2, %v3742_v12  ;;  %v928_v12 = vld [vmem:[%s7450_s1 + $0x218] sm:$0xff]  ;;  %v645_v2 = vsel %vm634_vm5, %v3731_v62, %v3732_v17 }
 0x16e   :  { %v3750_v53 = vpop.permute.xlu1 %3749 }
 0x16f   :  { %v3752_v3 = vunpack.i.h.bf16 %v3750_v53  ;;  %v3751_v42 = vunpack.i.l.bf16 %v3750_v53  ;;  %v3745_v14 = vpop.permute.xlu0 %3744  ;;  %1540 = vmatmul.f32.gmra.mxu3 %v972_v38  ;;  %v5306_v40 = vpop.f32.mrf.mxu1  ;;  %v981_v38 = vld [vmem:[%s7450_s1 + $0x3c0] sm:$0xff] }
 0x170   :  { %v3747_v54 = vunpack.i.h.bf16 %v3745_v14  ;;  %v3746_v55 = vunpack.i.l.bf16 %v3745_v14  ;;  %v5317_v53 = vpop.f32.mrf.mxu3  ;;  %v1069_v14 = vld [vmem:[%s7450_s1 + $0x680] sm:$0xff] }
 0x171   :  { %1442 = vmatmul.f32.gmra.mxu2 %v1016_v18  ;;  %v649_v31 = vsel %vm634_vm5, %v3751_v42, %v3752_v3  ;;  %7481 = vst [vmem:[#allocation2_spill] sm:$0xff] %v5317_v53  ;;  %v3726_v18 = vunpack.i.l.bf16 %v5148_v28  ;;  %v3721_v28 = vunpack.i.l.bf16 %v5241_v19 }
 0x172   :  { %1344 = vmatmul.f32.gmra.mxu1 %v1060_v60  ;;  %1635 = vmatmul.f32.gmra.mxu0 %v919_v45  ;;  %v648_v34 = vsel %vm634_vm5, %v3746_v55, %v3747_v54  ;;  %v1025_v60 = vld [vmem:[%s7450_s1 + $0x520] sm:$0xff]  ;;  %v3722_v45 = vunpack.i.h.bf16 %v5241_v19  ;;  %v1286_v55 = vadd.f32 %v5176_v61, %v1172_v56  ;;  %v3712_v19 = vunpack.i.h.bf16 %v5120_v9  ;;  %v990_v61 = vld [vmem:[%s7450_s1 + $0x408] sm:$0xff] }
 0x173   :  { %1828 = vmatpush.msra.mxu2 %v649_v31  ;;  %v3717_v31 = vunpack.i.h.bf16 %v5247_v20  ;;  %v644_v37 = vsel %vm634_vm5, %v3726_v18, %v3727_v36  ;;  %v3707_v56 = vunpack.i.h.bf16 %v5206_v32  ;;  %v1078_v18 = vld [vmem:[%s7450_s1 + $0x6c8] sm:$0xff] }
 0x174   :  { %v1395_v0 = vpop.f32.mrf.mxu2  ;;  %v1175_v54 = vpop.f32.mrf.mxu0  ;;  %v643_v62 = vsel %vm634_vm5, %v3721_v28, %v3722_v45  ;;  %v937_v45 = vld [vmem:[%s7450_s1 + $0x260] sm:$0xff] }
 0x175   :  { %1829 = vmatpush.msra.mxu2 %v648_v34  ;;  %v5321_v10 = vadd.f32 %v1395_v0, %v1283_v6  ;;  %v3716_v6 = vunpack.i.l.bf16 %v5247_v20  ;;  %v3711_v34 = vunpack.i.l.bf16 %v5120_v9  ;;  %v3706_v0 = vunpack.i.l.bf16 %v5206_v32 }
 0x176   :  { %v5325_v3 = vpop.permute.xlu1 %3764  ;;  %v3702_v32 = vunpack.i.h.bf16 %v5214_v24 }
 0x177   :  { %v5328_v42 = vpop.permute.xlu0 %3759  ;;  %1830 = vmatpush.msra.mxu2 %v647_v52  ;;  %1543 = vmatmul.f32.gmra.mxu3 %v981_v38  ;;  %v5346_v1 = vpop.f32.mrf.mxu1  ;;  %v642_v38 = vsel %vm634_vm5, %v3716_v6, %v3717_v31  ;;  %v641_v28 = vsel %vm634_vm5, %v3711_v34, %v3712_v19  ;;  %v3696_v31 = vunpack.i.l.bf16 %v5089_v7  ;;  %v640_v6 = vsel %vm634_vm5, %v3706_v0, %v3707_v56  ;;  %v1087_v0 = vld [vmem:[%s7450_s1 + $0x710] sm:$0xff] }
 0x178   :  { %v5361_v36 = vpop.f32.mrf.mxu3  ;;  %v3687_v34 = vunpack.i.h.bf16 %v5174_v58 }
 0x179   :  { %1831 = vmatpush.msra.mxu2 %v646_v35  ;;  %7482 = vst [vmem:[#allocation3_spill] sm:$0xff] %v5361_v36  ;;  %v1034_v35 = vld [vmem:[%s7450_s1 + $0x568] sm:$0xff] }
 0x17a   :  { %1347 = vmatmul.f32.gmra.mxu1 %v1069_v14  ;;  %1445 = vmatmul.f32.gmra.mxu2 %v1025_v60  ;;  %v5371_v14 = vpop.permute.xlu2 %3799  ;;  %v3701_v60 = vunpack.i.l.bf16 %v5214_v24  ;;  %v3692_v24 = vunpack.i.h.bf16 %v5166_v39 }
 0x17b   :  { %1638 = vmatmul.f32.gmra.mxu0 %v928_v12  ;;  %1832 = vmatpush.msra.mxu2 %v645_v2  ;;  %v1289_v2 = vadd.f32 %v5216_v26, %v1175_v54  ;;  %v999_v26 = vld [vmem:[%s7450_s1 + $0x450] sm:$0xff] }
 0x17c   :  { %v1398_v17 = vpop.f32.mrf.mxu2  ;;  %v1178_v12 = vpop.f32.mrf.mxu0  ;;  %v639_v19 = vsel %vm634_vm5, %v3701_v60, %v3702_v32 }
 0x17d   :  { %1833 = vmatpush.msra.mxu2 %v644_v37  ;;  %v5354_v20 = vadd.f32 %v1398_v17, %v1286_v55  ;;  %v3697_v55 = vunpack.i.h.bf16 %v5089_v7  ;;  %v3691_v37 = vunpack.i.l.bf16 %v5166_v39 }
 0x17e   :  { %v5358_v52 = vpop.permute.xlu1 %3779 }
 0x17f   :  { %v5363_v9 = vpop.permute.xlu0 %3774  ;;  %1834 = vmatpush.msra.mxu2 %v643_v62  ;;  %1546 = vmatmul.f32.gmra.mxu3 %v990_v61  ;;  %v5389_v54 = vpop.f32.mrf.mxu1  ;;  %v3686_v62 = vunpack.i.l.bf16 %v5174_v58  ;;  %v638_v39 = vsel %vm634_vm5, %v3696_v31, %v3697_v55  ;;  %v3681_v58 = vunpack.i.l.bf16 %v5052_v59  ;;  %v637_v60 = vsel %vm634_vm5, %v3691_v37, %v3692_v24  ;;  %v1008_v24 = vld [vmem:[%s7450_s1 + $0x498] sm:$0xff] }
 0x180   :  { %v5411_v32 = vpop.f32.mrf.mxu3  ;;  %v3979_v37 = vmov 0  }
 0x181   :  { %1835 = vmatpush.msra.mxu2 %v642_v38  ;;  %v1043_v38 = vld [vmem:[%s7450_s1 + $0x5b0] sm:$0xff]  ;;  %7483 = vst [vmem:[#allocation4_spill] sm:$0xff] %v5411_v32  ;;  %3918 = vset.pattern.permute.xlu2 %v3979_v37 }
 0x182   :  { %1350 = vmatmul.f32.gmra.mxu1 %v1078_v18  ;;  %1448 = vmatmul.f32.gmra.mxu2 %v1034_v35  ;;  %v3682_v18 = vunpack.i.h.bf16 %v5052_v59  ;;  %v946_v35 = vld [vmem:[%s7450_s1 + $0x2a8] sm:$0xff]  ;;  %v2673_v59 = vld [vmem:[%s7451_s2] sm:$0xff] }
 0x183   :  { %1641 = vmatmul.f32.gmra.mxu0 %v937_v45  ;;  %1836 = vmatpush.msra.mxu2 %v641_v28  ;;  %v5414_v45 = vpop.permute.xlu2 %3814  ;;  %v1292_v28 = vadd.f32 %v5249_v11, %v1178_v12 }
 0x184   :  { %v1401_v17 = vpop.f32.mrf.mxu2  ;;  %v1181_v55 = vpop.f32.mrf.mxu0  ;;  %3919 = vset.pattern.permute.xlu0 %v3979_v37  ;;  %2707 = vperm.xlu2 %3918, %v2673_v59   ;;  %v1061_v59 = vld [vmem:[%s7450_s1 + $0x640] sm:$0xff] }
 0x185   :  { %1837 = vmatpush.msra.mxu2 %v640_v6  ;;  %v5391_v7 = vadd.f32 %v1401_v17, %v1289_v2  ;;  %v636_v2 = vsel %vm634_vm5, %v3686_v62, %v3687_v34  ;;  %v635_v6 = vsel %vm634_vm5, %v3681_v58, %v3682_v18  ;;  %3920 = vset.pattern.permute.xlu1 %v3979_v37  ;;  %v1052_v34 = vld [vmem:[%s7450_s1 + $0x5f8] sm:$0xff]  ;;  %v955_v62 = vld [vmem:[%s7450_s1 + $0x2f0] sm:$0xff] }
 0x186   :  { %v5395_v61 = vpop.permute.xlu1 %3794  ;;  %v2676_v58 = vld [vmem:[%s7451_s2 + $0x18] sm:$0xff] }
 0x187   :  { %v5398_v56 = vpop.permute.xlu0 %3789  ;;  %1838 = vmatpush.msra.mxu2 %v639_v19  ;;  %1549 = vmatmul.f32.gmra.mxu3 %v999_v26  ;;  %v5429_v17 = vpop.f32.mrf.mxu1  ;;  %v1096_v26 = vld [vmem:[%s7450_s1 + $0x758] sm:$0xff] }
 0x189   :  { %1839 = vmatpush.msra.mxu2 %v638_v39  ;;  %v1295_v39 = vadd.f32 %v5277_v51, %v1181_v55 }
 0x18a   :  { %1353 = vmatmul.f32.gmra.mxu1 %v1087_v0  ;;  %1451 = vmatmul.f32.gmra.mxu2 %v1043_v38 }
 0x18b   :  { %1644 = vmatmul.f32.gmra.mxu0 %v946_v35  ;;  %1840 = vmatpush.msra.mxu2 %v637_v60  ;;  %v3830_v18 = vpop.permute.xlu2 %3829  ;;  %v1017_v60 = vld [vmem:[%s7450_s1 + $0x4e0] sm:$0xff] }
 0x18c   :  { %v1404_v31 = vpop.f32.mrf.mxu2  ;;  %2722 = vperm.xlu2 %3918, %v2676_v58  }
 0x18d   :  { %1841 = vmatpush.msra.mxu2 %v636_v2  ;;  %v5425_v11 = vadd.f32 %v1404_v31, %v1292_v28  ;;  %v1184_v28 = vpop.f32.mrf.mxu0  ;;  %v964_v31 = vld [vmem:[%s7450_s1 + $0x338] sm:$0xff] }
 0x18e   :  { %v5427_v12 = vpop.permute.xlu1 %3809 }
 0x18f   :  { %v5431_v19 = vpop.permute.xlu0 %3804  ;;  %1842 = vmatpush.msra.mxu2 %v635_v6  ;;  %1552 = vmatmul.f32.gmra.mxu3 %v1008_v24  ;;  %v5463_v6 = vpop.f32.mrf.mxu1  ;;  %v1298_v24 = vadd.f32 %v5306_v40, %v1184_v28 }
 0x192   :  { %1356 = vmatmul.f32.gmra.mxu1 %v1096_v26  ;;  %1454 = vmatmul.f32.gmra.mxu2 %v1052_v34  ;;  %v1505_v0 = vpop.f32.mrf.mxu3  ;;  %v2679_v34 = vld [vmem:[%s7451_s2 + $0x30] sm:$0xff] }
 0x193   :  { %1647 = vmatmul.f32.gmra.mxu0 %v955_v62  ;;  %v5444_v38 = vadd.f32 %v1505_v0, %v5293_v13  ;;  %v1105_v13 = vld [vmem:[%s7450_s1 + $0x7a0] sm:$0xff]  ;;  %v5475_v0 = vpop.permute.xlu2 %3844 }
 0x194   :  { %v1407_v35 = vpop.f32.mrf.mxu2  ;;  %2737 = vperm.xlu2 %3918, %v2679_v34  }
 0x195   :  { %7484 = vst [vmem:[#allocation5_spill] sm:$0xff] %v5444_v38  ;;  %v5452_v2 = vadd.f32 %v1407_v35, %v1295_v39  ;;  %v1026_v39 = vld [vmem:[%s7450_s1 + $0x528] sm:$0xff]  ;;  %v3832_v35 = vunpack.i.h.bf16 %v3830_v18 }
 0x196   :  { %v3825_v51 = vpop.permute.xlu1 %3824 }
 0x197   :  { %v3820_v55 = vpop.permute.xlu0 %3819  ;;  %1555 = vmatmul.f32.gmra.mxu3 %v1017_v60  ;;  %v3831_v60 = vunpack.i.l.bf16 %v3830_v18  ;;  %v973_v18 = vld [vmem:[%s7450_s1 + $0x380] sm:$0xff]  ;;  %v5493_v53 = vpop.f32.mrf.mxu1 }
 0x199   :  { %v746_v36 = vsel %vm731_vm6, %v3831_v60, %v3832_v35  ;;  %v2674_v35 = vld [vmem:[%s7451_s2 + $0x8] sm:$0xff]  ;;  %v3811_v60 = vunpack.i.l.bf16 %v5427_v12 }
 0x19a   :  { %1359 = vmatmul.f32.gmra.mxu1 %v1105_v13  ;;  %1457 = vmatmul.f32.gmra.mxu2 %v1061_v59  ;;  %v1508_v37 = vpop.f32.mrf.mxu3  ;;  %v1114_v13 = vld [vmem:[%s7450_s1 + $0x7e8] sm:$0xff] }
 0x19b   :  { %1650 = vmatmul.f32.gmra.mxu0 %v964_v31  ;;  %v5467_v26 = vadd.f32 %v1508_v37, %v5321_v10  ;;  %v1187_v10 = vpop.f32.mrf.mxu0  ;;  %v1070_v59 = vld [vmem:[%s7450_s1 + $0x688] sm:$0xff]  ;;  %v3827_v31 = vunpack.i.h.bf16 %v3825_v51  ;;  %2712 = vperm.xlu0 %3919, %v2674_v35   ;;  %v2685_v35 = vld [vmem:[%s7451_s2 + $0x60] sm:$0xff] }
 0x19c   :  { %v1410_v62 = vpop.f32.mrf.mxu2 }
 0x19d   :  { %7485 = vst [vmem:[#allocation6_spill] sm:$0xff] %v5467_v26  ;;  %v5477_v58 = vadd.f32 %v1410_v62, %v1298_v24  ;;  %v3826_v24 = vunpack.i.l.bf16 %v3825_v51  ;;  %v1301_v62 = vadd.f32 %v5346_v1, %v1187_v10  ;;  %v3821_v26 = vunpack.i.l.bf16 %v3820_v55  ;;  %v2682_v1 = vld [vmem:[%s7451_s2 + $0x48] sm:$0xff] }
 0x19e   :  { %v5479_v40 = vpop.permute.xlu1 %3839  ;;  %v3816_v10 = vunpack.i.l.bf16 %v5414_v45  ;;  %2752 = vperm.xlu2 %3918, %v2682_v1   ;;  %v3801_v1 = vunpack.i.l.bf16 %v5371_v14 }
 0x19f   :  { %v3835_v28 = vpop.permute.xlu0 %3834  ;;  %1558 = vmatmul.f32.gmra.mxu3 %v1026_v39  ;;  %v3822_v39 = vunpack.i.h.bf16 %v3820_v55  ;;  %v3817_v55 = vunpack.i.h.bf16 %v5414_v45  ;;  %v3812_v45 = vunpack.i.h.bf16 %v5427_v12  ;;  %v3807_v12 = vunpack.i.h.bf16 %v5431_v19 }
 0x1a0   :  { %v3837_v37 = vunpack.i.h.bf16 %v3835_v28  ;;  %v3836_v34 = vunpack.i.l.bf16 %v3835_v28 }
 0x1a2   :  { %1362 = vmatmul.f32.gmra.mxu1 %v1114_v13  ;;  %1460 = vmatmul.f32.gmra.mxu2 %v1070_v59  ;;  %v1511_v38 = vpop.f32.mrf.mxu3  ;;  %v747_v32 = vsel %vm731_vm6, %v3836_v34, %v3837_v37  ;;  %v745_v13 = vsel %vm731_vm6, %v3826_v24, %v3827_v31  ;;  %v744_v31 = vsel %vm731_vm6, %v3821_v26, %v3822_v39  ;;  %v1079_v37 = vld [vmem:[%s7450_s1 + $0x6d0] sm:$0xff]  ;;  %v5528_v34 = vpop.permute.xlu2 %3859  ;;  %v982_v26 = vld [vmem:[%s7450_s1 + $0x3c8] sm:$0xff]  ;;  %v3802_v39 = vunpack.i.h.bf16 %v5371_v14 }
 0x1a3   :  { %1653 = vmatmul.f32.gmra.mxu0 %v973_v18  ;;  %v5496_v51 = vadd.f32 %v1511_v38, %v5354_v20  ;;  %1940 = vmatpush.msra.mxu3 %v747_v32  ;;  %v2675_v20 = vld [vmem:[%s7451_s2 + $0x10] sm:$0xff]  ;;  %v3806_v18 = vunpack.i.l.bf16 %v5431_v19 }
 0x1a4   :  { %v1413_v28 = vpop.f32.mrf.mxu2  ;;  %v1035_v32 = vld [vmem:[%s7450_s1 + $0x570] sm:$0xff]  ;;  %2717 = vperm.xlu1 %3920, %v2675_v20  }
 0x1a5   :  { %7486 = vst [vmem:[#allocation7_spill] sm:$0xff] %v5496_v51  ;;  %1941 = vmatpush.msra.mxu3 %v746_v36  ;;  %v5513_v38 = vadd.f32 %v1413_v28, %v1301_v62  ;;  %v1123_v36 = vld [vmem:[%s7450_s1 + $0x830] sm:$0xff]  ;;  %v743_v62 = vsel %vm731_vm6, %v3816_v10, %v3817_v55  ;;  %v3797_v55 = vunpack.i.h.bf16 %v5395_v61  ;;  %v3796_v10 = vunpack.i.l.bf16 %v5395_v61 }
 0x1a6   :  { %v5517_v59 = vpop.permute.xlu1 %3854  ;;  %v741_v14 = vsel %vm731_vm6, %v3806_v18, %v3807_v12  ;;  %v3792_v61 = vunpack.i.h.bf16 %v5398_v56  ;;  %2767 = vperm.xlu2 %3918, %v2685_v35   ;;  %v1132_v18 = vld [vmem:[%s7450_s1 + $0x878] sm:$0xff]  ;;  %v3781_v35 = vunpack.i.l.bf16 %v5358_v52 }
 0x1a7   :  { %1942 = vmatpush.msra.mxu3 %v745_v13  ;;  %v5520_v24 = vpop.permute.xlu0 %3849  ;;  %v742_v13 = vsel %vm731_vm6, %v3811_v60, %v3812_v45  ;;  %v5556_v45 = vpop.f32.mrf.mxu1  ;;  %v1044_v60 = vld [vmem:[%s7450_s1 + $0x5b8] sm:$0xff] }
 0x1a8   :  { %1561 = vmatmul.f32.gmra.mxu3 %v1035_v32  ;;  %v2677_v32 = vld [vmem:[%s7451_s2 + $0x20] sm:$0xff] }
 0x1a9   :  { %1943 = vmatpush.msra.mxu3 %v744_v31  ;;  %2727 = vperm.xlu0 %3919, %v2677_v32   ;;  %v3791_v31 = vunpack.i.l.bf16 %v5398_v56  ;;  %v3786_v56 = vunpack.i.l.bf16 %v5319_v21 }
 0x1aa   :  { %1365 = vmatmul.f32.gmra.mxu1 %v1123_v36  ;;  %1463 = vmatmul.f32.gmra.mxu2 %v1079_v37  ;;  %v1514_v28 = vpop.f32.mrf.mxu3  ;;  %v740_v37 = vsel %vm731_vm6, %v3801_v1, %v3802_v39  ;;  %v991_v39 = vld [vmem:[%s7450_s1 + $0x410] sm:$0xff]  ;;  %v739_v1 = vsel %vm731_vm6, %v3796_v10, %v3797_v55  ;;  %v2688_v55 = vld [vmem:[%s7451_s2 + $0x78] sm:$0xff]  ;;  %v3777_v10 = vunpack.i.h.bf16 %v5363_v9 }
 0x1ab   :  { %1656 = vmatmul.f32.gmra.mxu0 %v982_v26  ;;  %v5540_v19 = vadd.f32 %v1514_v28, %v5391_v7  ;;  %1944 = vmatpush.msra.mxu3 %v743_v62  ;;  %v2678_v7 = vld [vmem:[%s7451_s2 + $0x28] sm:$0xff]  ;;  %v1088_v26 = vld [vmem:[%s7450_s1 + $0x718] sm:$0xff]  ;;  %v3787_v62 = vunpack.i.h.bf16 %v5319_v21  ;;  %v5580_v28 = vpop.permute.xlu2 %3874  ;;  %v738_v32 = vsel %vm731_vm6, %v3791_v31, %v3792_v61  ;;  %v1053_v31 = vld [vmem:[%s7450_s1 + $0x600] sm:$0xff] }
 0x1ac   :  { %v5547_v20 = vpop.f32.mrf.mxu2  ;;  %2732 = vperm.xlu1 %3920, %v2678_v7   ;;  %v3776_v7 = vunpack.i.l.bf16 %v5363_v9  ;;  %v2680_v61 = vld [vmem:[%s7451_s2 + $0x38] sm:$0xff]  ;;  %v3772_v9 = vunpack.i.h.bf16 %v5288_v29 }
 0x1ad   :  { %7487 = vst [vmem:[#allocation8_spill] sm:$0xff] %v5540_v19  ;;  %1945 = vmatpush.msra.mxu3 %v742_v13  ;;  %v3782_v13 = vunpack.i.h.bf16 %v5358_v52  ;;  %v737_v52 = vsel %vm731_vm6, %v3786_v56, %v3787_v62 }
 0x1ae   :  { %v5563_v36 = vpop.permute.xlu1 %3869  ;;  %2782 = vperm.xlu2 %3918, %v2688_v55   ;;  %v3761_v55 = vunpack.i.l.bf16 %v5328_v42 }
 0x1af   :  { %1946 = vmatpush.msra.mxu3 %v741_v14  ;;  %v5566_v12 = vpop.permute.xlu0 %3864  ;;  %v5610_v62 = vpop.f32.mrf.mxu1 }
 0x1b0   :  { %1564 = vmatmul.f32.gmra.mxu3 %v1044_v60 }
 0x1b1   :  { %1947 = vmatpush.msra.mxu3 %v740_v37  ;;  %2742 = vperm.xlu0 %3919, %v2680_v61   ;;  %v3771_v37 = vunpack.i.l.bf16 %v5288_v29  ;;  %v3767_v29 = vunpack.i.h.bf16 %v5325_v3 }
 0x1b2   :  { %1368 = vmatmul.f32.gmra.mxu1 %v1132_v18  ;;  %1466 = vmatmul.f32.gmra.mxu2 %v1088_v26  ;;  %v1517_v14 = vpop.f32.mrf.mxu3  ;;  %v736_v26 = vsel %vm731_vm6, %v3781_v35, %v3782_v13  ;;  %v1000_v13 = vld [vmem:[%s7450_s1 + $0x458] sm:$0xff]  ;;  %v735_v35 = vsel %vm731_vm6, %v3776_v7, %v3777_v10  ;;  %v2691_v10 = vld [vmem:[%s7451_s2 + $0x90] sm:$0xff] }
 0x1b3   :  { %1659 = vmatmul.f32.gmra.mxu0 %v991_v39  ;;  %v5586_v21 = vadd.f32 %v1517_v14, %v5425_v11  ;;  %1948 = vmatpush.msra.mxu3 %v739_v1  ;;  %v2681_v11 = vld [vmem:[%s7451_s2 + $0x40] sm:$0xff]  ;;  %v3766_v14 = vunpack.i.l.bf16 %v5325_v3  ;;  %v734_v61 = vsel %vm731_vm6, %v3771_v37, %v3772_v9  ;;  %v1062_v9 = vld [vmem:[%s7450_s1 + $0x648] sm:$0xff] }
 0x1b4   :  { %v5593_v60 = vpop.f32.mrf.mxu2  ;;  %2747 = vperm.xlu1 %3920, %v2681_v11   ;;  %v1141_v39 = vld [vmem:[%s7450_s1 + $0x8c0] sm:$0xff]  ;;  %v5632_v11 = vpop.permute.xlu2 %3889 }
 0x1b5   :  { %7488 = vst [vmem:[#allocation9_spill] sm:$0xff] %v5586_v21  ;;  %1949 = vmatpush.msra.mxu3 %v738_v32  ;;  %v1097_v1 = vld [vmem:[%s7450_s1 + $0x760] sm:$0xff]  ;;  %v3762_v32 = vunpack.i.h.bf16 %v5328_v42  ;;  %v733_v42 = vsel %vm731_vm6, %v3766_v14, %v3767_v29  ;;  %v866_v29 = vld [vmem:[%s7450_s1 + $0x28] sm:$0xff] }
 0x1b6   :  { %v5607_v18 = vpop.permute.xlu1 %3884  ;;  %2797 = vperm.xlu2 %3918, %v2691_v10   ;;  %v2686_v10 = vld [vmem:[%s7451_s2 + $0x68] sm:$0xff] }
 0x1b7   :  { %1950 = vmatpush.msra.mxu3 %v737_v52  ;;  %v5612_v56 = vpop.permute.xlu0 %3879 }
 0x1b8   :  { %1567 = vmatmul.f32.gmra.mxu3 %v1053_v31  ;;  %v2683_v31 = vld [vmem:[%s7451_s2 + $0x50] sm:$0xff] }
 0x1b9   :  { %1951 = vmatpush.msra.mxu3 %v736_v26  ;;  %2757 = vperm.xlu0 %3919, %v2683_v31   ;;  %v732_v26 = vsel %vm731_vm6, %v3761_v55, %v3762_v32  ;;  %v1071_v31 = vld [vmem:[%s7450_s1 + $0x690] sm:$0xff] }
 0x1ba   :  { %1371 = vmatmul.f32.gmra.mxu1 %v1141_v39  ;;  %1469 = vmatmul.f32.gmra.mxu2 %v1097_v1  ;;  %v1520_v52 = vpop.f32.mrf.mxu3  ;;  %v1106_v1 = vld [vmem:[%s7450_s1 + $0x7a8] sm:$0xff] }
 0x1bb   :  { %1662 = vmatmul.f32.gmra.mxu0 %v1000_v13  ;;  %v5630_v3 = vadd.f32 %v1520_v52, %v5452_v2  ;;  %1952 = vmatpush.msra.mxu3 %v735_v35  ;;  %v2684_v2 = vld [vmem:[%s7451_s2 + $0x58] sm:$0xff]  ;;  %v1009_v13 = vld [vmem:[%s7450_s1 + $0x4a0] sm:$0xff]  ;;  %v5665_v35 = vpop.f32.mrf.mxu1  ;;  %v2694_v52 = vld [vmem:[%s7451_s2 + $0xa8] sm:$0xff] }
 0x1bc   :  { %v5637_v7 = vpop.f32.mrf.mxu2  ;;  %2762 = vperm.xlu1 %3920, %v2684_v2  }
 0x1bd   :  { %7489 = vst [vmem:[#allocation10_spill] sm:$0xff] %v5630_v3  ;;  %1953 = vmatpush.msra.mxu3 %v734_v61 }
 0x1be   :  { %v5649_v37 = vpop.permute.xlu1 %3899  ;;  %2812 = vperm.xlu2 %3918, %v2694_v52  }
 0x1bf   :  { %v5652_v39 = vpop.f32.mrf.mxu0  ;;  %1954 = vmatpush.msra.mxu3 %v733_v42  ;;  %v5660_v14 = vpop.permute.xlu0 %3894  ;;  %v2687_v42 = vld [vmem:[%s7451_s2 + $0x70] sm:$0xff]  ;;  %v3902_v51 = vunpack.i.h.bf16 %v5649_v37 }
 0x1c0   :  { %7490 = vst [vmem:[#allocation11_spill] sm:$0xff] %v5652_v39  ;;  %1570 = vmatmul.f32.gmra.mxu3 %v1062_v9 }
 0x1c1   :  { %1955 = vmatpush.msra.mxu3 %v732_v26  ;;  %2772 = vperm.xlu0 %3919, %v2686_v10   ;;  %v1018_v10 = vld [vmem:[%s7450_s1 + $0x4e8] sm:$0xff] }
 0x1c2   :  { %1472 = vmatmul.f32.gmra.mxu2 %v1106_v1  ;;  %1730 = vmatmul.f32.vlgmr.msra.gmra.mxu1 %v866_v29  ;;  %v1523_v32 = vpop.f32.mrf.mxu3  ;;  %v1115_v29 = vld [vmem:[%s7450_s1 + $0x7f0] sm:$0xff] }
 0x1c3   :  { %1665 = vmatmul.f32.gmra.mxu0 %v1009_v13  ;;  %v5668_v55 = vadd.f32 %v1523_v32, %v5477_v58  ;;  %v3905_v58 = vpop.permute.xlu2 %3904  ;;  %v875_v13 = vld [vmem:[%s7450_s1 + $0x70] sm:$0xff]  ;;  %v5696_v19 = vpop.f32.mrf.mxu1 }
 0x1c4   :  { %v5673_v61 = vpop.f32.mrf.mxu2  ;;  %2777 = vperm.xlu1 %3920, %v2687_v42   ;;  %v3907_v42 = vunpack.i.h.bf16 %v3905_v58 }
 0x1c5   :  { %7491 = vst [vmem:[#allocation12_spill] sm:$0xff] %v5668_v55 }
 0x1c6   :  { %v3915_v2 = vpop.permute.xlu1 %3914 }
 0x1c7   :  { %v3917_v9 = vunpack.i.h.bf16 %v3915_v2  ;;  %v3916_v26 = vunpack.i.l.bf16 %v3915_v2  ;;  %v5684_v1 = vpop.f32.mrf.mxu0  ;;  %v3910_v32 = vpop.permute.xlu0 %3909  ;;  %v3906_v2 = vunpack.i.l.bf16 %v3905_v58  ;;  %v2689_v58 = vld [vmem:[%s7451_s2 + $0x80] sm:$0xff] }
 0x1c8   :  { %7492 = vst [vmem:[#allocation13_spill] sm:$0xff] %v5684_v1  ;;  %1573 = vmatmul.f32.gmra.mxu3 %v1071_v31  ;;  %v3912_v52 = vunpack.i.h.bf16 %v3910_v32  ;;  %v3911_v55 = vunpack.i.l.bf16 %v3910_v32  ;;  %v3901_v31 = vunpack.i.l.bf16 %v5649_v37  ;;  %v2697_v37 = vld [vmem:[%s7451_s2 + $0xc0] sm:$0xff] }
 0x1c9   :  { %v844_v3 = vsel %vm828_vm7, %v3916_v26, %v3917_v9  ;;  %v2690_v9 = vld [vmem:[%s7451_s2 + $0x88] sm:$0xff]  ;;  %2787 = vperm.xlu0 %3919, %v2689_v58   ;;  %v1304_v26 = vadd.f32 %v5389_v54, %v4655_v47  ;;  %2827 = vperm.xlu2 %3918, %v2697_v37   ;;  %v884_v47 = vld [vmem:[%s7450_s1 + $0xb8] sm:$0xff]  ;;  %v3881_v58 = vunpack.i.l.bf16 %v5612_v56 }
 0x1ca   :  { %1475 = vmatmul.f32.gmra.mxu2 %v1115_v29  ;;  %1733 = vmatmul.f32.gmra.mxu1 %v875_v13  ;;  %v1526_v21 = vpop.f32.mrf.mxu3  ;;  %v843_v39 = vsel %vm828_vm7, %v3911_v55, %v3912_v52  ;;  %v1080_v55 = vld [vmem:[%s7450_s1 + $0x6d8] sm:$0xff]  ;;  %v3892_v29 = vunpack.i.h.bf16 %v5632_v11  ;;  %v3891_v13 = vunpack.i.l.bf16 %v5632_v11  ;;  %v3887_v11 = vunpack.i.h.bf16 %v5607_v18 }
 0x1cb   :  { %1668 = vmatmul.f32.gmra.mxu0 %v1018_v10  ;;  %v5701_v1 = vadd.f32 %v1526_v21, %v5513_v38  ;;  %v3897_v38 = vunpack.i.h.bf16 %v5660_v14  ;;  %v3896_v21 = vunpack.i.l.bf16 %v5660_v14  ;;  %v841_v14 = vsel %vm828_vm7, %v3901_v31, %v3902_v51 }
 0x1cc   :  { %2053 = vmatpush.msra.mxu0 %v844_v3  ;;  %v5704_v32 = vpop.f32.mrf.mxu2  ;;  %v842_v3 = vsel %vm828_vm7, %v3906_v2, %v3907_v42  ;;  %2792 = vperm.xlu1 %3920, %v2690_v9   ;;  %v1124_v42 = vld [vmem:[%s7450_s1 + $0x838] sm:$0xff]  ;;  %v1417_v54 = vadd.f32 %v5547_v20, %v1304_v26  ;;  %v3886_v51 = vunpack.i.l.bf16 %v5607_v18  ;;  %v3882_v31 = vunpack.i.h.bf16 %v5612_v56 }
 0x1cd   :  { %v840_v52 = vsel %vm828_vm7, %v3896_v21, %v3897_v38  ;;  %v839_v37 = vsel %vm828_vm7, %v3891_v13, %v3892_v29  ;;  %v2692_v18 = vld [vmem:[%s7451_s2 + $0x98] sm:$0xff]  ;;  %v2693_v38 = vld [vmem:[%s7451_s2 + $0xa0] sm:$0xff]  ;;  %v3877_v21 = vunpack.i.h.bf16 %v5580_v28  ;;  %v1307_v13 = vadd.f32 %v5429_v17, %v4708_v43 }
 0x1ce   :  { %2054 = vmatpush.msra.mxu0 %v843_v39  ;;  %v1027_v39 = vld [vmem:[%s7450_s1 + $0x530] sm:$0xff]  ;;  %v2700_v56 = vld [vmem:[%s7451_s2 + $0xd8] sm:$0xff]  ;;  %v838_v26 = vsel %vm828_vm7, %v3886_v51, %v3887_v11  ;;  %v1089_v29 = vld [vmem:[%s7450_s1 + $0x720] sm:$0xff]  ;;  %v3867_v17 = vunpack.i.h.bf16 %v5566_v12 }
 0x1cf   :  { %v5725_v10 = vpop.f32.mrf.mxu0  ;;  %v893_v43 = vld [vmem:[%s7450_s1 + $0x100] sm:$0xff]  ;;  %v1420_v11 = vadd.f32 %v5593_v60, %v1307_v13  ;;  %v2696_v60 = vld [vmem:[%s7451_s2 + $0xb8] sm:$0xff]  ;;  %v3851_v13 = vunpack.i.l.bf16 %v5520_v24 }
 0x1d0   :  { %2055 = vmatpush.msra.mxu0 %v842_v3  ;;  %1576 = vmatmul.f32.gmra.mxu3 %v1080_v55  ;;  %v3876_v3 = vunpack.i.l.bf16 %v5580_v28  ;;  %v5759_v55 = vpop.f32.mrf.mxu1  ;;  %v837_v28 = vsel %vm828_vm7, %v3881_v58, %v3882_v31  ;;  %v3861_v31 = vunpack.i.l.bf16 %v5528_v34 }
 0x1d1   :  { %2802 = vperm.xlu0 %3919, %v2692_v18   ;;  %2842 = vperm.xlu2 %3918, %v2700_v56   ;;  %v3856_v56 = vunpack.i.l.bf16 %v5517_v59 }
 0x1d2   :  { %2056 = vmatpush.msra.mxu0 %v841_v14  ;;  %1478 = vmatmul.f32.gmra.mxu2 %v1124_v42  ;;  %v1529_v2 = vpop.f32.mrf.mxu3  ;;  %v3872_v14 = vunpack.i.h.bf16 %v5563_v36  ;;  %v3871_v42 = vunpack.i.l.bf16 %v5563_v36  ;;  %v3866_v36 = vunpack.i.l.bf16 %v5566_v12  ;;  %v836_v51 = vsel %vm828_vm7, %v3876_v3, %v3877_v21  ;;  %v2695_v12 = vld [vmem:[%s7451_s2 + $0xb0] sm:$0xff]  ;;  %v1098_v3 = vld [vmem:[%s7450_s1 + $0x768] sm:$0xff] }
 0x1d3   :  { %1671 = vmatmul.f32.gmra.mxu0 %v1027_v39  ;;  %1736 = vmatmul.f32.gmra.mxu1 %v884_v47  ;;  %v5743_v9 = vadd.f32 %v1529_v2, %v1417_v54  ;;  %v1133_v47 = vld [vmem:[%s7450_s1 + $0x880] sm:$0xff]  ;;  %v1036_v54 = vld [vmem:[%s7450_s1 + $0x578] sm:$0xff]  ;;  %v3862_v2 = vunpack.i.h.bf16 %v5528_v34  ;;  %v2703_v34 = vld [vmem:[%s7451_s2 + $0xf0] sm:$0xff] }
 0x1d4   :  { %2057 = vmatpush.msra.mxu0 %v840_v52  ;;  %v5746_v20 = vpop.f32.mrf.mxu2  ;;  %2807 = vperm.xlu1 %3920, %v2693_v38   ;;  %v3857_v38 = vunpack.i.h.bf16 %v5517_v59  ;;  %v834_v21 = vsel %vm828_vm7, %v3866_v36, %v3867_v17  ;;  %v3842_v36 = vunpack.i.h.bf16 %v5479_v40 }
 0x1d5   :  { %v833_v59 = vsel %vm828_vm7, %v3861_v31, %v3862_v2 }
 0x1d6   :  { %2058 = vmatpush.msra.mxu0 %v839_v37  ;;  %v835_v37 = vsel %vm828_vm7, %v3871_v42, %v3872_v14 }
 0x1d7   :  { %v5769_v39 = vpop.f32.mrf.mxu0 }
 0x1d8   :  { %2059 = vmatpush.msra.mxu0 %v838_v26  ;;  %1579 = vmatmul.f32.gmra.mxu3 %v1089_v29  ;;  %v1310_v26 = vadd.f32 %v5463_v6, %v4768_v23  ;;  %v3852_v29 = vunpack.i.h.bf16 %v5520_v24  ;;  %v5811_v14 = vpop.f32.mrf.mxu1  ;;  %v1045_v23 = vld [vmem:[%s7450_s1 + $0x5c0] sm:$0xff]  ;;  %v902_v6 = vld [vmem:[%s7450_s1 + $0x148] sm:$0xff]  ;;  %v3847_v24 = vunpack.i.h.bf16 %v5475_v0 }
 0x1d9   :  { %2817 = vperm.xlu0 %3919, %v2695_v12   ;;  %2857 = vperm.xlu2 %3918, %v2703_v34   ;;  %v1313_v12 = vadd.f32 %v5493_v53, %v4833_v4 }
 0x1da   :  { %2060 = vmatpush.msra.mxu0 %v837_v28  ;;  %1481 = vmatmul.f32.gmra.mxu2 %v1133_v47  ;;  %v1532_v52 = vpop.f32.mrf.mxu3  ;;  %v1142_v28 = vld [vmem:[%s7450_s1 + $0x8c8] sm:$0xff]  ;;  %v3846_v47 = vunpack.i.l.bf16 %v5475_v0 }
 0x1db   :  { %1674 = vmatmul.f32.gmra.mxu0 %v1036_v54  ;;  %1739 = vmatmul.f32.gmra.mxu1 %v893_v43  ;;  %v5787_v58 = vadd.f32 %v1532_v52, %v1420_v11  ;;  %v1423_v54 = vadd.f32 %v5637_v7, %v1310_v26  ;;  %v832_v43 = vsel %vm828_vm7, %v3856_v56, %v3857_v38  ;;  %v3841_v11 = vunpack.i.l.bf16 %v5479_v40  ;;  %v2698_v0 = vld [vmem:[%s7451_s2 + $0xc8] sm:$0xff]  ;;  %v2699_v7 = vld [vmem:[%s7451_s2 + $0xd0] sm:$0xff] }
 0x1dc   :  { %2061 = vmatpush.msra.mxu0 %v836_v51  ;;  %v5790_v18 = vpop.f32.mrf.mxu2  ;;  %2822 = vperm.xlu1 %3920, %v2696_v60   ;;  %v831_v52 = vsel %vm828_vm7, %v3851_v13, %v3852_v29  ;;  %v2898_v40 = vld [vmem:[%s7452_s3 + $0x8] sm:$0xff]  ;;  %v830_v31 = vsel %vm828_vm7, %v3846_v47, %v3847_v24  ;;  %v867_v38 = vld [vmem:[%s7450_s1 + $0x30] sm:$0xff]  ;;  %v1426_v4 = vadd.f32 %v5673_v61, %v1313_v12  ;;  %v2701_v13 = vld [vmem:[%s7451_s2 + $0xe0] sm:$0xff] }
 0x1dd   :  { %v829_v34 = vsel %vm828_vm7, %v3841_v11, %v3842_v36  ;;  %v1054_v56 = vld [vmem:[%s7450_s1 + $0x608] sm:$0xff]  ;;  %v2901_v61 = vld [vmem:[%s7452_s3 + $0x20] sm:$0xff]  ;;  %v876_v24 = vld [vmem:[%s7450_s1 + $0x78] sm:$0xff] }
 0x1de   :  { %2062 = vmatpush.msra.mxu0 %v835_v37  ;;  %v1107_v37 = vld [vmem:[%s7450_s1 + $0x7b0] sm:$0xff]  ;;  %v2704_v11 = vld [vmem:[%s7451_s2 + $0xf8] sm:$0xff]  ;;  %v929_v12 = vld [vmem:[%s7450_s1 + $0x220] sm:$0xff] }
 0x1df   :  { %v5813_v42 = vpop.f32.mrf.mxu0  ;;  %v1063_v47 = vld [vmem:[%s7450_s1 + $0x650] sm:$0xff] }
 0x1e0   :  { %2063 = vmatpush.msra.mxu0 %v834_v21  ;;  %1582 = vmatmul.f32.gmra.mxu3 %v1098_v3  ;;  %v911_v21 = vld [vmem:[%s7450_s1 + $0x190] sm:$0xff]  ;;  %v5864_v53 = vpop.f32.mrf.mxu1 }
 0x1e1   :  { %2832 = vperm.xlu0 %3919, %v2698_v0   ;;  %2936 = vperm.xlu2 %3918, %v2898_v40   ;;  %v1125_v0 = vld [vmem:[%s7450_s1 + $0x840] sm:$0xff] }
 0x1e2   :  { %2064 = vmatpush.msra.mxu0 %v833_v59  ;;  %1484 = vmatmul.f32.gmra.mxu2 %v1142_v28  ;;  %v1535_v17 = vpop.f32.mrf.mxu3  ;;  %v2702_v59 = vld [vmem:[%s7451_s2 + $0xe8] sm:$0xff]  ;;  %v1116_v28 = vld [vmem:[%s7450_s1 + $0x7f8] sm:$0xff]  ;;  %v885_v40 = vld [vmem:[%s7450_s1 + $0xc0] sm:$0xff] }
 0x1e3   :  { %1677 = vmatmul.f32.gmra.mxu0 %v1045_v23  ;;  %1742 = vmatmul.f32.gmra.mxu1 %v902_v6  ;;  %v5831_v51 = vadd.f32 %v1535_v17, %v1423_v54  ;;  %v1316_v23 = vadd.f32 %v5556_v45, %v4899_v63  ;;  %v920_v54 = vld [vmem:[%s7450_s1 + $0x1d8] sm:$0xff] }
 0x1e4   :  { %2065 = vmatpush.msra.mxu0 %v832_v43  ;;  %v5834_v2 = vpop.f32.mrf.mxu2  ;;  %2837 = vperm.xlu1 %3920, %v2699_v7   ;;  %v1319_v7 = vadd.f32 %v5610_v62, %v4967_v50 }
 0x1e5   :  { %v1429_v43 = vadd.f32 %v5704_v32, %v1316_v23  ;;  %v2904_v32 = vld [vmem:[%s7452_s3 + $0x38] sm:$0xff]  ;;  %v938_v23 = vld [vmem:[%s7450_s1 + $0x268] sm:$0xff] }
 0x1e6   :  { %2066 = vmatpush.msra.mxu0 %v831_v52  ;;  %v2897_v52 = vld [vmem:[%s7452_s3] sm:$0xff] }
 0x1e7   :  { %v5851_v60 = vpop.f32.mrf.mxu0 }
 0x1e8   :  { %2067 = vmatpush.msra.mxu0 %v830_v31  ;;  %1585 = vmatmul.f32.gmra.mxu3 %v1107_v37  ;;  %v5896_v45 = vpop.f32.mrf.mxu1  ;;  %v1072_v37 = vld [vmem:[%s7450_s1 + $0x698] sm:$0xff] }
 0x1e9   :  { %2847 = vperm.xlu0 %3919, %v2701_v13   ;;  %2951 = vperm.xlu2 %3918, %v2901_v61   ;;  %v1322_v13 = vadd.f32 %v5665_v35, %v5021_v25 }
 0x1ea   :  { %2068 = vmatpush.msra.mxu0 %v829_v34  ;;  %1843 = vmatmul.f32.vlgmr.msra.gmra.mxu2 %v867_v38  ;;  %v1538_v3 = vpop.f32.mrf.mxu3  ;;  %v1432_v34 = vadd.f32 %v5746_v20, %v1319_v7  ;;  %v2899_v38 = vld [vmem:[%s7452_s3 + $0x10] sm:$0xff]  ;;  %v1090_v7 = vld [vmem:[%s7450_s1 + $0x728] sm:$0xff] }
 0x1eb   :  { %1680 = vmatmul.f32.gmra.mxu0 %v1054_v56  ;;  %1745 = vmatmul.f32.gmra.mxu1 %v911_v21  ;;  %v5866_v26 = vadd.f32 %v1538_v3, %v1426_v4  ;;  %v2900_v56 = vld [vmem:[%s7452_s3 + $0x18] sm:$0xff]  ;;  %v2907_v21 = vld [vmem:[%s7452_s3 + $0x50] sm:$0xff]  ;;  %v1134_v3 = vld [vmem:[%s7450_s1 + $0x888] sm:$0xff] }
 0x1ec   :  { %v5868_v29 = vpop.f32.mrf.mxu2  ;;  %2852 = vperm.xlu1 %3920, %v2702_v59   ;;  %v894_v59 = vld [vmem:[%s7450_s1 + $0x108] sm:$0xff] }
 0x1ef   :  { %v5884_v6 = vpop.f32.mrf.mxu0 }
 0x1f0   :  { %1588 = vmatmul.f32.gmra.mxu3 %v1116_v28  ;;  %v5939_v4 = vpop.f32.mrf.mxu1  ;;  %v1081_v28 = vld [vmem:[%s7450_s1 + $0x6e0] sm:$0xff] }
 0x1f1   :  { %2862 = vperm.xlu0 %3919, %v2704_v11   ;;  %2966 = vperm.xlu2 %3918, %v2904_v32   ;;  %v1325_v11 = vadd.f32 %v5696_v19, %v5066_v33  ;;  %v903_v32 = vld [vmem:[%s7450_s1 + $0x150] sm:$0xff] }
 0x1f2   :  { %1846 = vmatmul.f32.gmra.mxu2 %v876_v24  ;;  %v1541_v63 = vpop.f32.mrf.mxu3  ;;  %v1435_v24 = vadd.f32 %v5790_v18, %v1322_v13  ;;  %v1143_v18 = vld [vmem:[%s7450_s1 + $0x8d0] sm:$0xff] }
 0x1f3   :  { %1683 = vmatmul.f32.gmra.mxu0 %v1063_v47  ;;  %1748 = vmatmul.f32.gmra.mxu1 %v920_v54  ;;  %v5898_v17 = vadd.f32 %v1541_v63, %v1429_v43  ;;  %v2902_v47 = vld [vmem:[%s7452_s3 + $0x28] sm:$0xff]  ;;  %v2903_v54 = vld [vmem:[%s7452_s3 + $0x30] sm:$0xff]  ;;  %v1438_v33 = vadd.f32 %v5834_v2, %v1325_v11  ;;  %v868_v2 = vld [vmem:[%s7450_s1 + $0x38] sm:$0xff] }
 0x1f4   :  { %v5900_v36 = vpop.f32.mrf.mxu2  ;;  %2931 = vperm.xlu1 %3920, %v2897_v52   ;;  %v2910_v43 = vld [vmem:[%s7452_s3 + $0x68] sm:$0xff]  ;;  %v1099_v13 = vld [vmem:[%s7450_s1 + $0x770] sm:$0xff] }
 0x1f8   :  { %v5919_v31 = vpop.f32.mrf.mxu0  ;;  %1591 = vmatmul.f32.gmra.mxu3 %v1125_v0  ;;  %v5978_v52 = vpop.f32.mrf.mxu1 }
 0x1f9   :  { %2941 = vperm.xlu0 %3919, %v2899_v38   ;;  %2981 = vperm.xlu2 %3918, %v2907_v21   ;;  %v912_v21 = vld [vmem:[%s7450_s1 + $0x198] sm:$0xff] }
 0x1fa   :  { %1849 = vmatmul.f32.gmra.mxu2 %v885_v40  ;;  %v1544_v50 = vpop.f32.mrf.mxu3  ;;  %v947_v40 = vld [vmem:[%s7450_s1 + $0x2b0] sm:$0xff] }
 0x1fb   :  { %1686 = vmatmul.f32.gmra.mxu0 %v1072_v37  ;;  %1751 = vmatmul.f32.gmra.mxu1 %v929_v12  ;;  %v5928_v62 = vadd.f32 %v1544_v50, %v1432_v34  ;;  %v2905_v12 = vld [vmem:[%s7452_s3 + $0x40] sm:$0xff]  ;;  %v2906_v34 = vld [vmem:[%s7452_s3 + $0x48] sm:$0xff] }
 0x1fc   :  { %2946 = vperm.xlu1 %3920, %v2900_v56   ;;  %v2913_v50 = vld [vmem:[%s7452_s3 + $0x80] sm:$0xff]  ;;  %v1328_v56 = vadd.f32 %v5759_v55, %v4929_v41 }
 0x1fd   :  { %v5941_v20 = vpop.f32.mrf.mxu2 }
 0x200   :  { %v5951_v61 = vpop.f32.mrf.mxu0  ;;  %1594 = vmatmul.f32.gmra.mxu3 %v1134_v3 }
 0x201   :  { %2956 = vperm.xlu0 %3919, %v2902_v47   ;;  %2996 = vperm.xlu2 %3918, %v2910_v43   ;;  %v1331_v43 = vadd.f32 %v5811_v14, %v4996_v57 }
 0x202   :  { %1852 = vmatmul.f32.gmra.mxu2 %v894_v59  ;;  %v1547_v25 = vpop.f32.mrf.mxu3  ;;  %v956_v59 = vld [vmem:[%s7450_s1 + $0x2f8] sm:$0xff] }
 0x203   :  { %1689 = vmatmul.f32.gmra.mxu0 %v1081_v28  ;;  %1754 = vmatmul.f32.gmra.mxu1 %v938_v23  ;;  %v5960_v35 = vadd.f32 %v1547_v25, %v1435_v24  ;;  %v1441_v28 = vadd.f32 %v5868_v29, %v1328_v56  ;;  %v6022_v23 = vpop.f32.mrf.mxu1  ;;  %v2908_v24 = vld [vmem:[%s7452_s3 + $0x58] sm:$0xff]  ;;  %v2909_v25 = vld [vmem:[%s7452_s3 + $0x60] sm:$0xff]  ;;  %v930_v56 = vld [vmem:[%s7450_s1 + $0x228] sm:$0xff] }
 0x204   :  { %2961 = vperm.xlu1 %3920, %v2903_v54   ;;  %v2916_v29 = vld [vmem:[%s7452_s3 + $0x98] sm:$0xff]  ;;  %v877_v54 = vld [vmem:[%s7450_s1 + $0x80] sm:$0xff] }
 0x205   :  { %v5971_v63 = vpop.f32.mrf.mxu2 }
 0x208   :  { %v5983_v0 = vpop.f32.mrf.mxu0  ;;  %1597 = vmatmul.f32.gmra.mxu3 %v1143_v18  ;;  %v921_v18 = vld [vmem:[%s7450_s1 + $0x1e0] sm:$0xff] }
 0x209   :  { %2971 = vperm.xlu0 %3919, %v2905_v12   ;;  %3011 = vperm.xlu2 %3918, %v2913_v50   ;;  %v2912_v12 = vld [vmem:[%s7452_s3 + $0x78] sm:$0xff]  ;;  %v886_v50 = vld [vmem:[%s7450_s1 + $0xc8] sm:$0xff] }
 0x20a   :  { %1855 = vmatmul.f32.gmra.mxu2 %v903_v32  ;;  %v1550_v19 = vpop.f32.mrf.mxu3  ;;  %v1108_v32 = vld [vmem:[%s7450_s1 + $0x7b8] sm:$0xff] }
 0x20b   :  { %1692 = vmatmul.f32.gmra.mxu0 %v1090_v7  ;;  %1757 = vmatmul.f32.gmra.mxu1 %v947_v40  ;;  %v5992_v37 = vadd.f32 %v1550_v19, %v1438_v33  ;;  %v965_v7 = vld [vmem:[%s7450_s1 + $0x340] sm:$0xff]  ;;  %v1444_v40 = vadd.f32 %v5900_v36, %v1331_v43  ;;  %v6054_v14 = vpop.f32.mrf.mxu1  ;;  %v2911_v19 = vld [vmem:[%s7452_s3 + $0x70] sm:$0xff] }
 0x20c   :  { %2976 = vperm.xlu1 %3920, %v2906_v34   ;;  %v2919_v36 = vld [vmem:[%s7452_s3 + $0xb0] sm:$0xff] }
 0x20d   :  { %v6003_v38 = vpop.f32.mrf.mxu2  ;;  %v939_v43 = vld [vmem:[%s7450_s1 + $0x270] sm:$0xff] }
 0x210   :  { %v6013_v3 = vpop.f32.mrf.mxu0  ;;  %1956 = vmatmul.f32.vlgmr.msra.gmra.mxu3 %v868_v2  ;;  %v1334_v2 = vadd.f32 %v5864_v53, %v5047_v16 }
 0x211   :  { %2986 = vperm.xlu0 %3919, %v2908_v24   ;;  %3026 = vperm.xlu2 %3918, %v2916_v29   ;;  %v2915_v24 = vld [vmem:[%s7452_s3 + $0x90] sm:$0xff] }
 0x212   :  { %1858 = vmatmul.f32.gmra.mxu2 %v912_v21  ;;  %v1553_v41 = vpop.f32.mrf.mxu3 }
 0x213   :  { %1695 = vmatmul.f32.gmra.mxu0 %v1099_v13  ;;  %1760 = vmatmul.f32.gmra.mxu1 %v956_v59  ;;  %v6024_v55 = vadd.f32 %v1553_v41, %v1441_v28  ;;  %v1117_v13 = vld [vmem:[%s7450_s1 + $0x800] sm:$0xff]  ;;  %v974_v59 = vld [vmem:[%s7450_s1 + $0x388] sm:$0xff]  ;;  %v1447_v28 = vadd.f32 %v5941_v20, %v1334_v2  ;;  %v6097_v29 = vpop.f32.mrf.mxu1 }
 0x214   :  { %2991 = vperm.xlu1 %3920, %v2909_v25   ;;  %v2914_v41 = vld [vmem:[%s7452_s3 + $0x88] sm:$0xff] }
 0x215   :  { %v6035_v47 = vpop.f32.mrf.mxu2  ;;  %v2922_v25 = vld [vmem:[%s7452_s3 + $0xc8] sm:$0xff] }
 0x218   :  { %v6045_v11 = vpop.f32.mrf.mxu0  ;;  %1959 = vmatmul.f32.gmra.mxu3 %v877_v54  ;;  %v895_v54 = vld [vmem:[%s7450_s1 + $0x110] sm:$0xff] }
 0x219   :  { %3001 = vperm.xlu0 %3919, %v2911_v19   ;;  %3041 = vperm.xlu2 %3918, %v2919_v36   ;;  %v2925_v36 = vld [vmem:[%s7452_s3 + $0xe0] sm:$0xff] }
 0x21a   :  { %1861 = vmatmul.f32.gmra.mxu2 %v921_v18  ;;  %v1556_v57 = vpop.f32.mrf.mxu3  ;;  %v1337_v18 = vadd.f32 %v5896_v45, %v5087_v30  ;;  %v2917_v30 = vld [vmem:[%s7452_s3 + $0xa0] sm:$0xff]  ;;  %v2918_v45 = vld [vmem:[%s7452_s3 + $0xa8] sm:$0xff] }
 0x21b   :  { %1698 = vmatmul.f32.gmra.mxu0 %v1108_v32  ;;  %1763 = vmatmul.f32.gmra.mxu1 %v965_v7  ;;  %v6056_v33 = vadd.f32 %v1556_v57, %v1444_v40  ;;  %v1126_v7 = vld [vmem:[%s7450_s1 + $0x848] sm:$0xff]  ;;  %v983_v40 = vld [vmem:[%s7450_s1 + $0x3d0] sm:$0xff]  ;;  %v6134_v2 = vpop.f32.mrf.mxu1 }
 0x21c   :  { %3006 = vperm.xlu1 %3920, %v2912_v12   ;;  %v1450_v57 = vadd.f32 %v5971_v63, %v1337_v18  ;;  %v904_v63 = vld [vmem:[%s7450_s1 + $0x158] sm:$0xff]  ;;  %v1343_v18 = vadd.f32 %v5978_v52, %v5172_v5  ;;  %v2923_v52 = vld [vmem:[%s7452_s3 + $0xd0] sm:$0xff] }
 0x21d   :  { %v6067_v34 = vpop.f32.mrf.mxu2 }
 0x220   :  { %v6077_v21 = vpop.f32.mrf.mxu0  ;;  %1962 = vmatmul.f32.gmra.mxu3 %v886_v50 }
 0x221   :  { %3016 = vperm.xlu0 %3919, %v2914_v41   ;;  %3056 = vperm.xlu2 %3918, %v2922_v25  }
 0x222   :  { %1864 = vmatmul.f32.gmra.mxu2 %v930_v56  ;;  %v1559_v16 = vpop.f32.mrf.mxu3  ;;  %v948_v56 = vld [vmem:[%s7450_s1 + $0x2b8] sm:$0xff] }
 0x223   :  { %1701 = vmatmul.f32.gmra.mxu0 %v1117_v13  ;;  %1766 = vmatmul.f32.gmra.mxu1 %v974_v59  ;;  %v6086_v53 = vadd.f32 %v1559_v16, %v1447_v28  ;;  %v1340_v13 = vadd.f32 %v5939_v4, %v5129_v15  ;;  %v1135_v28 = vld [vmem:[%s7450_s1 + $0x890] sm:$0xff]  ;;  %v992_v16 = vld [vmem:[%s7450_s1 + $0x418] sm:$0xff]  ;;  %v2921_v4 = vld [vmem:[%s7452_s3 + $0xc0] sm:$0xff] }
 0x224   :  { %3021 = vperm.xlu1 %3920, %v2915_v24   ;;  %v2920_v15 = vld [vmem:[%s7452_s3 + $0xb8] sm:$0xff] }
 0x225   :  { %v6099_v20 = vpop.f32.mrf.mxu2  ;;  %v1453_v41 = vadd.f32 %v6003_v38, %v1340_v13  ;;  %v913_v38 = vld [vmem:[%s7450_s1 + $0x1a0] sm:$0xff]  ;;  %v1346_v13 = vadd.f32 %v6022_v23, %v5227_v48  ;;  %v931_v23 = vld [vmem:[%s7450_s1 + $0x230] sm:$0xff] }
 0x228   :  { %v6109_v32 = vpop.f32.mrf.mxu0  ;;  %1965 = vmatmul.f32.gmra.mxu3 %v895_v54 }
 0x229   :  { %3031 = vperm.xlu0 %3919, %v2917_v30   ;;  %3071 = vperm.xlu2 %3918, %v2925_v36   ;;  %v1456_v30 = vadd.f32 %v6035_v47, %v1343_v18  ;;  %v2924_v36 = vld [vmem:[%s7452_s3 + $0xd8] sm:$0xff]  ;;  %v1019_v18 = vld [vmem:[%s7450_s1 + $0x4f0] sm:$0xff] }
 0x22a   :  { %1867 = vmatmul.f32.gmra.mxu2 %v939_v43  ;;  %v957_v43 = vld [vmem:[%s7450_s1 + $0x300] sm:$0xff] }
 0x22b   :  { %1704 = vmatmul.f32.gmra.mxu0 %v1126_v7  ;;  %1769 = vmatmul.f32.gmra.mxu1 %v983_v40  ;;  %v1562_v19 = vpop.f32.mrf.mxu3  ;;  %v1144_v40 = vld [vmem:[%s7450_s1 + $0x8d8] sm:$0xff] }
 0x22c   :  { %v6118_v12 = vadd.f32 %v1562_v19, %v1450_v57  ;;  %3036 = vperm.xlu1 %3920, %v2918_v45   ;;  %v1001_v57 = vld [vmem:[%s7450_s1 + $0x460] sm:$0xff]  ;;  %v6176_v19 = vpop.f32.mrf.mxu1 }
 0x22d   :  { %v6129_v50 = vpop.f32.mrf.mxu2 }
 0x230   :  { %v6141_v59 = vpop.f32.mrf.mxu0  ;;  %1968 = vmatmul.f32.gmra.mxu3 %v904_v63  ;;  %v922_v63 = vld [vmem:[%s7450_s1 + $0x1e8] sm:$0xff] }
 0x231   :  { %3046 = vperm.xlu0 %3919, %v2920_v15  }
 0x232   :  { %1870 = vmatmul.f32.gmra.mxu2 %v948_v56  ;;  %v966_v56 = vld [vmem:[%s7450_s1 + $0x348] sm:$0xff] }
 0x233   :  { %1707 = vmatmul.f32.gmra.mxu0 %v1135_v28  ;;  %1772 = vmatmul.f32.gmra.mxu1 %v992_v16  ;;  %v1565_v24 = vpop.f32.mrf.mxu3  ;;  %v1010_v16 = vld [vmem:[%s7450_s1 + $0x4a8] sm:$0xff] }
 0x234   :  { %v6150_v25 = vadd.f32 %v1565_v24, %v1453_v41  ;;  %3051 = vperm.xlu1 %3920, %v2921_v4   ;;  %v869_v41 = vld [vmem:[%s7450_s1 + $0x40] sm:$0xff]  ;;  %v1459_v24 = vadd.f32 %v6067_v34, %v1346_v13  ;;  %v6206_v15 = vpop.f32.mrf.mxu1  ;;  %v887_v13 = vld [vmem:[%s7450_s1 + $0xd0] sm:$0xff] }
 0x235   :  { %v6158_v54 = vpop.f32.mrf.mxu2 }
 0x236   :  { %7493 = vst [vmem:[#allocation14_spill] sm:$0xff] %v6150_v25 }
 0x238   :  { %v6168_v7 = vpop.f32.mrf.mxu0  ;;  %1971 = vmatmul.f32.gmra.mxu3 %v913_v38  ;;  %v975_v38 = vld [vmem:[%s7450_s1 + $0x390] sm:$0xff] }
 0x239   :  { %3061 = vperm.xlu0 %3919, %v2923_v52  }
 0x23a   :  { %1873 = vmatmul.f32.gmra.mxu2 %v957_v43  ;;  %v1349_v43 = vadd.f32 %v6054_v14, %v5264_v27  ;;  %v940_v14 = vld [vmem:[%s7450_s1 + $0x278] sm:$0xff] }
 0x23b   :  { %1710 = vmatmul.f32.gmra.mxu0 %v1144_v40  ;;  %1775 = vmatmul.f32.gmra.mxu1 %v1001_v57  ;;  %v1568_v45 = vpop.f32.mrf.mxu3  ;;  %v878_v40 = vld [vmem:[%s7450_s1 + $0x88] sm:$0xff] }
 0x23c   :  { %v6179_v5 = vadd.f32 %v1568_v45, %v1456_v30  ;;  %3066 = vperm.xlu1 %3920, %v2924_v36   ;;  %v1462_v30 = vadd.f32 %v6099_v20, %v1349_v43  ;;  %v1363_v27 = vpop.f32.mrf.mxu1  ;;  %v984_v36 = vld [vmem:[%s7450_s1 + $0x3d8] sm:$0xff]  ;;  %v1037_v43 = vld [vmem:[%s7450_s1 + $0x580] sm:$0xff] }
 0x23d   :  { %v6190_v47 = vpop.f32.mrf.mxu2  ;;  %v1028_v20 = vld [vmem:[%s7450_s1 + $0x538] sm:$0xff] }
 0x23e   :  { %7494 = vst [vmem:[#allocation15_spill] sm:$0xff] %v6179_v5 }
 0x240   :  { %v6197_v28 = vpop.f32.mrf.mxu0  ;;  %1974 = vmatmul.f32.gmra.mxu3 %v922_v63  ;;  %v1352_v63 = vadd.f32 %v6097_v29, %v5118_v8  ;;  %v949_v8 = vld [vmem:[%s7450_s1 + $0x2c0] sm:$0xff] }
 0x242   :  { %1876 = vmatmul.f32.gmra.mxu2 %v966_v56 }
 0x243   :  { %1778 = vmatmul.f32.gmra.mxu1 %v1010_v16  ;;  %2069 = vmatmul.f32.vlgmr.msra.gmra.mxu0 %v869_v41  ;;  %v1571_v4 = vpop.f32.mrf.mxu3  ;;  %v1465_v16 = vadd.f32 %v6129_v50, %v1352_v63 }
 0x244   :  { %v6208_v48 = vadd.f32 %v1571_v4, %v1459_v24  ;;  %v1366_v29 = vpop.f32.mrf.mxu1 }
 0x245   :  { %v1473_v57 = vpop.f32.mrf.mxu2 }
 0x246   :  { %7495 = vst [vmem:[#allocation16_spill] sm:$0xff] %v6208_v48 }
 0x248   :  { %v6218_v34 = vpop.f32.mrf.mxu0  ;;  %1977 = vmatmul.f32.gmra.mxu3 %v931_v23  ;;  %v993_v23 = vld [vmem:[%s7450_s1 + $0x420] sm:$0xff] }
 0x24a   :  { %1879 = vmatmul.f32.gmra.mxu2 %v975_v38  ;;  %v1355_v38 = vadd.f32 %v6134_v2, %v5160_v49  ;;  %v958_v2 = vld [vmem:[%s7450_s1 + $0x308] sm:$0xff] }
 0x24b   :  { %1781 = vmatmul.f32.gmra.mxu1 %v1019_v18  ;;  %2072 = vmatmul.f32.gmra.mxu0 %v878_v40  ;;  %v1574_v45 = vpop.f32.mrf.mxu3  ;;  %v896_v18 = vld [vmem:[%s7450_s1 + $0x118] sm:$0xff] }
 0x24c   :  { %v6227_v52 = vadd.f32 %v1574_v45, %v1462_v30  ;;  %v1468_v40 = vadd.f32 %v6158_v54, %v1355_v38  ;;  %v1046_v54 = vld [vmem:[%s7450_s1 + $0x5c8] sm:$0xff]  ;;  %v1361_v38 = vadd.f32 %v6206_v15, %v5260_v22  ;;  %v976_v22 = vld [vmem:[%s7450_s1 + $0x398] sm:$0xff] }
 0x24d   :  { %v1476_v41 = vpop.f32.mrf.mxu2  ;;  %v1020_v15 = vld [vmem:[%s7450_s1 + $0x4f8] sm:$0xff] }
 0x24e   :  { %7496 = vst [vmem:[#allocation17_spill] sm:$0xff] %v6227_v52  ;;  %v7539_v52 = vld [vmem:[#allocation11_spill] sm:$0xff] }
 0x250   :  { %v6237_v56 = vpop.f32.mrf.mxu0  ;;  %1980 = vmatmul.f32.gmra.mxu3 %v940_v14  ;;  %v1002_v14 = vld [vmem:[%s7450_s1 + $0x468] sm:$0xff] }
 0x252   :  { %1882 = vmatmul.f32.gmra.mxu2 %v984_v36  ;;  %v1358_v36 = vadd.f32 %v6176_v19, %v5212_v46  ;;  %v967_v46 = vld [vmem:[%s7450_s1 + $0x350] sm:$0xff] }
 0x253   :  { %1784 = vmatmul.f32.gmra.mxu1 %v1028_v20  ;;  %2075 = vmatmul.f32.gmra.mxu0 %v887_v13  ;;  %v1577_v24 = vpop.f32.mrf.mxu3  ;;  %v905_v20 = vld [vmem:[%s7450_s1 + $0x160] sm:$0xff]  ;;  %v1369_v13 = vpop.f32.mrf.mxu1 }
 0x254   :  { %v6246_v4 = vadd.f32 %v1577_v24, %v1465_v16  ;;  %v1471_v16 = vadd.f32 %v6190_v47, %v1358_v36  ;;  %v1055_v47 = vld [vmem:[%s7450_s1 + $0x610] sm:$0xff]  ;;  %v1364_v36 = vadd.f32 %v1363_v27, %v5286_v44  ;;  %v6321_v44 = vpop.permute.xlu2 %2707 }
 0x255   :  { %v1479_v49 = vpop.f32.mrf.mxu2  ;;  %7506 = vst [vmem:[#allocation27_spill] sm:$0xff] %v6321_v44  ;;  %v7515_v44 = vld [vmem:[#allocation4_spill] sm:$0xff] }
 0x256   :  { %7497 = vst [vmem:[#allocation18_spill] sm:$0xff] %v6246_v4 }
 0x258   :  { %v6256_v50 = vpop.f32.mrf.mxu0  ;;  %1983 = vmatmul.f32.gmra.mxu3 %v949_v8 }
 0x259   :  { %7498 = vst [vmem:[#allocation19_spill] sm:$0xff] %v6256_v50 }
 0x25a   :  { %1885 = vmatmul.f32.gmra.mxu2 %v993_v23  ;;  %v1011_v23 = vld [vmem:[%s7450_s1 + $0x4b0] sm:$0xff] }
 0x25b   :  { %1787 = vmatmul.f32.gmra.mxu1 %v1037_v43  ;;  %2078 = vmatmul.f32.gmra.mxu0 %v896_v18  ;;  %v1580_v30 = vpop.f32.mrf.mxu3  ;;  %v914_v18 = vld [vmem:[%s7450_s1 + $0x1a8] sm:$0xff] }
 0x25c   :  { %v6265_v45 = vadd.f32 %v1580_v30, %v1468_v40  ;;  %v1474_v40 = vadd.f32 %v1473_v57, %v1361_v38  ;;  %v1372_v30 = vpop.f32.mrf.mxu1  ;;  %v1064_v57 = vld [vmem:[%s7450_s1 + $0x658] sm:$0xff]  ;;  %v985_v38 = vld [vmem:[%s7450_s1 + $0x3e0] sm:$0xff] }
 0x25d   :  { %v1482_v19 = vpop.f32.mrf.mxu2 }
 0x25e   :  { %7499 = vst [vmem:[#allocation20_spill] sm:$0xff] %v6265_v45 }
 0x260   :  { %v6275_v63 = vpop.f32.mrf.mxu0  ;;  %1986 = vmatmul.f32.gmra.mxu3 %v958_v2 }
 0x261   :  { %7500 = vst [vmem:[#allocation21_spill] sm:$0xff] %v6275_v63  ;;  %v1066_v63 = vld [vmem:[%s7450_s1 + $0x668] sm:$0xff] }
 0x262   :  { %1888 = vmatmul.f32.gmra.mxu2 %v1002_v14 }
 0x263   :  { %1790 = vmatmul.f32.gmra.mxu1 %v1046_v54  ;;  %2081 = vmatmul.f32.gmra.mxu0 %v905_v20  ;;  %v1583_v24 = vpop.f32.mrf.mxu3  ;;  %v923_v20 = vld [vmem:[%s7450_s1 + $0x1f0] sm:$0xff] }
 0x264   :  { %v6284_v8 = vadd.f32 %v1583_v24, %v1471_v16  ;;  %v1477_v24 = vadd.f32 %v1476_v41, %v1364_v36  ;;  %v6323_v27 = vpop.f32.mrf.mxu1 }
 0x265   :  { %v1485_v16 = vpop.f32.mrf.mxu2 }
 0x266   :  { %7501 = vst [vmem:[#allocation22_spill] sm:$0xff] %v6284_v8 }
 0x268   :  { %v6294_v43 = vpop.f32.mrf.mxu0  ;;  %1989 = vmatmul.f32.gmra.mxu3 %v967_v46 }
 0x269   :  { %7502 = vst [vmem:[#allocation23_spill] sm:$0xff] %v6294_v43 }
 0x26a   :  { %1891 = vmatmul.f32.gmra.mxu2 %v1011_v23 }
 0x26b   :  { %1793 = vmatmul.f32.gmra.mxu1 %v1055_v47  ;;  %2084 = vmatmul.f32.gmra.mxu0 %v914_v18  ;;  %v1586_v2 = vpop.f32.mrf.mxu3  ;;  %v1029_v47 = vld [vmem:[%s7450_s1 + $0x540] sm:$0xff] }
 0x26c   :  { %v6302_v14 = vadd.f32 %v1586_v2, %v1474_v40  ;;  %v7507_v18 = vld [vmem:[#allocation2_spill] sm:$0xff] }
 0x26d   :  { %v1367_v41 = vadd.f32 %v1366_v29, %v7507_v18  ;;  %v1073_v2 = vld [vmem:[%s7450_s1 + $0x6a0] sm:$0xff]  ;;  %v6340_v36 = vpop.f32.mrf.mxu2  ;;  %v994_v29 = vld [vmem:[%s7450_s1 + $0x428] sm:$0xff] }
 0x26e   :  { %7503 = vst [vmem:[#allocation24_spill] sm:$0xff] %v6302_v14 }
 0x270   :  { %v6311_v54 = vpop.f32.mrf.mxu0  ;;  %1992 = vmatmul.f32.gmra.mxu3 %v976_v22  ;;  %v932_v22 = vld [vmem:[%s7450_s1 + $0x238] sm:$0xff] }
 0x271   :  { %7504 = vst [vmem:[#allocation25_spill] sm:$0xff] %v6311_v54 }
 0x272   :  { %1894 = vmatmul.f32.gmra.mxu2 %v1020_v15  ;;  %v1480_v15 = vadd.f32 %v1479_v49, %v1367_v41  ;;  %v1038_v49 = vld [vmem:[%s7450_s1 + $0x588] sm:$0xff] }
 0x273   :  { %1796 = vmatmul.f32.gmra.mxu1 %v1064_v57  ;;  %2087 = vmatmul.f32.gmra.mxu0 %v923_v20  ;;  %v1589_v46 = vpop.f32.mrf.mxu3  ;;  %v1082_v41 = vld [vmem:[%s7450_s1 + $0x6e8] sm:$0xff] }
 0x274   :  { %v6319_v23 = vadd.f32 %v1589_v46, %v1477_v24  ;;  %v6347_v24 = vpop.permute.xlu2 %2722  ;;  %v6349_v46 = vpop.f32.mrf.mxu1 }
 0x275   :  { %7510 = vst [vmem:[#allocation29_spill] sm:$0xff] %v6347_v24  ;;  %v6365_v24 = vpop.f32.mrf.mxu2 }
 0x276   :  { %7505 = vst [vmem:[#allocation26_spill] sm:$0xff] %v6319_v23 }
 0x278   :  { %v6332_v40 = vpop.f32.mrf.mxu0  ;;  %1995 = vmatmul.f32.gmra.mxu3 %v985_v38  ;;  %v7511_v38 = vld [vmem:[#allocation3_spill] sm:$0xff] }
 0x279   :  { %7508 = vst [vmem:[#allocation2_spill] sm:$0xff] %v6332_v40  ;;  %v1101_v40 = vld [vmem:[%s7450_s1 + $0x780] sm:$0xff] }
 0x27a   :  { %1897 = vmatmul.f32.gmra.mxu2 %v1029_v47  ;;  %v1370_v47 = vadd.f32 %v1369_v13, %v7511_v38  ;;  %v1003_v13 = vld [vmem:[%s7450_s1 + $0x470] sm:$0xff]  ;;  %v6373_v38 = vpop.permute.xlu0 %2712 }
 0x27b   :  { %1799 = vmatmul.f32.gmra.mxu1 %v1073_v2  ;;  %2090 = vmatmul.f32.gmra.mxu0 %v932_v22  ;;  %v1592_v57 = vpop.f32.mrf.mxu3  ;;  %v941_v2 = vld [vmem:[%s7450_s1 + $0x280] sm:$0xff]  ;;  %7514 = vst [vmem:[#allocation31_spill] sm:$0xff] %v6373_v38  ;;  %v6393_v38 = vpop.permute.xlu1 %2717 }
 0x27c   :  { %v6342_v20 = vadd.f32 %v1592_v57, %v1480_v15  ;;  %v1483_v22 = vadd.f32 %v1482_v19, %v1370_v47  ;;  %v1373_v19 = vadd.f32 %v1372_v30, %v7515_v44  ;;  %v1091_v47 = vld [vmem:[%s7450_s1 + $0x730] sm:$0xff]  ;;  %7519 = vst [vmem:[#allocation34_spill] sm:$0xff] %v6393_v38 }
 0x27e   :  { %7509 = vst [vmem:[#allocation28_spill] sm:$0xff] %v6342_v20 }
 0x280   :  { %v6355_v18 = vpop.f32.mrf.mxu0  ;;  %1998 = vmatmul.f32.gmra.mxu3 %v994_v29  ;;  %v1047_v29 = vld [vmem:[%s7450_s1 + $0x5d0] sm:$0xff] }
 0x281   :  { %7512 = vst [vmem:[#allocation3_spill] sm:$0xff] %v6355_v18 }
 0x282   :  { %1900 = vmatmul.f32.gmra.mxu2 %v1038_v49 }
 0x283   :  { %1802 = vmatmul.f32.gmra.mxu1 %v1082_v41  ;;  %2093 = vmatmul.f32.gmra.mxu0 %v941_v2  ;;  %v1595_v15 = vpop.f32.mrf.mxu3  ;;  %v950_v41 = vld [vmem:[%s7450_s1 + $0x2c8] sm:$0xff]  ;;  %v6384_v2 = vpop.permute.xlu2 %2737 }
 0x284   :  { %v6363_v57 = vadd.f32 %v1595_v15, %v1483_v22  ;;  %7517 = vst [vmem:[#allocation32_spill] sm:$0xff] %v6384_v2  ;;  %v6386_v22 = vpop.f32.mrf.mxu1  ;;  %v1486_v15 = vadd.f32 %v1485_v16, %v1373_v19  ;;  %v1056_v2 = vld [vmem:[%s7450_s1 + $0x618] sm:$0xff]  ;;  %v6408_v19 = vpop.permute.xlu0 %2727 }
 0x285   :  { %v1100_v16 = vld [vmem:[%s7450_s1 + $0x778] sm:$0xff]  ;;  %7521 = vst [vmem:[#allocation36_spill] sm:$0xff] %v6408_v19 }
 0x286   :  { %7513 = vst [vmem:[#allocation30_spill] sm:$0xff] %v6363_v57  ;;  %v6395_v57 = vpop.f32.mrf.mxu2 }
 0x288   :  { %v6376_v49 = vpop.f32.mrf.mxu0  ;;  %2001 = vmatmul.f32.gmra.mxu3 %v1003_v13  ;;  %v1012_v13 = vld [vmem:[%s7450_s1 + $0x4b8] sm:$0xff] }
 0x289   :  { %7516 = vst [vmem:[#allocation4_spill] sm:$0xff] %v6376_v49 }
 0x28a   :  { %1903 = vmatmul.f32.gmra.mxu2 %v1047_v29  ;;  %v959_v29 = vld [vmem:[%s7450_s1 + $0x310] sm:$0xff] }
 0x28b   :  { %1805 = vmatmul.f32.gmra.mxu1 %v1091_v47  ;;  %2096 = vmatmul.f32.gmra.mxu0 %v950_v41  ;;  %v1598_v30 = vpop.f32.mrf.mxu3  ;;  %v6410_v47 = vpop.permute.xlu2 %2752 }
 0x28c   :  { %v6388_v44 = vadd.f32 %v1598_v30, %v1486_v15  ;;  %7522 = vst [vmem:[#allocation37_spill] sm:$0xff] %v6410_v47  ;;  %v6412_v41 = vpop.f32.mrf.mxu1  ;;  %v1021_v30 = vld [vmem:[%s7450_s1 + $0x500] sm:$0xff] }
 0x28e   :  { %7518 = vst [vmem:[#allocation33_spill] sm:$0xff] %v6388_v44  ;;  %v6432_v19 = vpop.f32.mrf.mxu2  ;;  %v6436_v44 = vpop.permute.xlu0 %2742 }
 0x28f   :  { %7525 = vst [vmem:[#allocation40_spill] sm:$0xff] %v6436_v44 }
 0x290   :  { %v6400_v20 = vpop.f32.mrf.mxu0  ;;  %2004 = vmatmul.f32.gmra.mxu3 %v1012_v13  ;;  %v1065_v13 = vld [vmem:[%s7450_s1 + $0x660] sm:$0xff] }
 0x291   :  { %7520 = vst [vmem:[#allocation35_spill] sm:$0xff] %v6400_v20 }
 0x292   :  { %1906 = vmatmul.f32.gmra.mxu2 %v1056_v2  ;;  %v1109_v2 = vld [vmem:[%s7450_s1 + $0x7c0] sm:$0xff] }
 0x293   :  { %1808 = vmatmul.f32.gmra.mxu1 %v1100_v16  ;;  %2099 = vmatmul.f32.gmra.mxu0 %v959_v29  ;;  %v6414_v15 = vpop.f32.mrf.mxu3  ;;  %v968_v16 = vld [vmem:[%s7450_s1 + $0x358] sm:$0xff]  ;;  %v6430_v29 = vpop.permute.xlu1 %2732 }
 0x294   :  { %7524 = vst [vmem:[#allocation39_spill] sm:$0xff] %v6430_v29  ;;  %v6440_v23 = vpop.f32.mrf.mxu1  ;;  %v1074_v29 = vld [vmem:[%s7450_s1 + $0x6a8] sm:$0xff] }
 0x296   :  { %v6458_v44 = vpop.f32.mrf.mxu2 }
 0x298   :  { %v6422_v38 = vpop.f32.mrf.mxu0  ;;  %2007 = vmatmul.f32.gmra.mxu3 %v1021_v30  ;;  %v6438_v30 = vpop.permute.xlu2 %2767 }
 0x299   :  { %7523 = vst [vmem:[#allocation38_spill] sm:$0xff] %v6422_v38  ;;  %v1030_v38 = vld [vmem:[%s7450_s1 + $0x548] sm:$0xff] }
 0x29a   :  { %1909 = vmatmul.f32.gmra.mxu2 %v1065_v13  ;;  %7526 = vst [vmem:[#allocation41_spill] sm:$0xff] %v6438_v30  ;;  %v1118_v13 = vld [vmem:[%s7450_s1 + $0x808] sm:$0xff] }
 0x29b   :  { %1811 = vmatmul.f32.gmra.mxu1 %v1109_v2  ;;  %2102 = vmatmul.f32.gmra.mxu0 %v968_v16  ;;  %v6434_v47 = vpop.f32.mrf.mxu3  ;;  %v977_v2 = vld [vmem:[%s7450_s1 + $0x3a0] sm:$0xff]  ;;  %v6456_v16 = vpop.permute.xlu1 %2747 }
 0x29c   :  { %7528 = vst [vmem:[#allocation43_spill] sm:$0xff] %v6456_v16  ;;  %v6469_v8 = vpop.f32.mrf.mxu1 }
 0x29e   :  { %v6486_v49 = vpop.f32.mrf.mxu2 }
 0x2a0   :  { %v6448_v14 = vpop.f32.mrf.mxu0  ;;  %2010 = vmatmul.f32.gmra.mxu3 %v1030_v38  ;;  %v1039_v38 = vld [vmem:[%s7450_s1 + $0x590] sm:$0xff]  ;;  %v6467_v20 = vpop.permute.xlu2 %2782 }
 0x2a1   :  { %7527 = vst [vmem:[#allocation42_spill] sm:$0xff] %v6448_v14  ;;  %v6465_v14 = vpop.permute.xlu0 %2757 }
 0x2a2   :  { %1912 = vmatmul.f32.gmra.mxu2 %v1074_v29  ;;  %7529 = vst [vmem:[#allocation44_spill] sm:$0xff] %v6465_v14  ;;  %v1083_v29 = vld [vmem:[%s7450_s1 + $0x6f0] sm:$0xff] }
 0x2a3   :  { %1814 = vmatmul.f32.gmra.mxu1 %v1118_v13  ;;  %2105 = vmatmul.f32.gmra.mxu0 %v977_v2  ;;  %v6460_v30 = vpop.f32.mrf.mxu3  ;;  %7530 = vst [vmem:[#allocation45_spill] sm:$0xff] %v6467_v20  ;;  %v1127_v13 = vld [vmem:[%s7450_s1 + $0x850] sm:$0xff]  ;;  %v986_v2 = vld [vmem:[%s7450_s1 + $0x3e8] sm:$0xff]  ;;  %v6484_v14 = vpop.permute.xlu1 %2762 }
 0x2a4   :  { %7532 = vst [vmem:[#allocation47_spill] sm:$0xff] %v6484_v14  ;;  %v6506_v14 = vpop.f32.mrf.mxu1 }
 0x2a8   :  { %v6474_v16 = vpop.f32.mrf.mxu0  ;;  %2013 = vmatmul.f32.gmra.mxu3 %v1039_v38  ;;  %v1048_v38 = vld [vmem:[%s7450_s1 + $0x5d8] sm:$0xff] }
 0x2a9   :  { %7531 = vst [vmem:[#allocation46_spill] sm:$0xff] %v6474_v16  ;;  %v1092_v16 = vld [vmem:[%s7450_s1 + $0x738] sm:$0xff]  ;;  %v6494_v45 = vpop.permute.xlu0 %2772 }
 0x2aa   :  { %1915 = vmatmul.f32.gmra.mxu2 %v1083_v29  ;;  %7533 = vst [vmem:[#allocation48_spill] sm:$0xff] %v6494_v45  ;;  %v1136_v29 = vld [vmem:[%s7450_s1 + $0x898] sm:$0xff] }
 0x2ab   :  { %1817 = vmatmul.f32.gmra.mxu1 %v1127_v13  ;;  %2108 = vmatmul.f32.gmra.mxu0 %v986_v2  ;;  %v6482_v20 = vpop.f32.mrf.mxu3  ;;  %v995_v13 = vld [vmem:[%s7450_s1 + $0x430] sm:$0xff]  ;;  %v6504_v2 = vpop.permute.xlu2 %2797 }
 0x2ac   :  { %7535 = vst [vmem:[#allocation50_spill] sm:$0xff] %v6504_v2  ;;  %v6513_v45 = vpop.permute.xlu1 %2777 }
 0x2ad   :  { %7536 = vst [vmem:[#allocation51_spill] sm:$0xff] %v6513_v45 }
 0x2b0   :  { %v6496_v18 = vpop.f32.mrf.mxu0  ;;  %2016 = vmatmul.f32.gmra.mxu3 %v1048_v38  ;;  %v1057_v38 = vld [vmem:[%s7450_s1 + $0x620] sm:$0xff] }
 0x2b1   :  { %7534 = vst [vmem:[#allocation49_spill] sm:$0xff] %v6496_v18  ;;  %v6515_v18 = vpop.f32.mrf.mxu2  ;;  %v6530_v54 = vpop.permute.xlu0 %2787 }
 0x2b2   :  { %1918 = vmatmul.f32.gmra.mxu2 %v1092_v16  ;;  %v1145_v16 = vld [vmem:[%s7450_s1 + $0x8e0] sm:$0xff] }
 0x2b3   :  { %1820 = vmatmul.f32.gmra.mxu1 %v1136_v29  ;;  %2111 = vmatmul.f32.gmra.mxu0 %v995_v13  ;;  %v6508_v4 = vpop.f32.mrf.mxu3  ;;  %v1004_v29 = vld [vmem:[%s7450_s1 + $0x478] sm:$0xff]  ;;  %v6532_v48 = vpop.permute.xlu2 %2812 }
 0x2b4   :  { %v7538_v13 = vld [vmem:[#allocation5_spill] sm:$0xff]  ;;  %7541 = vst [vmem:[#allocation11_spill] sm:$0xff] %v6532_v48 }
 0x2b5   :  { %v1619_v45 = vadd.f32 %v7539_v52, %v7538_v13  ;;  %7540 = vst [vmem:[#allocation5_spill] sm:$0xff] %v6530_v54 }
 0x2b7   :  { %v1732_v43 = vadd.f32 %v6323_v27, %v1619_v45  ;;  %v1110_v45 = vld [vmem:[%s7450_s1 + $0x7c8] sm:$0xff] }
 0x2b8   :  { %v6520_v2 = vpop.f32.mrf.mxu0  ;;  %2019 = vmatmul.f32.gmra.mxu3 %v1057_v38 }
 0x2b9   :  { %7537 = vst [vmem:[#allocation52_spill] sm:$0xff] %v6520_v2  ;;  %v6535_v2 = vpop.f32.mrf.mxu1  ;;  %v1845_v5 = vadd.f32 %v6340_v36, %v1732_v43  ;;  %v1013_v43 = vld [vmem:[%s7450_s1 + $0x4c0] sm:$0xff]  ;;  %v6555_v36 = vpop.permute.xlu1 %2792 }
 0x2ba   :  { %1921 = vmatmul.f32.gmra.mxu2 %v1101_v40  ;;  %v6547_v40 = vld [vmem:[%s7453_s4] ss:$0 sm:$0xff]  ;;  %7542 = vst [vmem:[#allocation53_spill] sm:$0xff] %v6555_v36  ;;  %v6568_v25 = vpop.permute.xlu0 %2802 }
 0x2bb   :  { %1823 = vmatmul.f32.gmra.mxu1 %v1145_v16  ;;  %2114 = vmatmul.f32.gmra.mxu0 %v1004_v29  ;;  %v6537_v38 = vpop.f32.mrf.mxu3  ;;  %v1958_v52 = vadd.f32 %v6414_v15, %v1845_v5  ;;  %v7543_v16 = vld [vmem:[#allocation6_spill] sm:$0xff]  ;;  %v7544_v29 = vld [vmem:[#allocation13_spill] sm:$0xff]  ;;  %v6559_v15 = vpop.f32.mrf.mxu2 }
 0x2bc   :  { %v1622_v5 = vadd.f32 %v7544_v29, %v7543_v16  ;;  %7545 = vst [vmem:[#allocation6_spill] sm:$0xff] %v6568_v25  ;;  %v6570_v50 = vpop.permute.xlu2 %2827 }
 0x2bd   :  { %7546 = vst [vmem:[#allocation13_spill] sm:$0xff] %v6570_v50 }
 0x2be   :  { %v1735_v48 = vadd.f32 %v6349_v46, %v1622_v5 }
 0x2c0   :  { %v2070_v27 = vpop.f32.mrf.mxu0  ;;  %2022 = vmatmul.f32.gmra.mxu3 %v1066_v63  ;;  %v1848_v36 = vadd.f32 %v6365_v24, %v1735_v48  ;;  %v1022_v48 = vld [vmem:[%s7450_s1 + $0x508] sm:$0xff] }
 0x2c1   :  { %v6561_v13 = vadd.f32 %v2070_v27, %v1958_v52  ;;  %v1075_v52 = vld [vmem:[%s7450_s1 + $0x6b0] sm:$0xff]  ;;  %v6580_v27 = vpop.f32.mrf.mxu1 }
 0x2c2   :  { %1924 = vmatmul.f32.gmra.mxu2 %v1110_v45  ;;  %v1961_v46 = vadd.f32 %v6434_v47, %v1848_v36  ;;  %v1119_v45 = vld [vmem:[%s7450_s1 + $0x810] sm:$0xff]  ;;  %v6589_v47 = vpop.permute.xlu1 %2807 }
 0x2c3   :  { %v2169_v54 = vmul.f32 %v6547_v40, %v6561_v13  ;;  %2117 = vmatmul.f32.gmra.mxu0 %v1013_v43  ;;  %v6566_v63 = vpop.f32.mrf.mxu3  ;;  %7549 = vst [vmem:[#allocation54_spill] sm:$0xff] %v6589_v47  ;;  %v6592_v5 = vpop.f32.mrf.mxu2 }
 0x2c5   :  { %2201 = vadd.xlane.f32.xlu2 %v2169_v54  ;;  %v2265_v16 = vmul.f32 %v2169_v54, %v2169_v54  ;;  %v7547_v54 = vld [vmem:[#allocation7_spill] sm:$0xff] }
 0x2c6   :  { %v1625_v24 = vadd.f32 %v5725_v10, %v7547_v54  ;;  %v1084_v10 = vld [vmem:[%s7450_s1 + $0x6f8] sm:$0xff]  ;;  %v7552_v54 = vld [vmem:[#allocation8_spill] sm:$0xff] }
 0x2c7   :  { %2297 = vadd.xlane.f32.xlu0 %v2265_v16 }
 0x2c8   :  { %v2073_v43 = vpop.f32.mrf.mxu0  ;;  %2025 = vmatmul.f32.gmra.mxu3 %v1075_v52  ;;  %v1738_v36 = vadd.f32 %v6386_v22, %v1625_v24  ;;  %v1628_v24 = vadd.f32 %v5769_v39, %v7552_v54 }
 0x2c9   :  { %v6587_v29 = vadd.f32 %v2073_v43, %v1961_v46  ;;  %v6602_v46 = vpop.permute.xlu0 %2817  ;;  %v1128_v43 = vld [vmem:[%s7450_s1 + $0x858] sm:$0xff] }
 0x2ca   :  { %1927 = vmatmul.f32.gmra.mxu2 %v1119_v45  ;;  %v1851_v25 = vadd.f32 %v6395_v57, %v1738_v36  ;;  %7550 = vst [vmem:[#allocation55_spill] sm:$0xff] %v6602_v46  ;;  %v6604_v45 = vpop.permute.xlu2 %2842  ;;  %v1031_v57 = vld [vmem:[%s7450_s1 + $0x550] sm:$0xff]  ;;  %v6617_v46 = vpop.f32.mrf.mxu1 }
 0x2cb   :  { %7548 = vst [vmem:[#allocation7_spill] sm:$0xff] %v6587_v29  ;;  %v2170_v16 = vmul.f32 %v6547_v40, %v6587_v29  ;;  %2120 = vmatmul.f32.gmra.mxu0 %v1022_v48  ;;  %v6596_v52 = vpop.f32.mrf.mxu3  ;;  %v6627_v47 = vpop.f32.mrf.mxu2 }
 0x2cc   :  { %7551 = vst [vmem:[#allocation56_spill] sm:$0xff] %v6604_v45  ;;  %v1964_v22 = vadd.f32 %v6460_v30, %v1851_v25  ;;  %v1741_v25 = vadd.f32 %v6412_v41, %v1628_v24  ;;  %v7556_v24 = vld [vmem:[#allocation9_spill] sm:$0xff] }
 0x2cd   :  { %v2266_v50 = vmul.f32 %v2170_v16, %v2170_v16 }
 0x2cf   :  { %2299 = vadd.xlane.f32.xlu1 %v2266_v50  ;;  %2203 = vadd.xlane.f32.xlu0 %v2170_v16  ;;  %v6624_v16 = vpop.permute.xlu1 %2822 }
 0x2d0   :  { %v2076_v48 = vpop.f32.mrf.mxu0  ;;  %2028 = vmatmul.f32.gmra.mxu3 %v1084_v10  ;;  %7553 = vst [vmem:[#allocation8_spill] sm:$0xff] %v6624_v16  ;;  %v1854_v10 = vadd.f32 %v6432_v19, %v1741_v25  ;;  %v1040_v19 = vld [vmem:[%s7450_s1 + $0x598] sm:$0xff]  ;;  %v1631_v25 = vadd.f32 %v5813_v42, %v7556_v24  ;;  %v1102_v42 = vld [vmem:[%s7450_s1 + $0x788] sm:$0xff]  ;;  %v7558_v24 = vld [vmem:[#allocation10_spill] sm:$0xff] }
 0x2d1   :  { %v6615_v36 = vadd.f32 %v2076_v48, %v1964_v22  ;;  %v1093_v22 = vld [vmem:[%s7450_s1 + $0x740] sm:$0xff]  ;;  %v6633_v41 = vpop.permute.xlu0 %2832 }
 0x2d2   :  { %1930 = vmatmul.f32.gmra.mxu2 %v1128_v43  ;;  %v1967_v43 = vadd.f32 %v6482_v20, %v1854_v10  ;;  %7554 = vst [vmem:[#allocation57_spill] sm:$0xff] %v6633_v41  ;;  %v1137_v48 = vld [vmem:[%s7450_s1 + $0x8a0] sm:$0xff]  ;;  %v6641_v54 = vpop.permute.xlu2 %2857 }
 0x2d3   :  { %v2171_v50 = vmul.f32 %v6547_v40, %v6615_v36  ;;  %2123 = vmatmul.f32.gmra.mxu0 %v1031_v57  ;;  %v6622_v30 = vpop.f32.mrf.mxu3  ;;  %7555 = vst [vmem:[#allocation58_spill] sm:$0xff] %v6641_v54 }
 0x2d5   :  { %v2267_v39 = vmul.f32 %v2171_v50, %v2171_v50 }
 0x2d7   :  { %2205 = vadd.xlane.f32.xlu1 %v2171_v50  ;;  %2301 = vadd.xlane.f32.xlu2 %v2267_v39  ;;  %v1744_v50 = vadd.f32 %v6440_v23, %v1631_v25  ;;  %v6661_v23 = vpop.f32.mrf.mxu2  ;;  %v1634_v25 = vadd.f32 %v5851_v60, %v7558_v24  ;;  %v1111_v60 = vld [vmem:[%s7450_s1 + $0x7d0] sm:$0xff] }
 0x2d8   :  { %v2079_v57 = vpop.f32.mrf.mxu0  ;;  %2031 = vmatmul.f32.gmra.mxu3 %v1093_v22  ;;  %v6652_v22 = vpop.f32.mrf.mxu1 }
 0x2d9   :  { %v6645_v20 = vadd.f32 %v2079_v57, %v1967_v43  ;;  %v1857_v16 = vadd.f32 %v6458_v44, %v1744_v50  ;;  %v6658_v43 = vpop.permute.xlu1 %2837  ;;  %v1146_v57 = vld [vmem:[%s7450_s1 + $0x8e8] sm:$0xff]  ;;  %v1049_v44 = vld [vmem:[%s7450_s1 + $0x5e0] sm:$0xff] }
 0x2da   :  { %1933 = vmatmul.f32.gmra.mxu2 %v1137_v48 }
 0x2db   :  { %7557 = vst [vmem:[#allocation9_spill] sm:$0xff] %v6645_v20  ;;  %v2172_v10 = vmul.f32 %v6547_v40, %v6645_v20  ;;  %2126 = vmatmul.f32.gmra.mxu0 %v1040_v19  ;;  %v6650_v39 = vpop.f32.mrf.mxu3  ;;  %v1970_v48 = vadd.f32 %v6508_v4, %v1857_v16  ;;  %v6673_v4 = vpop.permute.xlu0 %2847 }
 0x2dc   :  { %7560 = vst [vmem:[#allocation59_spill] sm:$0xff] %v6673_v4  ;;  %v6675_v16 = vpop.permute.xlu2 %2936 }
 0x2dd   :  { %v2268_v45 = vmul.f32 %v2172_v10, %v2172_v10  ;;  %7561 = vst [vmem:[#allocation60_spill] sm:$0xff] %v6675_v16 }
 0x2df   :  { %2207 = vadd.xlane.f32.xlu2 %v2172_v10  ;;  %2303 = vadd.xlane.f32.xlu0 %v2268_v45  ;;  %v1747_v45 = vadd.f32 %v6469_v8, %v1634_v25  ;;  %v6696_v25 = vpop.f32.mrf.mxu2 }
 0x2e0   :  { %v2082_v19 = vpop.f32.mrf.mxu0  ;;  %2034 = vmatmul.f32.gmra.mxu3 %v1102_v42 }
 0x2e1   :  { %v6671_v50 = vadd.f32 %v2082_v19, %v1970_v48  ;;  %v1860_v54 = vadd.f32 %v6486_v49, %v1747_v45  ;;  %v6686_v48 = vpop.f32.mrf.mxu1  ;;  %v6689_v19 = vpop.permute.xlu1 %2852  ;;  %v7563_v49 = vld [vmem:[#allocation12_spill] sm:$0xff] }
 0x2e2   :  { %1936 = vmatmul.f32.gmra.mxu2 %v1146_v57  ;;  %7562 = vst [vmem:[#allocation61_spill] sm:$0xff] %v6689_v19  ;;  %v1637_v24 = vadd.f32 %v5884_v6, %v7563_v49  ;;  %v1147_v19 = vld [vmem:[%s7450_s1 + $0x8f0] sm:$0xff] }
 0x2e3   :  { %7559 = vst [vmem:[#allocation10_spill] sm:$0xff] %v6671_v50  ;;  %v2173_v10 = vmul.f32 %v6547_v40, %v6671_v50  ;;  %2129 = vmatmul.f32.gmra.mxu0 %v1049_v44  ;;  %v6680_v42 = vpop.f32.mrf.mxu3  ;;  %v1973_v57 = vadd.f32 %v6537_v38, %v1860_v54  ;;  %v1058_v44 = vld [vmem:[%s7450_s1 + $0x628] sm:$0xff] }
 0x2e4   :  { %v1750_v4 = vadd.f32 %v6506_v14, %v1637_v24 }
 0x2e5   :  { %v2269_v41 = vmul.f32 %v2173_v10, %v2173_v10 }
 0x2e7   :  { %2305 = vadd.xlane.f32.xlu1 %v2269_v41  ;;  %2209 = vadd.xlane.f32.xlu2 %v2173_v10  ;;  %v6703_v41 = vpop.permute.xlu0 %2862  ;;  %v6707_v10 = vpop.permute.xlu2 %2951 }
 0x2e8   :  { %v2085_v8 = vpop.f32.mrf.mxu0  ;;  %2037 = vmatmul.f32.gmra.mxu3 %v1111_v60  ;;  %7565 = vst [vmem:[#allocation62_spill] sm:$0xff] %v6703_v41  ;;  %v1863_v60 = vadd.f32 %v6515_v18, %v1750_v4  ;;  %v1640_v18 = vadd.f32 %v5919_v31, %v5701_v1  ;;  %v6726_v41 = vpop.f32.mrf.mxu2  ;;  %v1129_v31 = vld [vmem:[%s7450_s1 + $0x860] sm:$0xff] }
 0x2e9   :  { %v6698_v45 = vadd.f32 %v2085_v8, %v1973_v57  ;;  %7566 = vst [vmem:[#allocation63_spill] sm:$0xff] %v6707_v10  ;;  %v1120_v57 = vld [vmem:[%s7450_s1 + $0x818] sm:$0xff]  ;;  %v6714_v8 = vpop.f32.mrf.mxu1  ;;  %v6723_v24 = vpop.permute.xlu1 %2931 }
 0x2ea   :  { %v1976_v14 = vadd.f32 %v6566_v63, %v1863_v60 }
 0x2eb   :  { %7564 = vst [vmem:[#allocation12_spill] sm:$0xff] %v6698_v45  ;;  %v2174_v38 = vmul.f32 %v6547_v40, %v6698_v45  ;;  %2132 = vmatmul.f32.gmra.mxu0 %v1058_v44  ;;  %v6705_v54 = vpop.f32.mrf.mxu3  ;;  %v1067_v44 = vld [vmem:[%s7450_s1 + $0x670] sm:$0xff] }
 0x2ed   :  { %2211 = vadd.xlane.f32.xlu0 %v2174_v38  ;;  %v2270_v6 = vmul.f32 %v2174_v38, %v2174_v38  ;;  %v1753_v38 = vadd.f32 %v6535_v2, %v1640_v18 }
 0x2ef   :  { %2307 = vadd.xlane.f32.xlu2 %v2270_v6  ;;  %v1866_v60 = vadd.f32 %v6559_v15, %v1753_v38  ;;  %v6731_v6 = vpop.permute.xlu0 %2941  ;;  %v1076_v15 = vld [vmem:[%s7450_s1 + $0x6b8] sm:$0xff] }
 0x2f0   :  { %v2088_v49 = vpop.f32.mrf.mxu0  ;;  %2040 = vmatmul.f32.gmra.mxu3 %v1120_v57 }
 0x2f1   :  { %v6721_v4 = vadd.f32 %v2088_v49, %v1976_v14  ;;  %v6738_v14 = vpop.permute.xlu2 %2966  ;;  %v1979_v2 = vadd.f32 %v6596_v52, %v1866_v60  ;;  %v6748_v38 = vpop.f32.mrf.mxu1 }
 0x2f2   :  { %7568 = vst [vmem:[#allocation65_spill] sm:$0xff] %v6738_v14  ;;  %v6753_v52 = vpop.permute.xlu1 %2946 }
 0x2f3   :  { %7567 = vst [vmem:[#allocation64_spill] sm:$0xff] %v6721_v4  ;;  %v2175_v63 = vmul.f32 %v6547_v40, %v6721_v4  ;;  %2135 = vmatmul.f32.gmra.mxu0 %v1067_v44  ;;  %v6733_v57 = vpop.f32.mrf.mxu3  ;;  %v1643_v44 = vadd.f32 %v5951_v61, %v5743_v9  ;;  %v1138_v9 = vld [vmem:[%s7450_s1 + $0x8a8] sm:$0xff] }
 0x2f4   :  { %7570 = vst [vmem:[#allocation67_spill] sm:$0xff] %v6753_v52  ;;  %v7603_v52 = vld [vmem:[#allocation16_spill] sm:$0xff] }
 0x2f5   :  { %2213 = vadd.xlane.f32.xlu1 %v2175_v63  ;;  %v2271_v1 = vmul.f32 %v2175_v63, %v2175_v63  ;;  %v1756_v63 = vadd.f32 %v6580_v27, %v1643_v44 }
 0x2f7   :  { %2309 = vadd.xlane.f32.xlu0 %v2271_v1  ;;  %v1869_v60 = vadd.f32 %v6592_v5, %v1756_v63  ;;  %v6756_v1 = vpop.f32.mrf.mxu2  ;;  %v1085_v5 = vld [vmem:[%s7450_s1 + $0x700] sm:$0xff] }
 0x2f8   :  { %v2091_v49 = vpop.f32.mrf.mxu0  ;;  %2043 = vmatmul.f32.gmra.mxu3 %v1129_v31 }
 0x2f9   :  { %v6746_v18 = vadd.f32 %v2091_v49, %v1979_v2  ;;  %v1982_v61 = vadd.f32 %v6622_v30, %v1869_v60  ;;  %v6762_v2 = vpop.permute.xlu0 %2956  ;;  %v6766_v49 = vpop.permute.xlu2 %2981 }
 0x2fa   :  { %7571 = vst [vmem:[#allocation68_spill] sm:$0xff] %v6762_v2  ;;  %v6778_v60 = vpop.f32.mrf.mxu1 }
 0x2fb   :  { %7569 = vst [vmem:[#allocation66_spill] sm:$0xff] %v6746_v18  ;;  %v2176_v14 = vmul.f32 %v6547_v40, %v6746_v18  ;;  %2138 = vmatmul.f32.gmra.mxu0 %v1076_v15  ;;  %v6764_v27 = vpop.f32.mrf.mxu3  ;;  %v6784_v18 = vpop.permute.xlu1 %2961 }
 0x2fc   :  { %7572 = vst [vmem:[#allocation69_spill] sm:$0xff] %v6784_v18 }
 0x2fd   :  { %2215 = vadd.xlane.f32.xlu2 %v2176_v14  ;;  %v2272_v31 = vmul.f32 %v2176_v14, %v2176_v14  ;;  %v1646_v14 = vadd.f32 %v5983_v0, %v5787_v58 }
 0x2ff   :  { %2311 = vadd.xlane.f32.xlu1 %v2272_v31  ;;  %v1759_v30 = vadd.f32 %v6617_v46, %v1646_v14  ;;  %v6787_v0 = vpop.f32.mrf.mxu2 }
 0x300   :  { %v2094_v15 = vpop.f32.mrf.mxu0  ;;  %2046 = vmatmul.f32.gmra.mxu3 %v1138_v9 }
 0x301   :  { %v6773_v44 = vadd.f32 %v2094_v15, %v1982_v61  ;;  %v1872_v31 = vadd.f32 %v6627_v47, %v1759_v30  ;;  %v1094_v61 = vld [vmem:[%s7450_s1 + $0x748] sm:$0xff]  ;;  %v1649_v47 = vadd.f32 %v6013_v3, %v5831_v51  ;;  %v6794_v15 = vpop.permute.xlu0 %2971  ;;  %v6800_v30 = vpop.permute.xlu2 %2996 }
 0x302   :  { %7574 = vst [vmem:[#allocation71_spill] sm:$0xff] %v6800_v30 }
 0x303   :  { %v2177_v63 = vmul.f32 %v6547_v40, %v6773_v44  ;;  %2141 = vmatmul.f32.gmra.mxu0 %v1085_v5  ;;  %v1985_v58 = vadd.f32 %v6650_v39, %v1872_v31  ;;  %v6796_v5 = vpop.f32.mrf.mxu3  ;;  %v1762_v39 = vadd.f32 %v6652_v22, %v1649_v47  ;;  %v6809_v3 = vpop.permute.xlu1 %2976  ;;  %v1103_v22 = vld [vmem:[%s7450_s1 + $0x790] sm:$0xff] }
 0x304   :  { %7575 = vst [vmem:[#allocation72_spill] sm:$0xff] %v6809_v3 }
 0x305   :  { %2217 = vadd.xlane.f32.xlu0 %v2177_v63  ;;  %v2273_v9 = vmul.f32 %v2177_v63, %v2177_v63  ;;  %v1875_v63 = vadd.f32 %v6661_v23, %v1762_v39 }
 0x307   :  { %2313 = vadd.xlane.f32.xlu2 %v2273_v9  ;;  %v6806_v9 = vpop.f32.mrf.mxu1  ;;  %v1988_v51 = vadd.f32 %v6680_v42, %v1875_v63 }
 0x308   :  { %v2097_v46 = vpop.f32.mrf.mxu0  ;;  %2049 = vmatmul.f32.gmra.mxu3 %v1147_v19 }
 0x309   :  { %v6798_v14 = vadd.f32 %v2097_v46, %v1985_v58  ;;  %v1652_v46 = vadd.f32 %v6045_v11, %v5866_v26  ;;  %v6821_v39 = vpop.permute.xlu0 %2986  ;;  %v6827_v63 = vpop.permute.xlu2 %3011 }
 0x30a   :  { %7576 = vst [vmem:[#allocation73_spill] sm:$0xff] %v6821_v39 }
 0x30b   :  { %7573 = vst [vmem:[#allocation70_spill] sm:$0xff] %v6798_v14  ;;  %v2178_v19 = vmul.f32 %v6547_v40, %v6798_v14  ;;  %2144 = vmatmul.f32.gmra.mxu0 %v1094_v61  ;;  %v6816_v61 = vpop.f32.mrf.mxu2  ;;  %v1765_v47 = vadd.f32 %v6686_v48, %v1652_v46  ;;  %v6823_v42 = vpop.f32.mrf.mxu3  ;;  %v1655_v46 = vadd.f32 %v6077_v21, %v5898_v17 }
 0x30c   :  { %v6840_v18 = vpop.permute.xlu1 %2991 }
 0x30d   :  { %2219 = vadd.xlane.f32.xlu1 %v2178_v19  ;;  %v2274_v31 = vmul.f32 %v2178_v19, %v2178_v19  ;;  %7578 = vst [vmem:[#allocation75_spill] sm:$0xff] %v6840_v18 }
 0x30f   :  { %2315 = vadd.xlane.f32.xlu0 %v2274_v31  ;;  %v1878_v31 = vadd.f32 %v6696_v25, %v1765_v47  ;;  %v1768_v25 = vadd.f32 %v6714_v8, %v1655_v46 }
 0x310   :  { %v2100_v58 = vpop.f32.mrf.mxu0 }
 0x311   :  { %v6818_v23 = vadd.f32 %v2100_v58, %v1988_v51  ;;  %v1991_v11 = vadd.f32 %v6705_v54, %v1878_v31  ;;  %v6831_v51 = vpop.f32.mrf.mxu1  ;;  %v1112_v58 = vld [vmem:[%s7450_s1 + $0x7d8] sm:$0xff]  ;;  %v6848_v31 = vpop.permute.xlu0 %3001 }
 0x312   :  { %7579 = vst [vmem:[#allocation76_spill] sm:$0xff] %v6848_v31  ;;  %v6852_v21 = vpop.permute.xlu2 %3026 }
 0x313   :  { %v2179_v19 = vmul.f32 %v6547_v40, %v6818_v23  ;;  %2147 = vmatmul.f32.gmra.mxu0 %v1103_v22  ;;  %v6843_v47 = vpop.f32.mrf.mxu2  ;;  %7580 = vst [vmem:[#allocation77_spill] sm:$0xff] %v6852_v21 }
 0x315   :  { %2221 = vadd.xlane.f32.xlu2 %v2179_v19  ;;  %v2275_v26 = vmul.f32 %v2179_v19, %v2179_v19  ;;  %v1881_v19 = vadd.f32 %v6726_v41, %v1768_v25 }
 0x317   :  { %2317 = vadd.xlane.f32.xlu1 %v2275_v26  ;;  %v6850_v26 = vpop.f32.mrf.mxu3 }
 0x318   :  { %v2103_v48 = vpop.f32.mrf.mxu0 }
 0x319   :  { %v6838_v22 = vadd.f32 %v2103_v48, %v1991_v11  ;;  %v1994_v11 = vadd.f32 %v6733_v57, %v1881_v19  ;;  %v1121_v48 = vld [vmem:[%s7450_s1 + $0x820] sm:$0xff]  ;;  %v6862_v46 = vpop.f32.mrf.mxu1  ;;  %v6867_v57 = vpop.permute.xlu1 %3006 }
 0x31a   :  { %7582 = vst [vmem:[#allocation79_spill] sm:$0xff] %v6867_v57 }
 0x31b   :  { %7577 = vst [vmem:[#allocation74_spill] sm:$0xff] %v6838_v22  ;;  %v2180_v54 = vmul.f32 %v6547_v40, %v6838_v22  ;;  %2150 = vmatmul.f32.gmra.mxu0 %v1112_v58  ;;  %v1658_v58 = vadd.f32 %v6109_v32, %v5928_v62  ;;  %v6873_v32 = vpop.permute.xlu0 %3016 }
 0x31c   :  { %7583 = vst [vmem:[#allocation80_spill] sm:$0xff] %v6873_v32 }
 0x31d   :  { %2223 = vadd.xlane.f32.xlu0 %v2180_v54  ;;  %v2276_v17 = vmul.f32 %v2180_v54, %v2180_v54  ;;  %v1771_v25 = vadd.f32 %v6748_v38, %v1658_v58  ;;  %v6877_v38 = vpop.permute.xlu2 %3041 }
 0x31e   :  { %7584 = vst [vmem:[#allocation81_spill] sm:$0xff] %v6877_v38 }
 0x31f   :  { %2319 = vadd.xlane.f32.xlu2 %v2276_v17  ;;  %v1884_v19 = vadd.f32 %v6756_v1, %v1771_v25  ;;  %v6870_v17 = vpop.f32.mrf.mxu2  ;;  %v1661_v1 = vadd.f32 %v6141_v59, %v5960_v35  ;;  %v1139_v59 = vld [vmem:[%s7450_s1 + $0x8b0] sm:$0xff] }
 0x320   :  { %v2106_v8 = vpop.f32.mrf.mxu0 }
 0x321   :  { %v6860_v41 = vadd.f32 %v2106_v8, %v1994_v11  ;;  %v1997_v62 = vadd.f32 %v6764_v27, %v1884_v19  ;;  %v6875_v11 = vpop.f32.mrf.mxu3  ;;  %v1774_v25 = vadd.f32 %v6778_v60, %v1661_v1  ;;  %v6890_v57 = vpop.permute.xlu1 %3021  ;;  %v1664_v60 = vadd.f32 %v6168_v7, %v5992_v37 }
 0x323   :  { %7581 = vst [vmem:[#allocation78_spill] sm:$0xff] %v6860_v41  ;;  %v2181_v54 = vmul.f32 %v6547_v40, %v6860_v41  ;;  %2153 = vmatmul.f32.gmra.mxu0 %v1121_v48  ;;  %v1130_v48 = vld [vmem:[%s7450_s1 + $0x868] sm:$0xff]  ;;  %v1777_v1 = vadd.f32 %v6806_v9, %v1664_v60  ;;  %v1667_v9 = vadd.f32 %v6197_v28, %v6024_v55 }
 0x325   :  { %2225 = vadd.xlane.f32.xlu1 %v2181_v54  ;;  %v2277_v31 = vmul.f32 %v2181_v54, %v2181_v54  ;;  %v1785_v54 = vpop.f32.mrf.mxu1 }
 0x327   :  { %2321 = vadd.xlane.f32.xlu0 %v2277_v31  ;;  %v1887_v31 = vadd.f32 %v6787_v0, %v1774_v25  ;;  %v1898_v38 = vpop.f32.mrf.mxu2  ;;  %v1890_v25 = vadd.f32 %v6816_v61, %v1777_v1  ;;  %v1780_v61 = vadd.f32 %v6831_v51, %v1667_v9  ;;  %v1670_v51 = vadd.f32 %v6218_v34, %v6056_v33 }
 0x328   :  { %v2109_v8 = vpop.f32.mrf.mxu0 }
 0x329   :  { %v6884_v58 = vadd.f32 %v2109_v8, %v1997_v62  ;;  %v2000_v4 = vadd.f32 %v6796_v5, %v1887_v31  ;;  %v6898_v62 = vpop.permute.xlu0 %3031  ;;  %v2011_v8 = vpop.f32.mrf.mxu3  ;;  %v2003_v37 = vadd.f32 %v6823_v42, %v1890_v25  ;;  %v1893_v25 = vadd.f32 %v6843_v47, %v1780_v61 }
 0x32a   :  { %7586 = vst [vmem:[#allocation83_spill] sm:$0xff] %v6898_v62  ;;  %v6909_v7 = vpop.permute.xlu1 %3036 }
 0x32b   :  { %7585 = vst [vmem:[#allocation82_spill] sm:$0xff] %v6884_v58  ;;  %v2182_v27 = vmul.f32 %v6547_v40, %v6884_v58  ;;  %2156 = vmatmul.f32.gmra.mxu0 %v1130_v48  ;;  %v6902_v48 = vpop.permute.xlu2 %3056  ;;  %v2006_v55 = vadd.f32 %v6850_v26, %v1893_v25 }
 0x32c   :  { %7588 = vst [vmem:[#allocation85_spill] sm:$0xff] %v6902_v48 }
 0x32d   :  { %2227 = vadd.xlane.f32.xlu2 %v2182_v27  ;;  %v2278_v19 = vmul.f32 %v2182_v27, %v2182_v27  ;;  %v1788_v31 = vpop.f32.mrf.mxu1  ;;  %7589 = vst [vmem:[#allocation86_spill] sm:$0xff] %v6909_v7 }
 0x32f   :  { %2323 = vadd.xlane.f32.xlu1 %v2278_v19  ;;  %v1148_v19 = vld [vmem:[%s7450_s1 + $0x8f8] sm:$0xff] }
 0x330   :  { %v2112_v35 = vpop.f32.mrf.mxu0 }
 0x331   :  { %v6900_v0 = vadd.f32 %v2112_v35, %v2000_v4  ;;  %v1901_v35 = vpop.f32.mrf.mxu2  ;;  %v6919_v60 = vpop.permute.xlu0 %3046 }
 0x332   :  { %7591 = vst [vmem:[#allocation88_spill] sm:$0xff] %v6919_v60  ;;  %v2014_v1 = vpop.f32.mrf.mxu3  ;;  %v6931_v9 = vpop.permute.xlu1 %3051 }
 0x333   :  { %7587 = vst [vmem:[#allocation84_spill] sm:$0xff] %v6900_v0  ;;  %v2183_v5 = vmul.f32 %v6547_v40, %v6900_v0  ;;  %2159 = vmatmul.f32.gmra.mxu0 %v1139_v59 }
 0x335   :  { %2229 = vadd.xlane.f32.xlu0 %v2183_v5  ;;  %v2279_v27 = vmul.f32 %v2183_v5, %v2183_v5  ;;  %v6923_v5 = vpop.permute.xlu2 %3071  ;;  %v1791_v28 = vpop.f32.mrf.mxu1 }
 0x336   :  { %7592 = vst [vmem:[#allocation89_spill] sm:$0xff] %v6923_v5 }
 0x337   :  { %2325 = vadd.xlane.f32.xlu2 %v2279_v27 }
 0x338   :  { %v2115_v4 = vpop.f32.mrf.mxu0 }
 0x339   :  { %v6916_v59 = vadd.f32 %v2115_v4, %v2003_v37  ;;  %v1904_v60 = vpop.f32.mrf.mxu2 }
 0x33a   :  { %v2017_v25 = vpop.f32.mrf.mxu3 }
 0x33b   :  { %7590 = vst [vmem:[#allocation87_spill] sm:$0xff] %v6916_v59  ;;  %v2184_v42 = vmul.f32 %v6547_v40, %v6916_v59  ;;  %2162 = vmatmul.f32.gmra.mxu0 %v1148_v19  ;;  %v1783_v19 = vadd.f32 %v6862_v46, %v1670_v51  ;;  %v1673_v46 = vadd.f32 %v6237_v56, %v6086_v53  ;;  %v7596_v56 = vld [vmem:[#allocation19_spill] sm:$0xff] }
 0x33d   :  { %2231 = vadd.xlane.f32.xlu1 %v2184_v42  ;;  %v2280_v27 = vmul.f32 %v2184_v42, %v2184_v42  ;;  %v6936_v61 = vpop.xlane.xlu2 %2201  ;;  %v1896_v26 = vadd.f32 %v6870_v17, %v1783_v19  ;;  %v6939_v42 = vpop.permute.xlu0 %3061  ;;  %v1786_v51 = vadd.f32 %v1785_v54, %v1673_v46  ;;  %v1676_v54 = vadd.f32 %v7596_v56, %v6118_v12 }
 0x33e   :  { %7593 = vst [vmem:[#allocation90_spill] sm:$0xff] %v6939_v42  ;;  %v6948_v17 = vpop.permute.xlu1 %3066 }
 0x33f   :  { %2327 = vadd.xlane.f32.xlu0 %v2280_v27  ;;  %v2009_v33 = vadd.f32 %v6875_v11, %v1896_v26  ;;  %7595 = vst [vmem:[#allocation92_spill] sm:$0xff] %v6948_v17  ;;  %v1899_v0 = vadd.f32 %v1898_v38, %v1786_v51 }
 0x340   :  { %v2118_v37 = vpop.f32.mrf.mxu0 }
 0x341   :  { %v6929_v4 = vadd.f32 %v2118_v37, %v2006_v55  ;;  %v1794_v37 = vpop.f32.mrf.mxu1  ;;  %v2012_v26 = vadd.f32 %v2011_v8, %v1899_v0 }
 0x343   :  { %v2185_v47 = vmul.f32 %v6547_v40, %v6929_v4 }
 0x345   :  { %2233 = vadd.xlane.f32.xlu2 %v2185_v47  ;;  %v2281_v27 = vmul.f32 %v2185_v47, %v2185_v47  ;;  %v1907_v47 = vpop.f32.mrf.mxu2  ;;  %v6952_v5 = vpop.xlane.xlu0 %2297 }
 0x346   :  { %v6960_v51 = vpop.xlane.xlu1 %2299 }
 0x347   :  { %2329 = vadd.xlane.f32.xlu1 %v2281_v27  ;;  %v2020_v27 = vpop.f32.mrf.mxu3 }
 0x348   :  { %v2121_v34 = vpop.f32.mrf.mxu0 }
 0x349   :  { %v6944_v55 = vadd.f32 %v2121_v34, %v2009_v33  ;;  %v1789_v34 = vadd.f32 %v1788_v31, %v1676_v54  ;;  %v1797_v62 = vpop.f32.mrf.mxu1 }
 0x34a   :  { %v6950_v19 = vpop.xlane.xlu2 %2301 }
 0x34b   :  { %7594 = vst [vmem:[#allocation91_spill] sm:$0xff] %v6944_v55  ;;  %v2186_v59 = vmul.f32 %v6547_v40, %v6944_v55  ;;  %v1902_v38 = vadd.f32 %v1901_v35, %v1789_v34 }
 0x34d   :  { %2235 = vadd.xlane.f32.xlu0 %v2186_v59  ;;  %v2282_v11 = vmul.f32 %v2186_v59, %v2186_v59  ;;  %v1910_v8 = vpop.f32.mrf.mxu2  ;;  %v2015_v0 = vadd.f32 %v2014_v1, %v1902_v38 }
 0x34e   :  { %v6972_v1 = vpop.xlane.xlu1 %2205 }
 0x34f   :  { %2331 = vadd.xlane.f32.xlu2 %v2282_v11  ;;  %v6964_v11 = vpop.xlane.xlu0 %2203  ;;  %v2023_v56 = vpop.f32.mrf.mxu3 }
 0x350   :  { %v2124_v53 = vpop.f32.mrf.mxu0 }
 0x351   :  { %v6956_v33 = vadd.f32 %v2124_v53, %v2012_v26  ;;  %v7597_v26 = vld [vmem:[#allocation14_spill] sm:$0xff]  ;;  %v7598_v53 = vld [vmem:[#allocation21_spill] sm:$0xff]  ;;  %v1800_v41 = vpop.f32.mrf.mxu1 }
 0x352   :  { %v6962_v59 = vpop.xlane.xlu2 %2207  ;;  %v1679_v31 = vadd.f32 %v7598_v53, %v7597_v26  ;;  %v7600_v53 = vld [vmem:[#allocation15_spill] sm:$0xff] }
 0x353   :  { %v2187_v46 = vmul.f32 %v6547_v40, %v6956_v33 }
 0x354   :  { %v1792_v10 = vadd.f32 %v1791_v28, %v1679_v31 }
 0x355   :  { %2237 = vadd.xlane.f32.xlu1 %v2187_v46  ;;  %v2283_v18 = vmul.f32 %v2187_v46, %v2187_v46  ;;  %v1913_v28 = vpop.f32.mrf.mxu2 }
 0x356   :  { %v1905_v34 = vadd.f32 %v1904_v60, %v1792_v10 }
 0x357   :  { %2333 = vadd.xlane.f32.xlu0 %v2283_v18  ;;  %v6974_v38 = vpop.xlane.xlu0 %2303  ;;  %v2026_v10 = vpop.f32.mrf.mxu3 }
 0x358   :  { %v2127_v12 = vpop.f32.mrf.mxu0  ;;  %v2018_v50 = vadd.f32 %v2017_v25, %v1905_v34 }
 0x359   :  { %v6968_v54 = vadd.f32 %v2127_v12, %v2015_v0  ;;  %v7601_v0 = vld [vmem:[#allocation23_spill] sm:$0xff] }
 0x35a   :  { %v6976_v18 = vpop.xlane.xlu2 %2209  ;;  %v1682_v12 = vadd.f32 %v7601_v0, %v7600_v53  ;;  %v6984_v21 = vpop.xlane.xlu1 %2305  ;;  %v7604_v53 = vld [vmem:[#allocation25_spill] sm:$0xff] }
 0x35b   :  { %7599 = vst [vmem:[#allocation19_spill] sm:$0xff] %v6968_v54  ;;  %v2188_v35 = vmul.f32 %v6547_v40, %v6968_v54  ;;  %v1685_v0 = vadd.f32 %v7604_v53, %v7603_v52 }
 0x35c   :  { %v1795_v17 = vadd.f32 %v1794_v37, %v1682_v12 }
 0x35d   :  { %2239 = vadd.xlane.f32.xlu2 %v2188_v35  ;;  %v2284_v46 = vmul.f32 %v2188_v35, %v2188_v35  ;;  %v1798_v12 = vadd.f32 %v1797_v62, %v1685_v0 }
 0x35e   :  { %v1908_v25 = vadd.f32 %v1907_v47, %v1795_v17 }
 0x35f   :  { %2335 = vadd.xlane.f32.xlu1 %v2284_v46  ;;  %v1911_v47 = vadd.f32 %v1910_v8, %v1798_v12 }
 0x360   :  { %v2130_v26 = vpop.f32.mrf.mxu0  ;;  %v2021_v34 = vadd.f32 %v2020_v27, %v1908_v25  ;;  %v6986_v46 = vpop.xlane.xlu0 %2211 }
 0x361   :  { %v6980_v31 = vadd.f32 %v2130_v26, %v2018_v50  ;;  %v1803_v50 = vpop.f32.mrf.mxu1  ;;  %v2029_v27 = vpop.f32.mrf.mxu3  ;;  %v2024_v25 = vadd.f32 %v2023_v56, %v1911_v47 }
 0x362   :  { %v6992_v37 = vpop.xlane.xlu2 %2307 }
 0x363   :  { %7602 = vst [vmem:[#allocation14_spill] sm:$0xff] %v6980_v31  ;;  %v2189_v60 = vmul.f32 %v6547_v40, %v6980_v31  ;;  %v1916_v31 = vpop.f32.mrf.mxu2 }
 0x365   :  { %2241 = vadd.xlane.f32.xlu0 %v2189_v60  ;;  %v2285_v35 = vmul.f32 %v2189_v60, %v2189_v60 }
 0x367   :  { %2337 = vadd.xlane.f32.xlu2 %v2285_v35 }
 0x368   :  { %v2133_v39 = vpop.f32.mrf.mxu0  ;;  %v6996_v35 = vpop.xlane.xlu1 %2213 }
 0x369   :  { %v6990_v26 = vadd.f32 %v2133_v39, %v2021_v34  ;;  %v7606_v39 = vld [vmem:[#allocation17_spill] sm:$0xff]  ;;  %v7607_v34 = vld [vmem:[#allocation2_spill] sm:$0xff]  ;;  %v1806_v32 = vpop.f32.mrf.mxu1 }
 0x36a   :  { %v6998_v54 = vpop.xlane.xlu0 %2309  ;;  %v1688_v53 = vadd.f32 %v7607_v34, %v7606_v39 }
 0x36b   :  { %7605 = vst [vmem:[#allocation21_spill] sm:$0xff] %v6990_v26  ;;  %v2190_v17 = vmul.f32 %v6547_v40, %v6990_v26  ;;  %v1919_v56 = vpop.f32.mrf.mxu2 }
 0x36c   :  { %v1801_v0 = vadd.f32 %v1800_v41, %v1688_v53 }
 0x36d   :  { %2243 = vadd.xlane.f32.xlu1 %v2190_v17  ;;  %v2286_v60 = vmul.f32 %v2190_v17, %v2190_v17 }
 0x36e   :  { %v1914_v12 = vadd.f32 %v1913_v28, %v1801_v0 }
 0x36f   :  { %2339 = vadd.xlane.f32.xlu0 %v2286_v60  ;;  %v2032_v60 = vpop.f32.mrf.mxu3 }
 0x370   :  { %v2136_v52 = vpop.f32.mrf.mxu0  ;;  %v7004_v62 = vpop.xlane.xlu2 %2215  ;;  %v2027_v47 = vadd.f32 %v2026_v10, %v1914_v12 }
 0x371   :  { %v7002_v48 = vadd.f32 %v2136_v52, %v2024_v25  ;;  %v7609_v25 = vld [vmem:[#allocation18_spill] sm:$0xff]  ;;  %v7610_v52 = vld [vmem:[#allocation3_spill] sm:$0xff] }
 0x372   :  { %v7008_v3 = vpop.xlane.xlu1 %2311  ;;  %v1691_v34 = vadd.f32 %v7610_v52, %v7609_v25  ;;  %v7612_v25 = vld [vmem:[#allocation20_spill] sm:$0xff] }
 0x373   :  { %7608 = vst [vmem:[#allocation15_spill] sm:$0xff] %v7002_v48  ;;  %v2191_v8 = vmul.f32 %v6547_v40, %v7002_v48  ;;  %v1922_v48 = vpop.f32.mrf.mxu2 }
 0x374   :  { %v1804_v28 = vadd.f32 %v1803_v50, %v1691_v34 }
 0x375   :  { %2245 = vadd.xlane.f32.xlu2 %v2191_v8  ;;  %v2287_v17 = vmul.f32 %v2191_v8, %v2191_v8  ;;  %v1809_v8 = vpop.f32.mrf.mxu1 }
 0x376   :  { %v1917_v12 = vadd.f32 %v1916_v31, %v1804_v28 }
 0x377   :  { %2341 = vadd.xlane.f32.xlu1 %v2287_v17  ;;  %v2035_v52 = vpop.f32.mrf.mxu3 }
 0x378   :  { %v2139_v22 = vpop.f32.mrf.mxu0  ;;  %v2218_v39 = vpop.xlane.xlu0 %2217  ;;  %v2030_v7 = vadd.f32 %v2029_v27, %v1917_v12 }
 0x379   :  { %v7012_v16 = vadd.f32 %v2139_v22, %v2027_v47  ;;  %v7015_v41 = vadd.f32 %v2218_v39, %v6936_v61  ;;  %v7613_v61 = vld [vmem:[#allocation4_spill] sm:$0xff] }
 0x37a   :  { %v2314_v53 = vpop.xlane.xlu2 %2313  ;;  %v1694_v39 = vadd.f32 %v7613_v61, %v7612_v25  ;;  %v7615_v61 = vld [vmem:[#allocation35_spill] sm:$0xff] }
 0x37b   :  { %7611 = vst [vmem:[#allocation23_spill] sm:$0xff] %v7012_v16  ;;  %v2192_v0 = vmul.f32 %v6547_v40, %v7012_v16  ;;  %v7020_v10 = vadd.f32 %v2314_v53, %v6952_v5 }
 0x37c   :  { %v1807_v53 = vadd.f32 %v1806_v32, %v1694_v39 }
 0x37d   :  { %2247 = vadd.xlane.f32.xlu0 %v2192_v0  ;;  %v2288_v17 = vmul.f32 %v2192_v0, %v2192_v0  ;;  %v1812_v12 = vpop.f32.mrf.mxu1 }
 0x37e   :  { %v1920_v27 = vadd.f32 %v1919_v56, %v1807_v53 }
 0x37f   :  { %2343 = vadd.xlane.f32.xlu2 %v2288_v17 }
 0x380   :  { %v2142_v22 = vpop.f32.mrf.mxu0  ;;  %v2220_v47 = vpop.xlane.xlu1 %2219  ;;  %v2033_v17 = vadd.f32 %v2032_v60, %v1920_v27 }
 0x381   :  { %v7024_v50 = vadd.f32 %v2142_v22, %v2030_v7  ;;  %v7027_v34 = vadd.f32 %v2220_v47, %v6964_v11  ;;  %v7614_v22 = vld [vmem:[#allocation22_spill] sm:$0xff]  ;;  %v1925_v47 = vpop.f32.mrf.mxu2 }
 0x382   :  { %v2316_v5 = vpop.xlane.xlu0 %2315  ;;  %v1697_v11 = vadd.f32 %v7615_v61, %v7614_v22  ;;  %v7618_v22 = vld [vmem:[#allocation38_spill] sm:$0xff] }
 0x383   :  { %v2193_v31 = vmul.f32 %v6547_v40, %v7024_v50  ;;  %v7032_v28 = vadd.f32 %v2316_v5, %v6960_v51  ;;  %v2038_v5 = vpop.f32.mrf.mxu3 }
 0x384   :  { %v1810_v51 = vadd.f32 %v1809_v8, %v1697_v11 }
 0x385   :  { %2249 = vadd.xlane.f32.xlu1 %v2193_v31  ;;  %v2289_v0 = vmul.f32 %v2193_v31, %v2193_v31 }
 0x386   :  { %v1923_v53 = vadd.f32 %v1922_v48, %v1810_v51 }
 0x387   :  { %2345 = vadd.xlane.f32.xlu0 %v2289_v0 }
 0x388   :  { %v2145_v25 = vpop.f32.mrf.mxu0  ;;  %v2222_v7 = vpop.xlane.xlu2 %2221  ;;  %v2036_v27 = vadd.f32 %v2035_v52, %v1923_v53 }
 0x389   :  { %v7036_v16 = vadd.f32 %v2145_v25, %v2033_v17  ;;  %v7039_v32 = vadd.f32 %v2222_v7, %v6972_v1  ;;  %v7617_v25 = vld [vmem:[#allocation24_spill] sm:$0xff]  ;;  %v1815_v7 = vpop.f32.mrf.mxu1 }
 0x38a   :  { %v2318_v39 = vpop.xlane.xlu1 %2317  ;;  %v1700_v1 = vadd.f32 %v7618_v22, %v7617_v25 }
 0x38b   :  { %7616 = vst [vmem:[#allocation16_spill] sm:$0xff] %v7036_v16  ;;  %v2194_v56 = vmul.f32 %v6547_v40, %v7036_v16  ;;  %v7044_v60 = vadd.f32 %v2318_v39, %v6950_v19  ;;  %v1928_v19 = vpop.f32.mrf.mxu2  ;;  %v2041_v51 = vpop.f32.mrf.mxu3 }
 0x38c   :  { %v1813_v30 = vadd.f32 %v1812_v12, %v1700_v1 }
 0x38d   :  { %2251 = vadd.xlane.f32.xlu2 %v2194_v56  ;;  %v2290_v31 = vmul.f32 %v2194_v56, %v2194_v56 }
 0x38e   :  { %v1926_v39 = vadd.f32 %v1925_v47, %v1813_v30 }
 0x38f   :  { %2347 = vadd.xlane.f32.xlu1 %v2290_v31 }
 0x390   :  { %v2148_v0 = vpop.f32.mrf.mxu0  ;;  %v2224_v17 = vpop.xlane.xlu0 %2223  ;;  %v2039_v53 = vadd.f32 %v2038_v5, %v1926_v39 }
 0x391   :  { %v7048_v61 = vadd.f32 %v2148_v0, %v2036_v27  ;;  %v7051_v8 = vadd.f32 %v2224_v17, %v6962_v59  ;;  %v7619_v0 = vld [vmem:[#allocation26_spill] sm:$0xff] }
 0x392   :  { %v2320_v11 = vpop.xlane.xlu2 %2319  ;;  %v7620_v59 = vld [vmem:[#allocation42_spill] sm:$0xff] }
 0x393   :  { %v2195_v48 = vmul.f32 %v6547_v40, %v7048_v61  ;;  %v7056_v52 = vadd.f32 %v2320_v11, %v6974_v38  ;;  %v1703_v17 = vadd.f32 %v7620_v59, %v7619_v0  ;;  %v1818_v38 = vpop.f32.mrf.mxu1  ;;  %v1931_v11 = vpop.f32.mrf.mxu2 }
 0x395   :  { %2253 = vadd.xlane.f32.xlu0 %v2195_v48  ;;  %v2291_v56 = vmul.f32 %v2195_v48, %v2195_v48  ;;  %v1816_v1 = vadd.f32 %v1815_v7, %v1703_v17 }
 0x397   :  { %2349 = vadd.xlane.f32.xlu2 %v2291_v56  ;;  %v1929_v5 = vadd.f32 %v1928_v19, %v1816_v1  ;;  %v2044_v56 = vpop.f32.mrf.mxu3 }
 0x398   :  { %v2151_v31 = vpop.f32.mrf.mxu0  ;;  %v2226_v27 = vpop.xlane.xlu1 %2225 }
 0x399   :  { %v7060_v25 = vadd.f32 %v2151_v31, %v2039_v53  ;;  %v7063_v12 = vadd.f32 %v2226_v27, %v6976_v18  ;;  %v2042_v39 = vadd.f32 %v2041_v51, %v1929_v5  ;;  %v7622_v18 = vld [vmem:[#allocation28_spill] sm:$0xff]  ;;  %v7623_v27 = vld [vmem:[#allocation46_spill] sm:$0xff] }
 0x39a   :  { %v2322_v22 = vpop.xlane.xlu0 %2321  ;;  %v1706_v0 = vadd.f32 %v7623_v27, %v7622_v18  ;;  %v7625_v18 = vld [vmem:[#allocation30_spill] sm:$0xff] }
 0x39b   :  { %7621 = vst [vmem:[#allocation25_spill] sm:$0xff] %v7060_v25  ;;  %v2196_v30 = vmul.f32 %v6547_v40, %v7060_v25  ;;  %v7068_v47 = vadd.f32 %v2322_v22, %v6984_v21  ;;  %v1821_v51 = vpop.f32.mrf.mxu1  ;;  %v1934_v5 = vpop.f32.mrf.mxu2 }
 0x39c   :  { %v1819_v21 = vadd.f32 %v1818_v38, %v1706_v0 }
 0x39d   :  { %2255 = vadd.xlane.f32.xlu1 %v2196_v30  ;;  %v2292_v48 = vmul.f32 %v2196_v30, %v2196_v30 }
 0x39e   :  { %v1932_v1 = vadd.f32 %v1931_v11, %v1819_v21  ;;  %v7092_v11 = vld [vmem:[%s7453_s4] ss:$0 sm:$0xff] }
 0x39f   :  { %2351 = vadd.xlane.f32.xlu0 %v2292_v48  ;;  %7628 = vst [vmem:[#allocation18_spill] sm:$0xff] %v7092_v11 }
 0x3a0   :  { %v2154_v53 = vpop.f32.mrf.mxu0  ;;  %v2228_v31 = vpop.xlane.xlu2 %2227  ;;  %v2045_v48 = vadd.f32 %v2044_v56, %v1932_v1 }
 0x3a1   :  { %v7072_v7 = vadd.f32 %v2154_v53, %v2042_v39  ;;  %v7075_v59 = vadd.f32 %v2228_v31, %v6986_v46  ;;  %v7626_v46 = vld [vmem:[#allocation49_spill] sm:$0xff] }
 0x3a2   :  { %v2324_v17 = vpop.xlane.xlu1 %2323  ;;  %v1709_v31 = vadd.f32 %v7626_v46, %v7625_v18 }
 0x3a3   :  { %7624 = vst [vmem:[#allocation17_spill] sm:$0xff] %v7072_v7  ;;  %v2197_v19 = vmul.f32 %v6547_v40, %v7072_v7  ;;  %v7080_v22 = vadd.f32 %v2324_v17, %v6992_v37  ;;  %v2047_v40 = vpop.f32.mrf.mxu3  ;;  %v1824_v1 = vpop.f32.mrf.mxu1 }
 0x3a4   :  { %v1822_v0 = vadd.f32 %v1821_v51, %v1709_v31  ;;  %v7629_v51 = vld [vmem:[#allocation33_spill] sm:$0xff]  ;;  %v1937_v31 = vpop.f32.mrf.mxu2 }
 0x3a5   :  { %2257 = vadd.xlane.f32.xlu2 %v2197_v19  ;;  %v2293_v30 = vmul.f32 %v2197_v19, %v2197_v19 }
 0x3a6   :  { %v1935_v21 = vadd.f32 %v1934_v5, %v1822_v0 }
 0x3a7   :  { %2353 = vadd.xlane.f32.xlu1 %v2293_v30 }
 0x3a8   :  { %v2157_v39 = vpop.f32.mrf.mxu0  ;;  %v2230_v53 = vpop.xlane.xlu0 %2229 }
 0x3a9   :  { %v7084_v27 = vadd.f32 %v2157_v39, %v2045_v48  ;;  %v7087_v38 = vadd.f32 %v2230_v53, %v6996_v35  ;;  %v2048_v35 = vadd.f32 %v2047_v40, %v1935_v21  ;;  %v7630_v39 = vld [vmem:[#allocation52_spill] sm:$0xff] }
 0x3aa   :  { %v2326_v37 = vpop.xlane.xlu2 %2325  ;;  %v1712_v53 = vadd.f32 %v7630_v39, %v7629_v51 }
 0x3ab   :  { %7627 = vst [vmem:[#allocation2_spill] sm:$0xff] %v7084_v27  ;;  %v2198_v56 = vmul.f32 %v7092_v11, %v7084_v27  ;;  %v7097_v17 = vadd.f32 %v2326_v37, %v6998_v54  ;;  %v2050_v40 = vpop.f32.mrf.mxu3 }
 0x3ac   :  { %v1825_v54 = vadd.f32 %v1824_v1, %v1712_v53 }
 0x3ad   :  { %2259 = vadd.xlane.f32.xlu0 %v2198_v56  ;;  %v2294_v19 = vmul.f32 %v2198_v56, %v2198_v56 }
 0x3ae   :  { %v1938_v0 = vadd.f32 %v1937_v31, %v1825_v54 }
 0x3af   :  { %2355 = vadd.xlane.f32.xlu2 %v2294_v19 }
 0x3b0   :  { %v2160_v30 = vpop.f32.mrf.mxu0  ;;  %v2232_v48 = vpop.xlane.xlu1 %2231  ;;  %v2051_v21 = vadd.f32 %v2050_v40, %v1938_v0 }
 0x3b1   :  { %v7101_v18 = vadd.f32 %v2160_v30, %v2048_v35  ;;  %v7104_v46 = vadd.f32 %v2232_v48, %v7004_v62 }
 0x3b2   :  { %v2328_v27 = vpop.xlane.xlu0 %2327 }
 0x3b3   :  { %7631 = vst [vmem:[#allocation3_spill] sm:$0xff] %v7101_v18  ;;  %v2199_v5 = vmul.f32 %v7092_v11, %v7101_v18  ;;  %v7109_v37 = vadd.f32 %v2328_v27, %v7008_v3 }
 0x3b5   :  { %2261 = vadd.xlane.f32.xlu1 %v2199_v5  ;;  %v2295_v56 = vmul.f32 %v2199_v5, %v2199_v5 }
 0x3b7   :  { %2357 = vadd.xlane.f32.xlu0 %v2295_v56 }
 0x3b8   :  { %v2163_v19 = vpop.f32.mrf.mxu0  ;;  %v2234_v30 = vpop.xlane.xlu2 %2233 }
 0x3b9   :  { %v7111_v35 = vadd.f32 %v2163_v19, %v2051_v21 }
 0x3ba   :  { %v2330_v48 = vpop.xlane.xlu1 %2329 }
 0x3bb   :  { %7632 = vst [vmem:[#allocation20_spill] sm:$0xff] %v7111_v35  ;;  %v2200_v62 = vmul.f32 %v7092_v11, %v7111_v35  ;;  %v2393_v35 = vadd.f32 %v7020_v10, %v2330_v48 }
 0x3bd   :  { %2263 = vadd.xlane.f32.xlu2 %v2200_v62  ;;  %v2296_v1 = vmul.f32 %v2200_v62, %v2200_v62  ;;  %v2369_v62 = vadd.f32 %v7015_v41, %v2234_v30 }
 0x3bf   :  { %2359 = vadd.xlane.f32.xlu1 %v2296_v1 }
 0x3c0   :  { %v2236_v51 = vpop.xlane.xlu0 %2235 }
 0x3c1   :  { %v2370_v14 = vadd.f32 %v7027_v34, %v2236_v51 }
 0x3c2   :  { %v2332_v3 = vpop.xlane.xlu2 %2331 }
 0x3c3   :  { %v2394_v45 = vadd.f32 %v7032_v28, %v2332_v3 }
 0x3c8   :  { %v2238_v27 = vpop.xlane.xlu1 %2237 }
 0x3ca   :  { %v2334_v39 = vpop.xlane.xlu0 %2333 }
 0x3cb   :  { %v2395_v34 = vadd.f32 %v7044_v60, %v2334_v39 }
 0x3d0   :  { %v2240_v53 = vpop.xlane.xlu2 %2239 }
 0x3d2   :  { %v2336_v31 = vpop.xlane.xlu1 %2335 }
 0x3d8   :  { %v7115_v54 = vpop.xlane.xlu0 %2241 }
 0x3da   :  { %v7117_v5 = vpop.xlane.xlu2 %2337 }
 0x3e0   :  { %v7119_v40 = vpop.xlane.xlu1 %2243 }
 0x3e2   :  { %v7121_v0 = vpop.xlane.xlu0 %2339 }
 0x3e8   :  { %v7123_v56 = vpop.xlane.xlu2 %2245 }
 0x3ea   :  { %v7125_v21 = vpop.xlane.xlu1 %2341 }
 0x3f0   :  { %v7127_v19 = vpop.xlane.xlu0 %2247 }
 0x3f2   :  { %v7130_v1 = vpop.xlane.xlu2 %2343 }
 0x3f8   :  { %v2250_v18 = vpop.xlane.xlu1 %2249 }
 0x3f9   :  { %v2377_v7 = vadd.f32 %v2369_v62, %v2250_v18 }
 0x3fa   :  { %v2346_v25 = vpop.xlane.xlu0 %2345 }
 0x3fb   :  { %v2409_v2 = vmul.f32 0.013888889, %v2377_v7  ;;  %v2401_v20 = vadd.f32 %v2393_v35, %v2346_v25  ;;  %v2371_v25 = vadd.f32 %v7039_v32, %v2238_v27  ;;  %v2372_v32 = vadd.f32 %v7051_v8, %v2240_v53 }
 0x3fc   :  { %v2396_v27 = vadd.f32 %v7056_v52, %v2336_v31  ;;  %v2373_v52 = vadd.f32 %v7063_v12, %v7115_v54 }
 0x3fd   :  { %v2425_v16 = vmul.f32 %v2409_v2, %v2409_v2  ;;  %v2417_v55 = vmul.f32 0.013888889, %v2401_v20  ;;  %2531 = vperm.xlu2 %3918, %v2409_v2  }
 0x3ff   :  { %v2433_v26 = vsub.f32 %v2417_v55, %v2425_v16 }
 0x400   :  { %v2252_v58 = vpop.xlane.xlu2 %2251 }
 0x401   :  { %v2441_v29 = vadd.f32 1e-05, %v2433_v26  ;;  %v2378_v41 = vadd.f32 %v2370_v14, %v2252_v58 }
 0x402   :  { %v2348_v30 = vpop.xlane.xlu1 %2347 }
 0x403   :  { %3922 = vrsqrt.f32 %v2441_v29  ;;  %v2410_v11 = vmul.f32 0.013888889, %v2378_v41  ;;  %v2402_v42 = vadd.f32 %v2394_v45, %v2348_v30  ;;  %vm2455_vm9 = vweird.f32 %v2441_v29 }
 0x405   :  { %v2426_v10 = vmul.f32 %v2410_v11, %v2410_v11  ;;  %v2418_v18 = vmul.f32 0.013888889, %v2402_v42  ;;  %2536 = vperm.xlu0 %3919, %v2410_v11  }
 0x407   :  { %v2434_v7 = vsub.f32 %v2418_v18, %v2426_v10 }
 0x408   :  { %v2254_v20 = vpop.xlane.xlu0 %2253 }
 0x409   :  { %v3923_v2 = vpop.eup %3922  ;;  %v7137_v16 = vadd.f32 1e-05, %v2434_v7  ;;  %v2379_v55 = vadd.f32 %v2371_v25, %v2254_v20 }
 0x40a   :  { %v2450_v28 = vmul.f32 %v3923_v2, %v2441_v29  ;;  %v2350_v26 = vpop.xlane.xlu2 %2349  ;;  %vm2456_vm8 = vweird.f32 %v3923_v2  ;;  %v2397_v29 = vadd.f32 %v7068_v47, %v7117_v5 }
 0x40b   :  { %3924 = vrsqrt.f32 %v7137_v16  ;;  %v2411_v14 = vmul.f32 0.013888889, %v2379_v55  ;;  %v2403_v58 = vadd.f32 %v2395_v34, %v2350_v26  ;;  %vm2457_vm10 = vmor %vm2455_vm9, %vm2456_vm8  ;;  %vm2465_vm12 = vweird.f32 %v7137_v16 }
 0x40c   :  { %v2451_v45 = vmul.f32 %v3923_v2, %v2450_v28 }
 0x40d   :  { %v2427_v35 = vmul.f32 %v2411_v14, %v2411_v14  ;;  %v2419_v42 = vmul.f32 0.013888889, %v2403_v58  ;;  %2541 = vperm.xlu1 %3920, %v2411_v14  }
 0x40e   :  { %v2452_v11 = vmul.f32 0.5, %v2451_v45 }
 0x40f   :  { %v2435_v48 = vsub.f32 %v2419_v42, %v2427_v35 }
 0x410   :  { %v2256_v51 = vpop.xlane.xlu1 %2255  ;;  %v2453_v3 = vsub.f32 1.5, %v2452_v11 }
 0x411   :  { %v3925_v60 = vpop.eup %3924  ;;  %v7142_v39 = vadd.f32 1e-05, %v2435_v48  ;;  %v2380_v62 = vadd.f32 %v2372_v32, %v2256_v51  ;;  %v2374_v32 = vadd.f32 %v7075_v59, %v7119_v40 }
 0x412   :  { %v2460_v41 = vmul.f32 %v3925_v60, %v7137_v16  ;;  %v2352_v30 = vpop.xlane.xlu0 %2351  ;;  %v2454_v10 = vmul.f32 %v3923_v2, %v2453_v3  ;;  %vm2466_vm11 = vweird.f32 %v3925_v60 }
 0x413   :  { %3926 = vrsqrt.f32 %v7142_v39  ;;  %v2412_v18 = vmul.f32 0.013888889, %v2380_v62  ;;  %v2404_v25 = vadd.f32 %v2396_v27, %v2352_v30  ;;  %v2398_v27 = vadd.f32 %v7080_v22, %v7121_v0  ;;  %vm2467_vm13 = vmor %vm2465_vm12, %vm2466_vm11 }
 0x414   :  { %v2461_v8 = vmul.f32 %v3925_v60, %v2460_v41  ;;  %v2458_v53 = vsel %vm2457_vm10, %v3923_v2, %v2454_v10  ;;  %v2375_v0 = vadd.f32 %v7087_v38, %v7123_v56  ;;  %vm2475_vm0 = vweird.f32 %v7142_v39 }
 0x415   :  { %v2428_v7 = vmul.f32 %v2412_v18, %v2412_v18  ;;  %v2420_v20 = vmul.f32 0.013888889, %v2404_v25  ;;  %2603 = vperm.xlu0 %3919, %v2458_v53   ;;  %2546 = vperm.xlu2 %3918, %v2412_v18  }
 0x416   :  { %v2462_v55 = vmul.f32 0.5, %v2461_v8 }
 0x417   :  { %v2436_v31 = vsub.f32 %v2420_v20, %v2428_v7 }
 0x418   :  { %v2258_v34 = vpop.xlane.xlu2 %2257  ;;  %v2463_v12 = vsub.f32 1.5, %v2462_v55 }
 0x419   :  { %v7148_v28 = vpop.eup %3926  ;;  %v2444_v26 = vadd.f32 1e-05, %v2436_v31  ;;  %v2381_v14 = vadd.f32 %v2373_v52, %v2258_v34 }
 0x41a   :  { %v2470_v2 = vmul.f32 %v7148_v28, %v7142_v39  ;;  %v2354_v58 = vpop.xlane.xlu1 %2353  ;;  %v2464_v5 = vmul.f32 %v3925_v60, %v2463_v12  ;;  %vm2476_vm14 = vweird.f32 %v7148_v28  ;;  %v2376_v39 = vadd.f32 %v7104_v46, %v7127_v19 }
 0x41b   :  { %3928 = vrsqrt.f32 %v2444_v26  ;;  %v2413_v45 = vmul.f32 0.013888889, %v2381_v14  ;;  %v2405_v35 = vadd.f32 %v2397_v29, %v2354_v58  ;;  %vm2477_vm1 = vmor %vm2475_vm0, %vm2476_vm14  ;;  %vm2485_vm2 = vweird.f32 %v2444_v26 }
 0x41c   :  { %v2471_v42 = vmul.f32 %v7148_v28, %v2470_v2  ;;  %v2468_v25 = vsel %vm2467_vm13, %v3925_v60, %v2464_v5  ;;  %v2399_v60 = vadd.f32 %v7097_v17, %v7125_v21 }
 0x41d   :  { %v2429_v54 = vmul.f32 %v2413_v45, %v2413_v45  ;;  %v2421_v11 = vmul.f32 0.013888889, %v2405_v35  ;;  %2551 = vperm.xlu1 %3920, %v2413_v45  }
 0x41e   :  { %v2472_v51 = vmul.f32 0.5, %v2471_v42 }
 0x41f   :  { %v2437_v48 = vsub.f32 %v2421_v11, %v2429_v54 }
 0x420   :  { %v2260_v47 = vpop.xlane.xlu0 %2259  ;;  %v2473_v8 = vsub.f32 1.5, %v2472_v51 }
 0x421   :  { %v3929_v3 = vpop.eup %3928  ;;  %v7159_v62 = vadd.f32 1e-05, %v2437_v48  ;;  %v2382_v41 = vadd.f32 %v2374_v32, %v2260_v47  ;;  %v2400_v48 = vadd.f32 %v7109_v37, %v7130_v1 }
 0x422   :  { %v2480_v30 = vmul.f32 %v3929_v3, %v2444_v26  ;;  %v2356_v10 = vpop.xlane.xlu2 %2355  ;;  %v2474_v52 = vmul.f32 %v7148_v28, %v2473_v8  ;;  %vm2486_vm15 = vweird.f32 %v3929_v3 }
 0x423   :  { %3930 = vrsqrt.f32 %v7159_v62  ;;  %v2414_v18 = vmul.f32 0.013888889, %v2382_v41  ;;  %v2406_v59 = vadd.f32 %v2398_v27, %v2356_v10  ;;  %vm2487_vm3 = vmor %vm2485_vm2, %vm2486_vm15  ;;  %vm2495_vm5 = vweird.f32 %v7159_v62 }
 0x424   :  { %v2481_v40 = vmul.f32 %v3929_v3, %v2480_v30  ;;  %v2478_v35 = vsel %vm2477_vm1, %v7148_v28, %v2474_v52 }
 0x425   :  { %v2430_v53 = vmul.f32 %v2414_v18, %v2414_v18  ;;  %v2422_v7 = vmul.f32 0.013888889, %v2406_v59  ;;  %2608 = vperm.xlu1 %3920, %v2468_v25   ;;  %2556 = vperm.xlu2 %3918, %v2414_v18  }
 0x426   :  { %v2482_v22 = vmul.f32 0.5, %v2481_v40 }
 0x427   :  { %v2438_v20 = vsub.f32 %v2422_v7, %v2430_v53 }
 0x428   :  { %v2262_v16 = vpop.xlane.xlu1 %2261  ;;  %v2483_v31 = vsub.f32 1.5, %v2482_v22 }
 0x429   :  { %v3931_v34 = vpop.eup %3930  ;;  %v2446_v55 = vadd.f32 1e-05, %v2438_v20  ;;  %v2383_v29 = vadd.f32 %v2375_v0, %v2262_v16  ;;  %v2928_v16 = vld [vmem:[%s7452_s3 + $0xf8] sm:$0xff] }
 0x42a   :  { %v2490_v14 = vmul.f32 %v3931_v34, %v7159_v62  ;;  %v2358_v2 = vpop.xlane.xlu0 %2357  ;;  %v2484_v38 = vmul.f32 %v3929_v3, %v2483_v31  ;;  %vm2496_vm4 = vweird.f32 %v3931_v34 }
 0x42b   :  { %3932 = vrsqrt.f32 %v2446_v55  ;;  %v2415_v56 = vmul.f32 0.013888889, %v2383_v29  ;;  %v2407_v58 = vadd.f32 %v2399_v60, %v2358_v2  ;;  %vm2497_vm6 = vmor %vm2495_vm5, %vm2496_vm4  ;;  %vm2505_vm8 = vweird.f32 %v2446_v55  ;;  %v2926_v29 = vld [vmem:[%s7452_s3 + $0xe8] sm:$0xff] }
 0x42c   :  { %v2491_v45 = vmul.f32 %v3931_v34, %v2490_v14  ;;  %v2488_v42 = vsel %vm2487_vm3, %v3929_v3, %v2484_v38  ;;  %v2927_v38 = vld [vmem:[%s7452_s3 + $0xf0] sm:$0xff] }
 0x42d   :  { %v2431_v12 = vmul.f32 %v2415_v56, %v2415_v56  ;;  %v2423_v17 = vmul.f32 0.013888889, %v2407_v58  ;;  %2613 = vperm.xlu2 %3918, %v2478_v35   ;;  %2618 = vperm.xlu0 %3919, %v2488_v42  }
 0x42e   :  { %2561 = vperm.xlu1 %3920, %v2415_v56   ;;  %v2492_v21 = vmul.f32 0.5, %v2491_v45 }
 0x42f   :  { %v2439_v54 = vsub.f32 %v2423_v17, %v2431_v12 }
 0x430   :  { %v2264_v11 = vpop.xlane.xlu2 %2263  ;;  %v2493_v26 = vsub.f32 1.5, %v2492_v21 }
 0x431   :  { %v3933_v32 = vpop.eup %3932  ;;  %v2447_v47 = vadd.f32 1e-05, %v2439_v54  ;;  %v2384_v28 = vadd.f32 %v2376_v39, %v2264_v11 }
 0x432   :  { %v2500_v5 = vmul.f32 %v3933_v32, %v2446_v55  ;;  %v2360_v51 = vpop.xlane.xlu1 %2359  ;;  %v2494_v3 = vmul.f32 %v3931_v34, %v2493_v26  ;;  %vm2506_vm7 = vweird.f32 %v3933_v32 }
 0x433   :  { %3934 = vrsqrt.f32 %v2447_v47  ;;  %v2416_v27 = vmul.f32 0.013888889, %v2384_v28  ;;  %v2408_v41 = vadd.f32 %v2400_v48, %v2360_v51  ;;  %vm2507_vm9 = vmor %vm2505_vm8, %vm2506_vm7  ;;  %vm2515_vm11 = vweird.f32 %v2447_v47 }
 0x434   :  { %v2501_v46 = vmul.f32 %v3933_v32, %v2500_v5  ;;  %v2498_v19 = vsel %vm2497_vm6, %v3931_v34, %v2494_v3 }
 0x435   :  { %v2432_v30 = vmul.f32 %v2416_v27, %v2416_v27  ;;  %v2424_v10 = vmul.f32 0.013888889, %v2408_v41  ;;  %2566 = vperm.xlu2 %3918, %v2416_v27   ;;  %v7633_v41 = vld [vmem:[#allocation27_spill] sm:$0xff] }
 0x436   :  { %2623 = vperm.xlu1 %3920, %v2498_v19   ;;  %v2502_v18 = vmul.f32 0.5, %v2501_v46  ;;  %v7634_v46 = vld [vmem:[#allocation43_spill] sm:$0xff]  ;;  %v7635_v19 = vld [vmem:[#allocation5_spill] sm:$0xff] }
 0x437   :  { %v2440_v59 = vsub.f32 %v2424_v10, %v2432_v30  ;;  %v7636_v30 = vld [vmem:[#allocation13_spill] sm:$0xff]  ;;  %v7637_v10 = vld [vmem:[#allocation34_spill] sm:$0xff] }
 0x438   :  { %v2503_v37 = vsub.f32 1.5, %v2502_v18  ;;  %v7638_v18 = vld [vmem:[#allocation44_spill] sm:$0xff] }
 0x439   :  { %v3935_v1 = vpop.eup %3934  ;;  %v2448_v40 = vadd.f32 1e-05, %v2440_v59 }
 0x43a   :  { %v2510_v25 = vmul.f32 %v3935_v1, %v2447_v47  ;;  %v2504_v8 = vmul.f32 %v3933_v32, %v2503_v37  ;;  %vm2516_vm10 = vweird.f32 %v3935_v1  ;;  %v7639_v37 = vld [vmem:[#allocation50_spill] sm:$0xff] }
 0x43b   :  { %3936 = vrsqrt.f32 %v2448_v40  ;;  %vm2517_vm12 = vmor %vm2515_vm11, %vm2516_vm10  ;;  %vm2525_vm14 = vweird.f32 %v2448_v40 }
 0x43c   :  { %v2511_v62 = vmul.f32 %v3935_v1, %v2510_v25  ;;  %v2508_v53 = vsel %vm2507_vm9, %v3933_v32, %v2504_v8 }
 0x43d   :  { %2628 = vperm.xlu2 %3918, %v2508_v53  }
 0x43e   :  { %v2512_v7 = vmul.f32 0.5, %v2511_v62 }
 0x440   :  { %v2513_v22 = vsub.f32 1.5, %v2512_v7 }
 0x441   :  { %v3937_v0 = vpop.eup %3936 }
 0x442   :  { %v2520_v20 = vmul.f32 %v3937_v0, %v2448_v40  ;;  %v2514_v52 = vmul.f32 %v3935_v1, %v2513_v22  ;;  %vm2526_vm13 = vweird.f32 %v3937_v0 }
 0x443   :  { %vm2527_vm15 = vmor %vm2525_vm14, %vm2526_vm13 }
 0x444   :  { %v2521_v31 = vmul.f32 %v3937_v0, %v2520_v20  ;;  %v2518_v34 = vsel %vm2517_vm12, %v3935_v1, %v2514_v52  ;;  %v7640_v20 = vld [vmem:[#allocation90_spill] sm:$0xff] }
 0x445   :  { %3086 = vperm.xlu2 %3918, %v2928_v16   ;;  %2633 = vperm.xlu0 %3919, %v2518_v34  }
 0x446   :  { %v2522_v60 = vmul.f32 0.5, %v2521_v31 }
 0x448   :  { %v2523_v55 = vsub.f32 1.5, %v2522_v60 }
 0x44a   :  { %v2524_v14 = vmul.f32 %v3937_v0, %v2523_v55 }
 0x44c   :  { %v2528_v2 = vsel %vm2527_vm15, %v3937_v0, %v2524_v14 }
 0x44d   :  { %3076 = vperm.xlu0 %3919, %v2926_v29   ;;  %2638 = vperm.xlu1 %3920, %v2528_v2  }
 0x455   :  { %3081 = vperm.xlu1 %3920, %v2927_v38  }
 0x457   :  { %v2532_v56 = vpop.permute.xlu2 %2531 }
 0x458   :  { %v2569_v12 = vsub.f32 %v6561_v13, %v2532_v56  ;;  %v2577_v17 = vsub.f32 %v6773_v44, %v2532_v56  ;;  %v2585_v21 = vsub.f32 %v6929_v4, %v2532_v56  ;;  %v2593_v39 = vsub.f32 %v7024_v50, %v2532_v56 }
 0x46f   :  { %v7186_v58 = vpop.permute.xlu2 %2546 }
 0x477   :  { %v7188_v45 = vpop.permute.xlu0 %2536 }
 0x47f   :  { %v7190_v35 = vpop.permute.xlu2 %2556  ;;  %v2542_v42 = vpop.permute.xlu1 %2541 }
 0x480   :  { %v2571_v54 = vsub.f32 %v6615_v36, %v2542_v42  ;;  %v2579_v11 = vsub.f32 %v6818_v23, %v2542_v42  ;;  %v2587_v26 = vsub.f32 %v6956_v33, %v2542_v42  ;;  %v2595_v32 = vsub.f32 %v7048_v61, %v2542_v42 }
 0x487   :  { %v2604_v48 = vpop.permute.xlu0 %2603  ;;  %v2614_v47 = vpop.permute.xlu2 %2613 }
 0x488   :  { %v2641_v28 = vmul.f32 %v2604_v48, %v2569_v12  ;;  %v2649_v5 = vmul.f32 %v2604_v48, %v2577_v17  ;;  %v2657_v51 = vmul.f32 %v2604_v48, %v2585_v21  ;;  %v2665_v13 = vmul.f32 %v2604_v48, %v2593_v39  ;;  %v7642_v12 = vld [vmem:[#allocation7_spill] sm:$0xff]  ;;  %v7643_v21 = vld [vmem:[#allocation12_spill] sm:$0xff]  ;;  %v7646_v48 = vld [vmem:[#allocation70_spill] sm:$0xff] }
 0x489   :  { %v2643_v3 = vmul.f32 %v2614_v47, %v2571_v54  ;;  %v2651_v44 = vmul.f32 %v2614_v47, %v2579_v11  ;;  %v2659_v27 = vmul.f32 %v2614_v47, %v2587_v26  ;;  %v2667_v4 = vmul.f32 %v2614_v47, %v2595_v32  ;;  %v7644_v54 = vld [vmem:[#allocation82_spill] sm:$0xff]  ;;  %v7645_v26 = vld [vmem:[#allocation21_spill] sm:$0xff] }
 0x48a   :  { %v2865_v50 = vmul.f32 %v7633_v41, %v2641_v28  ;;  %v2873_v36 = vmul.f32 %v7634_v46, %v2649_v5  ;;  %v2881_v23 = vmul.f32 %v7635_v19, %v2657_v51  ;;  %v2889_v33 = vmul.f32 %v7636_v30, %v2665_v13  ;;  %v7647_v28 = vld [vmem:[#allocation91_spill] sm:$0xff]  ;;  %v7648_v51 = vld [vmem:[#allocation16_spill] sm:$0xff] }
 0x48b   :  { %v2867_v61 = vmul.f32 %v7637_v10, %v2643_v3  ;;  %v2875_v59 = vmul.f32 %v7638_v18, %v2651_v44  ;;  %v2883_v1 = vmul.f32 %v7639_v37, %v2659_v27  ;;  %v2891_v40 = vmul.f32 %v6658_v43, %v2667_v4  ;;  %v7649_v19 = vld [vmem:[#allocation39_spill] sm:$0xff]  ;;  %v7650_v30 = vld [vmem:[#allocation48_spill] sm:$0xff]  ;;  %v7653_v37 = vld [vmem:[#allocation9_spill] sm:$0xff] }
 0x48c   :  { %v3089_v25 = vadd.f32 %v6723_v24, %v2865_v50  ;;  %v3097_v8 = vadd.f32 %v6794_v15, %v2873_v36  ;;  %v3105_v62 = vadd.f32 %v6827_v63, %v2881_v23  ;;  %v3113_v53 = vadd.f32 %v6931_v9, %v2889_v33  ;;  %v7641_v63 = vld [vmem:[#allocation18_spill] sm:$0xff]  ;;  %v7651_v10 = vld [vmem:[#allocation11_spill] sm:$0xff] }
 0x48d   :  { %v3091_v7 = vadd.f32 %v6731_v6, %v2867_v61  ;;  %v3099_v22 = vadd.f32 %v6766_v49, %v2875_v59  ;;  %v3107_v0 = vadd.f32 %v6890_v57, %v2883_v1  ;;  %v3115_v16 = vadd.f32 %v7640_v20, %v2891_v40  ;;  %v7652_v18 = vld [vmem:[#allocation31_spill] sm:$0xff]  ;;  %v7654_v40 = vld [vmem:[#allocation37_spill] sm:$0xff] }
 0x48e   :  { %v3121_v52 = vmax.f32 %v3089_v25, 0.0  ;;  %v3129_v31 = vmax.f32 %v3097_v8, 0.0  ;;  %v3137_v34 = vmax.f32 %v3105_v62, 0.0  ;;  %v3145_v43 = vmax.f32 %v3113_v53, 0.0  ;;  %v7655_v8 = vld [vmem:[#allocation53_spill] sm:$0xff]  ;;  %v7658_v20 = vld [vmem:[#allocation71_spill] sm:$0xff] }
 0x48f   :  { %v3123_v60 = vmax.f32 %v3091_v7, 0.0  ;;  %v3131_v24 = vmax.f32 %v3099_v22, 0.0  ;;  %v7216_v55 = vpop.permute.xlu2 %2566  ;;  %v7218_v15 = vpop.permute.xlu1 %2551  ;;  %v3139_v29 = vmax.f32 %v3107_v0, 0.0  ;;  %v3147_v14 = vmax.f32 %v3115_v16, 0.0  ;;  %v7656_v53 = vld [vmem:[#allocation57_spill] sm:$0xff]  ;;  %v7657_v22 = vld [vmem:[#allocation68_spill] sm:$0xff] }
 0x490   :  { %v3153_v9 = vmul.f32 %v7641_v63, %v3121_v52  ;;  %v3161_v6 = vmul.f32 %v7641_v63, %v3129_v31  ;;  %v3169_v49 = vmul.f32 %v7641_v63, %v3137_v34  ;;  %v3177_v57 = vmul.f32 %v7641_v63, %v3145_v43  ;;  %v7659_v52 = vld [vmem:[#allocation86_spill] sm:$0xff]  ;;  %v7660_v34 = vld [vmem:[#allocation60_spill] sm:$0xff] }
 0x491   :  { %v3155_v2 = vmul.f32 %v7641_v63, %v3123_v60  ;;  %v3163_v38 = vmul.f32 %v7641_v63, %v3131_v24  ;;  %v3171_v56 = vmul.f32 %v7641_v63, %v3139_v29  ;;  %v3179_v42 = vmul.f32 %v7641_v63, %v3147_v14  ;;  %v7661_v60 = vld [vmem:[#allocation74_spill] sm:$0xff] }
 0x492   :  { %3185 = vst [vmem:[%s7454_s5] sm:$0xff] %v3153_v9  ;;  %v2570_v17 = vsub.f32 %v7642_v12, %v7188_v45  ;;  %v2574_v39 = vsub.f32 %v7643_v21, %v7190_v35  ;;  %v2582_v11 = vsub.f32 %v7644_v54, %v7190_v35  ;;  %v2590_v32 = vsub.f32 %v7645_v26, %v7190_v35  ;;  %v7662_v9 = vld [vmem:[#allocation72_spill] sm:$0xff]  ;;  %v7665_v12 = vld [vmem:[#allocation19_spill] sm:$0xff]  ;;  %v7666_v21 = vld [vmem:[#allocation25_spill] sm:$0xff] }
 0x493   :  { %3193 = vst [vmem:[%s7454_s5 + $0x40] sm:$0xff] %v3161_v6  ;;  %v2578_v47 = vsub.f32 %v7646_v48, %v7188_v45  ;;  %v2586_v5 = vsub.f32 %v7647_v28, %v7188_v45  ;;  %v2594_v13 = vsub.f32 %v7648_v51, %v7188_v45  ;;  %v2572_v1 = vsub.f32 %v7653_v37, %v7186_v58 }
 0x494   :  { %3201 = vst [vmem:[%s7454_s5 + $0x80] sm:$0xff] %v3169_v49  ;;  %v2580_v24 = vsub.f32 %v7661_v60, %v7186_v58  ;;  %v7663_v49 = vld [vmem:[#allocation80_spill] sm:$0xff] }
 0x495   :  { %3209 = vst [vmem:[%s7454_s5 + $0xc0] sm:$0xff] %v3177_v57  ;;  %v7664_v57 = vld [vmem:[#allocation85_spill] sm:$0xff] }
 0x496   :  { %3187 = vst [vmem:[%s7454_s5 + $0x10] sm:$0xff] %v3155_v2 }
 0x497   :  { %3195 = vst [vmem:[%s7454_s5 + $0x50] sm:$0xff] %v3163_v38  ;;  %v7260_v3 = vpop.permute.xlu2 %2628  ;;  %v2609_v44 = vpop.permute.xlu1 %2608 }
 0x498   :  { %3203 = vst [vmem:[%s7454_s5 + $0x90] sm:$0xff] %v3171_v56  ;;  %v2646_v27 = vmul.f32 %v7260_v3, %v2574_v39  ;;  %v2654_v4 = vmul.f32 %v7260_v3, %v2582_v11  ;;  %v2662_v41 = vmul.f32 %v7260_v3, %v2590_v32  ;;  %v2642_v50 = vmul.f32 %v2609_v44, %v2570_v17 }
 0x499   :  { %3211 = vst [vmem:[%s7454_s5 + $0xd0] sm:$0xff] %v3179_v42  ;;  %v2650_v45 = vmul.f32 %v2609_v44, %v2578_v47  ;;  %v2658_v46 = vmul.f32 %v2609_v44, %v2586_v5  ;;  %v2666_v36 = vmul.f32 %v2609_v44, %v2594_v13  ;;  %v2588_v17 = vsub.f32 %v7665_v12, %v7186_v58 }
 0x49a   :  { %v2870_v23 = vmul.f32 %v7649_v19, %v2646_v27  ;;  %v2878_v33 = vmul.f32 %v7650_v30, %v2654_v4  ;;  %v2886_v61 = vmul.f32 %v7651_v10, %v2662_v41  ;;  %v2866_v59 = vmul.f32 %v7652_v18, %v2642_v50  ;;  %v7667_v50 = vld [vmem:[#allocation29_spill] sm:$0xff] }
 0x49b   :  { %v2874_v25 = vmul.f32 %v7654_v40, %v2650_v45  ;;  %v2882_v62 = vmul.f32 %v7655_v8, %v2658_v46  ;;  %v2890_v7 = vmul.f32 %v7656_v53, %v2666_v36  ;;  %v2596_v39 = vsub.f32 %v7666_v21, %v7186_v58  ;;  %v7668_v36 = vld [vmem:[#allocation47_spill] sm:$0xff] }
 0x49c   :  { %v3094_v0 = vadd.f32 %v7657_v22, %v2870_v23  ;;  %v3102_v16 = vadd.f32 %v7658_v20, %v2878_v33  ;;  %v3110_v31 = vadd.f32 %v7659_v52, %v2886_v61  ;;  %v3090_v43 = vadd.f32 %v7660_v34, %v2866_v59  ;;  %v7669_v23 = vld [vmem:[#allocation6_spill] sm:$0xff]  ;;  %v7670_v33 = vld [vmem:[#allocation56_spill] sm:$0xff]  ;;  %v7671_v61 = vld [vmem:[#allocation67_spill] sm:$0xff] }
 0x49d   :  { %v3098_v6 = vadd.f32 %v7662_v9, %v2874_v25  ;;  %v3106_v29 = vadd.f32 %v7663_v49, %v2882_v62  ;;  %v3114_v14 = vadd.f32 %v7664_v57, %v2890_v7  ;;  %v7672_v59 = vld [vmem:[#allocation73_spill] sm:$0xff]  ;;  %v7674_v25 = vld [vmem:[#allocation92_spill] sm:$0xff]  ;;  %v7675_v62 = vld [vmem:[#allocation10_spill] sm:$0xff] }
 0x49e   :  { %v3126_v2 = vmax.f32 %v3094_v0, 0.0  ;;  %v3134_v38 = vmax.f32 %v3102_v16, 0.0  ;;  %v3142_v56 = vmax.f32 %v3110_v31, 0.0  ;;  %v3122_v42 = vmax.f32 %v3090_v43, 0.0  ;;  %v7676_v7 = vld [vmem:[#allocation78_spill] sm:$0xff]  ;;  %v7678_v52 = vld [vmem:[#allocation17_spill] sm:$0xff] }
 0x49f   :  { %v3130_v54 = vmax.f32 %v3098_v6, 0.0  ;;  %v3138_v11 = vmax.f32 %v3106_v29, 0.0  ;;  %v2619_v26 = vpop.permute.xlu0 %2618  ;;  %v3146_v28 = vmax.f32 %v3114_v14, 0.0  ;;  %v2573_v53 = vsub.f32 %v7675_v62, %v7218_v15  ;;  %v7677_v0 = vld [vmem:[#allocation14_spill] sm:$0xff]  ;;  %v7692_v62 = vld [vmem:[#allocation51_spill] sm:$0xff] }
 0x4a0   :  { %v3158_v32 = vmul.f32 %v7641_v63, %v3126_v2  ;;  %v3166_v48 = vmul.f32 %v7641_v63, %v3134_v38  ;;  %v3174_v47 = vmul.f32 %v7641_v63, %v3142_v56  ;;  %v7296_v5 = vpop.permute.xlu1 %2561  ;;  %v3154_v51 = vmul.f32 %v7641_v63, %v3122_v42  ;;  %v7679_v38 = vld [vmem:[#allocation36_spill] sm:$0xff]  ;;  %v7680_v42 = vld [vmem:[#allocation41_spill] sm:$0xff] }
 0x4a1   :  { %v2644_v13 = vmul.f32 %v2619_v26, %v2572_v1  ;;  %v3162_v58 = vmul.f32 %v7641_v63, %v3130_v54  ;;  %v2652_v44 = vmul.f32 %v2619_v26, %v2580_v24  ;;  %v2660_v27 = vmul.f32 %v2619_v26, %v2588_v17  ;;  %v7673_v1 = vld [vmem:[#allocation77_spill] sm:$0xff]  ;;  %v7681_v17 = vld [vmem:[#allocation54_spill] sm:$0xff] }
 0x4a2   :  { %3190 = vst [vmem:[%s7454_s5 + $0x28] sm:$0xff] %v3158_v32  ;;  %v2668_v4 = vmul.f32 %v2619_v26, %v2596_v39  ;;  %v3170_v41 = vmul.f32 %v7641_v63, %v3138_v11  ;;  %v3178_v46 = vmul.f32 %v7641_v63, %v3146_v28  ;;  %v2581_v22 = vsub.f32 %v7676_v7, %v7218_v15  ;;  %v7682_v39 = vld [vmem:[#allocation59_spill] sm:$0xff] }
 0x4a3   :  { %3198 = vst [vmem:[%s7454_s5 + $0x68] sm:$0xff] %v3166_v48  ;;  %v2868_v45 = vmul.f32 %v7667_v50, %v2644_v13  ;;  %v2876_v19 = vmul.f32 %v7668_v36, %v2652_v44  ;;  %v2884_v30 = vmul.f32 %v7669_v23, %v2660_v27  ;;  %v2589_v20 = vsub.f32 %v7677_v0, %v7218_v15  ;;  %v7683_v11 = vld [vmem:[#allocation63_spill] sm:$0xff]  ;;  %v7687_v36 = vld [vmem:[#allocation64_spill] sm:$0xff] }
 0x4a4   :  { %3206 = vst [vmem:[%s7454_s5 + $0xa8] sm:$0xff] %v3174_v47  ;;  %v2892_v10 = vmul.f32 %v7670_v33, %v2668_v4  ;;  %v2597_v31 = vsub.f32 %v7678_v52, %v7218_v15  ;;  %v7684_v32 = vld [vmem:[#allocation75_spill] sm:$0xff]  ;;  %v7688_v23 = vld [vmem:[#allocation84_spill] sm:$0xff] }
 0x4a5   :  { %3186 = vst [vmem:[%s7454_s5 + $0x8] sm:$0xff] %v3154_v51  ;;  %v3092_v18 = vadd.f32 %v7671_v61, %v2868_v45  ;;  %v3100_v37 = vadd.f32 %v7672_v59, %v2876_v19  ;;  %v3108_v40 = vadd.f32 %v7673_v1, %v2884_v30  ;;  %v7685_v47 = vld [vmem:[#allocation83_spill] sm:$0xff]  ;;  %v7686_v51 = vld [vmem:[#allocation89_spill] sm:$0xff]  ;;  %v2575_v19 = vsub.f32 %v7687_v36, %v7296_v5  ;;  %v7695_v52 = vld [vmem:[#allocation76_spill] sm:$0xff] }
 0x4a6   :  { %3194 = vst [vmem:[%s7454_s5 + $0x48] sm:$0xff] %v3162_v58  ;;  %v3116_v8 = vadd.f32 %v7674_v25, %v2892_v10  ;;  %v2583_v30 = vsub.f32 %v7688_v23, %v7296_v5  ;;  %v7689_v33 = vld [vmem:[#allocation15_spill] sm:$0xff]  ;;  %v7691_v25 = vld [vmem:[#allocation32_spill] sm:$0xff] }
 0x4a7   :  { %3202 = vst [vmem:[%s7454_s5 + $0x88] sm:$0xff] %v3170_v41  ;;  %v3124_v16 = vmax.f32 %v3092_v18, 0.0  ;;  %v3132_v34 = vmax.f32 %v3100_v37, 0.0  ;;  %v3140_v43 = vmax.f32 %v3108_v40, 0.0  ;;  %v2591_v10 = vsub.f32 %v7689_v33, %v7296_v5  ;;  %v7690_v18 = vld [vmem:[#allocation2_spill] sm:$0xff]  ;;  %v7693_v7 = vld [vmem:[#allocation55_spill] sm:$0xff] }
 0x4a8   :  { %3210 = vst [vmem:[%s7454_s5 + $0xc8] sm:$0xff] %v3178_v46  ;;  %v3148_v60 = vmax.f32 %v3116_v8, 0.0  ;;  %v2624_v24 = vpop.permute.xlu1 %2623  ;;  %v2598_v59 = vsub.f32 %v7690_v18, %v7190_v35 }
 0x4a9   :  { %v3156_v9 = vmul.f32 %v7641_v63, %v3124_v16  ;;  %v2645_v6 = vmul.f32 %v2624_v24, %v2573_v53  ;;  %v2653_v49 = vmul.f32 %v2624_v24, %v2581_v22  ;;  %v2661_v29 = vmul.f32 %v2624_v24, %v2589_v20  ;;  %v7694_v20 = vld [vmem:[#allocation69_spill] sm:$0xff] }
 0x4aa   :  { %v3164_v57 = vmul.f32 %v7641_v63, %v3132_v34  ;;  %v3172_v14 = vmul.f32 %v7641_v63, %v3140_v43  ;;  %v3180_v2 = vmul.f32 %v7641_v63, %v3148_v60  ;;  %v2669_v15 = vmul.f32 %v2624_v24, %v2597_v31  ;;  %v7696_v34 = vld [vmem:[#allocation81_spill] sm:$0xff]  ;;  %v7697_v60 = vld [vmem:[#allocation66_spill] sm:$0xff] }
 0x4ab   :  { %3188 = vst [vmem:[%s7454_s5 + $0x18] sm:$0xff] %v3156_v9  ;;  %v2869_v56 = vmul.f32 %v7679_v38, %v2645_v6  ;;  %v2877_v12 = vmul.f32 %v7680_v42, %v2653_v49  ;;  %v2885_v21 = vmul.f32 %v7681_v17, %v2661_v29  ;;  %v2670_v0 = vmul.f32 %v7260_v3, %v2598_v59  ;;  %v7698_v49 = vld [vmem:[#allocation61_spill] sm:$0xff] }
 0x4ac   :  { %3196 = vst [vmem:[%s7454_s5 + $0x58] sm:$0xff] %v3164_v57  ;;  %v2893_v54 = vmul.f32 %v7682_v39, %v2669_v15  ;;  %v2576_v35 = vsub.f32 %v7697_v60, %v7216_v55  ;;  %v7699_v57 = vld [vmem:[#allocation87_spill] sm:$0xff]  ;;  %v7701_v15 = vld [vmem:[#allocation20_spill] sm:$0xff] }
 0x4ad   :  { %3204 = vst [vmem:[%s7454_s5 + $0x98] sm:$0xff] %v3172_v14  ;;  %v3093_v26 = vadd.f32 %v7683_v11, %v2869_v56  ;;  %v3101_v48 = vadd.f32 %v7684_v32, %v2877_v12  ;;  %v3109_v28 = vadd.f32 %v7685_v47, %v2885_v21  ;;  %v2894_v29 = vmul.f32 %v7698_v49, %v2670_v0  ;;  %v7702_v56 = vld [vmem:[#allocation3_spill] sm:$0xff] }
 0x4ae   :  { %3212 = vst [vmem:[%s7454_s5 + $0xd8] sm:$0xff] %v3180_v2  ;;  %v3117_v13 = vadd.f32 %v7686_v51, %v2893_v54  ;;  %v2584_v14 = vsub.f32 %v7699_v57, %v7216_v55  ;;  %v7700_v2 = vld [vmem:[#allocation23_spill] sm:$0xff]  ;;  %v2600_v38 = vsub.f32 %v7701_v15, %v7216_v55  ;;  %v2599_v42 = vsub.f32 %v7702_v56, %v7296_v5  ;;  %v7703_v5 = vld [vmem:[#allocation40_spill] sm:$0xff] }
 0x4af   :  { %v3125_v58 = vmax.f32 %v3093_v26, 0.0  ;;  %v3133_v44 = vmax.f32 %v3101_v48, 0.0  ;;  %v3141_v27 = vmax.f32 %v3109_v28, 0.0  ;;  %v2592_v3 = vsub.f32 %v7700_v2, %v7216_v55 }
 0x4b0   :  { %v3149_v4 = vmax.f32 %v3117_v13, 0.0  ;;  %v7704_v13 = vld [vmem:[#allocation45_spill] sm:$0xff] }
 0x4b1   :  { %v3157_v41 = vmul.f32 %v7641_v63, %v3125_v58  ;;  %v3165_v50 = vmul.f32 %v7641_v63, %v3133_v44  ;;  %v3173_v45 = vmul.f32 %v7641_v63, %v3141_v27  ;;  %v7705_v44 = vld [vmem:[#allocation8_spill] sm:$0xff] }
 0x4b2   :  { %v3181_v46 = vmul.f32 %v7641_v63, %v3149_v4  ;;  %v7706_v4 = vld [vmem:[#allocation62_spill] sm:$0xff] }
 0x4b3   :  { %3189 = vst [vmem:[%s7454_s5 + $0x20] sm:$0xff] %v3157_v41 }
 0x4b4   :  { %3197 = vst [vmem:[%s7454_s5 + $0x60] sm:$0xff] %v3165_v50  ;;  %v3087_v50 = vpop.permute.xlu2 %3086 }
 0x4b5   :  { %3205 = vst [vmem:[%s7454_s5 + $0xa0] sm:$0xff] %v3173_v45 }
 0x4b6   :  { %3213 = vst [vmem:[%s7454_s5 + $0xe0] sm:$0xff] %v3181_v46  ;;  %v7707_v46 = vld [vmem:[#allocation65_spill] sm:$0xff] }
 0x4b7   :  { %v2634_v61 = vpop.permute.xlu0 %2633 }
 0x4b8   :  { %v2647_v37 = vmul.f32 %v2634_v61, %v2575_v19  ;;  %v2655_v1 = vmul.f32 %v2634_v61, %v2583_v30  ;;  %v2663_v40 = vmul.f32 %v2634_v61, %v2591_v10  ;;  %v2671_v28 = vmul.f32 %v2634_v61, %v2599_v42  ;;  %v7708_v19 = vld [vmem:[#allocation79_spill] sm:$0xff]  ;;  %v7709_v30 = vld [vmem:[#allocation88_spill] sm:$0xff]  ;;  %v7710_v61 = vld [vmem:[#allocation58_spill] sm:$0xff] }
 0x4ba   :  { %v2871_v8 = vmul.f32 %v7691_v25, %v2647_v37  ;;  %v2879_v53 = vmul.f32 %v7692_v62, %v2655_v1  ;;  %v2887_v22 = vmul.f32 %v7693_v7, %v2663_v40  ;;  %v2895_v18 = vmul.f32 %v7710_v61, %v2671_v28 }
 0x4bc   :  { %v3095_v16 = vadd.f32 %v7694_v20, %v2871_v8  ;;  %v3103_v31 = vadd.f32 %v7695_v52, %v2879_v53  ;;  %v3111_v43 = vadd.f32 %v7696_v34, %v2887_v22 }
 0x4be   :  { %v3127_v24 = vmax.f32 %v3095_v16, 0.0  ;;  %v3135_v9 = vmax.f32 %v3103_v31, 0.0  ;;  %v3143_v6 = vmax.f32 %v3111_v43, 0.0 }
 0x4bf   :  { %v3077_v12 = vpop.permute.xlu0 %3076  ;;  %v2639_v17 = vpop.permute.xlu1 %2638 }
 0x4c0   :  { %v3159_v21 = vmul.f32 %v7641_v63, %v3127_v24  ;;  %v3167_v39 = vmul.f32 %v7641_v63, %v3135_v9  ;;  %v3175_v54 = vmul.f32 %v7641_v63, %v3143_v6  ;;  %v3118_v11 = vadd.f32 %v3077_v12, %v2894_v29 }
 0x4c1   :  { %v2648_v26 = vmul.f32 %v2639_v17, %v2576_v35  ;;  %v2656_v32 = vmul.f32 %v2639_v17, %v2584_v14  ;;  %v2664_v48 = vmul.f32 %v2639_v17, %v2592_v3  ;;  %v2672_v47 = vmul.f32 %v2639_v17, %v2600_v38 }
 0x4c2   :  { %3191 = vst [vmem:[%s7454_s5 + $0x30] sm:$0xff] %v3159_v21  ;;  %v3150_v55 = vmax.f32 %v3118_v11, 0.0 }
 0x4c3   :  { %3199 = vst [vmem:[%s7454_s5 + $0x70] sm:$0xff] %v3167_v39  ;;  %v2872_v51 = vmul.f32 %v7703_v5, %v2648_v26  ;;  %v2880_v58 = vmul.f32 %v7704_v13, %v2656_v32  ;;  %v2888_v27 = vmul.f32 %v7705_v44, %v2664_v48  ;;  %v2896_v41 = vmul.f32 %v7706_v4, %v2672_v47 }
 0x4c4   :  { %3207 = vst [vmem:[%s7454_s5 + $0xb0] sm:$0xff] %v3175_v54  ;;  %v3182_v45 = vmul.f32 %v7641_v63, %v3150_v55 }
 0x4c5   :  { %v3096_v36 = vadd.f32 %v7707_v46, %v2872_v51  ;;  %v3104_v23 = vadd.f32 %v7708_v19, %v2880_v58  ;;  %v3112_v33 = vadd.f32 %v7709_v30, %v2888_v27  ;;  %v3120_v10 = vadd.f32 %v3087_v50, %v2896_v41 }
 0x4c6   :  { %3214 = vst [vmem:[%s7454_s5 + $0xe8] sm:$0xff] %v3182_v45 }
 0x4c7   :  { %v3128_v59 = vmax.f32 %v3096_v36, 0.0  ;;  %v3136_v37 = vmax.f32 %v3104_v23, 0.0  ;;  %v3144_v1 = vmax.f32 %v3112_v33, 0.0  ;;  %v3152_v40 = vmax.f32 %v3120_v10, 0.0  ;;  %v3082_v25 = vpop.permute.xlu1 %3081 }
 0x4c8   :  { %v3119_v8 = vadd.f32 %v3082_v25, %v2895_v18 }
 0x4c9   :  { %v3160_v62 = vmul.f32 %v7641_v63, %v3128_v59  ;;  %v3168_v53 = vmul.f32 %v7641_v63, %v3136_v37  ;;  %v3176_v7 = vmul.f32 %v7641_v63, %v3144_v1  ;;  %v3184_v22 = vmul.f32 %v7641_v63, %v3152_v40 }
 0x4ca   :  { %v3151_v0 = vmax.f32 %v3119_v8, 0.0 }
 0x4cb   :  { %3192 = vst [vmem:[%s7454_s5 + $0x38] sm:$0xff] %v3160_v62 }
 0x4cc   :  { %3200 = vst [vmem:[%s7454_s5 + $0x78] sm:$0xff] %v3168_v53  ;;  %v3183_v20 = vmul.f32 %v7641_v63, %v3151_v0 }
 0x4cd   :  { %3208 = vst [vmem:[%s7454_s5 + $0xb8] sm:$0xff] %v3176_v7 }
 0x4ce   :  { %3216 = vst [vmem:[%s7454_s5 + $0xf8] sm:$0xff] %v3184_v22 }
 0x4cf   :  { %3215 = vst [vmem:[%s7454_s5 + $0xf0] sm:$0xff] %v3183_v20 }

// kernel: decoder_forward.8
= control target key start
LH: loop header
LB: loop body
LE: loop exit
PB: predicated region body
PF: predicated region fallthrough
CT: control target
= control target key end

     0   :  { %s2181_s30 = smov 127   ;;  %s2182_s10 = smov 126   ;;  %vm101_vm0 = vcmask 1039360   ;;  %vm174_vm1 = vcmask 1031168   ;;  %vm247_vm2 = vcmask 932864   ;;  %vm539_vm3 = vcmask 809984   ;;  %s4039_s0 = inlined_call_operand.vmem [shape: f32[32,542], index: 0, kind: input, shape index: {}]   ;;  %s4040_s1 = inlined_call_operand.vmem [shape: f32[64,288], index: 1, kind: input, shape index: {}]   ;;  %s4041_s2 = inlined_call_operand.vmem [shape: f32[64,1], index: 2, kind: input, shape index: {}]   ;;  %s4042_s4 = inlined_call_operand.vmem [shape: f32[1,512], index: 4, kind: input, shape index: {}]   ;;  %s4043_s3 = inlined_call_operand.vmem [shape: f32[64,1], index: 3, kind: input, shape index: {}]   ;;  %s4044_s5 = inlined_call_operand.vmem [shape: f32[64,512], index: 5, kind: output, shape index: {}]  }
   0x1   :  { %v2223_v0 = vld [vmem:[%s4039_s0 + $0x40] sm:$0xff]  ;;  %v2228_v1 = vld [vmem:[%s4039_s0 + $0x48] sm:$0xff]  ;;  %v2262_v9 = vld [vmem:[%s4039_s0 + $0x50] sm:$0xff]  ;;  %s2183_s11 = smov 114   ;;  %s2185_s12 = smov 100   ;;  %vm612_vm4 = vcmask 801792  }
   0x2   :  { %v2233_v2 = vld [vmem:[%s4039_s0 + $0x28] sm:$0xff]  ;;  %v1786_v3 = vpack.i.bf16 %v2228_v1, %v2223_v0  ;;  %v2240_v4 = vld [vmem:[%s4039_s0 + $0x20] sm:$0xff]  ;;  %v2270_v10 = vld [vmem:[%s4039_s0 + $0x58] sm:$0xff]  ;;  %s2186_s13 = smov 98   ;;  %s2187_s14 = smov 112   ;;  %vm466_vm5 = vcmask 818176  }
   0x3   :  { %v2245_v5 = vld [vmem:[%s4039_s0] sm:$0xff]  ;;  %v2250_v6 = vld [vmem:[%s4039_s0 + $0x8] sm:$0xff]  ;;  %v1776_v7 = vpack.i.bf16 %v2233_v2, %v2240_v4  ;;  %v2275_v11 = vld [vmem:[%s4039_s0 + $0x30] sm:$0xff]  ;;  %v2294_v15 = vpack.i.bf16 %v2270_v10, %v2262_v9  ;;  %s2188_s15 = smov 113   ;;  %vm393_vm6 = vcmask 916480   ;;  %vm320_vm7 = vcmask 924672  }
   0x4   :  { %v2256_v8 = vpack.i.bf16 %v2250_v6, %v2245_v5  ;;  %1787 = vrot.lane.b32.xlu2 %v1786_v3, %s2181_s30  ;;  %v2280_v12 = vld [vmem:[%s4039_s0 + $0x38] sm:$0xff]  ;;  %v2285_v13 = vld [vmem:[%s4039_s0 + $0x10] sm:$0xff]  ;;  %v2305_v18 = vld [vmem:[%s4039_s0 + $0x80] sm:$0xff]  ;;  %v1916_v33 = vpack.i.bf16 %v2275_v11, %v2233_v2  ;;  %vm669_vm8 = vcmask 261120  }
   0x5   :  { %1777 = vrot.lane.b32.xlu1 %v1776_v7, %s2181_s30  ;;  %v2290_v14 = vld [vmem:[%s4039_s0 + $0x18] sm:$0xff]  ;;  %v1781_v16 = vpack.i.bf16 %v2280_v12, %v2275_v11  ;;  %v2312_v19 = vld [vmem:[%s4039_s0 + $0x88] sm:$0xff]  ;;  %v2322_v21 = vld [vmem:[%s4039_s0 + $0x70] sm:$0xff] }
   0x6   :  { %1767 = vrot.lane.b32.xlu0 %v2256_v8, %s2181_s30  ;;  %v1771_v17 = vpack.i.bf16 %v2290_v14, %v2285_v13  ;;  %v2317_v20 = vld [vmem:[%s4039_s0 + $0x78] sm:$0xff]  ;;  %v2327_v22 = vld [vmem:[%s4039_s0 + $0x60] sm:$0xff]  ;;  %v2332_v23 = vld [vmem:[%s4039_s0 + $0x68] sm:$0xff]  ;;  %v1806_v24 = vpack.i.bf16 %v2312_v19, %v2305_v18 }
   0x7   :  { %v1801_v25 = vpack.i.bf16 %v2317_v20, %v2322_v21  ;;  %v1796_v26 = vpack.i.bf16 %v2332_v23, %v2327_v22  ;;  %v2346_v27 = vld [vmem:[%s4039_s0 + $0x90] sm:$0xff]  ;;  %v2351_v28 = vld [vmem:[%s4039_s0 + $0x98] sm:$0xff]  ;;  %v1896_v30 = vpack.i.bf16 %v2305_v18, %v2327_v22  ;;  %v1906_v31 = vpack.i.bf16 %v2305_v18, %v2317_v20 }
   0x8   :  { %v1811_v29 = vpack.i.bf16 %v2351_v28, %v2346_v27  ;;  %v1901_v32 = vpack.i.bf16 %v2317_v20, %v2312_v19  ;;  %v2428_v47 = vpack.i.bf16 %v2285_v13, %v2332_v23  ;;  %v2011_v59 = vpack.i.bf16 %v2280_v12, %v2346_v27 }
   0x9   :  { %v2439_v60 = vpack.i.bf16 %v2327_v22, %v2312_v19 }
   0xc   :  { %1792 = vrot.lane.b32.xlu2 %v2294_v15, %s2181_s30 }
   0xd   :  { %1782 = vrot.lane.b32.xlu1 %v1781_v16, %s2181_s30 }
   0xe   :  { %1772 = vrot.lane.b32.xlu0 %v1771_v17, %s2181_s30 }
  0x14   :  { %1807 = vrot.lane.b32.xlu2 %v1806_v24, %s2181_s30 }
  0x15   :  { %1802 = vrot.lane.b32.xlu1 %v1801_v25, %s2181_s30 }
  0x16   :  { %1797 = vrot.lane.b32.xlu0 %v1796_v26, %s2181_s30 }
  0x1c   :  { %1822 = vrot.lane.b32.xlu2 %v1771_v17, %s2182_s10 }
  0x1d   :  { %1817 = vrot.lane.b32.xlu1 %v2256_v8, %s2182_s10 }
  0x1e   :  { %1812 = vrot.lane.b32.xlu0 %v1811_v29, %s2181_s30  ;;  %s2184_s30 = smov 99  }
  0x24   :  { %1837 = vrot.lane.b32.xlu2 %v1786_v3, %s2182_s10 }
  0x25   :  { %1832 = vrot.lane.b32.xlu1 %v1781_v16, %s2182_s10 }
  0x26   :  { %1827 = vrot.lane.b32.xlu0 %v1776_v7, %s2182_s10 }
  0x2c   :  { %1852 = vrot.lane.b32.xlu2 %v1801_v25, %s2182_s10 }
  0x2d   :  { %1847 = vrot.lane.b32.xlu1 %v1796_v26, %s2182_s10 }
  0x2e   :  { %1842 = vrot.lane.b32.xlu0 %v2294_v15, %s2182_s10 }
  0x34   :  { %1867 = vrot.lane.b32.xlu2 %v2256_v8, %s2183_s11 }
  0x35   :  { %1862 = vrot.lane.b32.xlu1 %v1811_v29, %s2182_s10 }
  0x36   :  { %1857 = vrot.lane.b32.xlu0 %v1806_v24, %s2182_s10 }
  0x3c   :  { %1882 = vrot.lane.b32.xlu2 %v1781_v16, %s2183_s11 }
  0x3d   :  { %1877 = vrot.lane.b32.xlu1 %v1776_v7, %s2183_s11 }
  0x3e   :  { %1872 = vrot.lane.b32.xlu0 %v1771_v17, %s2183_s11 }
  0x44   :  { %1897 = vrot.lane.b32.xlu2 %v1896_v30, %s2183_s11  ;;  %v2026_v30 = vpack.i.bf16 %v2290_v14, %v2223_v0 }
  0x45   :  { %1892 = vrot.lane.b32.xlu1 %v2294_v15, %s2183_s11 }
  0x46   :  { %1887 = vrot.lane.b32.xlu0 %v1786_v3, %s2183_s11 }
  0x4c   :  { %1912 = vrot.lane.b32.xlu2 %v2294_v15, %s2184_s30 }
  0x4d   :  { %1907 = vrot.lane.b32.xlu1 %v1906_v31, %s2184_s30 }
  0x4e   :  { %1902 = vrot.lane.b32.xlu0 %v1901_v32, %s2183_s11 }
  0x54   :  { %1927 = vrot.lane.b32.xlu2 %v1906_v31, %s2185_s12 }
  0x55   :  { %1922 = vrot.lane.b32.xlu1 %v2256_v8, %s2184_s30 }
  0x56   :  { %1917 = vrot.lane.b32.xlu0 %v1916_v33, %s2184_s30 }
  0x5c   :  { %1942 = vrot.lane.b32.xlu2 %v2256_v8, %s2185_s12 }
  0x5d   :  { %1937 = vrot.lane.b32.xlu1 %v1916_v33, %s2185_s12 }
  0x5e   :  { %1932 = vrot.lane.b32.xlu0 %v2294_v15, %s2185_s12  ;;  %v1788_v34 = vpop.permute.xlu2 %1787 }
  0x5f   :  { %v1790_v35 = vunpack.i.h.bf16 %v1788_v34  ;;  %v1789_v36 = vunpack.i.l.bf16 %v1788_v34 }
  0x61   :  { %v2389_v37 = vsel %vm101_vm0, %v1789_v36, %v1790_v35 }
  0x62   :  { %4087 = vst [vmem:[#allocation2_spill] sm:$0xff] %v2389_v37 }
  0x64   :  { %1957 = vrot.lane.b32.xlu2 %v1906_v31, %s2186_s13 }
  0x65   :  { %1952 = vrot.lane.b32.xlu1 %v2294_v15, %s2187_s14 }
  0x66   :  { %1947 = vrot.lane.b32.xlu0 %v1906_v31, %s2187_s14  ;;  %v2395_v38 = vpop.permute.xlu2 %1792 }
  0x67   :  { %v4048_v17 = vunpack.i.h.bf16 %v2395_v38 }
  0x6c   :  { %1972 = vrot.lane.b32.xlu2 %v2256_v8, %s2187_s14 }
  0x6d   :  { %1967 = vrot.lane.b32.xlu1 %v2294_v15, %s2186_s13 }
  0x6e   :  { %1962 = vrot.lane.b32.xlu0 %v1916_v33, %s2187_s14  ;;  %v2402_v39 = vpop.permute.xlu2 %1807 }
  0x74   :  { %1987 = vrot.lane.b32.xlu2 %v2256_v8, %s2186_s13 }
  0x75   :  { %1982 = vrot.lane.b32.xlu1 %v1906_v31, %s2188_s15  ;;  %v2478_v31 = vpack.i.bf16 %v2332_v23, %v2346_v27 }
  0x76   :  { %1977 = vrot.lane.b32.xlu0 %v1916_v33, %s2186_s13  ;;  %v2408_v40 = vpop.permute.xlu2 %1822 }
  0x77   :  { %v1778_v41 = vpop.permute.xlu1 %1777  ;;  %v1825_v42 = vunpack.i.h.bf16 %v2408_v40  ;;  %v4051_v43 = vunpack.i.l.bf16 %v2408_v40 }
  0x78   :  { %v2412_v44 = vpop.permute.xlu0 %1767  ;;  %v1780_v48 = vunpack.i.h.bf16 %v1778_v41  ;;  %v1779_v58 = vunpack.i.l.bf16 %v1778_v41  ;;  %v4050_v41 = vunpack.i.h.bf16 %v2402_v39 }
  0x79   :  { %v2419_v45 = vsel %vm174_vm1, %v4051_v43, %v1825_v42  ;;  %v4045_v49 = vunpack.i.h.bf16 %v2412_v44 }
  0x7a   :  { %4088 = vst [vmem:[#allocation3_spill] sm:$0xff] %v2419_v45 }
  0x7c   :  { %2002 = vrot.lane.b32.xlu2 %v2256_v8, %s2188_s15 }
  0x7d   :  { %1997 = vrot.lane.b32.xlu1 %v1916_v33, %s2188_s15 }
  0x7e   :  { %1992 = vrot.lane.b32.xlu0 %v2294_v15, %s2188_s15  ;;  %v1838_v46 = vpop.permute.xlu2 %1837  ;;  %v4049_v15 = vunpack.i.l.bf16 %v2402_v39 }
  0x7f   :  { %v2431_v50 = vpop.permute.xlu1 %1782  ;;  %v1840_v51 = vunpack.i.h.bf16 %v1838_v46  ;;  %v1839_v52 = vunpack.i.l.bf16 %v1838_v46 }
  0x80   :  { %v1773_v53 = vpop.permute.xlu0 %1772  ;;  %v4047_v54 = vunpack.i.h.bf16 %v2431_v50  ;;  %v4046_v55 = vunpack.i.l.bf16 %v2431_v50 }
  0x81   :  { %v1775_v56 = vunpack.i.h.bf16 %v1773_v53  ;;  %v1774_v57 = vunpack.i.l.bf16 %v1773_v53  ;;  %v2442_v61 = vsel %vm174_vm1, %v1839_v52, %v1840_v51 }
  0x82   :  { %4089 = vst [vmem:[#allocation4_spill] sm:$0xff] %v2442_v61  ;;  %v2447_v62 = vsel %vm101_vm0, %v1780_v48, %v4046_v55  ;;  %v2457_v3 = vsel %vm101_vm0, %v4047_v54, %v1789_v36 }
  0x83   :  { %v2452_v63 = vsel %vm101_vm0, %v4045_v49, %v1774_v57  ;;  %4090 = vst [vmem:[#allocation5_spill] sm:$0xff] %v2457_v3  ;;  %v2460_v7 = vsel %vm101_vm0, %v1774_v57, %v1775_v56  ;;  %v2463_v8 = vsel %vm101_vm0, %v1775_v56, %v1779_v58 }
  0x84   :  { %4091 = vst [vmem:[#allocation6_spill] sm:$0xff] %v2460_v7  ;;  %2017 = vrot.lane.b32.xlu2 %v2428_v47, %s2184_s30 }
  0x85   :  { %4092 = vst [vmem:[#allocation7_spill] sm:$0xff] %v2463_v8  ;;  %2012 = vrot.lane.b32.xlu1 %v2011_v59, %s2184_s30 }
  0x86   :  { %2007 = vrot.lane.b32.xlu0 %v2439_v60, %s2184_s30  ;;  %v2471_v16 = vpop.permute.xlu2 %1852 }
  0x87   :  { %v1803_v19 = vpop.permute.xlu1 %1802 }
  0x88   :  { %v1798_v22 = vpop.permute.xlu0 %1797  ;;  %v1805_v24 = vunpack.i.h.bf16 %v1803_v19  ;;  %v1804_v25 = vunpack.i.l.bf16 %v1803_v19 }
  0x89   :  { %v1800_v26 = vunpack.i.h.bf16 %v1798_v22  ;;  %v1799_v29 = vunpack.i.l.bf16 %v1798_v22 }
  0x8a   :  { %v2483_v32 = vsel %vm101_vm0, %v1805_v24, %v4049_v15 }
  0x8b   :  { %v2488_v33 = vsel %vm101_vm0, %v4048_v17, %v1799_v29  ;;  %v2491_v34 = vsel %vm101_vm0, %v1799_v29, %v1800_v26  ;;  %v2494_v35 = vsel %vm101_vm0, %v1800_v26, %v1804_v25  ;;  %v1854_v26 = vunpack.i.l.bf16 %v2471_v16 }
  0x8c   :  { %4093 = vst [vmem:[#allocation8_spill] sm:$0xff] %v2491_v34  ;;  %2032 = vrot.lane.b32.xlu2 %v2439_v60, %s2185_s12 }
  0x8d   :  { %4094 = vst [vmem:[#allocation9_spill] sm:$0xff] %v2494_v35  ;;  %2027 = vrot.lane.b32.xlu1 %v2026_v30, %s2184_s30 }
  0x8e   :  { %2022 = vrot.lane.b32.xlu0 %v2478_v31, %s2183_s11  ;;  %v2501_v23 = vpop.permute.xlu2 %1867 }
  0x8f   :  { %v2503_v27 = vpop.permute.xlu1 %1817 }
  0x90   :  { %v1813_v36 = vpop.permute.xlu0 %1812 }
  0x91   :  { %v1815_v46 = vunpack.i.h.bf16 %v1813_v36  ;;  %v1814_v48 = vunpack.i.l.bf16 %v1813_v36 }
  0x93   :  { %v2509_v51 = vsel %vm101_vm0, %v4050_v41, %v1814_v48  ;;  %v2512_v53 = vsel %vm101_vm0, %v1814_v48, %v1815_v46 }
  0x94   :  { %4095 = vst [vmem:[#allocation10_spill] sm:$0xff] %v2509_v51  ;;  %2047 = vrot.lane.b32.xlu2 %v2026_v30, %s2185_s12 }
  0x95   :  { %4096 = vst [vmem:[#allocation11_spill] sm:$0xff] %v2512_v53  ;;  %2042 = vrot.lane.b32.xlu1 %v2428_v47, %s2185_s12 }
  0x96   :  { %2037 = vrot.lane.b32.xlu0 %v2011_v59, %s2185_s12  ;;  %v2518_v56 = vpop.permute.xlu2 %1882 }
  0x97   :  { %v2520_v57 = vpop.permute.xlu1 %1832 }
  0x98   :  { %v2522_v58 = vpop.permute.xlu0 %1827  ;;  %v4052_v19 = vunpack.i.h.bf16 %v2520_v57 }
  0x99   :  { %v1829_v22 = vunpack.i.l.bf16 %v2522_v58 }
  0x9a   :  { %v2529_v24 = vsel %vm174_vm1, %v4052_v19, %v1839_v52 }
  0x9b   :  { %4097 = vst [vmem:[#allocation12_spill] sm:$0xff] %v2529_v24  ;;  %v2534_v25 = vsel %vm174_vm1, %v1825_v42, %v1829_v22 }
  0x9c   :  { %4098 = vst [vmem:[#allocation13_spill] sm:$0xff] %v2534_v25  ;;  %2062 = vrot.lane.b32.xlu2 %v2428_v47, %s2187_s14 }
  0x9d   :  { %2057 = vrot.lane.b32.xlu1 %v2011_v59, %s2187_s14 }
  0x9e   :  { %2052 = vrot.lane.b32.xlu0 %v2439_v60, %s2187_s14  ;;  %v2542_v29 = vpop.permute.xlu2 %1897 }
  0x9f   :  { %v2544_v36 = vpop.permute.xlu1 %1847 }
  0xa0   :  { %v2546_v52 = vpop.permute.xlu0 %1842  ;;  %v1850_v46 = vunpack.i.h.bf16 %v2544_v36  ;;  %v4054_v42 = vunpack.i.l.bf16 %v2544_v36 }
  0xa2   :  { %v2553_v48 = vsel %vm174_vm1, %v4054_v42, %v1850_v46  ;;  %v2556_v22 = vsel %vm174_vm1, %v1850_v46, %v1854_v26 }
  0xa3   :  { %4099 = vst [vmem:[#allocation14_spill] sm:$0xff] %v2556_v22 }
  0xa4   :  { %2077 = vrot.lane.b32.xlu2 %v2011_v59, %s2188_s15 }
  0xa5   :  { %2072 = vrot.lane.b32.xlu1 %v2439_v60, %s2188_s15 }
  0xa6   :  { %2067 = vrot.lane.b32.xlu0 %v2026_v30, %s2187_s14  ;;  %v2562_v49 = vpop.permute.xlu2 %1912 }
  0xa7   :  { %v2564_v55 = vpop.permute.xlu1 %1862  ;;  %v4102_v51 = vunpack.i.h.bf16 %v2562_v49 }
  0xa8   :  { %v2566_v54 = vpop.permute.xlu0 %1857  ;;  %v1865_v17 = vunpack.i.h.bf16 %v2564_v55  ;;  %v4053_v15 = vunpack.i.l.bf16 %v2564_v55 }
  0xaa   :  { %v2573_v26 = vsel %vm174_vm1, %v4053_v15, %v1865_v17  ;;  %v2590_v17 = vpack.i.bf16 %v2322_v21, %v2351_v28 }
  0xab   :  { %4100 = vst [vmem:[#allocation15_spill] sm:$0xff] %v2573_v26 }
  0xac   :  { %2092 = vrot.lane.b32.xlu2 %v2439_v60, %s2186_s13  ;;  %v2096_v60 = vpack.i.bf16 %v2285_v13, %v2280_v12  ;;  %v2610_v12 = vpack.i.bf16 %v2240_v4, %v2228_v1  ;;  %v1914_v4 = vunpack.i.l.bf16 %v2562_v49 }
  0xad   :  { %2087 = vrot.lane.b32.xlu1 %v2026_v30, %s2188_s15 }
  0xae   :  { %2082 = vrot.lane.b32.xlu0 %v2428_v47, %s2188_s15  ;;  %v2580_v59 = vpop.permute.xlu2 %1927  ;;  %v548_v45 = vsel %vm539_vm3, %v1914_v4, %v4102_v51 }
  0xaf   :  { %v2582_v46 = vpop.permute.xlu1 %1877 }
  0xb0   :  { %v2584_v41 = vpop.permute.xlu0 %1872  ;;  %v1879_v43 = vunpack.i.l.bf16 %v2582_v46  ;;  %v1880_v24 = vunpack.i.h.bf16 %v2582_v46 }
  0xb1   :  { %v4055_v19 = vunpack.i.h.bf16 %v2584_v41  ;;  %v1874_v51 = vunpack.i.l.bf16 %v2584_v41 }
  0xb3   :  { %v2597_v47 = vsel %vm247_vm2, %v4055_v19, %v1879_v43  ;;  %v1869_v43 = vunpack.i.l.bf16 %v2501_v23 }
  0xb4   :  { %4101 = vst [vmem:[#allocation16_spill] sm:$0xff] %v2597_v47  ;;  %2107 = vrot.lane.b32.xlu2 %v2590_v17, %s2184_s30 }
  0xb5   :  { %2102 = vrot.lane.b32.xlu1 %v2590_v17, %s2183_s11 }
  0xb6   :  { %2097 = vrot.lane.b32.xlu0 %v2096_v60, %s2186_s13  ;;  %v2604_v30 = vpop.permute.xlu2 %1942  ;;  %v1900_v60 = vunpack.i.h.bf16 %v2542_v29 }
  0xb7   :  { %v1893_v15 = vpop.permute.xlu1 %1892 }
  0xb8   :  { %v2606_v42 = vpop.permute.xlu0 %1887  ;;  %v1895_v22 = vunpack.i.h.bf16 %v1893_v15  ;;  %v1894_v26 = vunpack.i.l.bf16 %v1893_v15  ;;  %v1884_v15 = vunpack.i.l.bf16 %v2518_v56 }
  0xbc   :  { %2122 = vrot.lane.b32.xlu2 %v2610_v12, %s2185_s12 }
  0xbd   :  { %2117 = vrot.lane.b32.xlu1 %v2590_v17, %s2185_s12 }
  0xbe   :  { %2112 = vrot.lane.b32.xlu0 %v2610_v12, %s2184_s30  ;;  %v2625_v13 = vpop.permute.xlu2 %1957 }
  0xbf   :  { %v4056_v19 = vunpack.i.h.bf16 %v2625_v13  ;;  %v1959_v37 = vunpack.i.l.bf16 %v2625_v13  ;;  %v2629_v35 = vpop.permute.xlu1 %1907 }
  0xc0   :  { %v2631_v8 = vpop.permute.xlu0 %1902  ;;  %v1910_v53 = vunpack.i.h.bf16 %v2629_v35  ;;  %v1909_v25 = vunpack.i.l.bf16 %v2629_v35  ;;  %v2929_v35 = vld [vmem:[%s4040_s1 + $0x48] sm:$0xff] }
  0xc1   :  { %v1905_v1 = vunpack.i.h.bf16 %v2631_v8  ;;  %v4057_v61 = vunpack.i.l.bf16 %v2631_v8  ;;  %v625_v47 = vsel %vm612_vm4, %v1959_v37, %v4056_v19  ;;  %v1855_v37 = vunpack.i.h.bf16 %v2471_v16 }
  0xc2   :  { %v552_v3 = vsel %vm539_vm3, %v1909_v25, %v1910_v53  ;;  %788 = vmatpush.msra.mxu2 %v625_v47  ;;  %v256_v25 = vsel %vm247_vm2, %v1894_v26, %v1895_v22  ;;  %v4104_v16 = vunpack.i.h.bf16 %v2518_v56  ;;  %v1860_v26 = vunpack.i.h.bf16 %v2566_v54 }
  0xc3   :  { %v260_v7 = vsel %vm247_vm2, %v1905_v1, %v1900_v60  ;;  %v261_v34 = vsel %vm247_vm2, %v1900_v60, %v4057_v61  ;;  %735 = vmatpush.msra.mxu1 %v552_v3  ;;  %v4103_v3 = vunpack.i.l.bf16 %v2542_v29  ;;  %v1859_v47 = vunpack.i.l.bf16 %v2566_v54 }
  0xc4   :  { %694 = vmatpush.msra.mxu0 %v260_v7  ;;  %817 = vmatpush.msra.mxu3 %v261_v34  ;;  %v253_v46 = vsel %vm247_vm2, %v1884_v15, %v4104_v16  ;;  %v1929_v19 = vunpack.i.l.bf16 %v2580_v59 }
  0xc5   :  { %2137 = vrot.lane.b32.xlu2 %v2610_v12, %s2187_s14  ;;  %2132 = vrot.lane.b32.xlu1 %v2478_v31, %s2186_s13  ;;  %v257_v7 = vsel %vm247_vm2, %v1895_v22, %v4103_v3  ;;  %v252_v22 = vsel %vm247_vm2, %v1880_v24, %v1884_v15  ;;  %v2141_v24 = vpack.i.bf16 %v2223_v0, %v2351_v28  ;;  %v1930_v15 = vunpack.i.h.bf16 %v2580_v59  ;;  %v2980_v59 = vld [vmem:[%s4040_s1 + $0x58] sm:$0xff] }
  0xc6   :  { %736 = vmatpush.msra.mxu1 %v548_v45  ;;  %2127 = vrot.lane.b32.xlu0 %v2590_v17, %s2187_s14  ;;  %v2664_v34 = vpop.permute.xlu2 %1972  ;;  %v4105_v45 = vunpack.i.h.bf16 %v2501_v23  ;;  %v187_v0 = vsel %vm174_vm1, %v1855_v37, %v1859_v47  ;;  %v188_v28 = vsel %vm174_vm1, %v1859_v47, %v1860_v26  ;;  %v4107_v37 = vunpack.i.l.bf16 %v2544_v36 }
  0xc7   :  { %695 = vmatpush.msra.mxu0 %v256_v25  ;;  %818 = vmatpush.msra.mxu3 %v257_v7  ;;  %v2674_v60 = vpop.permute.xlu1 %1922  ;;  %v2146_v7 = vpack.i.bf16 %v2290_v14, %v2322_v21  ;;  %v1834_v14 = vunpack.i.l.bf16 %v2520_v57  ;;  %v1830_v21 = vunpack.i.h.bf16 %v2522_v58  ;;  %v479_v47 = vsel %vm466_vm5, %v1929_v19, %v1930_v15 }
  0xc8   :  { %v248_v31 = vsel %vm247_vm2, %v1869_v43, %v4105_v45  ;;  %v2676_v1 = vpop.permute.xlu0 %1917  ;;  %v1925_v4 = vunpack.i.h.bf16 %v2674_v60  ;;  %v1924_v25 = vunpack.i.l.bf16 %v2674_v60  ;;  %v1845_v43 = vunpack.i.h.bf16 %v2546_v52 }
  0xc9   :  { %v1920_v3 = vunpack.i.h.bf16 %v2676_v1  ;;  %v1919_v16 = vunpack.i.l.bf16 %v2676_v1  ;;  %696 = vmatpush.msra.mxu0 %v252_v22  ;;  %v1844_v45 = vunpack.i.l.bf16 %v2546_v52  ;;  %819 = vmatpush.msra.mxu3 %v253_v46  ;;  %v4106_v22 = vunpack.i.h.bf16 %v2501_v23 }
  0xca   :  { %v540_v23 = vsel %vm539_vm3, %v1924_v25, %v1925_v4  ;;  %v1820_v46 = vunpack.i.h.bf16 %v2503_v27  ;;  %v4117_v60 = vunpack.i.l.bf16 %v2631_v8  ;;  %v2985_v8 = vld [vmem:[%s4040_s1 + $0x60] sm:$0xff] }
  0xcb   :  { %697 = vmatpush.msra.mxu0 %v248_v31  ;;  %v249_v61 = vsel %vm247_vm2, %v4106_v22, %v1874_v51  ;;  %v544_v52 = vsel %vm539_vm3, %v1919_v16, %v1920_v3  ;;  %v183_v58 = vsel %vm174_vm1, %v1844_v45, %v1845_v43  ;;  %v179_v16 = vsel %vm174_vm1, %v1830_v21, %v1834_v14 }
  0xcc   :  { %820 = vmatpush.msra.mxu3 %v249_v61  ;;  %737 = vmatpush.msra.mxu1 %v544_v52  ;;  %v1819_v61 = vunpack.i.l.bf16 %v2503_v27  ;;  %v4108_v45 = vunpack.i.h.bf16 %v2520_v57  ;;  %v1794_v22 = vunpack.i.l.bf16 %v2395_v38  ;;  %v4109_v21 = vunpack.i.l.bf16 %v2408_v40 }
  0xcd   :  { %698 = vmatpush.msra.mxu0 %v187_v0  ;;  %2152 = vrot.lane.b32.xlu2 %v2590_v17, %s2188_s15  ;;  %v184_v17 = vsel %vm174_vm1, %v1845_v43, %v4107_v37  ;;  %v1944_v0 = vunpack.i.l.bf16 %v2604_v30  ;;  %v4112_v37 = vunpack.i.h.bf16 %v2395_v38  ;;  %v4113_v38 = vunpack.i.h.bf16 %v2431_v50 }
  0xce   :  { %821 = vmatpush.msra.mxu3 %v188_v28  ;;  %2147 = vrot.lane.b32.xlu1 %v2146_v7, %s2186_s13  ;;  %v2718_v31 = vpop.permute.xlu2 %1987  ;;  %v180_v36 = vsel %vm174_vm1, %v1834_v14, %v4108_v45  ;;  %v175_v52 = vsel %vm174_vm1, %v1819_v61, %v1820_v46  ;;  %v176_v57 = vsel %vm174_vm1, %v1820_v46, %v4109_v21  ;;  %v1945_v14 = vunpack.i.h.bf16 %v2604_v30 }
  0xcf   :  { %2142 = vrot.lane.b32.xlu0 %v2141_v24, %s2186_s13  ;;  %699 = vmatpush.msra.mxu0 %v183_v58  ;;  %v2723_v27 = vpop.permute.xlu1 %1937  ;;  %v4111_v61 = vunpack.i.l.bf16 %v2402_v39  ;;  %v1769_v58 = vunpack.i.l.bf16 %v2412_v44  ;;  %v4114_v45 = vunpack.i.l.bf16 %v2431_v50 }
  0xd0   :  { %738 = vmatpush.msra.mxu1 %v540_v23  ;;  %822 = vmatpush.msra.mxu3 %v184_v17  ;;  %v2725_v25 = vpop.permute.xlu0 %1932  ;;  %v1940_v43 = vunpack.i.h.bf16 %v2723_v27  ;;  %v1939_v7 = vunpack.i.l.bf16 %v2723_v27  ;;  %v4110_v23 = vunpack.i.h.bf16 %v2402_v39  ;;  %v467_v17 = vsel %vm466_vm5, %v1944_v0, %v1945_v14  ;;  %v3064_v27 = vld [vmem:[%s4040_s1 + $0x78] sm:$0xff] }
  0xd1   :  { %v1935_v24 = vunpack.i.h.bf16 %v2725_v25  ;;  %v1934_v19 = vunpack.i.l.bf16 %v2725_v25  ;;  %700 = vmatpush.msra.mxu0 %v179_v16 }
  0xd2   :  { %739 = vmatpush.msra.mxu1 %v479_v47  ;;  %823 = vmatpush.msra.mxu3 %v180_v36  ;;  %v115_v40 = vsel %vm101_vm0, %v4111_v61, %v4110_v23  ;;  %v471_v46 = vsel %vm466_vm5, %v1939_v7, %v1940_v43 }
  0xd3   :  { %701 = vmatpush.msra.mxu0 %v175_v52  ;;  %v475_v28 = vsel %vm466_vm5, %v1934_v19, %v1935_v24 }
  0xd4   :  { %824 = vmatpush.msra.mxu3 %v176_v57  ;;  %740 = vmatpush.msra.mxu1 %v475_v28 }
  0xd5   :  { %702 = vmatpush.msra.mxu0 %v2483_v32  ;;  %v110_v32 = vsel %vm101_vm0, %v1794_v22, %v4112_v37 }
  0xd6   :  { %825 = vmatpush.msra.mxu3 %v115_v40  ;;  %2162 = vrot.lane.b32.xlu1 %v2610_v12, %s2188_s15  ;;  %v2762_v39 = vpop.permute.xlu2 %2002  ;;  %v2822_v40 = vld [vmem:[%s4040_s1] sm:$0xff] }
  0xd7   :  { %2157 = vrot.lane.b32.xlu0 %v2610_v12, %s2186_s13  ;;  %703 = vmatpush.msra.mxu0 %v110_v32  ;;  %v2768_v47 = vpop.permute.xlu1 %1952  ;;  %v107_v12 = vsel %vm101_vm0, %v4114_v45, %v4113_v38 }
  0xd8   :  { %741 = vmatpush.msra.mxu1 %v471_v46  ;;  %826 = vmatpush.msra.mxu3 %v2488_v33  ;;  %v2770_v16 = vpop.permute.xlu0 %1947  ;;  %v1955_v36 = vunpack.i.h.bf16 %v2768_v47  ;;  %v1954_v7 = vunpack.i.l.bf16 %v2768_v47  ;;  %v4115_v33 = vunpack.i.h.bf16 %v2412_v44  ;;  %v4066_v44 = vunpack.i.h.bf16 %v2664_v34 }
  0xd9   :  { %v1950_v19 = vunpack.i.h.bf16 %v2770_v16  ;;  %v1949_v22 = vunpack.i.l.bf16 %v2770_v16  ;;  %704 = vmatpush.msra.mxu0 %v2447_v62  ;;  %v1974_v62 = vunpack.i.l.bf16 %v2664_v34 }
  0xda   :  { %742 = vmatpush.msra.mxu1 %v467_v17  ;;  %827 = vmatpush.msra.mxu3 %v107_v12  ;;  %v102_v52 = vsel %vm101_vm0, %v1769_v58, %v4115_v33  ;;  %v402_v21 = vsel %vm393_vm6, %v1954_v7, %v1955_v36  ;;  %v2852_v7 = vld [vmem:[%s4040_s1 + $0x18] sm:$0xff] }
  0xdb   :  { %705 = vmatpush.msra.mxu0 %v102_v52  ;;  %v406_v50 = vsel %vm393_vm6, %v1949_v22, %v1950_v19  ;;  %v2857_v22 = vld [vmem:[%s4040_s1 + $0x10] sm:$0xff]  ;;  %v4060_v52 = vunpack.i.h.bf16 %v2762_v39 }
  0xdc   :  { %828 = vmatpush.msra.mxu3 %v2452_v63  ;;  %743 = vmatpush.msra.mxu1 %v406_v50  ;;  %v2004_v50 = vunpack.i.l.bf16 %v2762_v39 }
  0xdd   :  { %706 = vmatpush.msra.mxu0 %v2317_v20 }
  0xde   :  { %744 = vmatpush.msra.mxu1 %v402_v21  ;;  %829 = vmatpush.msra.mxu3 %v2305_v18  ;;  %v2796_v57 = vpop.permute.xlu2 %2017 }
  0xdf   :  { %707 = vmatpush.msra.mxu0 %v2262_v9  ;;  %v2799_v0 = vpop.permute.xlu1 %1967 }
  0xe0   :  { %v2801_v28 = vpop.permute.xlu0 %1962  ;;  %830 = vmatpush.msra.mxu3 %v2270_v10  ;;  %v1970_v63 = vunpack.i.h.bf16 %v2799_v0  ;;  %v1969_v20 = vunpack.i.l.bf16 %v2799_v0  ;;  %v394_v10 = vsel %vm393_vm6, %v1974_v62, %v4066_v44  ;;  %v3073_v0 = vld [vmem:[%s4040_s1 + $0x50] sm:$0xff] }
  0xe1   :  { %v1965_v18 = vunpack.i.h.bf16 %v2801_v28  ;;  %v1964_v23 = vunpack.i.l.bf16 %v2801_v28  ;;  %708 = vmatpush.msra.mxu0 %v2233_v2  ;;  %v4058_v2 = vunpack.i.h.bf16 %v2718_v31 }
  0xe2   :  { %831 = vmatpush.msra.mxu3 %v2275_v11  ;;  %v621_v61 = vsel %vm612_vm4, %v1969_v20, %v1970_v63  ;;  %v1989_v11 = vunpack.i.l.bf16 %v2718_v31 }
  0xe3   :  { %v398_v9 = vsel %vm393_vm6, %v1964_v23, %v1965_v18  ;;  %709 = vmatpush.msra.mxu0 %v2245_v5  ;;  %789 = vmatpush.msra.mxu2 %v621_v61 }
  0xe4   :  { %745 = vmatpush.msra.mxu1 %v398_v9  ;;  %832 = vmatpush.msra.mxu3 %v2250_v6  ;;  %v613_v45 = vsel %vm612_vm4, %v1989_v11, %v4058_v2 }
  0xe5   :  { %710 = vmatmul.f32.vlgmr.msra.gmra.mxu0 %v2822_v40  ;;  %833 = vmatmul.f32.vlgmr.msra.gmra.mxu3 %v2822_v40 }
  0xe6   :  { %746 = vmatpush.msra.mxu1 %v394_v10  ;;  %v2830_v46 = vpop.permute.xlu2 %2032 }
  0xe7   :  { %v2832_v58 = vpop.permute.xlu1 %1982 }
  0xe8   :  { %v2834_v37 = vpop.permute.xlu0 %1977  ;;  %v4065_v5 = vunpack.i.h.bf16 %v2832_v58  ;;  %v1984_v6 = vunpack.i.l.bf16 %v2832_v58 }
  0xe9   :  { %v4059_v32 = vunpack.i.h.bf16 %v2834_v37  ;;  %v1979_v17 = vunpack.i.l.bf16 %v2834_v37 }
  0xea   :  { %v333_v12 = vsel %vm320_vm7, %v1984_v6, %v4065_v5  ;;  %v2884_v6 = vld [vmem:[%s4040_s1 + $0x30] sm:$0xff] }
  0xeb   :  { %v617_v38 = vsel %vm612_vm4, %v1979_v17, %v4059_v32  ;;  %747 = vmatpush.msra.mxu1 %v333_v12  ;;  %v2889_v17 = vld [vmem:[%s4040_s1 + $0x28] sm:$0xff]  ;;  %v4063_v12 = vunpack.i.l.bf16 %v2796_v57 }
  0xec   :  { %790 = vmatpush.msra.mxu2 %v617_v38  ;;  %v321_v38 = vsel %vm320_vm7, %v2004_v50, %v4060_v52 }
  0xed   :  { %713 = vmatmul.f32.gmra.mxu0 %v2852_v7  ;;  %836 = vmatmul.f32.gmra.mxu3 %v2852_v7 }
  0xee   :  { %791 = vmatpush.msra.mxu2 %v613_v45  ;;  %v2863_v33 = vpop.permute.xlu2 %2047  ;;  %v2898_v45 = vld [vmem:[%s4040_s1 + $0x8] sm:$0xff] }
  0xef   :  { %1725 = vmatmul.msk.f32.vlgmr.msra.gmra.mxu2 %vm669_vm8, %v2857_v22  ;;  %v2867_v21 = vpop.permute.xlu1 %1997 }
  0xf0   :  { %v2869_v62 = vpop.permute.xlu0 %1992  ;;  %v4061_v20 = vunpack.i.h.bf16 %v2867_v21  ;;  %v1999_v23 = vunpack.i.l.bf16 %v2867_v21 }
  0xf1   :  { %v4062_v9 = vunpack.i.h.bf16 %v2869_v62  ;;  %v1994_v10 = vunpack.i.l.bf16 %v2869_v62 }
  0xf2   :  { %v325_v11 = vsel %vm320_vm7, %v1999_v23, %v4061_v20 }
  0xf3   :  { %v329_v61 = vsel %vm320_vm7, %v1994_v10, %v4062_v9  ;;  %v2020_v9 = vunpack.i.h.bf16 %v2796_v57 }
  0xf4   :  { %748 = vmatpush.msra.mxu1 %v329_v61 }
  0xf5   :  { %716 = vmatmul.f32.gmra.mxu0 %v2884_v6  ;;  %839 = vmatmul.f32.gmra.mxu3 %v2884_v6 }
  0xf6   :  { %749 = vmatpush.msra.mxu1 %v325_v11  ;;  %v2904_v23 = vpop.permute.xlu2 %2062 }
  0xf7   :  { %1726 = vmatmul.msk.f32.gmra.mxu2 %vm669_vm8, %v2889_v17  ;;  %v2906_v10 = vpop.permute.xlu1 %2012  ;;  %v2064_v30 = vunpack.i.l.bf16 %v2904_v23 }
  0xf8   :  { %v2008_v50 = vpop.permute.xlu0 %2007  ;;  %750 = vmatpush.msra.mxu1 %v321_v38  ;;  %v4064_v61 = vunpack.i.l.bf16 %v2906_v10  ;;  %v2015_v32 = vunpack.i.h.bf16 %v2906_v10 }
  0xf9   :  { %v2010_v11 = vunpack.i.h.bf16 %v2008_v50  ;;  %v2009_v2 = vunpack.i.l.bf16 %v2008_v50  ;;  %751 = vmatmul.f32.vlgmr.msra.gmra.mxu1 %v2898_v45  ;;  %v2924_v50 = vld [vmem:[%s4040_s1 + $0x40] sm:$0xff] }
  0xfb   :  { %v553_v52 = vsel %vm539_vm3, %v1910_v53, %v2009_v2  ;;  %v554_v20 = vsel %vm539_vm3, %v2009_v2, %v4064_v61  ;;  %v550_v38 = vsel %vm539_vm3, %v2010_v11, %v4063_v12  ;;  %v4116_v53 = vunpack.i.h.bf16 %v2562_v49 }
  0xfc   :  { %858 = vmatpush.msrb.mxu2 %v553_v52  ;;  %981 = vmatpush.msrb.mxu3 %v554_v20  ;;  %v2938_v52 = vld [vmem:[%s4040_s1 + $0x20] sm:$0xff]  ;;  %v2034_v20 = vunpack.i.l.bf16 %v2830_v46  ;;  %v545_v49 = vsel %vm539_vm3, %v1920_v3, %v2015_v32 }
  0xfd   :  { %v549_v2 = vsel %vm539_vm3, %v4116_v53, %v2010_v11  ;;  %719 = vmatmul.f32.gmra.mxu0 %v2929_v35  ;;  %842 = vmatmul.f32.gmra.mxu3 %v2929_v35  ;;  %v2035_v11 = vunpack.i.h.bf16 %v2830_v46  ;;  %v4069_v46 = vunpack.i.l.bf16 %v2606_v42 }
  0xfe   :  { %859 = vmatpush.msrb.mxu2 %v549_v2  ;;  %982 = vmatpush.msrb.mxu3 %v550_v38  ;;  %v2943_v12 = vpop.permute.xlu2 %2077  ;;  %v541_v2 = vsel %vm539_vm3, %v1925_v4, %v2020_v9 }
  0xff   :  { %1727 = vmatmul.msk.f32.gmra.mxu2 %vm669_vm8, %v2924_v50  ;;  %v2950_v38 = vpop.permute.xlu1 %2027  ;;  %v4071_v28 = vunpack.i.l.bf16 %v2943_v12 }
 0x100   :  { %v2952_v53 = vpop.permute.xlu0 %2022  ;;  %860 = vmatpush.msrb.mxu2 %v545_v49  ;;  %v4067_v61 = vunpack.i.h.bf16 %v2950_v38  ;;  %v4068_v5 = vunpack.i.l.bf16 %v2950_v38  ;;  %v480_v49 = vsel %vm466_vm5, %v1930_v15, %v2034_v20  ;;  %v476_v15 = vsel %vm466_vm5, %v1935_v24, %v2035_v11 }
 0x101   :  { %v4070_v1 = vunpack.i.h.bf16 %v2952_v53  ;;  %v2024_v3 = vunpack.i.l.bf16 %v2952_v53  ;;  %754 = vmatmul.f32.gmra.mxu1 %v2938_v52 }
 0x102   :  { %861 = vmatpush.msrb.mxu2 %v541_v2  ;;  %v546_v44 = vsel %vm539_vm3, %v2015_v32, %v4068_v5  ;;  %v542_v2 = vsel %vm539_vm3, %v2020_v9, %v4067_v61  ;;  %v4118_v32 = vunpack.i.l.bf16 %v2542_v29  ;;  %v4119_v29 = vunpack.i.h.bf16 %v2518_v56 }
 0x103   :  { %v262_v4 = vsel %vm247_vm2, %v4117_v60, %v2024_v3  ;;  %983 = vmatpush.msrb.mxu3 %v546_v44  ;;  %v4122_v5 = vunpack.i.l.bf16 %v2564_v55  ;;  %v3056_v55 = vld [vmem:[%s4040_s1 + $0x70] sm:$0xff] }
 0x104   :  { %862 = vmatpush.msrb.mxu2 %v480_v49  ;;  %940 = vmatpush.msrb.mxu1 %v262_v4  ;;  %v258_v9 = vsel %vm247_vm2, %v4118_v32, %v4070_v1  ;;  %v2999_v49 = vld [vmem:[%s4040_s1 + $0x38] sm:$0xff]  ;;  %v254_v24 = vsel %vm247_vm2, %v4119_v29, %v4069_v46  ;;  %v2050_v1 = vunpack.i.h.bf16 %v2863_v33 }
 0x105   :  { %722 = vmatmul.f32.gmra.mxu0 %v2985_v8  ;;  %984 = vmatpush.msrb.mxu3 %v542_v2  ;;  %v4120_v2 = vunpack.i.h.bf16 %v2584_v41  ;;  %v4121_v41 = vunpack.i.h.bf16 %v2625_v13  ;;  %v189_v46 = vsel %vm174_vm1, %v1860_v26, %v4122_v5  ;;  %v4123_v5 = vld [vmem:[#allocation12_spill] sm:$0xff] }
 0x106   :  { %863 = vmatpush.msrb.mxu2 %v476_v15  ;;  %941 = vmatpush.msrb.mxu1 %v258_v9  ;;  %v3003_v25 = vpop.permute.xlu2 %2092 }
 0x107   :  { %1728 = vmatmul.msk.f32.gmra.mxu2 %vm669_vm8, %v2980_v59  ;;  %v2095_v44 = vunpack.i.h.bf16 %v3003_v25  ;;  %v2094_v60 = vunpack.i.l.bf16 %v3003_v25  ;;  %v3012_v4 = vpop.permute.xlu1 %2042  ;;  %v250_v32 = vsel %vm247_vm2, %v1874_v51, %v4120_v2  ;;  %845 = vmatmul.f32.gmra.mxu3 %v2985_v8 }
 0x108   :  { %v3014_v15 = vpop.permute.xlu0 %2037  ;;  %942 = vmatpush.msrb.mxu1 %v254_v24  ;;  %v2045_v56 = vunpack.i.h.bf16 %v3012_v4  ;;  %v2044_v9 = vunpack.i.l.bf16 %v3012_v4  ;;  %v2049_v24 = vunpack.i.l.bf16 %v2863_v33  ;;  %v4146_v4 = vld [vmem:[#allocation13_spill] sm:$0xff] }
 0x109   :  { %v2040_v29 = vunpack.i.h.bf16 %v3014_v15  ;;  %v2039_v61 = vunpack.i.l.bf16 %v3014_v15  ;;  %757 = vmatmul.f32.gmra.mxu1 %v2999_v49  ;;  %v626_v51 = vsel %vm612_vm4, %v4121_v41, %v2094_v60  ;;  %v622_v13 = vsel %vm612_vm4, %v1970_v63, %v2095_v44  ;;  %v4145_v15 = vld [vmem:[#allocation4_spill] sm:$0xff] }
 0x10a   :  { %943 = vmatpush.msrb.mxu1 %v250_v32  ;;  %911 = vmatpush.msrb.mxu0 %v626_v51  ;;  %v477_v54 = vsel %vm466_vm5, %v2035_v11, %v2044_v9  ;;  %v468_v26 = vsel %vm466_vm5, %v1945_v14, %v2045_v56 }
 0x10b   :  { %v472_v2 = vsel %vm466_vm5, %v1940_v43, %v2040_v29  ;;  %v481_v32 = vsel %vm466_vm5, %v2034_v20, %v2039_v61  ;;  %v473_v43 = vsel %vm466_vm5, %v2040_v29, %v2049_v24  ;;  %v4124_v29 = vld [vmem:[#allocation3_spill] sm:$0xff] }
 0x10c   :  { %864 = vmatpush.msrb.mxu2 %v472_v2  ;;  %944 = vmatpush.msrb.mxu1 %v189_v46  ;;  %v2065_v2 = vunpack.i.h.bf16 %v2904_v23 }
 0x10d   :  { %985 = vmatpush.msrb.mxu3 %v481_v32  ;;  %912 = vmatpush.msrb.mxu0 %v622_v13  ;;  %v4125_v32 = vld [vmem:[#allocation10_spill] sm:$0xff] }
 0x10e   :  { %865 = vmatpush.msrb.mxu2 %v468_v26  ;;  %945 = vmatpush.msrb.mxu1 %v2553_v48  ;;  %v469_v48 = vsel %vm466_vm5, %v2045_v56, %v2050_v1  ;;  %v3113_v26 = vld [vmem:[%s4040_s1 + $0x68] sm:$0xff] }
 0x10f   :  { %986 = vmatpush.msrb.mxu3 %v477_v54  ;;  %1729 = vmatmul.msk.f32.gmra.mxu2 %vm669_vm8, %v3056_v55  ;;  %v3078_v14 = vpop.permute.xlu1 %2057  ;;  %v3104_v54 = vld [vmem:[%s4040_s1 + $0x88] sm:$0xff] }
 0x110   :  { %v2053_v63 = vpop.permute.xlu0 %2052  ;;  %946 = vmatpush.msrb.mxu1 %v4123_v5  ;;  %848 = vmatmul.f32.gmra.mxu3 %v3064_v27  ;;  %v2059_v20 = vunpack.i.l.bf16 %v3078_v14  ;;  %v2060_v41 = vunpack.i.h.bf16 %v3078_v14  ;;  %v4127_v5 = vld [vmem:[#allocation5_spill] sm:$0xff] }
 0x111   :  { %v2055_v11 = vunpack.i.h.bf16 %v2053_v63  ;;  %v2054_v46 = vunpack.i.l.bf16 %v2053_v63  ;;  %987 = vmatpush.msrb.mxu3 %v473_v43  ;;  %760 = vmatmul.f32.gmra.mxu1 %v3073_v0  ;;  %v3118_v43 = vld [vmem:[%s4040_s1 + $0x90] sm:$0xff] }
 0x112   :  { %947 = vmatpush.msrb.mxu1 %v4124_v29  ;;  %725 = vmatmul.f32.gmra.mxu0 %v3064_v27  ;;  %v399_v47 = vsel %vm393_vm6, %v1965_v18, %v2060_v41  ;;  %v4129_v18 = vld [vmem:[#allocation6_spill] sm:$0xff] }
 0x113   :  { %988 = vmatpush.msrb.mxu3 %v469_v48  ;;  %v407_v56 = vsel %vm393_vm6, %v1950_v19, %v2054_v46  ;;  %v408_v51 = vsel %vm393_vm6, %v2054_v46, %v2059_v20  ;;  %v404_v13 = vsel %vm393_vm6, %v2055_v11, %v2064_v30  ;;  %v403_v16 = vsel %vm393_vm6, %v1955_v36, %v2055_v11  ;;  %v4126_v19 = vld [vmem:[#allocation8_spill] sm:$0xff] }
 0x114   :  { %866 = vmatpush.msrb.mxu2 %v407_v56  ;;  %948 = vmatpush.msrb.mxu1 %v4125_v32  ;;  %v4128_v48 = vunpack.i.h.bf16 %v2664_v34  ;;  %v2080_v32 = vunpack.i.h.bf16 %v2943_v12  ;;  %v2108_v34 = vpop.permute.xlu2 %2107 }
 0x115   :  { %989 = vmatpush.msrb.mxu3 %v408_v51 }
 0x116   :  { %867 = vmatpush.msrb.mxu2 %v403_v16  ;;  %949 = vmatpush.msrb.mxu1 %v4126_v19  ;;  %v395_v11 = vsel %vm393_vm6, %v4128_v48, %v2065_v2  ;;  %v2109_v48 = vunpack.i.l.bf16 %v2108_v34 }
 0x117   :  { %990 = vmatpush.msrb.mxu3 %v404_v13  ;;  %1730 = vmatmul.msk.f32.gmra.mxu2 %vm669_vm8, %v3104_v54  ;;  %v2073_v36 = vpop.permute.xlu1 %2072  ;;  %v4130_v13 = vunpack.i.h.bf16 %v2832_v58  ;;  %v3154_v58 = vld [vmem:[%s4040_s1 + $0xa0] sm:$0xff] }
 0x118   :  { %v3125_v63 = vpop.permute.xlu0 %2067  ;;  %868 = vmatpush.msrb.mxu2 %v399_v47  ;;  %950 = vmatpush.msrb.mxu1 %v4127_v5  ;;  %v2075_v46 = vunpack.i.h.bf16 %v2073_v36  ;;  %v2074_v29 = vunpack.i.l.bf16 %v2073_v36  ;;  %v2173_v47 = vld [vmem:[%s4039_s0 + $0x88] sm:$0xff] }
 0x119   :  { %v4072_v56 = vunpack.i.h.bf16 %v3125_v63  ;;  %v2069_v51 = vunpack.i.l.bf16 %v3125_v63  ;;  %763 = vmatmul.f32.gmra.mxu1 %v3113_v26  ;;  %851 = vmatmul.f32.gmra.mxu3 %v3118_v43 }
 0x11a   :  { %869 = vmatpush.msrb.mxu2 %v395_v11  ;;  %951 = vmatpush.msrb.mxu1 %v4129_v18  ;;  %v334_v16 = vsel %vm320_vm7, %v4130_v13, %v2074_v29  ;;  %v2174_v11 = vld [vmem:[%s4039_s0 + $0x60] sm:$0xff] }
 0x11b   :  { %v400_v19 = vsel %vm393_vm6, %v2060_v41, %v2069_v51  ;;  %728 = vmatmul.f32.gmra.mxu0 %v3118_v43  ;;  %v396_v36 = vsel %vm393_vm6, %v2065_v2, %v4072_v56  ;;  %v4131_v41 = vunpack.i.h.bf16 %v2869_v62  ;;  %v335_v2 = vsel %vm320_vm7, %v2074_v29, %v4071_v28  ;;  %v3168_v18 = vld [vmem:[%s4040_s1 + $0x80] sm:$0xff] }
 0x11c   :  { %870 = vmatpush.msrb.mxu2 %v334_v16  ;;  %952 = vmatpush.msrb.mxu1 %v2173_v47  ;;  %v4132_v62 = vunpack.i.h.bf16 %v2867_v21  ;;  %v3178_v16 = vld [vmem:[%s4040_s1 + $0xa8] sm:$0xff] }
 0x11d   :  { %991 = vmatpush.msrb.mxu3 %v400_v19  ;;  %v330_v5 = vsel %vm320_vm7, %v4131_v41, %v2075_v46  ;;  %v2110_v19 = vunpack.i.h.bf16 %v2108_v34  ;;  %v2176_v34 = vld [vmem:[%s4039_s0 + $0x10] sm:$0xff] }
 0x11e   :  { %871 = vmatpush.msrb.mxu2 %v330_v5  ;;  %953 = vmatpush.msrb.mxu1 %v2174_v11  ;;  %v326_v13 = vsel %vm320_vm7, %v4132_v62, %v2080_v32  ;;  %v4133_v62 = vunpack.i.l.bf16 %v2906_v10  ;;  %v4135_v10 = vunpack.i.l.bf16 %v2796_v57 }
 0x11f   :  { %992 = vmatpush.msrb.mxu3 %v396_v36  ;;  %1731 = vmatmul.msk.f32.gmra.mxu2 %vm669_vm8, %v3154_v58  ;;  %v3180_v29 = vpop.permute.xlu1 %2087  ;;  %v2175_v36 = vld [vmem:[%s4039_s0 + $0x38] sm:$0xff] }
 0x120   :  { %v3182_v47 = vpop.permute.xlu0 %2082  ;;  %872 = vmatpush.msrb.mxu2 %v326_v13  ;;  %954 = vmatpush.msrb.mxu1 %v2175_v36  ;;  %v4073_v21 = vunpack.i.h.bf16 %v3180_v29  ;;  %v4074_v41 = vunpack.i.l.bf16 %v3180_v29  ;;  %v555_v13 = vsel %vm539_vm3, %v4133_v62, %v2109_v48  ;;  %v4134_v36 = vunpack.i.h.bf16 %v2762_v39  ;;  %v3214_v39 = vld [vmem:[%s4040_s1 + $0xb8] sm:$0xff] }
 0x121   :  { %v2085_v5 = vunpack.i.h.bf16 %v3182_v47  ;;  %v2084_v11 = vunpack.i.l.bf16 %v3182_v47  ;;  %993 = vmatpush.msrb.mxu3 %v335_v2  ;;  %766 = vmatmul.f32.gmra.mxu1 %v3168_v18  ;;  %v551_v48 = vsel %vm539_vm3, %v4135_v10, %v2110_v19 }
 0x122   :  { %955 = vmatpush.msrb.mxu1 %v2176_v34  ;;  %854 = vmatmul.f32.gmra.mxu3 %v3178_v16  ;;  %v327_v56 = vsel %vm320_vm7, %v2080_v32, %v4074_v41 }
 0x123   :  { %v322_v28 = vsel %vm320_vm7, %v4134_v36, %v2085_v5  ;;  %v331_v2 = vsel %vm320_vm7, %v2075_v46, %v2084_v11  ;;  %v323_v46 = vsel %vm320_vm7, %v2085_v5, %v4073_v21  ;;  %731 = vmatmul.f32.gmra.mxu0 %v3178_v16  ;;  %v4141_v21 = vld [vmem:[#allocation16_spill] sm:$0xff] }
 0x124   :  { %1104 = vmatpush.msra.mxu1 %v555_v13  ;;  %873 = vmatpush.msrb.mxu2 %v322_v28  ;;  %v3223_v28 = vld [vmem:[%s4040_s1 + $0x98] sm:$0xff]  ;;  %v2123_v13 = vpop.permute.xlu2 %2122 }
 0x125   :  { %994 = vmatpush.msrb.mxu3 %v331_v2  ;;  %v4137_v2 = vunpack.i.h.bf16 %v2718_v31  ;;  %v4138_v31 = vunpack.i.h.bf16 %v2952_v53  ;;  %v4140_v53 = vunpack.i.l.bf16 %v2950_v38 }
 0x126   :  { %1105 = vmatpush.msra.mxu1 %v551_v48  ;;  %v1890_v48 = vunpack.i.h.bf16 %v2606_v42 }
 0x127   :  { %995 = vmatpush.msrb.mxu3 %v327_v56  ;;  %1732 = vmatmul.msk.f32.gmra.mxu2 %vm669_vm8, %v3214_v39  ;;  %v2103_v57 = vpop.permute.xlu1 %2102  ;;  %v4136_v56 = vunpack.i.h.bf16 %v2834_v37  ;;  %v3250_v37 = vld [vmem:[%s4040_s1 + $0xb0] sm:$0xff] }
 0x128   :  { %v3227_v32 = vpop.permute.xlu0 %2097  ;;  %v2104_v5 = vunpack.i.l.bf16 %v2103_v57  ;;  %v2105_v36 = vunpack.i.h.bf16 %v2103_v57 }
 0x129   :  { %996 = vmatpush.msrb.mxu3 %v323_v46  ;;  %v2100_v19 = vunpack.i.h.bf16 %v3227_v32  ;;  %v2099_v34 = vunpack.i.l.bf16 %v3227_v32  ;;  %769 = vmatmul.f32.gmra.mxu1 %v3223_v28 }
 0x12a   :  { %997 = vmatmul.f32.vlgmr.msrb.gmra.mxu3 %v2898_v45  ;;  %v263_v46 = vsel %vm247_vm2, %v2024_v3, %v2104_v5  ;;  %v4139_v3 = vunpack.i.l.bf16 %v2606_v42  ;;  %v2124_v42 = vunpack.i.l.bf16 %v2123_v13 }
 0x12b   :  { %v618_v62 = vsel %vm612_vm4, %v4136_v56, %v2099_v34  ;;  %v614_v10 = vsel %vm612_vm4, %v4137_v2, %v2100_v19 }
 0x12c   :  { %913 = vmatpush.msrb.mxu0 %v618_v62  ;;  %v259_v62 = vsel %vm247_vm2, %v4138_v31, %v2105_v36  ;;  %v255_v5 = vsel %vm247_vm2, %v4139_v3, %v1890_v48  ;;  %v2138_v41 = vpop.permute.xlu2 %2137  ;;  %v4143_v48 = vld [vmem:[#allocation15_spill] sm:$0xff] }
 0x12d   :  { %v2140_v33 = vunpack.i.h.bf16 %v2138_v41 }
 0x12e   :  { %914 = vmatpush.msrb.mxu0 %v614_v10 }
 0x12f   :  { %874 = vmatmul.f32.vlgmr.msrb.gmra.mxu2 %v2898_v45  ;;  %v2118_v57 = vpop.permute.xlu1 %2117  ;;  %1733 = vmatmul.msk.f32.vlgmr.msrb.gmra.mxu0 %vm669_vm8, %v2857_v22 }
 0x130   :  { %1063 = vmatpush.msra.mxu0 %v263_v46  ;;  %v2113_v56 = vpop.permute.xlu0 %2112  ;;  %v2119_v46 = vunpack.i.l.bf16 %v2118_v57  ;;  %v2120_v31 = vunpack.i.h.bf16 %v2118_v57 }
 0x131   :  { %v2115_v2 = vunpack.i.h.bf16 %v2113_v56  ;;  %v2114_v10 = vunpack.i.l.bf16 %v2113_v56  ;;  %772 = vmatmul.f32.gmra.mxu1 %v3250_v37  ;;  %v4142_v56 = vunpack.i.h.bf16 %v2950_v38 }
 0x132   :  { %1064 = vmatpush.msra.mxu0 %v259_v62  ;;  %1000 = vmatmul.f32.gmra.mxu3 %v2938_v52  ;;  %v482_v3 = vsel %vm466_vm5, %v2039_v61, %v2119_v46  ;;  %v474_v46 = vsel %vm466_vm5, %v2049_v24, %v2124_v42 }
 0x133   :  { %v547_v36 = vsel %vm539_vm3, %v4140_v53, %v2114_v10  ;;  %v543_v62 = vsel %vm539_vm3, %v4142_v56, %v2115_v2  ;;  %v478_v53 = vsel %vm466_vm5, %v2044_v9, %v2120_v31  ;;  %v4147_v56 = vld [vmem:[#allocation11_spill] sm:$0xff] }
 0x134   :  { %1065 = vmatpush.msra.mxu0 %v255_v5  ;;  %1106 = vmatpush.msra.mxu1 %v547_v36  ;;  %v4144_v5 = vld [vmem:[#allocation14_spill] sm:$0xff] }
 0x136   :  { %1066 = vmatpush.msra.mxu0 %v4141_v21  ;;  %1107 = vmatpush.msra.mxu1 %v543_v62  ;;  %v2125_v21 = vunpack.i.h.bf16 %v2123_v13  ;;  %v2153_v62 = vpop.permute.xlu2 %2152 }
 0x137   :  { %877 = vmatmul.f32.gmra.mxu2 %v2938_v52  ;;  %v2133_v10 = vpop.permute.xlu1 %2132  ;;  %1734 = vmatmul.msk.f32.gmra.mxu0 %vm669_vm8, %v2889_v17 }
 0x138   :  { %1067 = vmatpush.msra.mxu0 %v4143_v48  ;;  %1108 = vmatpush.msra.mxu1 %v482_v3  ;;  %v2135_v38 = vunpack.i.h.bf16 %v2133_v10  ;;  %v2134_v57 = vunpack.i.l.bf16 %v2133_v10  ;;  %v2128_v2 = vpop.permute.xlu0 %2127  ;;  %v470_v31 = vsel %vm466_vm5, %v2050_v1, %v2125_v21  ;;  %v2154_v10 = vunpack.i.l.bf16 %v2153_v62  ;;  %v4149_v21 = vld [vmem:[#allocation2_spill] sm:$0xff] }
 0x139   :  { %956 = vmatmul.f32.vlgmr.msrb.gmra.mxu1 %v2822_v40  ;;  %v2129_v61 = vunpack.i.l.bf16 %v2128_v2  ;;  %v2130_v36 = vunpack.i.h.bf16 %v2128_v2 }
 0x13a   :  { %1068 = vmatpush.msra.mxu0 %v4144_v5  ;;  %1109 = vmatpush.msra.mxu1 %v478_v53  ;;  %v627_v13 = vsel %vm612_vm4, %v2094_v60, %v2134_v57  ;;  %v623_v9 = vsel %vm612_vm4, %v2095_v44, %v2135_v38  ;;  %v2139_v60 = vunpack.i.l.bf16 %v2138_v41  ;;  %v4148_v44 = vld [vmem:[#allocation9_spill] sm:$0xff]  ;;  %v2155_v5 = vunpack.i.h.bf16 %v2153_v62 }
 0x13b   :  { %1003 = vmatmul.f32.gmra.mxu3 %v2999_v49  ;;  %1034 = vmatpush.msra.mxu2 %v627_v13  ;;  %v409_v24 = vsel %vm393_vm6, %v2059_v20, %v2129_v61  ;;  %v405_v48 = vsel %vm393_vm6, %v2064_v30, %v2130_v36  ;;  %v4150_v53 = vunpack.i.h.bf16 %v3125_v63  ;;  %v4153_v36 = vunpack.i.l.bf16 %v3180_v29 }
 0x13c   :  { %1069 = vmatpush.msra.mxu0 %v4145_v15  ;;  %1110 = vmatpush.msra.mxu1 %v474_v46  ;;  %v401_v41 = vsel %vm393_vm6, %v2069_v51, %v2139_v60  ;;  %v4151_v15 = vld [vmem:[#allocation7_spill] sm:$0xff]  ;;  %v332_v32 = vsel %vm320_vm7, %v2084_v11, %v2155_v5 }
 0x13d   :  { %1035 = vmatpush.msra.mxu2 %v623_v9  ;;  %v397_v61 = vsel %vm393_vm6, %v4150_v53, %v2140_v33  ;;  %v2177_v9 = vld [vmem:[%s4039_s0 + $0x90] sm:$0xff] }
 0x13e   :  { %1070 = vmatpush.msra.mxu0 %v4146_v4  ;;  %1111 = vmatpush.msra.mxu1 %v470_v31  ;;  %v4154_v31 = vunpack.i.h.bf16 %v3180_v29  ;;  %v2180_v29 = vld [vmem:[%s4039_s0 + $0x18] sm:$0xff] }
 0x13f   :  { %880 = vmatmul.f32.gmra.mxu2 %v2999_v49  ;;  %1735 = vmatmul.msk.f32.gmra.mxu0 %vm669_vm8, %v2924_v50 }
 0x140   :  { %1071 = vmatpush.msra.mxu0 %v4147_v56  ;;  %v2148_v42 = vpop.permute.xlu1 %2147  ;;  %1112 = vmatpush.msra.mxu1 %v409_v24  ;;  %v2178_v56 = vld [vmem:[%s4039_s0 + $0x68] sm:$0xff]  ;;  %v2179_v24 = vld [vmem:[%s4039_s0 + $0x40] sm:$0xff] }
 0x141   :  { %v2149_v25 = vunpack.i.l.bf16 %v2148_v42  ;;  %v2143_v1 = vpop.permute.xlu0 %2142  ;;  %959 = vmatmul.f32.gmra.mxu1 %v2852_v7  ;;  %v2150_v14 = vunpack.i.h.bf16 %v2148_v42 }
 0x142   :  { %1072 = vmatpush.msra.mxu0 %v4148_v44  ;;  %v2145_v3 = vunpack.i.h.bf16 %v2143_v1  ;;  %v2144_v20 = vunpack.i.l.bf16 %v2143_v1  ;;  %1113 = vmatpush.msra.mxu1 %v405_v48 }
 0x143   :  { %1006 = vmatmul.f32.gmra.mxu3 %v3073_v0  ;;  %v624_v30 = vsel %vm612_vm4, %v2135_v38, %v2149_v25  ;;  %v615_v51 = vsel %vm612_vm4, %v2100_v19, %v2150_v14 }
 0x144   :  { %1073 = vmatpush.msra.mxu0 %v4149_v21  ;;  %v619_v2 = vsel %vm612_vm4, %v2099_v34, %v2145_v3  ;;  %1114 = vmatpush.msra.mxu1 %v401_v41  ;;  %v628_v23 = vsel %vm612_vm4, %v2134_v57, %v2144_v20  ;;  %v4152_v34 = vunpack.i.l.bf16 %v2943_v12 }
 0x145   :  { %1036 = vmatpush.msra.mxu2 %v619_v2  ;;  %1157 = vmatpush.msra.mxu3 %v628_v23 }
 0x146   :  { %1074 = vmatpush.msra.mxu0 %v4151_v15  ;;  %1115 = vmatpush.msra.mxu1 %v397_v61  ;;  %v336_v38 = vsel %vm320_vm7, %v4152_v34, %v2154_v10 }
 0x147   :  { %1037 = vmatpush.msra.mxu2 %v615_v51  ;;  %1158 = vmatpush.msra.mxu3 %v624_v30 }
 0x148   :  { %883 = vmatmul.f32.gmra.mxu2 %v3073_v0  ;;  %v2163_v57 = vpop.permute.xlu1 %2162  ;;  %1116 = vmatpush.msra.mxu1 %v336_v38 }
 0x149   :  { %v2165_v63 = vunpack.i.h.bf16 %v2163_v57  ;;  %v2164_v13 = vunpack.i.l.bf16 %v2163_v57  ;;  %v2158_v46 = vpop.permute.xlu0 %2157  ;;  %962 = vmatmul.f32.gmra.mxu1 %v2884_v6  ;;  %1736 = vmatmul.msk.f32.gmra.mxu0 %vm669_vm8, %v2980_v59 }
 0x14a   :  { %v2160_v19 = vunpack.i.h.bf16 %v2158_v46  ;;  %v2159_v12 = vunpack.i.l.bf16 %v2158_v46  ;;  %1117 = vmatpush.msra.mxu1 %v332_v32  ;;  %1075 = vmatpush.msra.mxu0 %v2177_v9 }
 0x14b   :  { %1009 = vmatmul.f32.gmra.mxu3 %v3113_v26  ;;  %v328_v4 = vsel %vm320_vm7, %v4153_v36, %v2164_v13  ;;  %v324_v60 = vsel %vm320_vm7, %v4154_v31, %v2165_v63  ;;  %v1466_v36 = vld [vmem:[%s4041_s2 + $0x8] sm:$0xff] }
 0x14c   :  { %1118 = vmatpush.msra.mxu1 %v328_v4  ;;  %v620_v47 = vsel %vm612_vm4, %v2145_v3, %v2159_v12  ;;  %v616_v11 = vsel %vm612_vm4, %v2150_v14, %v2160_v19  ;;  %1076 = vmatpush.msra.mxu0 %v2178_v56  ;;  %v2189_v12 = vmov 0  }
 0x14d   :  { %1159 = vmatpush.msra.mxu3 %v620_v47  ;;  %2167 = vset.pattern.permute.xlu2 %v2189_v12  ;;  %v1468_v47 = vld [vmem:[%s4041_s2 + $0x18] sm:$0xff] }
 0x14e   :  { %1119 = vmatpush.msra.mxu1 %v324_v60  ;;  %1077 = vmatpush.msra.mxu0 %v2179_v24  ;;  %v1467_v24 = vld [vmem:[%s4041_s2 + $0x10] sm:$0xff] }
 0x14f   :  { %1160 = vmatpush.msra.mxu3 %v616_v11  ;;  %2166 = vset.pattern.permute.xlu1 %v2189_v12  ;;  %v1465_v11 = vld [vmem:[%s4041_s2] sm:$0xff] }
 0x150   :  { %886 = vmatmul.f32.gmra.mxu2 %v3113_v26  ;;  %1078 = vmatpush.msra.mxu0 %v2180_v29 }
 0x151   :  { %965 = vmatmul.f32.gmra.mxu1 %v2929_v35  ;;  %1737 = vmatmul.msk.f32.gmra.mxu0 %vm669_vm8, %v3056_v55 }
 0x152   :  { %1480 = vperm.xlu2 %2167, %v1466_v36   ;;  %2168 = vset.pattern.permute.xlu0 %v2189_v12 }
 0x153   :  { %1012 = vmatmul.f32.gmra.mxu3 %v3168_v18  ;;  %1475 = vperm.xlu1 %2166, %v1465_v11  }
 0x158   :  { %889 = vmatmul.f32.gmra.mxu2 %v3168_v18 }
 0x159   :  { %968 = vmatmul.f32.gmra.mxu1 %v2985_v8  ;;  %1738 = vmatmul.msk.f32.gmra.mxu0 %vm669_vm8, %v3104_v54 }
 0x15a   :  { %1490 = vperm.xlu2 %2167, %v1468_v47  }
 0x15b   :  { %1015 = vmatmul.f32.gmra.mxu3 %v3223_v28  ;;  %1485 = vperm.xlu1 %2166, %v1467_v24  }
 0x160   :  { %892 = vmatmul.f32.gmra.mxu2 %v3223_v28 }
 0x161   :  { %971 = vmatmul.f32.gmra.mxu1 %v3064_v27  ;;  %1739 = vmatmul.msk.f32.gmra.mxu0 %vm669_vm8, %v3154_v58 }
 0x162   :  { %v711_v62 = vpop.f32.mrf.mxu0 }
 0x163   :  { %1018 = vmatmul.f32.gmra.mxu3 %v3250_v37 }
 0x168   :  { %895 = vmatmul.f32.gmra.mxu2 %v3250_v37  ;;  %v3376_v42 = vpop.f32.mrf.mxu3 }
 0x169   :  { %974 = vmatmul.f32.gmra.mxu1 %v3118_v43  ;;  %1740 = vmatmul.msk.f32.gmra.mxu0 %vm669_vm8, %v3214_v39 }
 0x16a   :  { %v714_v33 = vpop.f32.mrf.mxu0 }
 0x16b   :  { %1749 = vmatmul.msk.f32.vlgmr.msra.gmra.mxu3 %vm669_vm8, %v2857_v22 }
 0x170   :  { %1741 = vmatmul.msk.f32.vlgmr.msra.gmra.mxu2 %vm669_vm8, %v2857_v22  ;;  %v3384_v25 = vpop.f32.mrf.mxu3 }
 0x171   :  { %977 = vmatmul.f32.gmra.mxu1 %v3178_v16  ;;  %1079 = vmatmul.f32.vlgmr.msra.gmra.mxu0 %v2822_v40 }
 0x172   :  { %v793_v1 = vpop.f32.mrf.mxu2  ;;  %v717_v44 = vpop.f32.mrf.mxu0 }
 0x173   :  { %1750 = vmatmul.msk.f32.gmra.mxu3 %vm669_vm8, %v2889_v17 }
 0x176   :  { %v752_v48 = vpop.f32.mrf.mxu1 }
 0x177   :  { %v753_v14 = vadd.f32 %v752_v48, %v711_v62 }
 0x178   :  { %1742 = vmatmul.msk.f32.gmra.mxu2 %vm669_vm8, %v2889_v17  ;;  %v3394_v22 = vpop.f32.mrf.mxu3 }
 0x179   :  { %v3390_v3 = vadd.f32 %v793_v1, %v753_v14  ;;  %1120 = vmatmul.f32.vlgmr.msra.gmra.mxu1 %v2898_v45  ;;  %1082 = vmatmul.f32.gmra.mxu0 %v2852_v7 }
 0x17a   :  { %v796_v40 = vpop.f32.mrf.mxu2  ;;  %v720_v20 = vpop.f32.mrf.mxu0 }
 0x17b   :  { %4155 = vst [vmem:[#allocation12_spill] sm:$0xff] %v3390_v3  ;;  %1751 = vmatmul.msk.f32.gmra.mxu3 %vm669_vm8, %v2924_v50 }
 0x17e   :  { %v755_v10 = vpop.f32.mrf.mxu1 }
 0x17f   :  { %v756_v21 = vadd.f32 %v755_v10, %v714_v33 }
 0x180   :  { %1743 = vmatmul.msk.f32.gmra.mxu2 %vm669_vm8, %v2924_v50  ;;  %v3406_v7 = vpop.f32.mrf.mxu3 }
 0x181   :  { %v3400_v41 = vadd.f32 %v796_v40, %v756_v21  ;;  %1123 = vmatmul.f32.gmra.mxu1 %v2938_v52  ;;  %1085 = vmatmul.f32.gmra.mxu0 %v2884_v6 }
 0x182   :  { %v799_v17 = vpop.f32.mrf.mxu2  ;;  %v723_v45 = vpop.f32.mrf.mxu0 }
 0x183   :  { %1752 = vmatmul.msk.f32.gmra.mxu3 %vm669_vm8, %v2980_v59 }
 0x186   :  { %v758_v2 = vpop.f32.mrf.mxu1 }
 0x187   :  { %v759_v23 = vadd.f32 %v758_v2, %v717_v44 }
 0x188   :  { %1744 = vmatmul.msk.f32.gmra.mxu2 %vm669_vm8, %v2980_v59 }
 0x189   :  { %v3410_v30 = vadd.f32 %v799_v17, %v759_v23  ;;  %1126 = vmatmul.f32.gmra.mxu1 %v2999_v49  ;;  %1088 = vmatmul.f32.gmra.mxu0 %v2929_v35 }
 0x18a   :  { %v802_v50 = vpop.f32.mrf.mxu2  ;;  %v3416_v6 = vpop.f32.mrf.mxu3 }
 0x18b   :  { %1753 = vmatmul.msk.f32.gmra.mxu3 %vm669_vm8, %v3056_v55 }
 0x18e   :  { %v761_v52 = vpop.f32.mrf.mxu1 }
 0x18f   :  { %v762_v5 = vadd.f32 %v761_v52, %v720_v20  ;;  %v726_v53 = vpop.f32.mrf.mxu0 }
 0x190   :  { %1745 = vmatmul.msk.f32.gmra.mxu2 %vm669_vm8, %v3056_v55 }
 0x191   :  { %v3420_v61 = vadd.f32 %v802_v50, %v762_v5  ;;  %1129 = vmatmul.f32.gmra.mxu1 %v3073_v0  ;;  %1091 = vmatmul.f32.gmra.mxu0 %v2985_v8 }
 0x192   :  { %v805_v59 = vpop.f32.mrf.mxu2 }
 0x193   :  { %1754 = vmatmul.msk.f32.gmra.mxu3 %vm669_vm8, %v3104_v54  ;;  %v3426_v35 = vpop.f32.mrf.mxu3 }
 0x196   :  { %v764_v49 = vpop.f32.mrf.mxu1 }
 0x197   :  { %v765_v15 = vadd.f32 %v764_v49, %v723_v45 }
 0x198   :  { %1746 = vmatmul.msk.f32.gmra.mxu2 %vm669_vm8, %v3104_v54  ;;  %v729_v55 = vpop.f32.mrf.mxu0 }
 0x199   :  { %v3430_v51 = vadd.f32 %v805_v59, %v765_v15  ;;  %1132 = vmatmul.f32.gmra.mxu1 %v3113_v26  ;;  %1094 = vmatmul.f32.gmra.mxu0 %v3064_v27 }
 0x19a   :  { %v808_v0 = vpop.f32.mrf.mxu2 }
 0x19b   :  { %1755 = vmatmul.msk.f32.gmra.mxu3 %vm669_vm8, %v3154_v58 }
 0x19c   :  { %v3436_v8 = vpop.f32.mrf.mxu3 }
 0x19e   :  { %v767_v34 = vpop.f32.mrf.mxu1 }
 0x19f   :  { %v768_v38 = vadd.f32 %v767_v34, %v726_v53 }
 0x1a0   :  { %1747 = vmatmul.msk.f32.gmra.mxu2 %vm669_vm8, %v3154_v58  ;;  %v732_v27 = vpop.f32.mrf.mxu0 }
 0x1a1   :  { %v3440_v57 = vadd.f32 %v808_v0, %v768_v38  ;;  %1135 = vmatmul.f32.gmra.mxu1 %v3168_v18  ;;  %1097 = vmatmul.f32.gmra.mxu0 %v3118_v43 }
 0x1a2   :  { %v811_v54 = vpop.f32.mrf.mxu2 }
 0x1a3   :  { %1756 = vmatmul.msk.f32.gmra.mxu3 %vm669_vm8, %v3214_v39 }
 0x1a5   :  { %v3446_v26 = vpop.f32.mrf.mxu3 }
 0x1a6   :  { %v770_v63 = vpop.f32.mrf.mxu1 }
 0x1a7   :  { %v771_v13 = vadd.f32 %v770_v63, %v729_v55  ;;  %v20_v55 = vld [vmem:[%s4042_s4] sm:$0xf] }
 0x1a8   :  { %1748 = vmatmul.msk.f32.gmra.mxu2 %vm669_vm8, %v3214_v39  ;;  %v3519_v38 = vperm.slane %v20_v55, 1  ;;  %v3523_v63 = vperm.slane %v20_v55, 0 }
 0x1a9   :  { %v3450_v46 = vadd.f32 %v811_v54, %v771_v13  ;;  %1138 = vmatmul.f32.gmra.mxu1 %v3223_v28  ;;  %1100 = vmatmul.f32.gmra.mxu0 %v3178_v16 }
 0x1aa   :  { %v814_v58 = vpop.f32.mrf.mxu2 }
 0x1ab   :  { %4156 = vst [vmem:[#allocation3_spill] sm:$0xff] %v3450_v46 }
 0x1ac   :  { %v916_v43 = vpop.f32.mrf.mxu0 }
 0x1ad   :  { %v998_v18 = vpop.f32.mrf.mxu3 }
 0x1ae   :  { %v773_v32 = vpop.f32.mrf.mxu1 }
 0x1af   :  { %v774_v19 = vadd.f32 %v773_v32, %v732_v27 }
 0x1b1   :  { %v3457_v39 = vadd.f32 %v814_v58, %v774_v19  ;;  %1141 = vmatmul.f32.gmra.mxu1 %v3250_v37  ;;  %v3527_v58 = vperm.slane %v20_v55, 2 }
 0x1b2   :  { %v875_v28 = vpop.f32.mrf.mxu2 }
 0x1b3   :  { %4157 = vst [vmem:[#allocation10_spill] sm:$0xff] %v3457_v39  ;;  %v876_v49 = vadd.f32 %v875_v28, %v3376_v42 }
 0x1b4   :  { %v919_v16 = vpop.f32.mrf.mxu0 }
 0x1b5   :  { %v1001_v4 = vpop.f32.mrf.mxu3  ;;  %v3517_v34 = vadd.f32 %v916_v43, %v876_v49  ;;  %v1195_v43 = vmul.f32 %v3523_v63, %v3390_v3 }
 0x1b6   :  { %v957_v9 = vpop.f32.mrf.mxu1 }
 0x1b7   :  { %4159 = vst [vmem:[#allocation5_spill] sm:$0xff] %v3517_v34  ;;  %v1196_v13 = vmul.f32 %v3519_v38, %v3517_v34  ;;  %v999_v42 = vadd.f32 %v998_v18, %v957_v9  ;;  %v3538_v9 = vperm.slane %v20_v55, 3  ;;  %v1267_v34 = vmul.f32 %v1195_v43, %v1195_v43 }
 0x1b8   :  { %v1199_v55 = vmul.f32 %v3523_v63, %v3400_v41 }
 0x1b9   :  { %v1268_v28 = vmul.f32 %v1196_v13, %v1196_v13 }
 0x1ba   :  { %v878_v31 = vpop.f32.mrf.mxu2 }
 0x1bb   :  { %v879_v32 = vadd.f32 %v878_v31, %v3384_v25  ;;  %v1227_v25 = vadd.f32 %v1196_v13, %v1195_v43 }
 0x1bc   :  { %v3466_v60 = vpop.f32.mrf.mxu0 }
 0x1bd   :  { %v3536_v49 = vadd.f32 %v919_v16, %v879_v32 }
 0x1be   :  { %v3468_v56 = vpop.f32.mrf.mxu3  ;;  %v960_v37 = vpop.f32.mrf.mxu1 }
 0x1bf   :  { %v1002_v3 = vadd.f32 %v1001_v4, %v960_v37 }
 0x1c2   :  { %v881_v29 = vpop.f32.mrf.mxu2 }
 0x1c6   :  { %v3473_v62 = vpop.f32.mrf.mxu3  ;;  %v3475_v33 = vpop.f32.mrf.mxu1 }
 0x1c7   :  { %v3477_v1 = vpop.f32.mrf.mxu0 }
 0x1cb   :  { %v3479_v44 = vpop.f32.mrf.mxu2 }
 0x1ce   :  { %v3481_v48 = vpop.f32.mrf.mxu3  ;;  %v3483_v14 = vpop.f32.mrf.mxu1 }
 0x1cf   :  { %v3485_v40 = vpop.f32.mrf.mxu0 }
 0x1d3   :  { %v3487_v20 = vpop.f32.mrf.mxu2 }
 0x1d6   :  { %v3489_v10 = vpop.f32.mrf.mxu3  ;;  %v3491_v21 = vpop.f32.mrf.mxu1 }
 0x1d7   :  { %v3493_v17 = vpop.f32.mrf.mxu0 }
 0x1db   :  { %v3495_v45 = vpop.f32.mrf.mxu2 }
 0x1de   :  { %v3497_v2 = vpop.f32.mrf.mxu3  ;;  %v3499_v23 = vpop.f32.mrf.mxu1 }
 0x1df   :  { %v3501_v50 = vpop.f32.mrf.mxu0 }
 0x1e3   :  { %v3503_v52 = vpop.f32.mrf.mxu2 }
 0x1e6   :  { %v3505_v5 = vpop.f32.mrf.mxu3  ;;  %v3507_v53 = vpop.f32.mrf.mxu1 }
 0x1e7   :  { %4158 = vst [vmem:[#allocation8_spill] sm:$0xff] %v3505_v5  ;;  %v3509_v59 = vpop.f32.mrf.mxu0  ;;  %v882_v5 = vadd.f32 %v881_v29, %v3394_v22 }
 0x1e9   :  { %v3554_v29 = vadd.f32 %v3466_v60, %v882_v5 }
 0x1eb   :  { %v3512_v15 = vpop.f32.mrf.mxu2 }
 0x1ee   :  { %v1162_v0 = vpop.f32.mrf.mxu3  ;;  %v3521_v54 = vpop.f32.mrf.mxu1 }
 0x1ef   :  { %v1080_v27 = vpop.f32.mrf.mxu0 }
 0x1f3   :  { %v1039_v19 = vpop.f32.mrf.mxu2 }
 0x1f4   :  { %v3532_v12 = vadd.f32 %v1039_v19, %v999_v42  ;;  %v1299_v42 = vadd.f32 %v1268_v28, %v1267_v34  ;;  %v1200_v19 = vmul.f32 %v3519_v38, %v3536_v49 }
 0x1f6   :  { %4160 = vst [vmem:[#allocation6_spill] sm:$0xff] %v3532_v12  ;;  %v1165_v36 = vpop.f32.mrf.mxu3  ;;  %v1197_v47 = vmul.f32 %v3527_v58, %v3532_v12  ;;  %v1121_v11 = vpop.f32.mrf.mxu1  ;;  %v1272_v22 = vmul.f32 %v1200_v19, %v1200_v19 }
 0x1f7   :  { %v1083_v24 = vpop.f32.mrf.mxu0  ;;  %v1122_v18 = vadd.f32 %v1121_v11, %v1080_v27 }
 0x1f8   :  { %v1269_v31 = vmul.f32 %v1197_v47, %v1197_v47  ;;  %v1228_v32 = vadd.f32 %v1227_v25, %v1197_v47  ;;  %v1271_v47 = vmul.f32 %v1199_v55, %v1199_v55 }
 0x1f9   :  { %v3540_v39 = vadd.f32 %v1162_v0, %v1122_v18 }
 0x1fa   :  { %v1300_v43 = vadd.f32 %v1299_v42, %v1269_v31  ;;  %v885_v31 = vadd.f32 %v3479_v44, %v3406_v7  ;;  %v1232_v42 = vadd.f32 %v1200_v19, %v1199_v55 }
 0x1fb   :  { %v1198_v12 = vmul.f32 %v3538_v9, %v3540_v39  ;;  %v1042_v16 = vpop.f32.mrf.mxu2 }
 0x1fc   :  { %v3547_v27 = vadd.f32 %v1042_v16, %v1002_v3  ;;  %v1204_v16 = vmul.f32 %v3519_v38, %v3554_v29  ;;  %v3571_v7 = vadd.f32 %v3477_v1, %v885_v31  ;;  %v1008_v1 = vadd.f32 %v3473_v62, %v3483_v14 }
 0x1fd   :  { %v1229_v13 = vadd.f32 %v1228_v32, %v1198_v12  ;;  %v1270_v0 = vmul.f32 %v1198_v12, %v1198_v12  ;;  %v1005_v12 = vadd.f32 %v3468_v56, %v3475_v33  ;;  %v888_v31 = vadd.f32 %v3487_v20, %v3416_v6 }
 0x1fe   :  { %v1168_v4 = vpop.f32.mrf.mxu3  ;;  %v1201_v37 = vmul.f32 %v3527_v58, %v3547_v27  ;;  %v1124_v34 = vpop.f32.mrf.mxu1 }
 0x1ff   :  { %v1086_v28 = vpop.f32.mrf.mxu0  ;;  %v1125_v11 = vadd.f32 %v1124_v34, %v1083_v24  ;;  %1230 = vadd.xlane.f32.xlu2 %v1229_v13  ;;  %v1301_v3 = vadd.f32 %v1300_v43, %v1270_v0  ;;  %v1304_v24 = vadd.f32 %v1272_v22, %v1271_v47  ;;  %v1276_v43 = vmul.f32 %v1204_v16, %v1204_v16 }
 0x200   :  { %v1273_v18 = vmul.f32 %v1201_v37, %v1201_v37  ;;  %v1233_v56 = vadd.f32 %v1232_v42, %v1201_v37  ;;  %v1208_v37 = vmul.f32 %v3519_v38, %v3571_v7  ;;  %v3592_v6 = vadd.f32 %v3485_v40, %v888_v31 }
 0x201   :  { %v3556_v25 = vadd.f32 %v1165_v36, %v1125_v11  ;;  %1302 = vadd.xlane.f32.xlu0 %v1301_v3  ;;  %v1203_v36 = vmul.f32 %v3523_v63, %v3410_v30 }
 0x202   :  { %v1305_v0 = vadd.f32 %v1304_v24, %v1273_v18  ;;  %v1212_v40 = vmul.f32 %v3519_v38, %v3592_v6 }
 0x203   :  { %v1202_v60 = vmul.f32 %v3538_v9, %v3556_v25  ;;  %v1045_v5 = vpop.f32.mrf.mxu2  ;;  %v1275_v3 = vmul.f32 %v1203_v36, %v1203_v36  ;;  %v1237_v18 = vadd.f32 %v1204_v16, %v1203_v36 }
 0x204   :  { %v3566_v32 = vadd.f32 %v1045_v5, %v1005_v12 }
 0x205   :  { %v1274_v13 = vmul.f32 %v1202_v60, %v1202_v60  ;;  %v1234_v11 = vadd.f32 %v1233_v56, %v1202_v60  ;;  %v1309_v60 = vadd.f32 %v1276_v43, %v1275_v3  ;;  %v1280_v56 = vmul.f32 %v1208_v37, %v1208_v37 }
 0x206   :  { %v1171_v33 = vpop.f32.mrf.mxu3  ;;  %v1205_v44 = vmul.f32 %v3527_v58, %v3566_v32  ;;  %v1127_v19 = vpop.f32.mrf.mxu1  ;;  %v891_v3 = vadd.f32 %v3495_v45, %v3426_v35 }
 0x207   :  { %v1089_v55 = vpop.f32.mrf.mxu0  ;;  %v1128_v34 = vadd.f32 %v1127_v19, %v1086_v28  ;;  %v1306_v22 = vadd.f32 %v1305_v0, %v1274_v13 }
 0x208   :  { %v1277_v47 = vmul.f32 %v1205_v44, %v1205_v44  ;;  %v1238_v24 = vadd.f32 %v1237_v18, %v1205_v44  ;;  %v1011_v44 = vadd.f32 %v3481_v48, %v3491_v21  ;;  %v3609_v21 = vadd.f32 %v3493_v17, %v891_v3 }
 0x209   :  { %v3575_v12 = vadd.f32 %v1168_v4, %v1128_v34  ;;  %1307 = vadd.xlane.f32.xlu1 %v1306_v22  ;;  %1235 = vadd.xlane.f32.xlu0 %v1234_v11  ;;  %v1207_v4 = vmul.f32 %v3523_v63, %v3420_v61  ;;  %v1014_v17 = vadd.f32 %v3489_v10, %v3499_v23 }
 0x20a   :  { %v1310_v0 = vadd.f32 %v1309_v60, %v1277_v47 }
 0x20b   :  { %v1206_v28 = vmul.f32 %v3538_v9, %v3575_v12  ;;  %v1048_v42 = vpop.f32.mrf.mxu2  ;;  %v1279_v34 = vmul.f32 %v1207_v4, %v1207_v4  ;;  %v1242_v47 = vadd.f32 %v1208_v37, %v1207_v4  ;;  %v1284_v37 = vmul.f32 %v1212_v40, %v1212_v40 }
 0x20c   :  { %v3585_v5 = vadd.f32 %v1048_v42, %v1008_v1 }
 0x20d   :  { %v1278_v13 = vmul.f32 %v1206_v28, %v1206_v28  ;;  %v1239_v36 = vadd.f32 %v1238_v24, %v1206_v28  ;;  %v1314_v18 = vadd.f32 %v1280_v56, %v1279_v34 }
 0x20e   :  { %v1209_v62 = vmul.f32 %v3527_v58, %v3585_v5  ;;  %v1130_v14 = vpop.f32.mrf.mxu1  ;;  %v1174_v43 = vpop.f32.mrf.mxu3 }
 0x20f   :  { %v1092_v16 = vpop.f32.mrf.mxu0  ;;  %v1131_v20 = vadd.f32 %v1130_v14, %v1089_v55  ;;  %v1311_v19 = vadd.f32 %v1310_v0, %v1278_v13 }
 0x210   :  { %v1281_v22 = vmul.f32 %v1209_v62, %v1209_v62  ;;  %v1243_v48 = vadd.f32 %v1242_v47, %v1209_v62  ;;  %v1216_v62 = vmul.f32 %v3519_v38, %v3609_v21 }
 0x211   :  { %v3594_v11 = vadd.f32 %v1171_v33, %v1131_v20  ;;  %1240 = vadd.xlane.f32.xlu1 %v1239_v36  ;;  %1312 = vadd.xlane.f32.xlu2 %v1311_v19  ;;  %v1211_v33 = vmul.f32 %v3523_v63, %v3430_v51 }
 0x212   :  { %v1315_v42 = vadd.f32 %v1314_v18, %v1281_v22 }
 0x213   :  { %v1210_v55 = vmul.f32 %v3538_v9, %v3594_v11  ;;  %v1051_v1 = vpop.f32.mrf.mxu2  ;;  %v1283_v0 = vmul.f32 %v1211_v33, %v1211_v33  ;;  %v1247_v36 = vadd.f32 %v1212_v40, %v1211_v33 }
 0x214   :  { %v3604_v31 = vadd.f32 %v1051_v1, %v1011_v44  ;;  %v1288_v1 = vmul.f32 %v1216_v62, %v1216_v62 }
 0x215   :  { %v1282_v28 = vmul.f32 %v1210_v55, %v1210_v55  ;;  %v1244_v24 = vadd.f32 %v1243_v48, %v1210_v55  ;;  %v1319_v22 = vadd.f32 %v1284_v37, %v1283_v0 }
 0x216   :  { %v1213_v35 = vmul.f32 %v3527_v58, %v3604_v31  ;;  %v1133_v45 = vpop.f32.mrf.mxu1  ;;  %v1177_v20 = vpop.f32.mrf.mxu3 }
 0x217   :  { %v1134_v60 = vadd.f32 %v1133_v45, %v1092_v16  ;;  %v1316_v4 = vadd.f32 %v1315_v42, %v1282_v28  ;;  %v1095_v13 = vpop.f32.mrf.mxu0  ;;  %v894_v16 = vadd.f32 %v3503_v52, %v3436_v8 }
 0x218   :  { %v1285_v56 = vmul.f32 %v1213_v35, %v1213_v35  ;;  %v1248_v55 = vadd.f32 %v1247_v36, %v1213_v35  ;;  %v1017_v35 = vadd.f32 %v3497_v2, %v3507_v53 }
 0x219   :  { %v3613_v14 = vadd.f32 %v1174_v43, %v1134_v60  ;;  %1317 = vadd.xlane.f32.xlu0 %v1316_v4  ;;  %1245 = vadd.xlane.f32.xlu2 %v1244_v24  ;;  %v1215_v43 = vmul.f32 %v3523_v63, %v3440_v57  ;;  %v3630_v8 = vadd.f32 %v3501_v50, %v894_v16 }
 0x21a   :  { %v1320_v47 = vadd.f32 %v1319_v22, %v1285_v56  ;;  %v897_v50 = vadd.f32 %v3512_v15, %v3446_v26 }
 0x21b   :  { %v1214_v19 = vmul.f32 %v3538_v9, %v3613_v14  ;;  %v1054_v34 = vpop.f32.mrf.mxu2  ;;  %4161 = vst [vmem:[#allocation16_spill] sm:$0xff] %v3630_v8  ;;  %v1287_v33 = vmul.f32 %v1215_v43, %v1215_v43  ;;  %v1252_v28 = vadd.f32 %v1216_v62, %v1215_v43  ;;  %v1220_v60 = vmul.f32 %v3519_v38, %v3630_v8 }
 0x21c   :  { %v3625_v44 = vadd.f32 %v1054_v34, %v1014_v17  ;;  %v1219_v62 = vmul.f32 %v3523_v63, %v3450_v46  ;;  %v3649_v26 = vadd.f32 %v3509_v59, %v897_v50 }
 0x21d   :  { %v1286_v3 = vmul.f32 %v1214_v19, %v1214_v19  ;;  %v1249_v18 = vadd.f32 %v1248_v55, %v1214_v19  ;;  %v1324_v37 = vadd.f32 %v1288_v1, %v1287_v33  ;;  %v1292_v16 = vmul.f32 %v1220_v60, %v1220_v60  ;;  %v4165_v33 = vld [vmem:[#allocation10_spill] sm:$0xff] }
 0x21e   :  { %v1217_v10 = vmul.f32 %v3527_v58, %v3625_v44  ;;  %v1136_v23 = vpop.f32.mrf.mxu1  ;;  %v1180_v56 = vpop.f32.mrf.mxu3  ;;  %v1291_v34 = vmul.f32 %v1219_v62, %v1219_v62  ;;  %v1257_v22 = vadd.f32 %v1220_v60, %v1219_v62  ;;  %v1224_v1 = vmul.f32 %v3519_v38, %v3649_v26 }
 0x21f   :  { %v1137_v52 = vadd.f32 %v1136_v23, %v1095_v13  ;;  %v1321_v40 = vadd.f32 %v1320_v47, %v1286_v3  ;;  %v1098_v45 = vpop.f32.mrf.mxu0  ;;  %v4164_v47 = vld [vmem:[#allocation8_spill] sm:$0xff] }
 0x220   :  { %v1289_v42 = vmul.f32 %v1217_v10, %v1217_v10  ;;  %v1253_v13 = vadd.f32 %v1252_v28, %v1217_v10  ;;  %v1020_v55 = vadd.f32 %v4164_v47, %v3521_v54  ;;  %v1223_v28 = vmul.f32 %v3523_v63, %v4165_v33  ;;  %v1545_v47 = vld [vmem:[%s4043_s3] sm:$0xff] }
 0x221   :  { %v3632_v48 = vadd.f32 %v1177_v20, %v1137_v52  ;;  %1322 = vadd.xlane.f32.xlu1 %v1321_v40  ;;  %1250 = vadd.xlane.f32.xlu2 %v1249_v18  ;;  %v1329_v52 = vadd.f32 %v1292_v16, %v1291_v34  ;;  %v1296_v50 = vmul.f32 %v1224_v1, %v1224_v1  ;;  %v1471_v34 = vld [vmem:[%s4041_s2 + $0x30] sm:$0xff] }
 0x222   :  { %v1325_v17 = vadd.f32 %v1324_v37, %v1289_v42 }
 0x223   :  { %v1218_v4 = vmul.f32 %v3538_v9, %v3632_v48  ;;  %v1057_v24 = vpop.f32.mrf.mxu2 }
 0x224   :  { %v3642_v0 = vadd.f32 %v1057_v24, %v1017_v35 }
 0x225   :  { %v1254_v2 = vadd.f32 %v1253_v13, %v1218_v4  ;;  %v1290_v53 = vmul.f32 %v1218_v4, %v1218_v4  ;;  %v1295_v13 = vmul.f32 %v1223_v28, %v1223_v28 }
 0x226   :  { %4162 = vst [vmem:[#allocation15_spill] sm:$0xff] %v3642_v0  ;;  %v1221_v20 = vmul.f32 %v3527_v58, %v3642_v0  ;;  %v1139_v36 = vpop.f32.mrf.mxu1  ;;  %v1183_v60 = vpop.f32.mrf.mxu3 }
 0x227   :  { %v1140_v15 = vadd.f32 %v1139_v36, %v1098_v45  ;;  %1255 = vadd.xlane.f32.xlu0 %v1254_v2  ;;  %v1326_v19 = vadd.f32 %v1325_v17, %v1290_v53  ;;  %v1101_v18 = vpop.f32.mrf.mxu0 }
 0x228   :  { %v1293_v43 = vmul.f32 %v1221_v20, %v1221_v20  ;;  %v1258_v23 = vadd.f32 %v1257_v22, %v1221_v20  ;;  %v1334_v20 = vadd.f32 %v1296_v50, %v1295_v13  ;;  %v1470_v22 = vld [vmem:[%s4041_s2 + $0x28] sm:$0xff] }
 0x229   :  { %v3651_v3 = vadd.f32 %v1180_v56, %v1140_v15  ;;  %1327 = vadd.xlane.f32.xlu2 %v1326_v19  ;;  %v1262_v56 = vadd.f32 %v1224_v1, %v1223_v28  ;;  %v1548_v1 = vld [vmem:[%s4043_s3 + $0x18] sm:$0xff] }
 0x22a   :  { %v1330_v45 = vadd.f32 %v1329_v52, %v1293_v43  ;;  %v1546_v43 = vld [vmem:[%s4043_s3 + $0x8] sm:$0xff]  ;;  %v3694_v52 = vpop.permute.xlu1 %1475  ;;  %v1472_v28 = vld [vmem:[%s4041_s2 + $0x38] sm:$0xff] }
 0x22b   :  { %4163 = vst [vmem:[#allocation14_spill] sm:$0xff] %v3651_v3  ;;  %v1222_v10 = vmul.f32 %v3538_v9, %v3651_v3  ;;  %v1060_v59 = vpop.f32.mrf.mxu2 }
 0x22c   :  { %v3659_v40 = vadd.f32 %v1060_v59, %v1020_v55  ;;  %v1549_v55 = vld [vmem:[%s4043_s3 + $0x20] sm:$0xff] }
 0x22d   :  { %v1259_v42 = vadd.f32 %v1258_v23, %v1222_v10  ;;  %v1294_v35 = vmul.f32 %v1222_v10, %v1222_v10  ;;  %v3687_v10 = vpop.permute.xlu2 %1480  ;;  %v1469_v23 = vld [vmem:[%s4041_s2 + $0x20] sm:$0xff] }
 0x22e   :  { %v1225_v54 = vmul.f32 %v3527_v58, %v3659_v40  ;;  %v1142_v37 = vpop.f32.mrf.mxu1 }
 0x22f   :  { %v1143_v4 = vadd.f32 %v1142_v37, %v1101_v18  ;;  %1260 = vadd.xlane.f32.xlu1 %v1259_v42  ;;  %v1331_v24 = vadd.f32 %v1330_v45, %v1294_v35  ;;  %v1547_v37 = vld [vmem:[%s4043_s3 + $0x10] sm:$0xff] }
 0x230   :  { %v1297_v62 = vmul.f32 %v1225_v54, %v1225_v54  ;;  %v1263_v17 = vadd.f32 %v1262_v56, %v1225_v54 }
 0x231   :  { %v3665_v2 = vadd.f32 %v1183_v60, %v1143_v4  ;;  %1332 = vadd.xlane.f32.xlu0 %v1331_v24 }
 0x232   :  { %v1335_v15 = vadd.f32 %v1334_v20, %v1297_v62  ;;  %v3699_v42 = vpop.permute.xlu1 %1485 }
 0x233   :  { %v1226_v53 = vmul.f32 %v3538_v9, %v3665_v2 }
 0x235   :  { %v1264_v36 = vadd.f32 %v1263_v17, %v1226_v53  ;;  %v1298_v16 = vmul.f32 %v1226_v53, %v1226_v53  ;;  %v3689_v59 = vpop.permute.xlu2 %1490 }
 0x237   :  { %1265 = vadd.xlane.f32.xlu2 %v1264_v36  ;;  %v1336_v19 = vadd.f32 %v1335_v15, %v1298_v16 }
 0x239   :  { %1337 = vadd.xlane.f32.xlu1 %v1336_v19 }
 0x245   :  { %1495 = vperm.xlu0 %2168, %v1469_v23  }
 0x24d   :  { %1510 = vperm.xlu0 %2168, %v1472_v28  }
 0x24f   :  { %1505 = vperm.xlu2 %2167, %v1471_v34  }
 0x252   :  { %1500 = vperm.xlu1 %2166, %v1470_v22  }
 0x255   :  { %1565 = vperm.xlu0 %2168, %v1547_v37  }
 0x257   :  { %1560 = vperm.xlu2 %2167, %v1546_v43  }
 0x25a   :  { %1555 = vperm.xlu1 %2166, %v1545_v47  }
 0x25f   :  { %1575 = vperm.xlu2 %2167, %v1549_v55  }
 0x262   :  { %1570 = vperm.xlu1 %2166, %v1548_v1  }
 0x272   :  { %v1231_v18 = vpop.xlane.xlu2 %1230 }
 0x274   :  { %v1303_v35 = vpop.xlane.xlu0 %1302 }
 0x27c   :  { %v1308_v54 = vpop.xlane.xlu1 %1307  ;;  %v1236_v60 = vpop.xlane.xlu0 %1235 }
 0x284   :  { %v1313_v45 = vpop.xlane.xlu2 %1312  ;;  %v1241_v4 = vpop.xlane.xlu1 %1240 }
 0x285   :  { %v1339_v53 = vadd.f32 %v1241_v4, %v1231_v18  ;;  %v1345_v17 = vadd.f32 %v1313_v45, %v1303_v35 }
 0x28c   :  { %v1246_v50 = vpop.xlane.xlu2 %1245  ;;  %v1318_v24 = vpop.xlane.xlu0 %1317 }
 0x28d   :  { %v1340_v47 = vadd.f32 %v1246_v50, %v1236_v60  ;;  %v1346_v23 = vadd.f32 %v1318_v24, %v1308_v54  ;;  %v1550_v54 = vld [vmem:[%s4043_s3 + $0x28] sm:$0xff] }
 0x294   :  { %v1251_v13 = vpop.xlane.xlu2 %1250  ;;  %v1323_v56 = vpop.xlane.xlu1 %1322 }
 0x295   :  { %v1341_v20 = vadd.f32 %v1339_v53, %v1251_v13  ;;  %v1347_v15 = vadd.f32 %v1345_v17, %v1323_v56 }
 0x29a   :  { %v1256_v62 = vpop.xlane.xlu0 %1255 }
 0x29b   :  { %v1342_v28 = vadd.f32 %v1340_v47, %v1256_v62 }
 0x29c   :  { %v1328_v36 = vpop.xlane.xlu2 %1327 }
 0x29d   :  { %v1348_v0 = vadd.f32 %v1346_v23, %v1328_v36 }
 0x2a2   :  { %v1261_v16 = vpop.xlane.xlu1 %1260 }
 0x2a3   :  { %v1343_v19 = vadd.f32 %v1341_v20, %v1261_v16 }
 0x2a4   :  { %v1333_v34 = vpop.xlane.xlu0 %1332 }
 0x2a5   :  { %v1351_v22 = vmul.f32 0.00086805556, %v1343_v19  ;;  %v1349_v43 = vadd.f32 %v1347_v15, %v1333_v34 }
 0x2a7   :  { %v1355_v55 = vmul.f32 %v1351_v22, %v1351_v22  ;;  %v1353_v1 = vmul.f32 0.00086805556, %v1349_v43  ;;  %1383 = vperm.xlu2 %2167, %v1351_v22   ;;  %v1551_v22 = vld [vmem:[%s4043_s3 + $0x30] sm:$0xff] }
 0x2a9   :  { %v1357_v37 = vsub.f32 %v1353_v1, %v1355_v55 }
 0x2aa   :  { %v1266_v3 = vpop.xlane.xlu2 %1265 }
 0x2ab   :  { %v1359_v8 = vadd.f32 1e-05, %v1357_v37  ;;  %v1344_v18 = vadd.f32 %v1342_v28, %v1266_v3 }
 0x2ac   :  { %v1338_v35 = vpop.xlane.xlu1 %1337 }
 0x2ad   :  { %2169 = vrsqrt.f32 %v1359_v8  ;;  %v1352_v45 = vmul.f32 0.00086805556, %v1344_v18  ;;  %v1350_v4 = vadd.f32 %v1348_v0, %v1338_v35  ;;  %vm1367_vm10 = vweird.f32 %v1359_v8 }
 0x2af   :  { %v1356_v13 = vmul.f32 %v1352_v45, %v1352_v45  ;;  %v1354_v56 = vmul.f32 0.00086805556, %v1350_v4  ;;  %1388 = vperm.xlu0 %2168, %v1352_v45  }
 0x2b1   :  { %v1358_v53 = vsub.f32 %v1354_v56, %v1356_v13  ;;  %v4167_v13 = vld [vmem:[#allocation12_spill] sm:$0xff] }
 0x2b2   :  { %v3713_v55 = vpop.permute.xlu2 %1505 }
 0x2b3   :  { %v2170_v17 = vpop.eup %2169  ;;  %v1360_v60 = vadd.f32 1e-05, %v1358_v53  ;;  %4166 = vst [vmem:[#allocation4_spill] sm:$0xff] %v3713_v55  ;;  %v4168_v53 = vld [vmem:[#allocation5_spill] sm:$0xff] }
 0x2b4   :  { %v1362_v50 = vmul.f32 %v2170_v17, %v1359_v8  ;;  %vm1368_vm9 = vweird.f32 %v2170_v17  ;;  %v1552_v8 = vld [vmem:[%s4043_s3 + $0x38] sm:$0xff] }
 0x2b5   :  { %2171 = vrsqrt.f32 %v1360_v60  ;;  %vm1369_vm11 = vmor %vm1367_vm10, %vm1368_vm9  ;;  %vm1377_vm13 = vweird.f32 %v1360_v60 }
 0x2b6   :  { %v1363_v24 = vmul.f32 %v2170_v17, %v1362_v50 }
 0x2b7   :  { %1580 = vperm.xlu0 %2168, %v1550_v54   ;;  %v3715_v1 = vpop.permute.xlu0 %1495 }
 0x2b8   :  { %v1364_v62 = vmul.f32 0.5, %v1363_v24 }
 0x2ba   :  { %v1365_v3 = vsub.f32 1.5, %v1364_v62  ;;  %v1561_v23 = vpop.permute.xlu2 %1560 }
 0x2bb   :  { %v2172_v20 = vpop.eup %2171 }
 0x2bc   :  { %v1372_v36 = vmul.f32 %v2172_v20, %v1360_v60  ;;  %v1366_v0 = vmul.f32 %v2170_v17, %v1365_v3  ;;  %vm1378_vm12 = vweird.f32 %v2172_v20  ;;  %v4169_v60 = vld [vmem:[#allocation6_spill] sm:$0xff] }
 0x2bd   :  { %vm1379_vm14 = vmor %vm1377_vm13, %vm1378_vm12 }
 0x2be   :  { %v1370_v16 = vsel %vm1369_vm11, %v2170_v17, %v1366_v0  ;;  %v1373_v15 = vmul.f32 %v2172_v20, %v1372_v36 }
 0x2bf   :  { %1425 = vperm.xlu1 %2166, %v1370_v16   ;;  %v3717_v28 = vpop.permute.xlu0 %1510 }
 0x2c0   :  { %v1374_v19 = vmul.f32 0.5, %v1373_v15 }
 0x2c2   :  { %v1375_v34 = vsub.f32 1.5, %v1374_v19  ;;  %v3719_v37 = vpop.permute.xlu2 %1575 }
 0x2c4   :  { %v1376_v43 = vmul.f32 %v2172_v20, %v1375_v34  ;;  %v3721_v18 = vpop.permute.xlu1 %1500 }
 0x2c6   :  { %v1380_v47 = vsel %vm1379_vm14, %v2172_v20, %v1376_v43 }
 0x2c7   :  { %1585 = vperm.xlu1 %2166, %v1551_v22   ;;  %1430 = vperm.xlu2 %2167, %v1380_v47   ;;  %v3723_v35 = vpop.permute.xlu0 %1565 }
 0x2cc   :  { %v3727_v4 = vpop.permute.xlu1 %1555 }
 0x2cf   :  { %1590 = vperm.xlu2 %2167, %v1552_v8  }
 0x2d4   :  { %v1571_v62 = vpop.permute.xlu1 %1570 }
 0x301   :  { %v3725_v45 = vpop.permute.xlu2 %1383 }
 0x321   :  { %v3753_v19 = vpop.permute.xlu0 %1388  ;;  %v3771_v0 = vpop.permute.xlu2 %1430 }
 0x322   :  { %v1395_v34 = vsub.f32 %v3400_v41, %v3753_v19  ;;  %v1396_v22 = vsub.f32 %v3536_v49, %v3753_v19  ;;  %v1397_v43 = vsub.f32 %v3547_v27, %v3753_v19  ;;  %v1398_v47 = vsub.f32 %v3556_v25, %v3753_v19 }
 0x323   :  { %v1403_v8 = vsub.f32 %v3420_v61, %v3753_v19  ;;  %v1404_v15 = vsub.f32 %v3571_v7, %v3753_v19  ;;  %v1405_v16 = vsub.f32 %v3585_v5, %v3753_v19  ;;  %v1406_v41 = vsub.f32 %v3594_v11, %v3753_v19 }
 0x324   :  { %v1437_v49 = vmul.f32 %v3771_v0, %v1395_v34  ;;  %v1438_v27 = vmul.f32 %v3771_v0, %v1396_v22  ;;  %v1439_v25 = vmul.f32 %v3771_v0, %v1397_v43  ;;  %v1440_v36 = vmul.f32 %v3771_v0, %v1398_v47 }
 0x325   :  { %v1445_v61 = vmul.f32 %v3771_v0, %v1403_v8  ;;  %v1446_v7 = vmul.f32 %v3771_v0, %v1404_v15  ;;  %v1447_v20 = vmul.f32 %v3771_v0, %v1405_v16  ;;  %v1448_v5 = vmul.f32 %v3771_v0, %v1406_v41 }
 0x326   :  { %v1517_v11 = vmul.f32 %v3687_v10, %v1437_v49  ;;  %v1518_v3 = vmul.f32 %v3687_v10, %v1438_v27  ;;  %v1519_v34 = vmul.f32 %v3687_v10, %v1439_v25  ;;  %v1520_v22 = vmul.f32 %v3687_v10, %v1440_v36 }
 0x327   :  { %v1525_v43 = vmul.f32 %v3689_v59, %v1445_v61  ;;  %v1526_v47 = vmul.f32 %v3689_v59, %v1446_v7  ;;  %v1527_v8 = vmul.f32 %v3689_v59, %v1447_v20  ;;  %v1528_v15 = vmul.f32 %v3689_v59, %v1448_v5 }
 0x328   :  { %v1597_v16 = vadd.f32 %v1561_v23, %v1517_v11  ;;  %v1598_v24 = vadd.f32 %v1561_v23, %v1518_v3  ;;  %v1599_v41 = vadd.f32 %v1561_v23, %v1519_v34  ;;  %v1600_v54 = vadd.f32 %v1561_v23, %v1520_v22 }
 0x329   :  { %v1605_v49 = vadd.f32 %v1571_v62, %v1525_v43  ;;  %v1606_v50 = vadd.f32 %v1571_v62, %v1526_v47  ;;  %v1607_v27 = vadd.f32 %v1571_v62, %v1527_v8  ;;  %v1608_v17 = vadd.f32 %v1571_v62, %v1528_v15 }
 0x32a   :  { %v1629_v25 = vmax.f32 %v1597_v16, 0.0  ;;  %v1630_v56 = vmax.f32 %v1598_v24, 0.0  ;;  %v1631_v10 = vmax.f32 %v1599_v41, 0.0  ;;  %v1632_v36 = vmax.f32 %v1600_v54, 0.0  ;;  %v1591_v16 = vpop.permute.xlu2 %1590 }
 0x32b   :  { %v1637_v61 = vmax.f32 %v1605_v49, 0.0  ;;  %v1638_v55 = vmax.f32 %v1606_v50, 0.0  ;;  %v1639_v7 = vmax.f32 %v1607_v27, 0.0  ;;  %v1640_v46 = vmax.f32 %v1608_v17, 0.0 }
 0x32c   :  { %v1661_v20 = vmul.f32 %v1629_v25, %v3523_v63  ;;  %v1662_v59 = vmul.f32 %v1630_v56, %v3519_v38  ;;  %v1663_v3 = vmul.f32 %v1631_v10, %v3527_v58  ;;  %v1664_v23 = vmul.f32 %v1632_v36, %v3538_v9 }
 0x32d   :  { %v1669_v5 = vmul.f32 %v1637_v61, %v3523_v63  ;;  %v1670_v62 = vmul.f32 %v1638_v55, %v3519_v38  ;;  %v1671_v24 = vmul.f32 %v1639_v7, %v3527_v58  ;;  %v1672_v54 = vmul.f32 %v1640_v46, %v3538_v9 }
 0x32e   :  { %1693 = vst [vmem:[%s4044_s5 + $0x20] sm:$0xff] %v1661_v20  ;;  %v1411_v17 = vsub.f32 %v3440_v57, %v3753_v19  ;;  %v1412_v56 = vsub.f32 %v3609_v21, %v3753_v19  ;;  %v1413_v50 = vsub.f32 %v3625_v44, %v3753_v19  ;;  %v1414_v55 = vsub.f32 %v3632_v48, %v3753_v19 }
 0x32f   :  { %1694 = vst [vmem:[%s4044_s5 + $0x28] sm:$0xff] %v1662_v59  ;;  %v1419_v46 = vsub.f32 %v4165_v33, %v3753_v19  ;;  %v1420_v11 = vsub.f32 %v3649_v26, %v3753_v19  ;;  %v1421_v57 = vsub.f32 %v3659_v40, %v3753_v19  ;;  %v1422_v21 = vsub.f32 %v3665_v2, %v3753_v19  ;;  %v1581_v26 = vpop.permute.xlu0 %1580 }
 0x330   :  { %1695 = vst [vmem:[%s4044_s5 + $0x30] sm:$0xff] %v1663_v3  ;;  %v1453_v44 = vmul.f32 %v3771_v0, %v1411_v17  ;;  %v1454_v48 = vmul.f32 %v3771_v0, %v1412_v56  ;;  %v1455_v34 = vmul.f32 %v3771_v0, %v1413_v50  ;;  %v1456_v33 = vmul.f32 %v3771_v0, %v1414_v55 }
 0x331   :  { %1696 = vst [vmem:[%s4044_s5 + $0x38] sm:$0xff] %v1664_v23  ;;  %v1461_v40 = vmul.f32 %v3771_v0, %v1419_v46  ;;  %v1462_v2 = vmul.f32 %v3771_v0, %v1420_v11  ;;  %v1463_v19 = vmul.f32 %v3771_v0, %v1421_v57  ;;  %v1464_v22 = vmul.f32 %v3771_v0, %v1422_v21  ;;  %v3853_v50 = vpop.permute.xlu1 %1425 }
 0x332   :  { %1701 = vst [vmem:[%s4044_s5 + $0x60] sm:$0xff] %v1669_v5  ;;  %v1533_v43 = vmul.f32 %v3721_v18, %v1453_v44  ;;  %v1534_v47 = vmul.f32 %v3721_v18, %v1454_v48  ;;  %v1535_v8 = vmul.f32 %v3721_v18, %v1455_v34  ;;  %v1536_v15 = vmul.f32 %v3721_v18, %v1456_v33 }
 0x333   :  { %1702 = vst [vmem:[%s4044_s5 + $0x68] sm:$0xff] %v1670_v62  ;;  %v1541_v41 = vmul.f32 %v3717_v28, %v1461_v40  ;;  %v1542_v0 = vmul.f32 %v3717_v28, %v1462_v2  ;;  %v1543_v49 = vmul.f32 %v3717_v28, %v1463_v19  ;;  %v1544_v27 = vmul.f32 %v3717_v28, %v1464_v22 }
 0x334   :  { %1703 = vst [vmem:[%s4044_s5 + $0x70] sm:$0xff] %v1671_v24  ;;  %v1613_v25 = vadd.f32 %v1581_v26, %v1533_v43  ;;  %v1614_v10 = vadd.f32 %v1581_v26, %v1534_v47  ;;  %v1615_v18 = vadd.f32 %v1581_v26, %v1535_v8  ;;  %v1616_v36 = vadd.f32 %v1581_v26, %v1536_v15 }
 0x335   :  { %1704 = vst [vmem:[%s4044_s5 + $0x78] sm:$0xff] %v1672_v54  ;;  %v1621_v61 = vadd.f32 %v1591_v16, %v1541_v41  ;;  %v1622_v7 = vadd.f32 %v1591_v16, %v1542_v0  ;;  %v1623_v20 = vadd.f32 %v1591_v16, %v1543_v49  ;;  %v1624_v59 = vadd.f32 %v1591_v16, %v1544_v27 }
 0x336   :  { %v1645_v3 = vmax.f32 %v1613_v25, 0.0  ;;  %v1646_v23 = vmax.f32 %v1614_v10, 0.0  ;;  %v1647_v5 = vmax.f32 %v1615_v18, 0.0  ;;  %v1648_v28 = vmax.f32 %v1616_v36, 0.0 }
 0x337   :  { %v1653_v62 = vmax.f32 %v1621_v61, 0.0  ;;  %v1654_v17 = vmax.f32 %v1622_v7, 0.0  ;;  %v1655_v56 = vmax.f32 %v1623_v20, 0.0  ;;  %v1656_v24 = vmax.f32 %v1624_v59, 0.0 }
 0x338   :  { %v1677_v55 = vmul.f32 %v1645_v3, %v3523_v63  ;;  %v1678_v46 = vmul.f32 %v1646_v23, %v3519_v38  ;;  %v1679_v54 = vmul.f32 %v1647_v5, %v3527_v58  ;;  %v1680_v11 = vmul.f32 %v1648_v28, %v3538_v9 }
 0x339   :  { %v1685_v57 = vmul.f32 %v1653_v62, %v3523_v63  ;;  %v1686_v21 = vmul.f32 %v1654_v17, %v3519_v38  ;;  %v1687_v44 = vmul.f32 %v1655_v56, %v3527_v58  ;;  %v1688_v48 = vmul.f32 %v1656_v24, %v3538_v9 }
 0x33a   :  { %1709 = vst [vmem:[%s4044_s5 + $0xa0] sm:$0xff] %v1677_v55  ;;  %v4170_v34 = vsub.f32 %v4167_v13, %v3725_v45  ;;  %v4171_v26 = vsub.f32 %v4168_v53, %v3725_v45  ;;  %v4172_v2 = vsub.f32 %v4169_v60, %v3725_v45  ;;  %v4173_v22 = vsub.f32 %v3540_v39, %v3725_v45 }
 0x33b   :  { %1710 = vst [vmem:[%s4044_s5 + $0xa8] sm:$0xff] %v1678_v46  ;;  %v4174_v13 = vsub.f32 %v3410_v30, %v3725_v45  ;;  %v4175_v47 = vsub.f32 %v3554_v29, %v3725_v45  ;;  %v4176_v8 = vsub.f32 %v3566_v32, %v3725_v45  ;;  %v4177_v15 = vsub.f32 %v3575_v12, %v3725_v45 }
 0x33c   :  { %v1433_v33 = vmul.f32 %v3853_v50, %v4170_v34  ;;  %v1434_v40 = vmul.f32 %v3853_v50, %v4171_v26  ;;  %v1435_v19 = vmul.f32 %v3853_v50, %v4172_v2  ;;  %v1436_v43 = vmul.f32 %v3853_v50, %v4173_v22  ;;  %1711 = vst [vmem:[%s4044_s5 + $0xb0] sm:$0xff] %v1679_v54 }
 0x33d   :  { %v1441_v53 = vmul.f32 %v3853_v50, %v4174_v13  ;;  %v1442_v60 = vmul.f32 %v3853_v50, %v4175_v47  ;;  %v1443_v39 = vmul.f32 %v3853_v50, %v4176_v8  ;;  %v1444_v16 = vmul.f32 %v3853_v50, %v4177_v15  ;;  %1712 = vst [vmem:[%s4044_s5 + $0xb8] sm:$0xff] %v1680_v11 }
 0x33e   :  { %v4178_v30 = vsub.f32 %v3430_v51, %v3725_v45  ;;  %v4179_v41 = vsub.f32 %v3592_v6, %v3725_v45  ;;  %v4180_v0 = vsub.f32 %v3604_v31, %v3725_v45  ;;  %v4181_v49 = vsub.f32 %v3613_v14, %v3725_v45  ;;  %1717 = vst [vmem:[%s4044_s5 + $0xe0] sm:$0xff] %v1685_v57 }
 0x33f   :  { %v1513_v51 = vmul.f32 %v3694_v52, %v1433_v33  ;;  %v1514_v6 = vmul.f32 %v3694_v52, %v1434_v40  ;;  %v1515_v25 = vmul.f32 %v3694_v52, %v1435_v19  ;;  %v1516_v10 = vmul.f32 %v3694_v52, %v1436_v43  ;;  %1718 = vst [vmem:[%s4044_s5 + $0xe8] sm:$0xff] %v1686_v21  ;;  %v4183_v19 = vld [vmem:[#allocation16_spill] sm:$0xff]  ;;  %v4184_v43 = vld [vmem:[#allocation15_spill] sm:$0xff] }
 0x340   :  { %v1449_v29 = vmul.f32 %v3853_v50, %v4178_v30  ;;  %v1450_v32 = vmul.f32 %v3853_v50, %v4179_v41  ;;  %v1451_v12 = vmul.f32 %v3853_v50, %v4180_v0  ;;  %v1452_v27 = vmul.f32 %v3853_v50, %v4181_v49  ;;  %1719 = vst [vmem:[%s4044_s5 + $0xf0] sm:$0xff] %v1687_v44  ;;  %v4186_v49 = vld [vmem:[#allocation4_spill] sm:$0xff] }
 0x341   :  { %v1521_v31 = vmul.f32 %v3699_v42, %v1441_v53  ;;  %v1522_v14 = vmul.f32 %v3699_v42, %v1442_v60  ;;  %v1523_v18 = vmul.f32 %v3699_v42, %v1443_v39  ;;  %v1524_v36 = vmul.f32 %v3699_v42, %v1444_v16  ;;  %1720 = vst [vmem:[%s4044_s5 + $0xf8] sm:$0xff] %v1688_v48  ;;  %v4182_v48 = vld [vmem:[#allocation3_spill] sm:$0xff] }
 0x342   :  { %v1529_v61 = vmul.f32 %v3715_v1, %v1449_v29  ;;  %v1530_v52 = vmul.f32 %v3715_v1, %v1450_v32  ;;  %v1531_v7 = vmul.f32 %v3715_v1, %v1451_v12  ;;  %v1593_v20 = vadd.f32 %v3727_v4, %v1513_v51  ;;  %v1586_v12 = vpop.permute.xlu1 %1585 }
 0x343   :  { %v1594_v59 = vadd.f32 %v3727_v4, %v1514_v6  ;;  %v1595_v42 = vadd.f32 %v3727_v4, %v1515_v25  ;;  %v1596_v3 = vadd.f32 %v3727_v4, %v1516_v10  ;;  %v1532_v23 = vmul.f32 %v3715_v1, %v1452_v27 }
 0x344   :  { %v1601_v5 = vadd.f32 %v3723_v35, %v1521_v31  ;;  %v1602_v28 = vadd.f32 %v3723_v35, %v1522_v14  ;;  %v1603_v62 = vadd.f32 %v3723_v35, %v1523_v18  ;;  %v1604_v17 = vadd.f32 %v3723_v35, %v1524_v36 }
 0x345   :  { %v1625_v56 = vmax.f32 %v1593_v20, 0.0  ;;  %v1626_v24 = vmax.f32 %v1594_v59, 0.0  ;;  %v1627_v55 = vmax.f32 %v1595_v42, 0.0  ;;  %v1628_v46 = vmax.f32 %v1596_v3, 0.0 }
 0x346   :  { %v1609_v4 = vadd.f32 %v3719_v37, %v1529_v61  ;;  %v1610_v54 = vadd.f32 %v3719_v37, %v1530_v52  ;;  %v1633_v11 = vmax.f32 %v1601_v5, 0.0  ;;  %v1634_v57 = vmax.f32 %v1602_v28, 0.0 }
 0x347   :  { %v1611_v1 = vadd.f32 %v3719_v37, %v1531_v7  ;;  %v1612_v21 = vadd.f32 %v3719_v37, %v1532_v23  ;;  %v1635_v44 = vmax.f32 %v1603_v62, 0.0  ;;  %v1415_v34 = vsub.f32 %v4182_v48, %v3725_v45  ;;  %v4185_v37 = vld [vmem:[#allocation14_spill] sm:$0xff] }
 0x348   :  { %v1636_v33 = vmax.f32 %v1604_v17, 0.0  ;;  %v1657_v35 = vmul.f32 %v1625_v56, %v3523_v63  ;;  %v1658_v26 = vmul.f32 %v1626_v24, %v3519_v38  ;;  %v1659_v40 = vmul.f32 %v1627_v55, %v3527_v58 }
 0x349   :  { %v1660_v2 = vmul.f32 %v1628_v46, %v3538_v9  ;;  %v1416_v22 = vsub.f32 %v4183_v19, %v3725_v45  ;;  %v1417_v13 = vsub.f32 %v4184_v43, %v3725_v45  ;;  %v1418_v53 = vsub.f32 %v4185_v37, %v3725_v45 }
 0x34a   :  { %v1641_v47 = vmax.f32 %v1609_v4, 0.0  ;;  %v1642_v60 = vmax.f32 %v1610_v54, 0.0  ;;  %v1665_v8 = vmul.f32 %v1633_v11, %v3523_v63  ;;  %v1666_v39 = vmul.f32 %v1634_v57, %v3519_v38  ;;  %1689 = vst [vmem:[%s4044_s5] sm:$0xff] %v1657_v35 }
 0x34b   :  { %1690 = vst [vmem:[%s4044_s5 + $0x8] sm:$0xff] %v1658_v26  ;;  %v1457_v15 = vmul.f32 %v3853_v50, %v1415_v34  ;;  %v1458_v16 = vmul.f32 %v3853_v50, %v1416_v22  ;;  %v1459_v45 = vmul.f32 %v3853_v50, %v1417_v13  ;;  %v1460_v30 = vmul.f32 %v3853_v50, %v1418_v53 }
 0x34c   :  { %v1643_v29 = vmax.f32 %v1611_v1, 0.0  ;;  %v1644_v41 = vmax.f32 %v1612_v21, 0.0  ;;  %v1667_v32 = vmul.f32 %v1635_v44, %v3527_v58  ;;  %v1668_v0 = vmul.f32 %v1636_v33, %v3538_v9  ;;  %1691 = vst [vmem:[%s4044_s5 + $0x10] sm:$0xff] %v1659_v40 }
 0x34d   :  { %1692 = vst [vmem:[%s4044_s5 + $0x18] sm:$0xff] %v1660_v2  ;;  %v1537_v27 = vmul.f32 %v4186_v49, %v1457_v15  ;;  %v1538_v51 = vmul.f32 %v4186_v49, %v1458_v16  ;;  %v1539_v50 = vmul.f32 %v4186_v49, %v1459_v45  ;;  %v1540_v6 = vmul.f32 %v4186_v49, %v1460_v30 }
 0x34e   :  { %v1673_v25 = vmul.f32 %v1641_v47, %v3523_v63  ;;  %v1674_v10 = vmul.f32 %v1642_v60, %v3519_v38  ;;  %1697 = vst [vmem:[%s4044_s5 + $0x40] sm:$0xff] %v1665_v8  ;;  %v1675_v61 = vmul.f32 %v1643_v29, %v3527_v58  ;;  %v1676_v52 = vmul.f32 %v1644_v41, %v3538_v9 }
 0x34f   :  { %1698 = vst [vmem:[%s4044_s5 + $0x48] sm:$0xff] %v1666_v39  ;;  %v1617_v31 = vadd.f32 %v1586_v12, %v1537_v27  ;;  %v1618_v14 = vadd.f32 %v1586_v12, %v1538_v51  ;;  %v1619_v18 = vadd.f32 %v1586_v12, %v1539_v50  ;;  %v1620_v36 = vadd.f32 %v1586_v12, %v1540_v6 }
 0x350   :  { %1699 = vst [vmem:[%s4044_s5 + $0x50] sm:$0xff] %v1667_v32 }
 0x351   :  { %1700 = vst [vmem:[%s4044_s5 + $0x58] sm:$0xff] %v1668_v0  ;;  %v1649_v7 = vmax.f32 %v1617_v31, 0.0  ;;  %v1650_v20 = vmax.f32 %v1618_v14, 0.0  ;;  %v1651_v59 = vmax.f32 %v1619_v18, 0.0  ;;  %v1652_v42 = vmax.f32 %v1620_v36, 0.0 }
 0x352   :  { %1705 = vst [vmem:[%s4044_s5 + $0x80] sm:$0xff] %v1673_v25 }
 0x353   :  { %1706 = vst [vmem:[%s4044_s5 + $0x88] sm:$0xff] %v1674_v10  ;;  %v1681_v3 = vmul.f32 %v1649_v7, %v3523_v63  ;;  %v1682_v23 = vmul.f32 %v1650_v20, %v3519_v38  ;;  %v1683_v5 = vmul.f32 %v1651_v59, %v3527_v58  ;;  %v1684_v28 = vmul.f32 %v1652_v42, %v3538_v9 }
 0x354   :  { %1707 = vst [vmem:[%s4044_s5 + $0x90] sm:$0xff] %v1675_v61 }
 0x355   :  { %1708 = vst [vmem:[%s4044_s5 + $0x98] sm:$0xff] %v1676_v52 }
 0x356   :  { %1713 = vst [vmem:[%s4044_s5 + $0xc0] sm:$0xff] %v1681_v3 }
 0x357   :  { %1714 = vst [vmem:[%s4044_s5 + $0xc8] sm:$0xff] %v1682_v23 }
 0x358   :  { %1715 = vst [vmem:[%s4044_s5 + $0xd0] sm:$0xff] %v1683_v5 }
 0x359   :  { %1716 = vst [vmem:[%s4044_s5 + $0xd8] sm:$0xff] %v1684_v28 }

// kernel: decoder_forward.9
= control target key start
LH: loop header
LB: loop body
LE: loop exit
PB: predicated region body
PF: predicated region fallthrough
CT: control target
= control target key end

     0   :  { %s2147_s30 = smov 127   ;;  %s2148_s18 = smov 126   ;;  %vm118_vm0 = vcmask 1039360   ;;  %vm211_vm1 = vcmask 1031168   ;;  %vm304_vm2 = vcmask 834560   ;;  %vm397_vm3 = vcmask 826368   ;;  %s3818_s0 = inlined_call_operand.vmem [shape: f32[16,1462], index: 0, kind: input, shape index: {}]   ;;  %s3819_s1 = inlined_call_operand.vmem [shape: f32[24,144], index: 1, kind: input, shape index: {}]   ;;  %s3820_s2 = inlined_call_operand.vmem [shape: f32[24,1], index: 2, kind: input, shape index: {}]   ;;  %s3821_s3 = inlined_call_operand.vmem [shape: f32[24,1], index: 3, kind: input, shape index: {}]   ;;  %s3822_s4 = inlined_call_operand.vmem [shape: f32[1,1408], index: 4, kind: input, shape index: {}]   ;;  %s3823_s5 = inlined_call_operand.vmem [shape: f32[24,1408], index: 5, kind: output, shape index: {}]  }
   0x1   :  { %v30_v0 = vld [vmem:[%s3818_s0 + $0x40] sm:$0xff]  ;;  %v31_v1 = vld [vmem:[%s3818_s0 + $0x48] sm:$0xff]  ;;  %v32_v9 = vld [vmem:[%s3818_s0 + $0x50] sm:$0xff]  ;;  %s2150_s19 = smov 101   ;;  %s2151_s20 = smov 75   ;;  %vm676_vm4 = vcmask 613376  }
   0x2   :  { %v26_v2 = vld [vmem:[%s3818_s0 + $0x20] sm:$0xff]  ;;  %v2195_v3 = vpack.i.bf16 %v31_v1, %v30_v0  ;;  %v27_v4 = vld [vmem:[%s3818_s0 + $0x28] sm:$0xff]  ;;  %v44_v10 = vld [vmem:[%s3818_s0 + $0x58] sm:$0xff]  ;;  %s2152_s21 = smov 100   ;;  %s2153_s22 = smov 76   ;;  %vm583_vm5 = vcmask 621568  }
   0x3   :  { %v2203_v5 = vld [vmem:[%s3818_s0] sm:$0xff]  ;;  %v2208_v6 = vld [vmem:[%s3818_s0 + $0x8] sm:$0xff]  ;;  %v2210_v7 = vpack.i.bf16 %v27_v4, %v26_v2  ;;  %v28_v11 = vld [vmem:[%s3818_s0 + $0x30] sm:$0xff]  ;;  %v2244_v15 = vpack.i.bf16 %v44_v10, %v32_v9  ;;  %s2154_s23 = smov 74   ;;  %vm769_vm6 = vcmask 605184   ;;  %vm490_vm7 = vcmask 818176  }
   0x4   :  { %v2214_v8 = vpack.i.bf16 %v2208_v6, %v2203_v5  ;;  %1661 = vrot.lane.b32.xlu2 %v2195_v3, %s2147_s30  ;;  %v29_v12 = vld [vmem:[%s3818_s0 + $0x38] sm:$0xff]  ;;  %v2237_v13 = vld [vmem:[%s3818_s0 + $0x10] sm:$0xff]  ;;  %v37_v18 = vld [vmem:[%s3818_s0 + $0x80] sm:$0xff]  ;;  %vm820_vm8 = vcmask 130048  }
   0x5   :  { %1651 = vrot.lane.b32.xlu1 %v2210_v7, %s2147_s30  ;;  %v2242_v14 = vld [vmem:[%s3818_s0 + $0x18] sm:$0xff]  ;;  %v2246_v16 = vpack.i.bf16 %v29_v12, %v28_v11  ;;  %v38_v19 = vld [vmem:[%s3818_s0 + $0x88] sm:$0xff]  ;;  %v2264_v20 = vld [vmem:[%s3818_s0 + $0x70] sm:$0xff]  ;;  %v1890_v55 = vpack.i.bf16 %v2237_v13, %v2208_v6 }
   0x6   :  { %1641 = vrot.lane.b32.xlu0 %v2214_v8, %s2147_s30  ;;  %v1645_v17 = vpack.i.bf16 %v2242_v14, %v2237_v13  ;;  %v2269_v21 = vld [vmem:[%s3818_s0 + $0x78] sm:$0xff]  ;;  %v2274_v22 = vld [vmem:[%s3818_s0 + $0x60] sm:$0xff]  ;;  %v2279_v23 = vld [vmem:[%s3818_s0 + $0x68] sm:$0xff]  ;;  %v2281_v24 = vpack.i.bf16 %v38_v19, %v37_v18 }
   0x7   :  { %v1675_v25 = vpack.i.bf16 %v2269_v21, %v2264_v20  ;;  %v1670_v26 = vpack.i.bf16 %v2279_v23, %v2274_v22  ;;  %v43_v27 = vld [vmem:[%s3818_s0 + $0xb0] sm:$0xff]  ;;  %v45_v28 = vld [vmem:[%s3818_s0 + $0xb8] sm:$0xff]  ;;  %v41_v29 = vld [vmem:[%s3818_s0 + $0xa0] sm:$0xff]  ;;  %v1885_v60 = vpack.i.bf16 %v2264_v20, %v2279_v23  ;;  %v1880_v61 = vpack.i.bf16 %v2279_v23, %v2203_v5 }
   0x8   :  { %v42_v30 = vld [vmem:[%s3818_s0 + $0xa8] sm:$0xff]  ;;  %v39_v31 = vld [vmem:[%s3818_s0 + $0x90] sm:$0xff]  ;;  %v40_v32 = vld [vmem:[%s3818_s0 + $0x98] sm:$0xff]  ;;  %v2309_v33 = vpack.i.bf16 %v45_v28, %v43_v27 }
   0x9   :  { %v2311_v34 = vpack.i.bf16 %v42_v30, %v41_v29  ;;  %v2313_v35 = vpack.i.bf16 %v40_v32, %v39_v31  ;;  %v1920_v31 = vpack.i.bf16 %v2208_v6, %v2264_v20 }
   0xc   :  { %1666 = vrot.lane.b32.xlu2 %v2244_v15, %s2147_s30 }
   0xd   :  { %1656 = vrot.lane.b32.xlu1 %v2246_v16, %s2147_s30 }
   0xe   :  { %1646 = vrot.lane.b32.xlu0 %v1645_v17, %s2147_s30 }
  0x14   :  { %1681 = vrot.lane.b32.xlu2 %v2281_v24, %s2147_s30 }
  0x15   :  { %1676 = vrot.lane.b32.xlu1 %v1675_v25, %s2147_s30 }
  0x16   :  { %1671 = vrot.lane.b32.xlu0 %v1670_v26, %s2147_s30 }
  0x1c   :  { %1696 = vrot.lane.b32.xlu2 %v2309_v33, %s2147_s30 }
  0x1d   :  { %1691 = vrot.lane.b32.xlu1 %v2311_v34, %s2147_s30 }
  0x1e   :  { %1686 = vrot.lane.b32.xlu0 %v2313_v35, %s2147_s30  ;;  %s2149_s30 = smov 102  }
  0x24   :  { %1711 = vrot.lane.b32.xlu2 %v2210_v7, %s2148_s18 }
  0x25   :  { %1706 = vrot.lane.b32.xlu1 %v1645_v17, %s2148_s18 }
  0x26   :  { %1701 = vrot.lane.b32.xlu0 %v2214_v8, %s2148_s18 }
  0x2c   :  { %1726 = vrot.lane.b32.xlu2 %v2244_v15, %s2148_s18 }
  0x2d   :  { %1721 = vrot.lane.b32.xlu1 %v2195_v3, %s2148_s18 }
  0x2e   :  { %1716 = vrot.lane.b32.xlu0 %v2246_v16, %s2148_s18 }
  0x34   :  { %1741 = vrot.lane.b32.xlu2 %v2281_v24, %s2148_s18 }
  0x35   :  { %1736 = vrot.lane.b32.xlu1 %v1675_v25, %s2148_s18 }
  0x36   :  { %1731 = vrot.lane.b32.xlu0 %v1670_v26, %s2148_s18 }
  0x3c   :  { %1756 = vrot.lane.b32.xlu2 %v2309_v33, %s2148_s18 }
  0x3d   :  { %1751 = vrot.lane.b32.xlu1 %v2311_v34, %s2148_s18 }
  0x3e   :  { %1746 = vrot.lane.b32.xlu0 %v2313_v35, %s2148_s18 }
  0x44   :  { %1771 = vrot.lane.b32.xlu2 %v2210_v7, %s2149_s30 }
  0x45   :  { %1766 = vrot.lane.b32.xlu1 %v1645_v17, %s2149_s30 }
  0x46   :  { %1761 = vrot.lane.b32.xlu0 %v2214_v8, %s2149_s30 }
  0x4c   :  { %1786 = vrot.lane.b32.xlu2 %v2244_v15, %s2149_s30 }
  0x4d   :  { %1781 = vrot.lane.b32.xlu1 %v2195_v3, %s2149_s30 }
  0x4e   :  { %1776 = vrot.lane.b32.xlu0 %v2246_v16, %s2149_s30 }
  0x54   :  { %1801 = vrot.lane.b32.xlu2 %v2281_v24, %s2149_s30 }
  0x55   :  { %1796 = vrot.lane.b32.xlu1 %v1675_v25, %s2149_s30 }
  0x56   :  { %1791 = vrot.lane.b32.xlu0 %v1670_v26, %s2149_s30 }
  0x5c   :  { %1816 = vrot.lane.b32.xlu2 %v2309_v33, %s2149_s30 }
  0x5d   :  { %1811 = vrot.lane.b32.xlu1 %v2311_v34, %s2149_s30 }
  0x5e   :  { %1806 = vrot.lane.b32.xlu0 %v2313_v35, %s2149_s30  ;;  %v1662_v36 = vpop.permute.xlu2 %1661 }
  0x5f   :  { %v1664_v38 = vunpack.i.h.bf16 %v1662_v36  ;;  %v1663_v39 = vunpack.i.l.bf16 %v1662_v36 }
  0x61   :  { %v2347_v42 = vsel %vm118_vm0, %v1663_v39, %v1664_v38 }
  0x62   :  { %3874 = vst [vmem:[#allocation3_spill] sm:$0xff] %v2347_v42 }
  0x64   :  { %1831 = vrot.lane.b32.xlu2 %v2210_v7, %s2150_s19 }
  0x65   :  { %1826 = vrot.lane.b32.xlu1 %v1645_v17, %s2150_s19 }
  0x66   :  { %1821 = vrot.lane.b32.xlu0 %v2214_v8, %s2150_s19  ;;  %v1667_v37 = vpop.permute.xlu2 %1666 }
  0x67   :  { %v1668_v40 = vunpack.i.l.bf16 %v1667_v37  ;;  %v1669_v44 = vunpack.i.h.bf16 %v1667_v37 }
  0x69   :  { %v2350_v43 = vsel %vm118_vm0, %v1664_v38, %v1668_v40  ;;  %v2360_v48 = vsel %vm118_vm0, %v1668_v40, %v1669_v44 }
  0x6a   :  { %3875 = vst [vmem:[#allocation4_spill] sm:$0xff] %v2350_v43 }
  0x6b   :  { %3877 = vst [vmem:[#allocation6_spill] sm:$0xff] %v2360_v48 }
  0x6c   :  { %1846 = vrot.lane.b32.xlu2 %v2244_v15, %s2150_s19 }
  0x6d   :  { %1841 = vrot.lane.b32.xlu1 %v2195_v3, %s2150_s19 }
  0x6e   :  { %1836 = vrot.lane.b32.xlu0 %v2246_v16, %s2150_s19  ;;  %v2344_v41 = vpop.permute.xlu2 %1681 }
  0x6f   :  { %3873 = vst [vmem:[#allocation2_spill] sm:$0xff] %v2344_v41  ;;  %v3826_v4 = vunpack.i.l.bf16 %v2344_v41  ;;  %v3827_v27 = vunpack.i.h.bf16 %v2344_v41 }
  0x74   :  { %1861 = vrot.lane.b32.xlu2 %v2281_v24, %s2150_s19 }
  0x75   :  { %1856 = vrot.lane.b32.xlu1 %v1675_v25, %s2150_s19 }
  0x76   :  { %1851 = vrot.lane.b32.xlu0 %v1670_v26, %s2150_s19  ;;  %v2353_v45 = vpop.permute.xlu2 %1696 }
  0x77   :  { %v2355_v46 = vpop.permute.xlu1 %1651  ;;  %v1699_v9 = vunpack.i.h.bf16 %v2353_v45  ;;  %v1698_v19 = vunpack.i.l.bf16 %v2353_v45 }
  0x78   :  { %3876 = vst [vmem:[#allocation5_spill] sm:$0xff] %v2355_v46  ;;  %v2357_v47 = vpop.permute.xlu0 %1641  ;;  %v3825_v49 = vunpack.i.h.bf16 %v2355_v46  ;;  %v3824_v50 = vunpack.i.l.bf16 %v2355_v46 }
  0x79   :  { %v3839_v52 = vunpack.i.h.bf16 %v2357_v47  ;;  %v2435_v26 = vsel %vm118_vm0, %v1698_v19, %v1699_v9 }
  0x7a   :  { %3883 = vst [vmem:[#allocation12_spill] sm:$0xff] %v2435_v26 }
  0x7c   :  { %1876 = vrot.lane.b32.xlu2 %v2309_v33, %s2150_s19 }
  0x7d   :  { %1871 = vrot.lane.b32.xlu1 %v2311_v34, %s2150_s19 }
  0x7e   :  { %1866 = vrot.lane.b32.xlu0 %v2313_v35, %s2150_s19  ;;  %v2367_v51 = vpop.permute.xlu2 %1711 }
  0x7f   :  { %v1657_v53 = vpop.permute.xlu1 %1656 }
  0x80   :  { %v2370_v54 = vpop.permute.xlu0 %1646  ;;  %v1659_v56 = vunpack.i.h.bf16 %v1657_v53  ;;  %v1658_v57 = vunpack.i.l.bf16 %v1657_v53  ;;  %v3828_v53 = vunpack.i.l.bf16 %v2367_v51 }
  0x81   :  { %v3830_v58 = vunpack.i.h.bf16 %v2370_v54  ;;  %v3829_v59 = vunpack.i.l.bf16 %v2370_v54 }
  0x82   :  { %v2397_v0 = vsel %vm118_vm0, %v3825_v49, %v1658_v57  ;;  %v2400_v1 = vsel %vm118_vm0, %v1658_v57, %v1659_v56  ;;  %v2403_v2 = vsel %vm118_vm0, %v1659_v56, %v1663_v39  ;;  %v1910_v39 = vpack.i.bf16 %v2269_v21, %v2274_v22 }
  0x83   :  { %v2385_v62 = vsel %vm118_vm0, %v3839_v52, %v3829_v59  ;;  %v2392_v63 = vsel %vm118_vm0, %v3830_v58, %v3824_v50  ;;  %3879 = vst [vmem:[#allocation8_spill] sm:$0xff] %v2397_v0  ;;  %v1950_v49 = vpack.i.bf16 %v2242_v14, %v2269_v21 }
  0x84   :  { %3878 = vst [vmem:[#allocation7_spill] sm:$0xff] %v2392_v63  ;;  %1891 = vrot.lane.b32.xlu2 %v1890_v55, %s2151_s20 }
  0x85   :  { %3880 = vst [vmem:[#allocation9_spill] sm:$0xff] %v2400_v1  ;;  %1886 = vrot.lane.b32.xlu1 %v1885_v60, %s2151_s20 }
  0x86   :  { %3881 = vst [vmem:[#allocation10_spill] sm:$0xff] %v2403_v2  ;;  %1881 = vrot.lane.b32.xlu0 %v1880_v61, %s2152_s21  ;;  %v2409_v8 = vpop.permute.xlu2 %1726 }
  0x87   :  { %v2412_v10 = vpop.permute.xlu1 %1676  ;;  %v1729_v57 = vunpack.i.h.bf16 %v2409_v8 }
  0x88   :  { %v2414_v11 = vpop.permute.xlu0 %1671  ;;  %v3833_v12 = vunpack.i.h.bf16 %v2412_v10  ;;  %v3832_v17 = vunpack.i.l.bf16 %v2412_v10 }
  0x89   :  { %v3840_v18 = vunpack.i.h.bf16 %v2414_v11 }
  0x8a   :  { %v2432_v25 = vsel %vm118_vm0, %v3833_v12, %v3826_v4 }
  0x8b   :  { %v2425_v23 = vsel %vm118_vm0, %v3840_v18, %v3832_v17  ;;  %3882 = vst [vmem:[#allocation11_spill] sm:$0xff] %v2432_v25 }
  0x8c   :  { %1906 = vrot.lane.b32.xlu2 %v1890_v55, %s2153_s22 }
  0x8d   :  { %1901 = vrot.lane.b32.xlu1 %v1885_v60, %s2154_s23 }
  0x8e   :  { %1896 = vrot.lane.b32.xlu0 %v1885_v60, %s2153_s22  ;;  %v2441_v28 = vpop.permute.xlu2 %1741 }
  0x8f   :  { %v1692_v29 = vpop.permute.xlu1 %1691 }
  0x90   :  { %v1687_v30 = vpop.permute.xlu0 %1686  ;;  %v1694_v32 = vunpack.i.h.bf16 %v1692_v29  ;;  %v1693_v36 = vunpack.i.l.bf16 %v1692_v29 }
  0x91   :  { %v1689_v37 = vunpack.i.h.bf16 %v1687_v30  ;;  %v1688_v38 = vunpack.i.l.bf16 %v1687_v30  ;;  %v1930_v30 = vpack.i.bf16 %v2274_v22, %v2237_v13  ;;  %v3831_v13 = vunpack.i.h.bf16 %v2367_v51 }
  0x92   :  { %v2459_v6 = vsel %vm118_vm0, %v1693_v36, %v1694_v32  ;;  %v2462_v20 = vsel %vm118_vm0, %v1694_v32, %v1698_v19 }
  0x93   :  { %v2450_v40 = vsel %vm118_vm0, %v3827_v27, %v1688_v38  ;;  %v2453_v44 = vsel %vm118_vm0, %v1688_v38, %v1689_v37  ;;  %v2456_v45 = vsel %vm118_vm0, %v1689_v37, %v1693_v36  ;;  %3887 = vst [vmem:[#allocation16_spill] sm:$0xff] %v2459_v6 }
  0x94   :  { %3884 = vst [vmem:[#allocation13_spill] sm:$0xff] %v2450_v40  ;;  %1921 = vrot.lane.b32.xlu2 %v1920_v31, %s2152_s21  ;;  %v1925_v31 = vpack.i.bf16 %v2242_v14, %v2203_v5 }
  0x95   :  { %3885 = vst [vmem:[#allocation14_spill] sm:$0xff] %v2453_v44  ;;  %1916 = vrot.lane.b32.xlu1 %v1890_v55, %s2154_s23  ;;  %v1728_v55 = vunpack.i.l.bf16 %v2409_v8 }
  0x96   :  { %3886 = vst [vmem:[#allocation15_spill] sm:$0xff] %v2456_v45  ;;  %1911 = vrot.lane.b32.xlu0 %v1910_v39, %s2151_s20  ;;  %v2468_v56 = vpop.permute.xlu2 %1756 }
  0x97   :  { %3888 = vst [vmem:[#allocation17_spill] sm:$0xff] %v2462_v20  ;;  %v2471_v60 = vpop.permute.xlu1 %1706  ;;  %v2498_v8 = vsel %vm211_vm1, %v1728_v55, %v1729_v57 }
  0x98   :  { %v2473_v61 = vpop.permute.xlu0 %1701  ;;  %v3836_v9 = vunpack.i.h.bf16 %v2471_v60  ;;  %v3834_v19 = vunpack.i.l.bf16 %v2471_v60  ;;  %3890 = vst [vmem:[#allocation19_spill] sm:$0xff] %v2498_v8 }
  0x99   :  { %v3841_v29 = vunpack.i.h.bf16 %v2473_v61 }
  0x9a   :  { %v2495_v36 = vsel %vm211_vm1, %v3836_v9, %v3828_v53 }
  0x9b   :  { %v2488_v32 = vsel %vm211_vm1, %v3841_v29, %v3834_v19  ;;  %3889 = vst [vmem:[#allocation18_spill] sm:$0xff] %v2495_v36 }
  0x9c   :  { %1936 = vrot.lane.b32.xlu2 %v1910_v39, %s2153_s22  ;;  %v1940_v39 = vpack.i.bf16 %v2203_v5, %v2274_v22  ;;  %v3835_v5 = vunpack.i.l.bf16 %v2441_v28 }
  0x9d   :  { %1931 = vrot.lane.b32.xlu1 %v1930_v30, %s2152_s21 }
  0x9e   :  { %1926 = vrot.lane.b32.xlu0 %v1925_v31, %s2151_s20  ;;  %v2504_v37 = vpop.permute.xlu2 %1771 }
  0x9f   :  { %v1722_v38 = vpop.permute.xlu1 %1721 }
  0xa0   :  { %v1717_v50 = vpop.permute.xlu0 %1716  ;;  %v1724_v4 = vunpack.i.h.bf16 %v1722_v38  ;;  %v1723_v27 = vunpack.i.l.bf16 %v1722_v38 }
  0xa1   :  { %v1719_v53 = vunpack.i.h.bf16 %v1717_v50  ;;  %v1718_v57 = vunpack.i.l.bf16 %v1717_v50  ;;  %v1759_v50 = vunpack.i.h.bf16 %v2468_v56 }
  0xa2   :  { %v2522_v14 = vsel %vm211_vm1, %v1723_v27, %v1724_v4  ;;  %v2525_v21 = vsel %vm211_vm1, %v1724_v4, %v1728_v55 }
  0xa3   :  { %v2513_v30 = vsel %vm211_vm1, %v3831_v13, %v1718_v57  ;;  %v2516_v59 = vsel %vm211_vm1, %v1718_v57, %v1719_v53  ;;  %v2519_v58 = vsel %vm211_vm1, %v1719_v53, %v1723_v27  ;;  %3894 = vst [vmem:[#allocation23_spill] sm:$0xff] %v2522_v14  ;;  %v1758_v57 = vunpack.i.l.bf16 %v2468_v56 }
  0xa4   :  { %3891 = vst [vmem:[#allocation20_spill] sm:$0xff] %v2513_v30  ;;  %1951 = vrot.lane.b32.xlu2 %v1950_v49, %s2152_s21  ;;  %v3843_v56 = vunpack.i.h.bf16 %v2441_v28 }
  0xa5   :  { %3892 = vst [vmem:[#allocation21_spill] sm:$0xff] %v2516_v59  ;;  %1946 = vrot.lane.b32.xlu1 %v1925_v31, %s2153_s22  ;;  %v2555_v13 = vsel %vm211_vm1, %v1758_v57, %v1759_v50 }
  0xa6   :  { %3893 = vst [vmem:[#allocation22_spill] sm:$0xff] %v2519_v58  ;;  %1941 = vrot.lane.b32.xlu0 %v1940_v39, %s2154_s23  ;;  %v1787_v22 = vpop.permute.xlu2 %1786 }
  0xa7   :  { %3895 = vst [vmem:[#allocation24_spill] sm:$0xff] %v2525_v21  ;;  %v2532_v38 = vpop.permute.xlu1 %1736  ;;  %v1788_v48 = vunpack.i.l.bf16 %v1787_v22 }
  0xa8   :  { %v2534_v53 = vpop.permute.xlu0 %1731  ;;  %v3838_v27 = vunpack.i.h.bf16 %v2532_v38  ;;  %v3837_v4 = vunpack.i.l.bf16 %v2532_v38  ;;  %3897 = vst [vmem:[#allocation26_spill] sm:$0xff] %v2555_v13 }
  0xa9   :  { %v3842_v55 = vunpack.i.h.bf16 %v2534_v53 }
  0xaa   :  { %v2552_v39 = vsel %vm211_vm1, %v3838_v27, %v3835_v5 }
  0xab   :  { %v2545_v31 = vsel %vm211_vm1, %v3842_v55, %v3837_v4  ;;  %3896 = vst [vmem:[#allocation25_spill] sm:$0xff] %v2552_v39 }
  0xac   :  { %1966 = vrot.lane.b32.xlu2 %v2281_v24, %s2153_s22 }
  0xad   :  { %1961 = vrot.lane.b32.xlu1 %v2210_v7, %s2151_s20 }
  0xae   :  { %1956 = vrot.lane.b32.xlu0 %v2281_v24, %s2151_s20  ;;  %v2564_v17 = vpop.permute.xlu2 %1801 }
  0xaf   :  { %v1752_v12 = vpop.permute.xlu1 %1751 }
  0xb0   :  { %v1747_v19 = vpop.permute.xlu0 %1746  ;;  %v1754_v5 = vunpack.i.h.bf16 %v1752_v12  ;;  %v1753_v9 = vunpack.i.l.bf16 %v1752_v12  ;;  %v3846_v12 = vunpack.i.l.bf16 %v2504_v37 }
  0xb1   :  { %v1749_v4 = vunpack.i.h.bf16 %v1747_v19  ;;  %v1748_v50 = vunpack.i.l.bf16 %v1747_v19 }
  0xb2   :  { %v2578_v29 = vsel %vm211_vm1, %v1753_v9, %v1754_v5  ;;  %v2581_v55 = vsel %vm211_vm1, %v1754_v5, %v1758_v57 }
  0xb3   :  { %v2569_v27 = vsel %vm211_vm1, %v3843_v56, %v1748_v50  ;;  %v2572_v52 = vsel %vm211_vm1, %v1748_v50, %v1749_v4  ;;  %v2575_v18 = vsel %vm211_vm1, %v1749_v4, %v1753_v9  ;;  %3901 = vst [vmem:[#allocation30_spill] sm:$0xff] %v2578_v29  ;;  %v1789_v50 = vunpack.i.h.bf16 %v1787_v22 }
  0xb4   :  { %3898 = vst [vmem:[#allocation27_spill] sm:$0xff] %v2569_v27  ;;  %1981 = vrot.lane.b32.xlu2 %v2281_v24, %s2152_s21  ;;  %v3848_v22 = vunpack.i.h.bf16 %v2504_v37 }
  0xb5   :  { %3899 = vst [vmem:[#allocation28_spill] sm:$0xff] %v2572_v52  ;;  %1976 = vrot.lane.b32.xlu1 %v2210_v7, %s2153_s22  ;;  %v2611_v43 = vsel %vm304_vm2, %v1788_v48, %v1789_v50 }
  0xb6   :  { %3900 = vst [vmem:[#allocation29_spill] sm:$0xff] %v2575_v18  ;;  %1971 = vrot.lane.b32.xlu0 %v1950_v49, %s2154_s23  ;;  %v1817_v19 = vpop.permute.xlu2 %1816 }
  0xb7   :  { %3902 = vst [vmem:[#allocation31_spill] sm:$0xff] %v2581_v55  ;;  %v2589_v4 = vpop.permute.xlu1 %1766 }
  0xb8   :  { %v2591_v56 = vpop.permute.xlu0 %1761  ;;  %v3847_v9 = vunpack.i.h.bf16 %v2589_v4  ;;  %v3844_v5 = vunpack.i.l.bf16 %v2589_v4  ;;  %3904 = vst [vmem:[#allocation33_spill] sm:$0xff] %v2611_v43 }
  0xb9   :  { %v3845_v57 = vunpack.i.h.bf16 %v2591_v56 }
  0xba   :  { %v2608_v26 = vsel %vm304_vm2, %v3847_v9, %v3846_v12 }
  0xbb   :  { %v2601_v49 = vsel %vm304_vm2, %v3845_v57, %v3844_v5  ;;  %3903 = vst [vmem:[#allocation32_spill] sm:$0xff] %v2608_v26 }
  0xbc   :  { %1996 = vrot.lane.b32.xlu2 %v2246_v16, %s2151_s20 }
  0xbd   :  { %1991 = vrot.lane.b32.xlu1 %v2313_v35, %s2151_s20 }
  0xbe   :  { %1986 = vrot.lane.b32.xlu0 %v2210_v7, %s2152_s21  ;;  %v2620_v5 = vpop.permute.xlu2 %1831 }
  0xbf   :  { %v1782_v57 = vpop.permute.xlu1 %1781 }
  0xc0   :  { %v1777_v8 = vpop.permute.xlu0 %1776  ;;  %v1784_v12 = vunpack.i.h.bf16 %v1782_v57  ;;  %v1783_v9 = vunpack.i.l.bf16 %v1782_v57 }
  0xc1   :  { %v1779_v20 = vunpack.i.h.bf16 %v1777_v8  ;;  %v1778_v50 = vunpack.i.l.bf16 %v1777_v8  ;;  %v3851_v8 = vunpack.i.l.bf16 %v2564_v17 }
  0xc2   :  { %v2634_v55 = vsel %vm304_vm2, %v1783_v9, %v1784_v12  ;;  %v2637_v42 = vsel %vm304_vm2, %v1784_v12, %v1788_v48 }
  0xc3   :  { %v2625_v13 = vsel %vm304_vm2, %v3848_v22, %v1778_v50  ;;  %v2628_v21 = vsel %vm304_vm2, %v1778_v50, %v1779_v20  ;;  %v2631_v43 = vsel %vm304_vm2, %v1779_v20, %v1783_v9  ;;  %3908 = vst [vmem:[#allocation37_spill] sm:$0xff] %v2634_v55  ;;  %v1819_v20 = vunpack.i.h.bf16 %v1817_v19 }
  0xc4   :  { %3905 = vst [vmem:[#allocation34_spill] sm:$0xff] %v2625_v13  ;;  %2011 = vrot.lane.b32.xlu2 %v2313_v35, %s2152_s21 }
  0xc5   :  { %3906 = vst [vmem:[#allocation35_spill] sm:$0xff] %v2628_v21  ;;  %2006 = vrot.lane.b32.xlu1 %v2246_v16, %s2153_s22 }
  0xc6   :  { %3907 = vst [vmem:[#allocation36_spill] sm:$0xff] %v2631_v43  ;;  %2001 = vrot.lane.b32.xlu0 %v2313_v35, %s2153_s22  ;;  %v1847_v57 = vpop.permute.xlu2 %1846 }
  0xc7   :  { %3909 = vst [vmem:[#allocation38_spill] sm:$0xff] %v2637_v42  ;;  %v2646_v50 = vpop.permute.xlu1 %1796  ;;  %v1818_v42 = vunpack.i.l.bf16 %v1817_v19  ;;  %v3853_v19 = vunpack.i.h.bf16 %v2564_v17 }
  0xc8   :  { %v2648_v9 = vpop.permute.xlu0 %1791  ;;  %v3852_v48 = vunpack.i.h.bf16 %v2646_v50  ;;  %v3849_v12 = vunpack.i.l.bf16 %v2646_v50 }
  0xc9   :  { %v3850_v22 = vunpack.i.h.bf16 %v2648_v9  ;;  %v2668_v45 = vsel %vm304_vm2, %v1818_v42, %v1819_v20 }
  0xca   :  { %v2665_v6 = vsel %vm304_vm2, %v3852_v48, %v3851_v8  ;;  %3910 = vst [vmem:[#allocation39_spill] sm:$0xff] %v2668_v45 }
  0xcb   :  { %v2658_v2 = vsel %vm304_vm2, %v3850_v22, %v3849_v12 }
  0xcc   :  { %2026 = vrot.lane.b32.xlu2 %v2210_v7, %s2154_s23 }
  0xcd   :  { %2021 = vrot.lane.b32.xlu1 %v2281_v24, %s2154_s23 }
  0xce   :  { %2016 = vrot.lane.b32.xlu0 %v2246_v16, %s2152_s21  ;;  %v2677_v12 = vpop.permute.xlu2 %1861 }
  0xcf   :  { %v1812_v22 = vpop.permute.xlu1 %1811 }
  0xd0   :  { %v1807_v14 = vpop.permute.xlu0 %1806  ;;  %v1814_v8 = vunpack.i.h.bf16 %v1812_v22  ;;  %v1813_v48 = vunpack.i.l.bf16 %v1812_v22 }
  0xd1   :  { %v1809_v58 = vunpack.i.h.bf16 %v1807_v14  ;;  %v1808_v20 = vunpack.i.l.bf16 %v1807_v14  ;;  %v3854_v14 = vunpack.i.l.bf16 %v2620_v5 }
  0xd2   :  { %v2691_v29 = vsel %vm304_vm2, %v1813_v48, %v1814_v8  ;;  %v2694_v18 = vsel %vm304_vm2, %v1814_v8, %v1818_v42  ;;  %v1848_v8 = vunpack.i.l.bf16 %v1847_v57 }
  0xd3   :  { %v2682_v7 = vsel %vm304_vm2, %v3853_v19, %v1808_v20  ;;  %v2685_v24 = vsel %vm304_vm2, %v1808_v20, %v1809_v58  ;;  %v2688_v45 = vsel %vm304_vm2, %v1809_v58, %v1813_v48  ;;  %3914 = vst [vmem:[#allocation43_spill] sm:$0xff] %v2691_v29  ;;  %v1849_v58 = vunpack.i.h.bf16 %v1847_v57 }
  0xd4   :  { %3911 = vst [vmem:[#allocation40_spill] sm:$0xff] %v2682_v7  ;;  %2041 = vrot.lane.b32.xlu2 %v2311_v34, %s2153_s22  ;;  %v3856_v57 = vunpack.i.h.bf16 %v2620_v5 }
  0xd5   :  { %3912 = vst [vmem:[#allocation41_spill] sm:$0xff] %v2685_v24  ;;  %2036 = vrot.lane.b32.xlu1 %v2195_v3, %s2151_s20 }
  0xd6   :  { %3913 = vst [vmem:[#allocation42_spill] sm:$0xff] %v2688_v45  ;;  %2031 = vrot.lane.b32.xlu0 %v2311_v34, %s2151_s20  ;;  %v1877_v22 = vpop.permute.xlu2 %1876 }
  0xd7   :  { %3915 = vst [vmem:[#allocation44_spill] sm:$0xff] %v2694_v18  ;;  %v2703_v20 = vpop.permute.xlu1 %1826  ;;  %v2716_v18 = vsel %vm397_vm3, %v1848_v8, %v1849_v58 }
  0xd8   :  { %v2705_v48 = vpop.permute.xlu0 %1821  ;;  %v3855_v42 = vunpack.i.h.bf16 %v2703_v20  ;;  %3916 = vst [vmem:[#allocation45_spill] sm:$0xff] %v2716_v18 }
  0xda   :  { %v2713_v19 = vsel %vm397_vm3, %v3855_v42, %v3854_v14 }
  0xdc   :  { %2056 = vrot.lane.b32.xlu2 %v2246_v16, %s2154_s23 }
  0xdd   :  { %2051 = vrot.lane.b32.xlu1 %v2195_v3, %s2153_s22 }
  0xde   :  { %2046 = vrot.lane.b32.xlu0 %v2313_v35, %s2154_s23  ;;  %v2725_v14 = vpop.permute.xlu2 %1891 }
  0xdf   :  { %v1842_v55 = vpop.permute.xlu1 %1841 }
  0xe0   :  { %v1837_v43 = vpop.permute.xlu0 %1836  ;;  %v1844_v1 = vunpack.i.h.bf16 %v1842_v55  ;;  %v1843_v29 = vunpack.i.l.bf16 %v1842_v55 }
  0xe1   :  { %v1839_v42 = vunpack.i.h.bf16 %v1837_v43  ;;  %v1838_v58 = vunpack.i.l.bf16 %v1837_v43  ;;  %v1879_v43 = vunpack.i.h.bf16 %v1877_v22 }
  0xe2   :  { %v2739_v45 = vsel %vm397_vm3, %v1843_v29, %v1844_v1  ;;  %v2742_v55 = vsel %vm397_vm3, %v1844_v1, %v1848_v8  ;;  %v3857_v8 = vunpack.i.h.bf16 %v2677_v12 }
  0xe3   :  { %v2730_v16 = vsel %vm397_vm3, %v3856_v57, %v1838_v58  ;;  %v2733_v18 = vsel %vm397_vm3, %v1838_v58, %v1839_v42  ;;  %v2736_v35 = vsel %vm397_vm3, %v1839_v42, %v1843_v29  ;;  %3920 = vst [vmem:[#allocation49_spill] sm:$0xff] %v2739_v45  ;;  %v1878_v57 = vunpack.i.l.bf16 %v1877_v22 }
  0xe4   :  { %3917 = vst [vmem:[#allocation46_spill] sm:$0xff] %v2730_v16  ;;  %2071 = vrot.lane.b32.xlu2 %v2309_v33, %s2151_s20 }
  0xe5   :  { %3918 = vst [vmem:[#allocation47_spill] sm:$0xff] %v2733_v18  ;;  %2066 = vrot.lane.b32.xlu1 %v2195_v3, %s2152_s21  ;;  %v2757_v1 = vsel %vm397_vm3, %v1878_v57, %v1879_v43 }
  0xe6   :  { %3919 = vst [vmem:[#allocation48_spill] sm:$0xff] %v2736_v35  ;;  %2061 = vrot.lane.b32.xlu0 %v2311_v34, %s2152_s21  ;;  %v2754_v29 = vpop.permute.xlu2 %1906 }
  0xe7   :  { %3921 = vst [vmem:[#allocation50_spill] sm:$0xff] %v2742_v55  ;;  %v2750_v58 = vpop.permute.xlu1 %1856 }
  0xe8   :  { %v2752_v42 = vpop.permute.xlu0 %1851  ;;  %3922 = vst [vmem:[#allocation51_spill] sm:$0xff] %v2757_v1  ;;  %v3929_v25 = vunpack.i.l.bf16 %v2750_v58 }
  0xe9   :  { %v3930_v36 = vunpack.i.h.bf16 %v2752_v42 }
  0xec   :  { %2086 = vrot.lane.b32.xlu2 %v2311_v34, %s2154_s23 }
  0xed   :  { %2081 = vrot.lane.b32.xlu1 %v2309_v33, %s2153_s22 }
  0xee   :  { %2076 = vrot.lane.b32.xlu0 %v2244_v15, %s2151_s20 }
  0xef   :  { %v1872_v55 = vpop.permute.xlu1 %1871 }
  0xf0   :  { %v1867_v44 = vpop.permute.xlu0 %1866  ;;  %v1874_v45 = vunpack.i.h.bf16 %v1872_v55  ;;  %v1873_v22 = vunpack.i.l.bf16 %v1872_v55  ;;  %v2783_v55 = vpop.permute.xlu2 %1921 }
  0xf1   :  { %v1869_v35 = vunpack.i.h.bf16 %v1867_v44  ;;  %v1868_v59 = vunpack.i.l.bf16 %v1867_v44  ;;  %v1893_v44 = vunpack.i.l.bf16 %v2725_v14  ;;  %v3863_v24 = vunpack.i.l.bf16 %v2783_v55 }
  0xf2   :  { %v2778_v52 = vsel %vm397_vm3, %v1873_v22, %v1874_v45  ;;  %v2781_v0 = vsel %vm397_vm3, %v1874_v45, %v1878_v57  ;;  %v1924_v7 = vunpack.i.h.bf16 %v2783_v55 }
  0xf3   :  { %v2769_v43 = vsel %vm397_vm3, %v3857_v8, %v1868_v59  ;;  %v2772_v34 = vsel %vm397_vm3, %v1868_v59, %v1869_v35  ;;  %v2775_v1 = vsel %vm397_vm3, %v1869_v35, %v1873_v22  ;;  %3926 = vst [vmem:[#allocation55_spill] sm:$0xff] %v2778_v52  ;;  %v3858_v59 = vunpack.i.h.bf16 %v2725_v14 }
  0xf4   :  { %3923 = vst [vmem:[#allocation52_spill] sm:$0xff] %v2769_v43  ;;  %2101 = vrot.lane.b32.xlu2 %v2309_v33, %s2152_s21 }
  0xf5   :  { %3924 = vst [vmem:[#allocation53_spill] sm:$0xff] %v2772_v34  ;;  %2096 = vrot.lane.b32.xlu1 %v2195_v3, %s2154_s23  ;;  %v678_v8 = vsel %vm676_vm4, %v1893_v44, %v3858_v59 }
  0xf6   :  { %3925 = vst [vmem:[#allocation54_spill] sm:$0xff] %v2775_v1  ;;  %2091 = vrot.lane.b32.xlu0 %v2244_v15, %s2153_s22 }
  0xf7   :  { %3927 = vst [vmem:[#allocation56_spill] sm:$0xff] %v2781_v0  ;;  %v2793_v35 = vpop.permute.xlu1 %1886  ;;  %v3860_v0 = vunpack.i.h.bf16 %v2754_v29 }
  0xf8   :  { %v2795_v22 = vpop.permute.xlu0 %1881  ;;  %v3859_v45 = vunpack.i.h.bf16 %v2793_v35  ;;  %v1888_v57 = vunpack.i.l.bf16 %v2793_v35  ;;  %v2811_v1 = vpop.permute.xlu2 %1936 }
  0xf9   :  { %v3864_v30 = vunpack.i.h.bf16 %v2795_v22 }
  0xfa   :  { %v689_v3 = vsel %vm676_vm4, %v1888_v57, %v3859_v45 }
  0xfb   :  { %882 = vmatpush.msra.mxu2 %v689_v3 }
  0xfc   :  { %2116 = vrot.lane.b32.xlu2 %v2244_v15, %s2154_s23 }
  0xfd   :  { %2111 = vrot.lane.b32.xlu1 %v2309_v33, %s2154_s23  ;;  %883 = vmatpush.msra.mxu2 %v678_v8  ;;  %v3928_v8 = vunpack.i.l.bf16 %v2754_v29 }
  0xfe   :  { %2106 = vrot.lane.b32.xlu0 %v2244_v15, %s2152_s21 }
  0xff   :  { %v2813_v21 = vpop.permute.xlu1 %1901  ;;  %v585_v40 = vsel %vm583_vm5, %v3928_v8, %v3860_v0  ;;  %v503_v8 = vsel %vm490_vm7, %v3864_v30, %v3863_v24  ;;  %v3868_v30 = vunpack.i.h.bf16 %v2705_v48 }
 0x100   :  { %v2815_v3 = vpop.permute.xlu0 %1896  ;;  %v3862_v59 = vunpack.i.h.bf16 %v2813_v21  ;;  %v3865_v45 = vunpack.i.l.bf16 %v2813_v21  ;;  %v3933_v39 = vunpack.i.l.bf16 %v2813_v21 }
 0x101   :  { %v3861_v33 = vunpack.i.h.bf16 %v2815_v3  ;;  %v1898_v52 = vunpack.i.l.bf16 %v2815_v3 }
 0x102   :  { %v782_v18 = vsel %vm769_vm6, %v3865_v45, %v3862_v59 }
 0x103   :  { %v596_v15 = vsel %vm583_vm5, %v1898_v52, %v3861_v33  ;;  %922 = vmatpush.msra.mxu3 %v782_v18  ;;  %v2847_v33 = vpop.permute.xlu2 %1951 }
 0x104   :  { %884 = vmatpush.msra.mxu2 %v596_v15 }
 0x106   :  { %885 = vmatpush.msra.mxu2 %v585_v40  ;;  %v2855_v40 = vld [vmem:[%s3819_s1 + $0x8] sm:$0xff] }
 0x107   :  { %v2843_v0 = vpop.permute.xlu1 %1916 }
 0x108   :  { %v2845_v27 = vpop.permute.xlu0 %1911  ;;  %886 = vmatpush.msra.mxu2 %v503_v8  ;;  %v3866_v34 = vunpack.i.h.bf16 %v2843_v0  ;;  %v1918_v15 = vunpack.i.l.bf16 %v2843_v0 }
 0x109   :  { %v1913_v18 = vunpack.i.l.bf16 %v2845_v27 }
 0x10a   :  { %v771_v8 = vsel %vm769_vm6, %v1918_v15, %v3866_v34  ;;  %v410_v34 = vsel %vm397_vm3, %v3930_v36, %v3929_v25 }
 0x10b   :  { %v688_v59 = vsel %vm676_vm4, %v1913_v18, %v1888_v57  ;;  %923 = vmatpush.msra.mxu3 %v771_v8  ;;  %v1938_v57 = vunpack.i.l.bf16 %v2811_v1  ;;  %v2876_v8 = vld [vmem:[%s3819_s1 + $0x18] sm:$0xff]  ;;  %v2880_v24 = vpop.permute.xlu2 %1966 }
 0x10c   :  { %830 = vmatpush.msra.mxu0 %v688_v59  ;;  %1601 = vmatmul.msk.f32.vlgmr.msra.gmra.mxu3 %vm820_vm8, %v2855_v40 }
 0x10d   :  { %v595_v63 = vsel %vm583_vm5, %v1938_v57, %v1898_v52 }
 0x10f   :  { %v2865_v45 = vpop.permute.xlu1 %1931 }
 0x110   :  { %v2867_v13 = vpop.permute.xlu0 %1926  ;;  %v3867_v18 = vunpack.i.l.bf16 %v2865_v45  ;;  %v1934_v57 = vunpack.i.h.bf16 %v2865_v45 }
 0x111   :  { %v1928_v59 = vunpack.i.l.bf16 %v2867_v13 }
 0x112   :  { %v492_v43 = vsel %vm490_vm7, %v1924_v7, %v3867_v18  ;;  %v2155_v18 = vmov 0  }
 0x113   :  { %v677_v16 = vsel %vm676_vm4, %v1928_v59, %v1893_v44  ;;  %887 = vmatpush.msra.mxu2 %v492_v43  ;;  %v3931_v44 = vunpack.i.l.bf16 %v2703_v20  ;;  %2121 = vset.pattern.permute.xlu1 %v2155_v18  ;;  %v2922_v26 = vpop.permute.xlu2 %1981 }
 0x114   :  { %831 = vmatpush.msra.mxu0 %v677_v16  ;;  %1602 = vmatmul.msk.f32.gmra.mxu3 %vm820_vm8, %v2876_v8 }
 0x115   :  { %888 = vmatpush.msra.mxu2 %v410_v34  ;;  %v399_v16 = vsel %vm397_vm3, %v3868_v30, %v3931_v44  ;;  %2120 = vset.pattern.permute.xlu0 %v2155_v18  ;;  %v2911_v44 = vld [vmem:[%s3819_s1 + $0x28] sm:$0xff]  ;;  %v1929_v34 = vunpack.i.h.bf16 %v2867_v13  ;;  %v3116_v13 = vld [vmem:[%s3819_s1 + $0x10] sm:$0xff] }
 0x116   :  { %832 = vmatpush.msra.mxu0 %v595_v63  ;;  %v1403_v63 = vld [vmem:[%s3820_s2 + $0x8] sm:$0xff]  ;;  %2122 = vset.pattern.permute.xlu2 %v2155_v18 }
 0x117   :  { %v2899_v43 = vpop.permute.xlu1 %1946  ;;  %889 = vmatpush.msra.mxu2 %v399_v16  ;;  %1412 = vperm.xlu1 %2121, %v1403_v63   ;;  %v1883_v16 = vunpack.i.l.bf16 %v2795_v22  ;;  %v3934_v63 = vunpack.i.h.bf16 %v2795_v22 }
 0x118   :  { %v1942_v52 = vpop.permute.xlu0 %1941  ;;  %v1948_v59 = vunpack.i.l.bf16 %v2899_v43 }
 0x119   :  { %v1944_v25 = vunpack.i.h.bf16 %v1942_v52  ;;  %v1943_v36 = vunpack.i.l.bf16 %v1942_v52  ;;  %890 = vmatpush.msra.mxu2 %v2658_v2  ;;  %v3932_v52 = vunpack.i.l.bf16 %v2754_v29  ;;  %v1853_v2 = vunpack.i.l.bf16 %v2752_v42 }
 0x11a   :  { %v502_v41 = vsel %vm490_vm7, %v1934_v57, %v3934_v63  ;;  %v491_v22 = vsel %vm490_vm7, %v1883_v16, %v1924_v7  ;;  %v1793_v7 = vunpack.i.l.bf16 %v2648_v9  ;;  %v3939_v63 = vunpack.i.h.bf16 %v2815_v3 }
 0x11b   :  { %v584_v30 = vsel %vm583_vm5, %v1948_v59, %v3932_v52  ;;  %v781_v46 = vsel %vm769_vm6, %v1943_v36, %v3933_v39  ;;  %891 = vmatpush.msra.mxu2 %v2601_v49  ;;  %v770_v59 = vsel %vm769_vm6, %v1944_v25, %v1918_v15  ;;  %v1939_v39 = vunpack.i.h.bf16 %v2811_v1  ;;  %v1402_v15 = vld [vmem:[%s3820_s2] sm:$0xff] }
 0x11c   :  { %833 = vmatpush.msra.mxu0 %v584_v30  ;;  %870 = vmatpush.msra.mxu1 %v781_v46  ;;  %v3935_v46 = vunpack.i.h.bf16 %v2845_v27  ;;  %v3936_v30 = vunpack.i.h.bf16 %v2793_v35  ;;  %v1823_v49 = vunpack.i.l.bf16 %v2705_v48  ;;  %v3937_v35 = vunpack.i.h.bf16 %v2725_v14  ;;  %v1453_v52 = vld [vmem:[%s3821_s3] sm:$0xff] }
 0x11d   :  { %1603 = vmatmul.msk.f32.gmra.mxu3 %vm820_vm8, %v2911_v44  ;;  %892 = vmatpush.msra.mxu2 %v2545_v31  ;;  %v3938_v36 = vunpack.i.h.bf16 %v2752_v42  ;;  %v1953_v14 = vunpack.i.l.bf16 %v2847_v33  ;;  %v3940_v42 = vunpack.i.h.bf16 %v2705_v48  ;;  %v3941_v3 = vunpack.i.h.bf16 %v2754_v29 }
 0x11e   :  { %834 = vmatpush.msra.mxu0 %v502_v41  ;;  %871 = vmatpush.msra.mxu1 %v770_v59  ;;  %v690_v18 = vsel %vm676_vm4, %v3936_v30, %v3935_v46  ;;  %v1949_v41 = vunpack.i.h.bf16 %v2899_v43  ;;  %v679_v31 = vsel %vm676_vm4, %v3937_v35, %v1929_v34  ;;  %v597_v59 = vsel %vm583_vm5, %v3939_v63, %v1939_v39 }
 0x11f   :  { %v2944_v57 = vpop.permute.xlu1 %1961  ;;  %1598 = vmatmul.msk.f32.vlgmr.msra.gmra.mxu1 %vm820_vm8, %v2855_v40  ;;  %893 = vmatpush.msra.mxu2 %v2488_v32  ;;  %v409_v16 = vsel %vm397_vm3, %v1853_v2, %v3938_v36  ;;  %v1763_v32 = vunpack.i.l.bf16 %v2591_v56  ;;  %v398_v2 = vsel %vm397_vm3, %v1823_v49, %v3940_v42  ;;  %v1733_v46 = vunpack.i.l.bf16 %v2534_v53 }
 0x120   :  { %934 = vmatpush.msrb.mxu1 %v690_v18  ;;  %v2946_v25 = vpop.permute.xlu0 %1956  ;;  %835 = vmatpush.msra.mxu0 %v491_v22  ;;  %v1954_v30 = vunpack.i.h.bf16 %v2847_v33  ;;  %v586_v18 = vsel %vm583_vm5, %v3941_v3, %v1949_v41  ;;  %v1964_v22 = vunpack.i.h.bf16 %v2944_v57  ;;  %v3942_v49 = vunpack.i.h.bf16 %v2648_v9  ;;  %v2123_v9 = vld [vmem:[%s3818_s0 + $0x68] sm:$0xff] }
 0x121   :  { %1407 = vperm.xlu0 %2120, %v1402_v15   ;;  %894 = vmatpush.msra.mxu2 %v2425_v23  ;;  %v1959_v23 = vunpack.i.h.bf16 %v2946_v25  ;;  %v1958_v48 = vunpack.i.l.bf16 %v2946_v25  ;;  %v1859_v35 = vunpack.i.h.bf16 %v2750_v58  ;;  %v3943_v29 = vunpack.i.l.bf16 %v2783_v55 }
 0x122   :  { %935 = vmatpush.msrb.mxu1 %v679_v31  ;;  %836 = vmatpush.msra.mxu0 %v409_v16  ;;  %v316_v15 = vsel %vm304_vm2, %v1793_v7, %v3942_v49  ;;  %v1703_v36 = vunpack.i.l.bf16 %v2473_v61  ;;  %v1969_v16 = vunpack.i.h.bf16 %v2880_v24  ;;  %v3944_v7 = vunpack.i.h.bf16 %v2591_v56  ;;  %v3021_v56 = vld [vmem:[%s3819_s1] sm:$0xff] }
 0x123   :  { %1458 = vperm.xlu1 %2121, %v1453_v52   ;;  %895 = vmatpush.msra.mxu2 %v2385_v62  ;;  %v504_v31 = vsel %vm490_vm7, %v3943_v29, %v1953_v14  ;;  %v2996_v52 = vpop.permute.xlu2 %1996  ;;  %v1963_v62 = vunpack.i.l.bf16 %v2944_v57  ;;  %v1673_v63 = vunpack.i.l.bf16 %v2414_v11  ;;  %v3962_v1 = vunpack.i.h.bf16 %v2471_v60 }
 0x124   :  { %936 = vmatpush.msrb.mxu1 %v597_v59  ;;  %837 = vmatpush.msra.mxu0 %v398_v2  ;;  %v305_v55 = vsel %vm304_vm2, %v1763_v32, %v3944_v7  ;;  %v3945_v2 = vunpack.i.l.bf16 %v2865_v45  ;;  %v1968_v32 = vunpack.i.l.bf16 %v2880_v24  ;;  %v2124_v45 = vld [vmem:[%s3818_s0 + $0x8] sm:$0xff]  ;;  %v2131_v24 = vld [vmem:[%s3818_s0 + $0x78] sm:$0xff] }
 0x125   :  { %896 = vmatpush.msra.mxu2 %v2123_v9  ;;  %v3947_v9 = vunpack.i.l.bf16 %v2750_v58  ;;  %v1404_v58 = vld [vmem:[%s3820_s2 + $0x10] sm:$0xff] }
 0x126   :  { %937 = vmatpush.msrb.mxu1 %v586_v18  ;;  %838 = vmatpush.msra.mxu0 %v316_v15  ;;  %v493_v3 = vsel %vm490_vm7, %v3945_v2, %v1954_v30  ;;  %v3946_v18 = vunpack.i.h.bf16 %v2534_v53  ;;  %v692_v53 = vsel %vm676_vm4, %v1958_v48, %v1959_v23  ;;  %v3948_v2 = vunpack.i.h.bf16 %v2473_v61 }
 0x127   :  { %v3006_v59 = vpop.permute.xlu1 %1976  ;;  %1599 = vmatmul.msk.f32.gmra.mxu1 %vm820_vm8, %v2876_v8  ;;  %897 = vmatpush.msra.mxu2 %v2124_v45  ;;  %v411_v7 = vsel %vm397_vm3, %v3947_v9, %v1859_v35  ;;  %v599_v45 = vsel %vm583_vm5, %v1968_v32, %v1969_v16  ;;  %v3950_v61 = vunpack.i.h.bf16 %v2703_v20 }
 0x128   :  { %938 = vmatpush.msrb.mxu1 %v504_v31  ;;  %v3008_v42 = vpop.permute.xlu0 %1971  ;;  %839 = vmatpush.msra.mxu0 %v305_v55  ;;  %v223_v49 = vsel %vm211_vm1, %v1733_v46, %v3946_v18  ;;  %v681_v46 = vsel %vm676_vm4, %v1963_v62, %v1964_v22  ;;  %v1979_v29 = vunpack.i.h.bf16 %v3006_v59  ;;  %v1643_v55 = vunpack.i.l.bf16 %v2357_v47 }
 0x129   :  { %v1973_v15 = vunpack.i.l.bf16 %v3008_v42  ;;  %v1974_v31 = vunpack.i.h.bf16 %v3008_v42  ;;  %1038 = vmatpush.msrb.mxu2 %v692_v53  ;;  %v3949_v18 = vunpack.i.h.bf16 %v2813_v21  ;;  %v1984_v53 = vunpack.i.h.bf16 %v2922_v26  ;;  %1417 = vperm.xlu2 %2122, %v1404_v58   ;;  %v3989_v58 = vld [vmem:[#allocation7_spill] sm:$0xff] }
 0x12a   :  { %939 = vmatpush.msrb.mxu1 %v493_v3  ;;  %840 = vmatpush.msra.mxu0 %v223_v49  ;;  %v212_v3 = vsel %vm211_vm1, %v1703_v36, %v3948_v2  ;;  %v1978_v9 = vunpack.i.l.bf16 %v3006_v59  ;;  %v3951_v36 = vunpack.i.l.bf16 %v2703_v20  ;;  %v3952_v21 = vunpack.i.h.bf16 %v2414_v11 }
 0x12b   :  { %898 = vmatmul.f32.vlgmr.msra.gmra.mxu2 %v3021_v56  ;;  %v783_v49 = vsel %vm769_vm6, %v3949_v18, %v1973_v15  ;;  %v1983_v18 = vunpack.i.l.bf16 %v2922_v26  ;;  %v3954_v20 = vunpack.i.h.bf16 %v2646_v50 }
 0x12c   :  { %940 = vmatpush.msrb.mxu1 %v411_v7  ;;  %1039 = vmatpush.msrb.mxu2 %v681_v46  ;;  %v400_v7 = vsel %vm397_vm3, %v3951_v36, %v3950_v61  ;;  %v130_v2 = vsel %vm118_vm0, %v1673_v63, %v3952_v21  ;;  %v3953_v46 = vunpack.i.h.bf16 %v2843_v0  ;;  %v3955_v61 = vunpack.i.l.bf16 %v2646_v50 }
 0x12d   :  { %841 = vmatpush.msra.mxu0 %v212_v3  ;;  %974 = vmatpush.msrb.mxu3 %v783_v49  ;;  %v588_v11 = vsel %vm583_vm5, %v1978_v9, %v1979_v29  ;;  %v3956_v63 = vunpack.i.h.bf16 %v2845_v27  ;;  %v3957_v0 = vunpack.i.h.bf16 %v2357_v47  ;;  %v3958_v21 = vunpack.i.h.bf16 %v2589_v4 }
 0x12e   :  { %941 = vmatpush.msrb.mxu1 %v400_v7  ;;  %v772_v3 = vsel %vm769_vm6, %v3953_v46, %v1974_v31  ;;  %1040 = vmatpush.msrb.mxu2 %v599_v45  ;;  %v318_v49 = vsel %vm304_vm2, %v3955_v61, %v3954_v20  ;;  %v506_v27 = vsel %vm490_vm7, %v1983_v18, %v1984_v53  ;;  %v3960_v20 = vunpack.i.h.bf16 %v2532_v38 }
 0x12f   :  { %842 = vmatpush.msra.mxu0 %v130_v2  ;;  %975 = vmatpush.msrb.mxu3 %v772_v3  ;;  %v691_v36 = vsel %vm676_vm4, %v3956_v63, %v1958_v48  ;;  %v119_v45 = vsel %vm118_vm0, %v1643_v55, %v3957_v0  ;;  %v3086_v7 = vpop.permute.xlu1 %1991  ;;  %v3959_v2 = vunpack.i.l.bf16 %v2589_v4  ;;  %v680_v55 = vsel %vm676_vm4, %v1929_v34, %v1963_v62  ;;  %v3103_v3 = vpop.permute.xlu2 %2011  ;;  %v2125_v4 = vld [vmem:[%s3818_s0 + $0x60] sm:$0xff] }
 0x130   :  { %942 = vmatpush.msrb.mxu1 %v318_v49  ;;  %v3088_v50 = vpop.permute.xlu0 %1986  ;;  %1041 = vmatpush.msrb.mxu2 %v588_v11  ;;  %v3961_v61 = vunpack.i.l.bf16 %v2532_v38  ;;  %v598_v34 = vsel %vm583_vm5, %v1939_v39, %v1968_v32  ;;  %v2126_v38 = vld [vmem:[%s3818_s0] sm:$0xff]  ;;  %v1863_v11 = vunpack.i.l.bf16 %v2677_v12  ;;  %v3963_v39 = vunpack.i.l.bf16 %v2471_v60 }
 0x131   :  { %986 = vmatpush.msra.mxu3 %v691_v36  ;;  %843 = vmatpush.msra.mxu0 %v119_v45  ;;  %v307_v46 = vsel %vm304_vm2, %v3959_v2, %v3958_v21  ;;  %v1989_v47 = vunpack.i.h.bf16 %v3088_v50  ;;  %v1988_v48 = vunpack.i.l.bf16 %v3088_v50  ;;  %v587_v63 = vsel %vm583_vm5, %v1949_v41, %v1978_v9  ;;  %v1455_v36 = vld [vmem:[%s3821_s3 + $0x10] sm:$0xff] }
 0x132   :  { %943 = vmatpush.msrb.mxu1 %v307_v46  ;;  %v225_v49 = vsel %vm211_vm1, %v3961_v61, %v3960_v20  ;;  %1042 = vmatpush.msrb.mxu2 %v506_v27  ;;  %v214_v32 = vsel %vm211_vm1, %v3963_v39, %v3962_v1  ;;  %v3964_v0 = vunpack.i.h.bf16 %v2677_v12  ;;  %v3965_v60 = vunpack.i.h.bf16 %v2412_v10 }
 0x133   :  { %987 = vmatpush.msra.mxu3 %v680_v55  ;;  %844 = vmatpush.msra.mxu0 %v2125_v4  ;;  %v495_v62 = vsel %vm490_vm7, %v1988_v48, %v1989_v47  ;;  %v3966_v21 = vunpack.i.l.bf16 %v2412_v10  ;;  %v505_v41 = vsel %vm490_vm7, %v1953_v14, %v1983_v18  ;;  %v3967_v2 = vunpack.i.h.bf16 %v2620_v5  ;;  %v3174_v18 = vld [vmem:[%s3819_s1 + $0x20] sm:$0xff] }
 0x134   :  { %944 = vmatpush.msrb.mxu1 %v225_v49  ;;  %901 = vmatmul.f32.gmra.mxu2 %v3116_v13  ;;  %v413_v45 = vsel %vm397_vm3, %v1863_v11, %v3964_v0  ;;  %v3968_v46 = vunpack.i.l.bf16 %v2620_v5  ;;  %v3969_v10 = vunpack.i.h.bf16 %v2370_v54  ;;  %v3970_v55 = vunpack.i.l.bf16 %v2370_v54 }
 0x135   :  { %988 = vmatpush.msra.mxu3 %v598_v34  ;;  %845 = vmatpush.msra.mxu0 %v2126_v38  ;;  %v132_v43 = vsel %vm118_vm0, %v3966_v21, %v3965_v60  ;;  %v494_v14 = vsel %vm490_vm7, %v1954_v30, %v1988_v48  ;;  %v3971_v5 = vunpack.i.h.bf16 %v2564_v17  ;;  %v3972_v20 = vunpack.i.l.bf16 %v2564_v17  ;;  %v2127_v30 = vld [vmem:[%s3818_s0 + $0x70] sm:$0xff] }
 0x136   :  { %846 = vmatmul.f32.vlgmr.msra.gmra.mxu0 %v3021_v56  ;;  %1043 = vmatpush.msrb.mxu2 %v495_v62  ;;  %v402_v27 = vsel %vm397_vm3, %v3968_v46, %v3967_v2  ;;  %v121_v4 = vsel %vm118_vm0, %v3970_v55, %v3969_v10  ;;  %v412_v33 = vsel %vm397_vm3, %v1859_v35, %v1863_v11  ;;  %v3973_v48 = vunpack.i.h.bf16 %v2504_v37  ;;  %v2128_v35 = vld [vmem:[%s3818_s0 + $0x10] sm:$0xff]  ;;  %v3983_v46 = vld [vmem:[#allocation5_spill] sm:$0xff] }
 0x137   :  { %945 = vmatpush.msrb.mxu1 %v214_v32  ;;  %989 = vmatpush.msra.mxu3 %v587_v63  ;;  %v3154_v9 = vpop.permute.xlu1 %2006  ;;  %v320_v54 = vsel %vm304_vm2, %v3972_v20, %v3971_v5  ;;  %v3181_v61 = vpop.permute.xlu2 %2026  ;;  %v3974_v17 = vunpack.i.l.bf16 %v2504_v37  ;;  %v3975_v34 = vunpack.i.h.bf16 %v2441_v28  ;;  %v3976_v37 = vunpack.i.l.bf16 %v2441_v28  ;;  %v3982_v2 = vld [vmem:[#allocation32_spill] sm:$0xff]  ;;  %v3987_v20 = vld [vmem:[#allocation18_spill] sm:$0xff] }
 0x138   :  { %1600 = vmatmul.msk.f32.gmra.mxu1 %vm820_vm8, %v2911_v44  ;;  %1044 = vmatpush.msrb.mxu2 %v413_v45  ;;  %v3156_v12 = vpop.permute.xlu0 %2001  ;;  %v3977_v32 = vunpack.i.h.bf16 %v2367_v51  ;;  %v3978_v63 = vunpack.i.l.bf16 %v2367_v51  ;;  %v3985_v10 = vunpack.i.l.bf16 %v3983_v46  ;;  %v1998_v55 = vunpack.i.l.bf16 %v2996_v52 }
 0x139   :  { %946 = vmatpush.msrb.mxu1 %v132_v43  ;;  %990 = vmatpush.msra.mxu3 %v505_v41  ;;  %v309_v49 = vsel %vm304_vm2, %v3974_v17, %v3973_v48  ;;  %v227_v62 = vsel %vm211_vm1, %v3976_v37, %v3975_v34  ;;  %v2029_v43 = vunpack.i.h.bf16 %v3181_v61  ;;  %v2003_v5 = vunpack.i.l.bf16 %v3156_v12  ;;  %v1454_v17 = vld [vmem:[%s3821_s3 + $0x8] sm:$0xff] }
 0x13a   :  { %1468 = vperm.xlu0 %2120, %v1455_v36   ;;  %1045 = vmatpush.msrb.mxu2 %v402_v27  ;;  %v216_v28 = vsel %vm211_vm1, %v3978_v63, %v3977_v32  ;;  %v3979_v36 = vld [vmem:[#allocation2_spill] sm:$0xff]  ;;  %v3984_v27 = vunpack.i.h.bf16 %v3983_v46  ;;  %v2008_v42 = vunpack.i.l.bf16 %v3154_v9  ;;  %v682_v25 = vsel %vm676_vm4, %v1964_v22, %v1998_v55  ;;  %v2132_v63 = vld [vmem:[%s3818_s0 + $0x18] sm:$0xff] }
 0x13b   :  { %947 = vmatpush.msrb.mxu1 %v121_v4  ;;  %991 = vmatpush.msra.mxu3 %v494_v14  ;;  %v3980_v0 = vunpack.i.h.bf16 %v3979_v36  ;;  %v3981_v45 = vunpack.i.l.bf16 %v3979_v36  ;;  %v3986_v4 = vld [vmem:[#allocation25_spill] sm:$0xff]  ;;  %v600_v57 = vsel %vm583_vm5, %v1969_v16, %v2003_v5  ;;  %v2130_v22 = vld [vmem:[%s3818_s0 + $0x20] sm:$0xff]  ;;  %v1999_v34 = vunpack.i.h.bf16 %v2996_v52 }
 0x13c   :  { %1046 = vmatpush.msrb.mxu2 %v320_v54  ;;  %1604 = vmatmul.msk.f32.vlgmr.msrb.gmra.mxu3 %vm820_vm8, %v2855_v40  ;;  %v589_v16 = vsel %vm583_vm5, %v1979_v29, %v2008_v42 }
 0x13d   :  { %948 = vmatpush.msrb.mxu1 %v2127_v30  ;;  %992 = vmatpush.msra.mxu3 %v412_v33  ;;  %v134_v60 = vsel %vm118_vm0, %v3981_v45, %v3980_v0 }
 0x13e   :  { %904 = vmatmul.f32.gmra.mxu2 %v3174_v18  ;;  %849 = vmatmul.f32.gmra.mxu0 %v3116_v13 }
 0x13f   :  { %1047 = vmatpush.msrb.mxu2 %v309_v49  ;;  %949 = vmatpush.msrb.mxu1 %v2128_v35  ;;  %v3210_v38 = vpop.permute.xlu1 %2021  ;;  %v3237_v41 = vpop.permute.xlu2 %2041  ;;  %v1994_v49 = vunpack.i.h.bf16 %v3086_v7  ;;  %v2013_v35 = vunpack.i.l.bf16 %v3103_v3 }
 0x140   :  { %993 = vmatpush.msra.mxu3 %v2713_v19  ;;  %v3212_v11 = vpop.permute.xlu0 %2016  ;;  %950 = vmatmul.f32.vlgmr.msrb.gmra.mxu1 %v3021_v56  ;;  %v2024_v1 = vunpack.i.h.bf16 %v3210_v38  ;;  %v2023_v39 = vunpack.i.l.bf16 %v3210_v38  ;;  %v2028_v19 = vunpack.i.l.bf16 %v3181_v61  ;;  %v3991_v61 = vld [vmem:[#allocation46_spill] sm:$0xff] }
 0x141   :  { %1048 = vmatpush.msrb.mxu2 %v227_v62  ;;  %1463 = vperm.xlu2 %2122, %v1454_v17   ;;  %v2018_v62 = vunpack.i.l.bf16 %v3212_v11  ;;  %v507_v36 = vsel %vm490_vm7, %v1984_v53, %v2013_v35 }
 0x142   :  { %994 = vmatpush.msra.mxu3 %v2665_v6  ;;  %v784_v21 = vsel %vm769_vm6, %v1973_v15, %v2023_v39  ;;  %v785_v51 = vsel %vm769_vm6, %v2023_v39, %v2024_v1  ;;  %v1993_v6 = vunpack.i.l.bf16 %v3086_v7  ;;  %v123_v15 = vsel %vm118_vm0, %v3985_v10, %v3984_v27  ;;  %v3990_v10 = vld [vmem:[#allocation52_spill] sm:$0xff] }
 0x143   :  { %1049 = vmatpush.msrb.mxu2 %v216_v28  ;;  %1026 = vmatpush.msrb.mxu0 %v784_v21  ;;  %v773_v14 = vsel %vm769_vm6, %v1974_v31, %v2028_v19  ;;  %v774_v48 = vsel %vm769_vm6, %v2028_v19, %v2029_v43  ;;  %v3988_v31 = vld [vmem:[#allocation11_spill] sm:$0xff]  ;;  %v2004_v39 = vunpack.i.h.bf16 %v3156_v12  ;;  %v683_v21 = vsel %vm676_vm4, %v1998_v55, %v1999_v34 }
 0x144   :  { %995 = vmatpush.msra.mxu3 %v3982_v2  ;;  %1078 = vmatpush.msra.mxu1 %v785_v51  ;;  %v693_v54 = vsel %vm676_vm4, %v1959_v23, %v1993_v6  ;;  %v2129_v23 = vld [vmem:[%s3818_s0 + $0x80] sm:$0xff]  ;;  %v694_v59 = vsel %vm676_vm4, %v1993_v6, %v1994_v49  ;;  %v496_v51 = vsel %vm490_vm7, %v1989_v47, %v2018_v62  ;;  %v2014_v6 = vunpack.i.h.bf16 %v3103_v3 }
 0x145   :  { %1050 = vmatpush.msrb.mxu2 %v134_v60  ;;  %1605 = vmatmul.msk.f32.gmra.mxu3 %vm820_vm8, %v2876_v8  ;;  %v2009_v60 = vunpack.i.h.bf16 %v3154_v9  ;;  %v601_v46 = vsel %vm583_vm5, %v2003_v5, %v2004_v39 }
 0x146   :  { %996 = vmatpush.msra.mxu3 %v3986_v4  ;;  %852 = vmatmul.f32.gmra.mxu0 %v3174_v18  ;;  %v2044_v4 = vunpack.i.h.bf16 %v3237_v41 }
 0x147   :  { %1051 = vmatpush.msrb.mxu2 %v123_v15  ;;  %1027 = vmatpush.msrb.mxu0 %v773_v14  ;;  %v3258_v33 = vpop.permute.xlu1 %2036  ;;  %v3288_v37 = vpop.permute.xlu2 %2056  ;;  %v590_v15 = vsel %vm583_vm5, %v2008_v42, %v2009_v60 }
 0x148   :  { %997 = vmatpush.msra.mxu3 %v3987_v20  ;;  %v3260_v30 = vpop.permute.xlu0 %2031  ;;  %953 = vmatmul.f32.gmra.mxu1 %v3116_v13  ;;  %v2059_v32 = vunpack.i.h.bf16 %v3288_v37  ;;  %v2058_v19 = vunpack.i.l.bf16 %v3288_v37  ;;  %v2039_v27 = vunpack.i.h.bf16 %v3258_v33  ;;  %v2038_v55 = vunpack.i.l.bf16 %v3258_v33 }
 0x149   :  { %1090 = vmatpush.msra.mxu0 %v693_v54  ;;  %1052 = vmatpush.msrb.mxu2 %v2129_v23  ;;  %v2034_v2 = vunpack.i.h.bf16 %v3260_v30  ;;  %v2033_v47 = vunpack.i.l.bf16 %v3260_v30  ;;  %v2043_v20 = vunpack.i.l.bf16 %v3237_v41 }
 0x14a   :  { %998 = vmatpush.msra.mxu3 %v3988_v31  ;;  %1079 = vmatpush.msra.mxu1 %v774_v48  ;;  %v776_v50 = vsel %vm769_vm6, %v2058_v19, %v2059_v32  ;;  %v775_v38 = vsel %vm769_vm6, %v2029_v43, %v2058_v19  ;;  %v508_v43 = vsel %vm490_vm7, %v2013_v35, %v2014_v6  ;;  %v3992_v48 = vld [vmem:[#allocation40_spill] sm:$0xff]  ;;  %v3994_v35 = vld [vmem:[#allocation53_spill] sm:$0xff] }
 0x14b   :  { %1091 = vmatpush.msra.mxu0 %v682_v25  ;;  %1053 = vmatpush.msrb.mxu2 %v2130_v22  ;;  %v696_v14 = vsel %vm676_vm4, %v2033_v47, %v2034_v2  ;;  %v695_v54 = vsel %vm676_vm4, %v1994_v49, %v2033_v47  ;;  %v685_v31 = vsel %vm676_vm4, %v2038_v55, %v2039_v27  ;;  %v3993_v49 = vld [vmem:[#allocation34_spill] sm:$0xff]  ;;  %v2133_v47 = vld [vmem:[%s3818_s0 + $0x88] sm:$0xff] }
 0x14c   :  { %999 = vmatpush.msra.mxu3 %v3989_v58  ;;  %1054 = vmatmul.f32.vlgmr.msrb.gmra.mxu2 %v3021_v56  ;;  %v684_v7 = vsel %vm676_vm4, %v1999_v34, %v2038_v55  ;;  %v603_v58 = vsel %vm583_vm5, %v2043_v20, %v2044_v4  ;;  %v602_v52 = vsel %vm583_vm5, %v2004_v39, %v2043_v20  ;;  %v2134_v55 = vld [vmem:[%s3818_s0 + $0x28] sm:$0xff]  ;;  %v4008_v20 = vld [vmem:[#allocation14_spill] sm:$0xff] }
 0x14d   :  { %1092 = vmatpush.msra.mxu0 %v600_v57  ;;  %1606 = vmatmul.msk.f32.gmra.mxu3 %vm820_vm8, %v2911_v44 }
 0x14e   :  { %1000 = vmatpush.msra.mxu3 %v2131_v24  ;;  %1607 = vmatmul.msk.f32.vlgmr.msrb.gmra.mxu0 %vm820_vm8, %v2855_v40  ;;  %v3995_v24 = vld [vmem:[#allocation27_spill] sm:$0xff] }
 0x14f   :  { %1093 = vmatpush.msra.mxu0 %v589_v16  ;;  %v3307_v29 = vpop.permute.xlu1 %2051  ;;  %v3376_v25 = vpop.permute.xlu2 %2071 }
 0x150   :  { %1001 = vmatpush.msra.mxu3 %v2132_v63  ;;  %v3309_v28 = vpop.permute.xlu0 %2046  ;;  %956 = vmatmul.f32.gmra.mxu1 %v3174_v18  ;;  %v2054_v23 = vunpack.i.h.bf16 %v3307_v29  ;;  %v2053_v57 = vunpack.i.l.bf16 %v3307_v29  ;;  %v2138_v29 = vld [vmem:[%s3818_s0 + $0x38] sm:$0xff] }
 0x151   :  { %v2049_v0 = vunpack.i.h.bf16 %v3309_v28  ;;  %v2048_v45 = vunpack.i.l.bf16 %v3309_v28  ;;  %1094 = vmatpush.msra.mxu0 %v507_v36 }
 0x152   :  { %1142 = vmatpush.msrb.mxu3 %v694_v59  ;;  %v592_v63 = vsel %vm583_vm5, %v2053_v57, %v2054_v23  ;;  %v3997_v59 = vld [vmem:[#allocation20_spill] sm:$0xff]  ;;  %v591_v19 = vsel %vm583_vm5, %v2009_v60, %v2053_v57  ;;  %v2073_v57 = vunpack.i.l.bf16 %v3376_v25 }
 0x153   :  { %v786_v26 = vsel %vm769_vm6, %v2024_v1, %v2048_v45  ;;  %v787_v53 = vsel %vm769_vm6, %v2048_v45, %v2049_v0  ;;  %1095 = vmatpush.msra.mxu0 %v496_v51  ;;  %v2019_v1 = vunpack.i.h.bf16 %v3212_v11  ;;  %v3998_v45 = vld [vmem:[#allocation41_spill] sm:$0xff]  ;;  %v4004_v11 = vld [vmem:[#allocation55_spill] sm:$0xff] }
 0x154   :  { %1143 = vmatpush.msrb.mxu3 %v683_v21  ;;  %1130 = vmatpush.msrb.mxu1 %v786_v26  ;;  %v3999_v21 = vld [vmem:[#allocation13_spill] sm:$0xff] }
 0x155   :  { %1182 = vmatpush.msra.mxu2 %v787_v53  ;;  %1096 = vmatpush.msra.mxu0 %v3990_v10  ;;  %v497_v42 = vsel %vm490_vm7, %v2018_v62, %v2019_v1  ;;  %v3996_v62 = vld [vmem:[#allocation47_spill] sm:$0xff] }
 0x156   :  { %1144 = vmatpush.msrb.mxu3 %v601_v46  ;;  %1131 = vmatpush.msrb.mxu1 %v775_v38  ;;  %v4000_v53 = vld [vmem:[#allocation35_spill] sm:$0xff]  ;;  %v4001_v46 = vld [vmem:[#allocation8_spill] sm:$0xff]  ;;  %v4003_v38 = vld [vmem:[#allocation54_spill] sm:$0xff] }
 0x157   :  { %1183 = vmatpush.msra.mxu2 %v776_v50  ;;  %1002 = vmatmul.f32.vlgmr.msra.gmra.mxu3 %v3021_v56  ;;  %v3361_v5 = vpop.permute.xlu1 %2066  ;;  %v3423_v60 = vpop.permute.xlu2 %2086 }
 0x158   :  { %1145 = vmatpush.msrb.mxu3 %v590_v15  ;;  %1097 = vmatpush.msra.mxu0 %v3991_v61  ;;  %v3379_v17 = vpop.permute.xlu0 %2061  ;;  %v2069_v34 = vunpack.i.h.bf16 %v3361_v5  ;;  %v2068_v39 = vunpack.i.l.bf16 %v3361_v5  ;;  %v2088_v50 = vunpack.i.l.bf16 %v3423_v60  ;;  %v4006_v61 = vld [vmem:[#allocation48_spill] sm:$0xff] }
 0x159   :  { %1610 = vmatmul.msk.f32.vlgmr.msra.gmra.mxu1 %vm820_vm8, %v2855_v40  ;;  %1246 = vmatpush.msrb.mxu2 %v696_v14  ;;  %v2064_v22 = vunpack.i.h.bf16 %v3379_v17  ;;  %v2063_v16 = vunpack.i.l.bf16 %v3379_v17 }
 0x15a   :  { %1146 = vmatpush.msrb.mxu3 %v508_v43  ;;  %1098 = vmatpush.msra.mxu0 %v3992_v48  ;;  %v499_v9 = vsel %vm490_vm7, %v2068_v39, %v2069_v34  ;;  %v498_v3 = vsel %vm490_vm7, %v2019_v1, %v2068_v39  ;;  %v4005_v1 = vld [vmem:[#allocation21_spill] sm:$0xff]  ;;  %v788_v14 = vsel %vm769_vm6, %v2049_v0, %v2088_v50  ;;  %v4010_v48 = vld [vmem:[#allocation43_spill] sm:$0xff]  ;;  %v4012_v0 = vld [vmem:[#allocation36_spill] sm:$0xff] }
 0x15b   :  { %1194 = vmatpush.msra.mxu1 %v695_v54  ;;  %1247 = vmatpush.msrb.mxu2 %v685_v31  ;;  %v510_v36 = vsel %vm490_vm7, %v2063_v16, %v2064_v22  ;;  %v509_v51 = vsel %vm490_vm7, %v2014_v6, %v2063_v16  ;;  %v4002_v6 = vld [vmem:[#allocation28_spill] sm:$0xff]  ;;  %v4007_v43 = vld [vmem:[#allocation49_spill] sm:$0xff]  ;;  %v4009_v54 = vld [vmem:[#allocation42_spill] sm:$0xff]  ;;  %v2089_v31 = vunpack.i.h.bf16 %v3423_v60 }
 0x15c   :  { %1147 = vmatpush.msrb.mxu3 %v497_v42  ;;  %1099 = vmatpush.msra.mxu0 %v3993_v49  ;;  %v4011_v49 = vld [vmem:[#allocation9_spill] sm:$0xff] }
 0x15d   :  { %1195 = vmatpush.msra.mxu1 %v684_v7  ;;  %1248 = vmatpush.msrb.mxu2 %v603_v58  ;;  %v4013_v58 = vld [vmem:[#allocation37_spill] sm:$0xff] }
 0x15e   :  { %1148 = vmatpush.msrb.mxu3 %v3994_v35  ;;  %1100 = vmatpush.msra.mxu0 %v3995_v24  ;;  %v2074_v35 = vunpack.i.h.bf16 %v3376_v25  ;;  %v4015_v24 = vld [vmem:[#allocation30_spill] sm:$0xff] }
 0x15f   :  { %1196 = vmatpush.msra.mxu1 %v602_v52  ;;  %1005 = vmatmul.f32.gmra.mxu3 %v3116_v13  ;;  %v3404_v12 = vpop.permute.xlu1 %2081  ;;  %v3469_v28 = vpop.permute.xlu2 %2101  ;;  %v4014_v52 = vld [vmem:[#allocation29_spill] sm:$0xff] }
 0x160   :  { %1149 = vmatpush.msrb.mxu3 %v3996_v62  ;;  %1608 = vmatmul.msk.f32.gmra.mxu0 %vm820_vm8, %v2876_v8  ;;  %v3425_v26 = vpop.permute.xlu0 %2076  ;;  %v2136_v62 = vld [vmem:[%s3818_s0 + $0x30] sm:$0xff]  ;;  %v2083_v25 = vunpack.i.l.bf16 %v3404_v12  ;;  %v2103_v33 = vunpack.i.l.bf16 %v3469_v28 }
 0x161   :  { %1057 = vmatmul.f32.gmra.mxu2 %v3116_v13  ;;  %1101 = vmatpush.msra.mxu0 %v3997_v59  ;;  %v2078_v16 = vunpack.i.l.bf16 %v3425_v26  ;;  %v2079_v39 = vunpack.i.h.bf16 %v3425_v26  ;;  %v4016_v59 = vld [vmem:[#allocation22_spill] sm:$0xff]  ;;  %v4018_v26 = vld [vmem:[#allocation15_spill] sm:$0xff] }
 0x162   :  { %1197 = vmatpush.msra.mxu1 %v591_v19  ;;  %1249 = vmatpush.msrb.mxu2 %v592_v63  ;;  %v789_v63 = vsel %vm769_vm6, %v2088_v50, %v2089_v31  ;;  %v4017_v19 = vld [vmem:[#allocation23_spill] sm:$0xff]  ;;  %v4020_v50 = vld [vmem:[#allocation10_spill] sm:$0xff] }
 0x163   :  { %1150 = vmatpush.msrb.mxu3 %v3998_v45  ;;  %1102 = vmatpush.msra.mxu0 %v3999_v21  ;;  %v686_v30 = vsel %vm676_vm4, %v2039_v27, %v2078_v16 }
 0x164   :  { %1198 = vmatpush.msra.mxu1 %v509_v51  ;;  %1250 = vmatpush.msrb.mxu2 %v510_v36  ;;  %v697_v36 = vsel %vm676_vm4, %v2034_v2, %v2073_v57  ;;  %v2084_v51 = vunpack.i.h.bf16 %v3404_v12  ;;  %v687_v12 = vsel %vm676_vm4, %v2078_v16, %v2079_v39  ;;  %v4034_v16 = vld [vmem:[#allocation19_spill] sm:$0xff] }
 0x165   :  { %1151 = vmatpush.msrb.mxu3 %v4000_v53  ;;  %1103 = vmatpush.msra.mxu0 %v4001_v46  ;;  %v4019_v53 = vld [vmem:[#allocation16_spill] sm:$0xff]  ;;  %v2141_v39 = vld [vmem:[%s3818_s0 + $0xa8] sm:$0xff] }
 0x166   :  { %1199 = vmatpush.msra.mxu1 %v498_v3  ;;  %1251 = vmatpush.msrb.mxu2 %v499_v9  ;;  %v698_v9 = vsel %vm676_vm4, %v2073_v57, %v2074_v35  ;;  %v605_v27 = vsel %vm583_vm5, %v2083_v25, %v2084_v51  ;;  %v4028_v57 = vld [vmem:[#allocation39_spill] sm:$0xff]  ;;  %v4031_v35 = vld [vmem:[#allocation24_spill] sm:$0xff] }
 0x167   :  { %1611 = vmatmul.msk.f32.gmra.mxu1 %vm820_vm8, %v2876_v8  ;;  %1152 = vmatpush.msrb.mxu3 %v4002_v6  ;;  %v3440_v10 = vpop.permute.xlu1 %2096  ;;  %v2117_v2 = vpop.permute.xlu2 %2116 }
 0x168   :  { %1104 = vmatpush.msra.mxu0 %v2133_v47  ;;  %1200 = vmatpush.msra.mxu1 %v4003_v38  ;;  %v2098_v15 = vunpack.i.l.bf16 %v3440_v10  ;;  %v3464_v7 = vpop.permute.xlu0 %2091  ;;  %v2099_v37 = vunpack.i.h.bf16 %v3440_v10  ;;  %v604_v47 = vsel %vm583_vm5, %v2044_v4, %v2083_v25  ;;  %v4021_v38 = vld [vmem:[#allocation3_spill] sm:$0xff]  ;;  %v2118_v10 = vunpack.i.l.bf16 %v2117_v2  ;;  %v2137_v4 = vld [vmem:[%s3818_s0 + $0x98] sm:$0xff]  ;;  %v4037_v25 = vld [vmem:[#allocation6_spill] sm:$0xff] }
 0x169   :  { %1252 = vmatpush.msrb.mxu2 %v4004_v11  ;;  %1153 = vmatpush.msrb.mxu3 %v4005_v1  ;;  %v2093_v60 = vunpack.i.l.bf16 %v3464_v7  ;;  %v2094_v3 = vunpack.i.h.bf16 %v3464_v7  ;;  %v2104_v11 = vunpack.i.h.bf16 %v3469_v28  ;;  %v2119_v17 = vunpack.i.h.bf16 %v2117_v2  ;;  %v4024_v7 = vld [vmem:[#allocation51_spill] sm:$0xff]  ;;  %v4025_v28 = vld [vmem:[#allocation44_spill] sm:$0xff] }
 0x16a   :  { %1008 = vmatmul.f32.gmra.mxu3 %v3174_v18  ;;  %1609 = vmatmul.msk.f32.gmra.mxu0 %vm820_vm8, %v2911_v44  ;;  %v777_v42 = vsel %vm769_vm6, %v2059_v32, %v2098_v15  ;;  %v2135_v32 = vld [vmem:[%s3818_s0 + $0x90] sm:$0xff]  ;;  %v778_v45 = vsel %vm769_vm6, %v2098_v15, %v2099_v37 }
 0x16b   :  { %1060 = vmatmul.f32.gmra.mxu2 %v3174_v18  ;;  %1105 = vmatpush.msra.mxu0 %v2134_v55  ;;  %v593_v41 = vsel %vm583_vm5, %v2054_v23, %v2093_v60  ;;  %v511_v23 = vsel %vm490_vm7, %v2064_v22, %v2103_v33  ;;  %v2139_v22 = vld [vmem:[%s3818_s0 + $0xa0] sm:$0xff] }
 0x16c   :  { %1201 = vmatpush.msra.mxu1 %v4006_v61  ;;  %1253 = vmatpush.msrb.mxu2 %v4007_v43  ;;  %v594_v61 = vsel %vm583_vm5, %v2093_v60, %v2094_v3  ;;  %v779_v43 = vsel %vm769_vm6, %v2099_v37, %v2118_v10  ;;  %v4029_v37 = vld [vmem:[#allocation31_spill] sm:$0xff] }
 0x16d   :  { %1154 = vmatpush.msrb.mxu3 %v4008_v20  ;;  %1234 = vmatpush.msrb.mxu0 %v788_v14  ;;  %v512_v20 = vsel %vm490_vm7, %v2103_v33, %v2104_v11 }
 0x16e   :  { %1202 = vmatpush.msra.mxu1 %v4009_v54  ;;  %1254 = vmatpush.msrb.mxu2 %v4010_v48 }
 0x16f   :  { %1155 = vmatpush.msrb.mxu3 %v4011_v49  ;;  %1612 = vmatmul.msk.f32.gmra.mxu1 %vm820_vm8, %v2911_v44  ;;  %v2112_v21 = vpop.permute.xlu1 %2111  ;;  %v780_v49 = vsel %vm769_vm6, %v2118_v10, %v2119_v17 }
 0x170   :  { %1203 = vmatpush.msra.mxu1 %v4012_v0  ;;  %1255 = vmatpush.msrb.mxu2 %v4013_v58  ;;  %v2113_v46 = vunpack.i.l.bf16 %v2112_v21  ;;  %v2107_v6 = vpop.permute.xlu0 %2106  ;;  %v2114_v14 = vunpack.i.h.bf16 %v2112_v21  ;;  %v4026_v0 = vld [vmem:[#allocation45_spill] sm:$0xff]  ;;  %v4027_v58 = vld [vmem:[#allocation38_spill] sm:$0xff]  ;;  %v2145_v21 = vld [vmem:[%s3819_s1 + $0x8] sm:$0xff] }
 0x171   :  { %1156 = vmatpush.msrb.mxu3 %v2135_v32  ;;  %1235 = vmatpush.msrb.mxu0 %v777_v42  ;;  %v2108_v1 = vunpack.i.l.bf16 %v2107_v6  ;;  %v2109_v55 = vunpack.i.h.bf16 %v2107_v6  ;;  %v4022_v42 = vld [vmem:[#allocation56_spill] sm:$0xff]  ;;  %v4030_v32 = vld [vmem:[#allocation33_spill] sm:$0xff] }
 0x172   :  { %1204 = vmatpush.msra.mxu1 %v4014_v52  ;;  %1256 = vmatpush.msrb.mxu2 %v4015_v24  ;;  %v790_v15 = vsel %vm769_vm6, %v2089_v31, %v2113_v46  ;;  %v791_v5 = vsel %vm769_vm6, %v2113_v46, %v2114_v14  ;;  %v4023_v31 = vld [vmem:[#allocation50_spill] sm:$0xff]  ;;  %v4033_v24 = vld [vmem:[#allocation17_spill] sm:$0xff] }
 0x173   :  { %1157 = vmatpush.msrb.mxu3 %v2136_v62  ;;  %1106 = vmatmul.f32.vlgmr.msra.gmra.mxu0 %v3021_v56  ;;  %v500_v54 = vsel %vm490_vm7, %v2069_v34, %v2108_v1  ;;  %v501_v48 = vsel %vm490_vm7, %v2108_v1, %v2109_v55  ;;  %v2140_v34 = vld [vmem:[%s3818_s0 + $0x40] sm:$0xff]  ;;  %v4035_v62 = vld [vmem:[#allocation4_spill] sm:$0xff]  ;;  %v2146_v6 = vld [vmem:[%s3819_s1 + $0x18] sm:$0xff] }
 0x174   :  { %1158 = vmatmul.f32.vlgmr.msrb.gmra.mxu3 %v3021_v56  ;;  %1616 = vmatmul.msk.f32.vlgmr.msra.gmra.mxu2 %vm820_vm8, %v2855_v40  ;;  %v4032_v52 = vld [vmem:[#allocation26_spill] sm:$0xff] }
 0x175   :  { %1205 = vmatpush.msra.mxu1 %v4016_v59  ;;  %1257 = vmatpush.msrb.mxu2 %v4017_v19  ;;  %v2142_v59 = vld [vmem:[%s3818_s0 + $0x48] sm:$0xff]  ;;  %v2144_v19 = vld [vmem:[%s3818_s0 + $0x50] sm:$0xff] }
 0x176   :  { %1286 = vmatpush.msra.mxu3 %v789_v63  ;;  %1298 = vmatpush.msra.mxu0 %v697_v36  ;;  %v4036_v63 = vld [vmem:[#allocation12_spill] sm:$0xff] }
 0x177   :  { %1206 = vmatpush.msra.mxu1 %v4018_v26  ;;  %1258 = vmatpush.msrb.mxu2 %v4019_v53 }
 0x178   :  { %1287 = vmatpush.msra.mxu3 %v778_v45  ;;  %1299 = vmatpush.msra.mxu0 %v686_v30  ;;  %v3620_v30 = vld [vmem:[%s3822_s4] sm:$0xff] }
 0x179   :  { %1207 = vmatpush.msra.mxu1 %v4020_v50  ;;  %1259 = vmatpush.msrb.mxu2 %v4021_v38  ;;  %v1506_v38 = vperm.slane %v3620_v30, 0 }
 0x17a   :  { %1350 = vmatpush.msrb.mxu3 %v698_v9  ;;  %1300 = vmatpush.msra.mxu0 %v604_v47 }
 0x17b   :  { %1613 = vmatmul.msk.f32.vlgmr.msrb.gmra.mxu1 %vm820_vm8, %v2855_v40  ;;  %1109 = vmatmul.f32.gmra.mxu0 %v3116_v13 }
 0x17c   :  { %1351 = vmatpush.msrb.mxu3 %v687_v12  ;;  %1208 = vmatpush.msra.mxu1 %v2137_v4  ;;  %v1507_v12 = vperm.slane %v3620_v30, 1 }
 0x17d   :  { %1301 = vmatpush.msra.mxu0 %v593_v41  ;;  %1617 = vmatmul.msk.f32.gmra.mxu2 %vm820_vm8, %v2876_v8 }
 0x17e   :  { %1352 = vmatpush.msrb.mxu3 %v605_v27  ;;  %1209 = vmatpush.msra.mxu1 %v2138_v29 }
 0x17f   :  { %1161 = vmatmul.f32.gmra.mxu3 %v3116_v13  ;;  %1302 = vmatpush.msra.mxu0 %v511_v23 }
 0x180   :  { %1338 = vmatpush.msrb.mxu1 %v790_v15  ;;  %1353 = vmatpush.msrb.mxu3 %v594_v61 }
 0x181   :  { %1303 = vmatpush.msra.mxu0 %v500_v54  ;;  %1260 = vmatpush.msrb.mxu2 %v2139_v22 }
 0x182   :  { %1339 = vmatpush.msrb.mxu1 %v779_v43  ;;  %1354 = vmatpush.msrb.mxu3 %v512_v20 }
 0x183   :  { %1304 = vmatpush.msra.mxu0 %v4022_v42  ;;  %1614 = vmatmul.msk.f32.gmra.mxu1 %vm820_vm8, %v2876_v8 }
 0x184   :  { %1355 = vmatpush.msrb.mxu3 %v501_v48  ;;  %1261 = vmatpush.msrb.mxu2 %v2140_v34 }
 0x185   :  { %1305 = vmatpush.msra.mxu0 %v4023_v31  ;;  %1618 = vmatmul.msk.f32.gmra.mxu2 %vm820_vm8, %v2911_v44 }
 0x186   :  { %1356 = vmatpush.msrb.mxu3 %v4024_v7  ;;  %1390 = vmatpush.msra.mxu2 %v791_v5  ;;  %v1508_v7 = vperm.slane %v3620_v30, 2 }
 0x187   :  { %1164 = vmatmul.f32.gmra.mxu3 %v3174_v18  ;;  %1306 = vmatpush.msra.mxu0 %v4025_v28 }
 0x188   :  { %1357 = vmatpush.msrb.mxu3 %v4026_v0  ;;  %1112 = vmatmul.f32.gmra.mxu0 %v3174_v18 }
 0x189   :  { %1307 = vmatpush.msra.mxu0 %v4027_v58  ;;  %1391 = vmatpush.msra.mxu2 %v780_v49  ;;  %v3608_v51 = vpop.permute.xlu1 %1412 }
 0x18a   :  { %1358 = vmatpush.msrb.mxu3 %v4028_v57 }
 0x18b   :  { %1308 = vmatpush.msra.mxu0 %v4029_v37  ;;  %1615 = vmatmul.msk.f32.gmra.mxu1 %vm820_vm8, %v2911_v44 }
 0x18c   :  { %1359 = vmatpush.msrb.mxu3 %v4030_v32 }
 0x18d   :  { %1309 = vmatpush.msra.mxu0 %v4031_v35  ;;  %1262 = vmatmul.f32.vlgmr.msrb.gmra.mxu2 %v3021_v56 }
 0x18e   :  { %1360 = vmatpush.msrb.mxu3 %v4032_v52 }
 0x18f   :  { %1622 = vmatmul.msk.f32.vlgmr.msra.gmra.mxu3 %vm820_vm8, %v2855_v40  ;;  %1310 = vmatpush.msra.mxu0 %v4033_v24  ;;  %v925_v45 = vpop.f32.mrf.mxu3 }
 0x190   :  { %1361 = vmatpush.msrb.mxu3 %v4034_v16  ;;  %1619 = vmatmul.msk.f32.vlgmr.msrb.gmra.mxu0 %vm820_vm8, %v2855_v40  ;;  %v2143_v40 = vld [vmem:[%s3818_s0 + $0xb0] sm:$0xff] }
 0x191   :  { %1311 = vmatpush.msra.mxu0 %v4035_v62 }
 0x192   :  { %1362 = vmatpush.msrb.mxu3 %v4036_v63 }
 0x193   :  { %1210 = vmatmul.f32.vlgmr.msra.gmra.mxu1 %v3021_v56  ;;  %1312 = vmatpush.msra.mxu0 %v2141_v39  ;;  %v3615_v60 = vpop.permute.xlu0 %1407 }
 0x194   :  { %1363 = vmatpush.msrb.mxu3 %v4037_v25 }
 0x195   :  { %1265 = vmatmul.f32.gmra.mxu2 %v3116_v13  ;;  %1313 = vmatpush.msra.mxu0 %v2142_v59  ;;  %v3626_v46 = vpop.permute.xlu1 %1458 }
 0x196   :  { %1364 = vmatpush.msrb.mxu3 %v2143_v40 }
 0x197   :  { %1623 = vmatmul.msk.f32.gmra.mxu3 %vm820_vm8, %v2876_v8  ;;  %v928_v53 = vpop.f32.mrf.mxu3 }
 0x198   :  { %1620 = vmatmul.msk.f32.gmra.mxu0 %vm820_vm8, %v2876_v8  ;;  %1365 = vmatpush.msrb.mxu3 %v2144_v19 }
 0x19b   :  { %1213 = vmatmul.f32.gmra.mxu1 %v3116_v13 }
 0x19c   :  { %v873_v36 = vpop.f32.mrf.mxu1 }
 0x19d   :  { %1268 = vmatmul.f32.gmra.mxu2 %v3174_v18 }
 0x19f   :  { %1624 = vmatmul.msk.f32.gmra.mxu3 %vm820_vm8, %v2911_v44 }
 0x1a0   :  { %1621 = vmatmul.msk.f32.gmra.mxu0 %vm820_vm8, %v2911_v44  ;;  %v931_v41 = vpop.f32.mrf.mxu3 }
 0x1a3   :  { %1216 = vmatmul.f32.gmra.mxu1 %v3174_v18 }
 0x1a4   :  { %v876_v9 = vpop.f32.mrf.mxu1 }
 0x1a5   :  { %1628 = vmatmul.msk.f32.vlgmr.msra.gmra.mxu2 %vm820_vm8, %v2145_v21 }
 0x1a7   :  { %1366 = vmatmul.f32.vlgmr.msrb.gmra.mxu3 %v3021_v56 }
 0x1a8   :  { %1314 = vmatmul.f32.vlgmr.msra.gmra.mxu0 %v3021_v56  ;;  %v3624_v56 = vpop.permute.xlu2 %1417 }
 0x1ab   :  { %1625 = vmatmul.msk.f32.vlgmr.msrb.gmra.mxu1 %vm820_vm8, %v2145_v21 }
 0x1ac   :  { %v3659_v22 = vpop.permute.xlu0 %1468 }
 0x1ad   :  { %1629 = vmatmul.msk.f32.gmra.mxu2 %vm820_vm8, %v2876_v8 }
 0x1ae   :  { %v899_v26 = vpop.f32.mrf.mxu2 }
 0x1af   :  { %1369 = vmatmul.f32.gmra.mxu3 %v3116_v13  ;;  %v926_v2 = vadd.f32 %v925_v45, %v899_v26 }
 0x1b0   :  { %1317 = vmatmul.f32.gmra.mxu0 %v3116_v13  ;;  %v3645_v15 = vpop.permute.xlu2 %1463 }
 0x1b1   :  { %v1421_v8 = vmul.f32 %v3615_v60, %v926_v2 }
 0x1b3   :  { %v847_v3 = vpop.f32.mrf.mxu0  ;;  %1626 = vmatmul.msk.f32.gmra.mxu1 %vm820_vm8, %v2146_v6  ;;  %v1472_v47 = vadd.f32 %v3626_v46, %v1421_v8  ;;  %v1510_v8 = vperm.slane %v3620_v30, 4 }
 0x1b4   :  { %v874_v50 = vadd.f32 %v873_v36, %v847_v3 }
 0x1b5   :  { %v879_v33 = vpop.f32.mrf.mxu1  ;;  %1630 = vmatmul.msk.f32.gmra.mxu2 %vm820_vm8, %v2911_v44  ;;  %v1529_v27 = vmul.f32 %v1507_v12, %v1472_v47 }
 0x1b6   :  { %v1420_v13 = vmul.f32 %v3615_v60, %v874_v50 }
 0x1b7   :  { %1372 = vmatmul.f32.gmra.mxu3 %v3174_v18  ;;  %1562 = vst [vmem:[%s3823_s5 + $0x8] sm:$0xff] %v1529_v27  ;;  %v902_v11 = vpop.f32.mrf.mxu2 }
 0x1b8   :  { %v1471_v10 = vadd.f32 %v3626_v46, %v1420_v13  ;;  %1320 = vmatmul.f32.gmra.mxu0 %v3174_v18  ;;  %v929_v1 = vadd.f32 %v928_v53, %v902_v11 }
 0x1ba   :  { %v1528_v4 = vmul.f32 %v1506_v38, %v1471_v10  ;;  %v1432_v55 = vmul.f32 %v3608_v51, %v929_v1 }
 0x1bb   :  { %1627 = vmatmul.msk.f32.gmra.mxu1 %vm820_vm8, %v2911_v44  ;;  %v850_v61 = vpop.f32.mrf.mxu0 }
 0x1bc   :  { %1561 = vst [vmem:[%s3823_s5] sm:$0xff] %v1528_v4  ;;  %v877_v29 = vadd.f32 %v876_v9, %v850_v61  ;;  %v1483_v23 = vadd.f32 %v3645_v15, %v1432_v55 }
 0x1bd   :  { %v951_v43 = vpop.f32.mrf.mxu1 }
 0x1be   :  { %v1431_v18 = vmul.f32 %v3608_v51, %v877_v29  ;;  %v1540_v14 = vmul.f32 %v1507_v12, %v1483_v23 }
 0x1bf   :  { %v977_v44 = vpop.f32.mrf.mxu3 }
 0x1c0   :  { %v1482_v20 = vadd.f32 %v3645_v15, %v1431_v18  ;;  %1573 = vst [vmem:[%s3823_s5 + $0x60] sm:$0xff] %v1540_v14  ;;  %v978_v5 = vadd.f32 %v977_v44, %v951_v43 }
 0x1c1   :  { %v905_v54 = vpop.f32.mrf.mxu2 }
 0x1c2   :  { %v932_v48 = vadd.f32 %v931_v41, %v905_v54  ;;  %v1539_v17 = vmul.f32 %v1506_v38, %v1482_v20  ;;  %v1422_v31 = vmul.f32 %v3615_v60, %v978_v5 }
 0x1c3   :  { %v853_v34 = vpop.f32.mrf.mxu0 }
 0x1c4   :  { %v1443_v42 = vmul.f32 %v3624_v56, %v932_v48  ;;  %1572 = vst [vmem:[%s3823_s5 + $0x58] sm:$0xff] %v1539_v17  ;;  %v880_v49 = vadd.f32 %v879_v33, %v853_v34  ;;  %v1473_v58 = vadd.f32 %v3626_v46, %v1422_v31  ;;  %v1509_v33 = vperm.slane %v3620_v30, 3 }
 0x1c5   :  { %v954_v0 = vpop.f32.mrf.mxu1 }
 0x1c6   :  { %v1494_v28 = vadd.f32 %v3659_v22, %v1443_v42  ;;  %v1442_v57 = vmul.f32 %v3624_v56, %v880_v49  ;;  %v1530_v32 = vmul.f32 %v1508_v7, %v1473_v58 }
 0x1c8   :  { %v1551_v37 = vmul.f32 %v1507_v12, %v1494_v28  ;;  %v1493_v35 = vadd.f32 %v3659_v22, %v1442_v57  ;;  %v980_v52 = vpop.f32.mrf.mxu3  ;;  %1563 = vst [vmem:[%s3823_s5 + $0x10] sm:$0xff] %v1530_v32 }
 0x1c9   :  { %v981_v16 = vadd.f32 %v980_v52, %v954_v0  ;;  %v1512_v52 = vperm.slane %v3620_v30, 6 }
 0x1ca   :  { %1584 = vst [vmem:[%s3823_s5 + $0xb8] sm:$0xff] %v1551_v37  ;;  %v1550_v24 = vmul.f32 %v1506_v38, %v1493_v35 }
 0x1cb   :  { %v1433_v62 = vmul.f32 %v3608_v51, %v981_v16  ;;  %v1029_v45 = vpop.f32.mrf.mxu0  ;;  %v1511_v16 = vperm.slane %v3620_v30, 5 }
 0x1cc   :  { %1583 = vst [vmem:[%s3823_s5 + $0xb0] sm:$0xff] %v1550_v24 }
 0x1cd   :  { %v957_v63 = vpop.f32.mrf.mxu1  ;;  %v1484_v39 = vadd.f32 %v3645_v15, %v1433_v62 }
 0x1cf   :  { %v1541_v25 = vmul.f32 %v1508_v7, %v1484_v39  ;;  %v1055_v19 = vpop.f32.mrf.mxu2 }
 0x1d0   :  { %v983_v59 = vpop.f32.mrf.mxu3 }
 0x1d1   :  { %1574 = vst [vmem:[%s3823_s5 + $0x68] sm:$0xff] %v1541_v25  ;;  %v984_v40 = vadd.f32 %v983_v59, %v957_v63 }
 0x1d3   :  { %v1444_v36 = vmul.f32 %v3624_v56, %v984_v40 }
 0x1d5   :  { %v1495_v9 = vadd.f32 %v3659_v22, %v1444_v36 }
 0x1d6   :  { %v1081_v21 = vpop.f32.mrf.mxu1 }
 0x1d7   :  { %v1082_v26 = vadd.f32 %v1081_v21, %v1055_v19  ;;  %v1552_v53 = vmul.f32 %v1508_v7, %v1495_v9 }
 0x1d9   :  { %v1424_v2 = vmul.f32 %v3615_v60, %v1082_v26  ;;  %1585 = vst [vmem:[%s3823_s5 + $0xc0] sm:$0xff] %v1552_v53 }
 0x1da   :  { %v1003_v12 = vpop.f32.mrf.mxu3 }
 0x1db   :  { %v1475_v3 = vadd.f32 %v3626_v46, %v1424_v2  ;;  %v1030_v6 = vadd.f32 %v1029_v45, %v1003_v12 }
 0x1dd   :  { %v1532_v50 = vmul.f32 %v1510_v8, %v1475_v3  ;;  %v1423_v47 = vmul.f32 %v3615_v60, %v1030_v6  ;;  %v1032_v13 = vpop.f32.mrf.mxu0 }
 0x1df   :  { %1565 = vst [vmem:[%s3823_s5 + $0x20] sm:$0xff] %v1532_v50  ;;  %v1474_v38 = vadd.f32 %v3626_v46, %v1423_v47 }
 0x1e1   :  { %v1531_v27 = vmul.f32 %v1509_v33, %v1474_v38 }
 0x1e2   :  { %v1006_v10 = vpop.f32.mrf.mxu3 }
 0x1e3   :  { %1564 = vst [vmem:[%s3823_s5 + $0x18] sm:$0xff] %v1531_v27  ;;  %v1033_v41 = vadd.f32 %v1032_v13, %v1006_v10 }
 0x1e4   :  { %v1084_v11 = vpop.f32.mrf.mxu1  ;;  %v1058_v1 = vpop.f32.mrf.mxu2 }
 0x1e5   :  { %v1085_v4 = vadd.f32 %v1084_v11, %v1058_v1  ;;  %v1434_v55 = vmul.f32 %v3608_v51, %v1033_v41 }
 0x1e7   :  { %v1435_v61 = vmul.f32 %v3608_v51, %v1085_v4  ;;  %v1485_v29 = vadd.f32 %v3645_v15, %v1434_v55  ;;  %v1035_v18 = vpop.f32.mrf.mxu0 }
 0x1e9   :  { %v1486_v23 = vadd.f32 %v3645_v15, %v1435_v61  ;;  %v1542_v43 = vmul.f32 %v1509_v33, %v1485_v29 }
 0x1eb   :  { %v1543_v14 = vmul.f32 %v1510_v8, %v1486_v23  ;;  %1575 = vst [vmem:[%s3823_s5 + $0x70] sm:$0xff] %v1542_v43  ;;  %v21_v23 = vld [vmem:[%s3822_s4 + $0x8] sm:$0x7] }
 0x1ec   :  { %v1087_v54 = vpop.f32.mrf.mxu1 }
 0x1ed   :  { %1576 = vst [vmem:[%s3823_s5 + $0x78] sm:$0xff] %v1543_v14  ;;  %v1009_v20 = vpop.f32.mrf.mxu3  ;;  %v1513_v14 = vperm.slane %v3620_v30, 7 }
 0x1ee   :  { %v1036_v48 = vadd.f32 %v1035_v18, %v1009_v20  ;;  %v1061_v44 = vpop.f32.mrf.mxu2 }
 0x1ef   :  { %v1088_v17 = vadd.f32 %v1087_v54, %v1061_v44  ;;  %v1514_v44 = vperm.slane %v21_v23, 0 }
 0x1f0   :  { %v1445_v42 = vmul.f32 %v3624_v56, %v1036_v48  ;;  %v1107_v7 = vpop.f32.mrf.mxu0 }
 0x1f1   :  { %v1446_v5 = vmul.f32 %v3624_v56, %v1088_v17 }
 0x1f2   :  { %v1496_v34 = vadd.f32 %v3659_v22, %v1445_v42 }
 0x1f3   :  { %v1497_v31 = vadd.f32 %v3659_v22, %v1446_v5 }
 0x1f4   :  { %v1553_v49 = vmul.f32 %v1509_v33, %v1496_v34 }
 0x1f5   :  { %v1554_v28 = vmul.f32 %v1510_v8, %v1497_v31 }
 0x1f6   :  { %1586 = vst [vmem:[%s3823_s5 + $0xc8] sm:$0xff] %v1553_v49 }
 0x1f7   :  { %1587 = vst [vmem:[%s3823_s5 + $0xd0] sm:$0xff] %v1554_v28  ;;  %v1159_v0 = vpop.f32.mrf.mxu3  ;;  %v1185_v58 = vpop.f32.mrf.mxu2 }
 0x1f8   :  { %v1133_v57 = vpop.f32.mrf.mxu1  ;;  %v1186_v37 = vadd.f32 %v1185_v58, %v1159_v0  ;;  %v1110_v39 = vpop.f32.mrf.mxu0 }
 0x1f9   :  { %v1134_v32 = vadd.f32 %v1133_v57, %v1107_v7 }
 0x1fa   :  { %v1426_v35 = vmul.f32 %v3615_v60, %v1186_v37 }
 0x1fb   :  { %v1425_v24 = vmul.f32 %v3615_v60, %v1134_v32 }
 0x1fc   :  { %v1477_v62 = vadd.f32 %v3626_v46, %v1426_v35 }
 0x1fd   :  { %v1476_v63 = vadd.f32 %v3626_v46, %v1425_v24 }
 0x1fe   :  { %v1534_v25 = vmul.f32 %v1512_v52, %v1477_v62 }
 0x1ff   :  { %v1533_v59 = vmul.f32 %v1511_v16, %v1476_v63 }
 0x200   :  { %1567 = vst [vmem:[%s3823_s5 + $0x30] sm:$0xff] %v1534_v25  ;;  %v1136_v40 = vpop.f32.mrf.mxu1  ;;  %v1188_v19 = vpop.f32.mrf.mxu2 }
 0x201   :  { %1566 = vst [vmem:[%s3823_s5 + $0x28] sm:$0xff] %v1533_v59  ;;  %v1137_v36 = vadd.f32 %v1136_v40, %v1110_v39 }
 0x202   :  { %v1162_v45 = vpop.f32.mrf.mxu3 }
 0x203   :  { %v1189_v21 = vadd.f32 %v1188_v19, %v1162_v45  ;;  %v1436_v9 = vmul.f32 %v3608_v51, %v1137_v36 }
 0x205   :  { %v1437_v26 = vmul.f32 %v3608_v51, %v1189_v21  ;;  %v1487_v53 = vadd.f32 %v3645_v15, %v1436_v9  ;;  %v1113_v2 = vpop.f32.mrf.mxu0 }
 0x207   :  { %v1488_v8 = vadd.f32 %v3645_v15, %v1437_v26  ;;  %v1544_v12 = vmul.f32 %v1511_v16, %v1487_v53 }
 0x208   :  { %v1139_v6 = vpop.f32.mrf.mxu1  ;;  %v1191_v50 = vpop.f32.mrf.mxu2 }
 0x209   :  { %v1545_v3 = vmul.f32 %v1512_v52, %v1488_v8  ;;  %1577 = vst [vmem:[%s3823_s5 + $0x80] sm:$0xff] %v1544_v12  ;;  %v1140_v47 = vadd.f32 %v1139_v6, %v1113_v2  ;;  %v1515_v12 = vperm.slane %v21_v23, 1 }
 0x20a   :  { %v1165_v33 = vpop.f32.mrf.mxu3 }
 0x20b   :  { %1578 = vst [vmem:[%s3823_s5 + $0x88] sm:$0xff] %v1545_v3  ;;  %v1447_v13 = vmul.f32 %v3624_v56, %v1140_v47  ;;  %v1192_v38 = vadd.f32 %v1191_v50, %v1165_v33  ;;  %v1516_v47 = vperm.slane %v21_v23, 2 }
 0x20d   :  { %v1498_v27 = vadd.f32 %v3659_v22, %v1447_v13  ;;  %v1448_v10 = vmul.f32 %v3624_v56, %v1192_v38  ;;  %v1237_v11 = vpop.f32.mrf.mxu0 }
 0x20f   :  { %v1555_v41 = vmul.f32 %v1511_v16, %v1498_v27  ;;  %v1499_v1 = vadd.f32 %v3659_v22, %v1448_v10 }
 0x210   :  { %v1211_v4 = vpop.f32.mrf.mxu1  ;;  %v1263_v55 = vpop.f32.mrf.mxu2 }
 0x211   :  { %1588 = vst [vmem:[%s3823_s5 + $0xd8] sm:$0xff] %v1555_v41  ;;  %v1556_v61 = vmul.f32 %v1512_v52, %v1499_v1  ;;  %v1238_v29 = vadd.f32 %v1237_v11, %v1211_v4 }
 0x212   :  { %v1289_v18 = vpop.f32.mrf.mxu3 }
 0x213   :  { %1589 = vst [vmem:[%s3823_s5 + $0xe0] sm:$0xff] %v1556_v61  ;;  %v1427_v43 = vmul.f32 %v3615_v60, %v1238_v29  ;;  %v1290_v20 = vadd.f32 %v1289_v18, %v1263_v55 }
 0x215   :  { %v1478_v54 = vadd.f32 %v3626_v46, %v1427_v43  ;;  %v1428_v48 = vmul.f32 %v3615_v60, %v1290_v20  ;;  %v1240_v17 = vpop.f32.mrf.mxu0 }
 0x217   :  { %v1535_v42 = vmul.f32 %v1513_v14, %v1478_v54  ;;  %v1479_v5 = vadd.f32 %v3626_v46, %v1428_v48 }
 0x218   :  { %v1214_v34 = vpop.f32.mrf.mxu1  ;;  %v1266_v31 = vpop.f32.mrf.mxu2 }
 0x219   :  { %1568 = vst [vmem:[%s3823_s5 + $0x38] sm:$0xff] %v1535_v42  ;;  %v1536_v7 = vmul.f32 %v1514_v44, %v1479_v5  ;;  %v1241_v49 = vadd.f32 %v1240_v17, %v1214_v34 }
 0x21a   :  { %v1292_v28 = vpop.f32.mrf.mxu3 }
 0x21b   :  { %1569 = vst [vmem:[%s3823_s5 + $0x40] sm:$0xff] %v1536_v7  ;;  %v1438_v30 = vmul.f32 %v3608_v51, %v1241_v49  ;;  %v1293_v0 = vadd.f32 %v1292_v28, %v1266_v31 }
 0x21d   :  { %v1489_v58 = vadd.f32 %v3645_v15, %v1438_v30  ;;  %v1439_v57 = vmul.f32 %v3608_v51, %v1293_v0  ;;  %v1243_v37 = vpop.f32.mrf.mxu0 }
 0x21f   :  { %v1546_v32 = vmul.f32 %v1513_v14, %v1489_v58  ;;  %v1490_v35 = vadd.f32 %v3645_v15, %v1439_v57 }
 0x220   :  { %v1217_v52 = vpop.f32.mrf.mxu1  ;;  %v1269_v24 = vpop.f32.mrf.mxu2 }
 0x221   :  { %1579 = vst [vmem:[%s3823_s5 + $0x90] sm:$0xff] %v1546_v32  ;;  %v1547_v16 = vmul.f32 %v1514_v44, %v1490_v35  ;;  %v1244_v62 = vadd.f32 %v1243_v37, %v1217_v52 }
 0x222   :  { %v1295_v63 = vpop.f32.mrf.mxu3 }
 0x223   :  { %1580 = vst [vmem:[%s3823_s5 + $0x98] sm:$0xff] %v1547_v16  ;;  %v1449_v39 = vmul.f32 %v3624_v56, %v1244_v62  ;;  %v1296_v25 = vadd.f32 %v1295_v63, %v1269_v24 }
 0x225   :  { %v1500_v59 = vadd.f32 %v3659_v22, %v1449_v39  ;;  %v1450_v40 = vmul.f32 %v3624_v56, %v1296_v25  ;;  %v1315_v19 = vpop.f32.mrf.mxu0 }
 0x227   :  { %v1557_v36 = vmul.f32 %v1513_v14, %v1500_v59  ;;  %v1501_v45 = vadd.f32 %v3659_v22, %v1450_v40 }
 0x228   :  { %v1341_v21 = vpop.f32.mrf.mxu1  ;;  %v1393_v9 = vpop.f32.mrf.mxu2 }
 0x229   :  { %1590 = vst [vmem:[%s3823_s5 + $0xe8] sm:$0xff] %v1557_v36  ;;  %v1558_v26 = vmul.f32 %v1514_v44, %v1501_v45  ;;  %v1342_v53 = vadd.f32 %v1341_v21, %v1315_v19 }
 0x22a   :  { %v1367_v2 = vpop.f32.mrf.mxu3 }
 0x22b   :  { %1591 = vst [vmem:[%s3823_s5 + $0xf0] sm:$0xff] %v1558_v26  ;;  %v1429_v8 = vmul.f32 %v3615_v60, %v1342_v53  ;;  %v1394_v3 = vadd.f32 %v1393_v9, %v1367_v2 }
 0x22d   :  { %v1480_v6 = vadd.f32 %v3626_v46, %v1429_v8  ;;  %v1430_v50 = vmul.f32 %v3615_v60, %v1394_v3  ;;  %v1318_v33 = vpop.f32.mrf.mxu0 }
 0x22f   :  { %v1537_v13 = vmul.f32 %v1515_v12, %v1480_v6  ;;  %v1481_v38 = vadd.f32 %v3626_v46, %v1430_v50 }
 0x230   :  { %v1344_v27 = vpop.f32.mrf.mxu1  ;;  %v1396_v10 = vpop.f32.mrf.mxu2 }
 0x231   :  { %1570 = vst [vmem:[%s3823_s5 + $0x48] sm:$0xff] %v1537_v13  ;;  %v1538_v11 = vmul.f32 %v1516_v47, %v1481_v38  ;;  %v1345_v41 = vadd.f32 %v1344_v27, %v1318_v33 }
 0x232   :  { %v1370_v1 = vpop.f32.mrf.mxu3 }
 0x233   :  { %1571 = vst [vmem:[%s3823_s5 + $0x50] sm:$0xff] %v1538_v11  ;;  %v1440_v60 = vmul.f32 %v3608_v51, %v1345_v41  ;;  %v1397_v4 = vadd.f32 %v1396_v10, %v1370_v1 }
 0x235   :  { %v1491_v55 = vadd.f32 %v3645_v15, %v1440_v60  ;;  %v1441_v46 = vmul.f32 %v3608_v51, %v1397_v4  ;;  %v1321_v61 = vpop.f32.mrf.mxu0 }
 0x237   :  { %v1548_v29 = vmul.f32 %v1515_v12, %v1491_v55  ;;  %v1492_v23 = vadd.f32 %v3645_v15, %v1441_v46 }
 0x238   :  { %v1347_v18 = vpop.f32.mrf.mxu1  ;;  %v1399_v43 = vpop.f32.mrf.mxu2 }
 0x239   :  { %1581 = vst [vmem:[%s3823_s5 + $0xa0] sm:$0xff] %v1548_v29  ;;  %v1549_v14 = vmul.f32 %v1516_v47, %v1492_v23  ;;  %v1348_v20 = vadd.f32 %v1347_v18, %v1321_v61 }
 0x23a   :  { %v1373_v54 = vpop.f32.mrf.mxu3 }
 0x23b   :  { %1582 = vst [vmem:[%s3823_s5 + $0xa8] sm:$0xff] %v1549_v14  ;;  %v1451_v48 = vmul.f32 %v3624_v56, %v1348_v20  ;;  %v1400_v51 = vadd.f32 %v1399_v43, %v1373_v54 }
 0x23d   :  { %v1502_v44 = vadd.f32 %v3659_v22, %v1451_v48  ;;  %v1452_v15 = vmul.f32 %v3624_v56, %v1400_v51 }
 0x23f   :  { %v1559_v17 = vmul.f32 %v1515_v12, %v1502_v44  ;;  %v1503_v42 = vadd.f32 %v3659_v22, %v1452_v15 }
 0x241   :  { %1592 = vst [vmem:[%s3823_s5 + $0xf8] sm:$0xff] %v1559_v17  ;;  %v1560_v5 = vmul.f32 %v1516_v47, %v1503_v42 }
 0x243   :  { %1593 = vst [vmem:[%s3823_s5 + $0x100] sm:$0xff] %v1560_v5 }

</bundles_post_ra>
